<compile_context>
chip_gen: v6e
topology: v6e:2x2x1
jax: 0.10.0
libtpu: 0.0.40
codegen_flags: <defaults>
</compile_context>

<pallas_src>
import jax
import jax.numpy as jnp
from jax.experimental import pallas as pl
from jax.experimental.pallas import tpu as pltpu

D_MODEL = 256
N_HEAD = 8
HEAD_DIM = D_MODEL // N_HEAD
FFN_DIM = 2048          # PyTorch TransformerEncoderLayer default
LN_EPS = 1e-5


def _layer_norm(y, g, b):
    mu = jnp.mean(y, axis=-1, keepdims=True)
    var = jnp.mean((y - mu) ** 2, axis=-1, keepdims=True)
    return (y - mu) * jax.lax.rsqrt(var + LN_EPS) * g + b


# ---------------------------------------------------------------------------
# Fused kernel: full transformer encoder stack (grid over layers) + intensity
# head on the last grid step.  The (2B*T, E) activation persists in VMEM
# scratch; per-layer (bf16) weights are auto double-buffered by the pipeline.
# ---------------------------------------------------------------------------
def fused_encoder_kernel(x_ref, wqkv_ref, bqkv_ref, wo_ref, bo_ref,
                         ln1g_ref, ln1b_ref, w1_ref, b1_ref, w2_ref, b2_ref,
                         ln2g_ref, ln2b_ref, emb_ref, wp_ref, bp_ref,
                         out_ref, act_ref):
    l = pl.program_id(0)
    B2, T, E = x_ref.shape
    BT = B2 * T

    # Load the input activation once, at the first layer.
    @pl.when(l == 0)
    def _():
        act_ref[...] = x_ref[...].reshape(BT, E)

    x2d = act_ref[...]                                    # (BT, E) f32

    # Fused QKV projection: bf16 weights, f32 accumulation on the MXU.
    qkv = jnp.dot(x2d.astype(jnp.bfloat16), wqkv_ref[...],
                  preferred_element_type=jnp.float32) + bqkv_ref[...]

    # Cast each projection to bf16 once (not per head); fold the 1/sqrt(dh)
    # attention scale into q (T*HEAD_DIM elements vs T*T scores).
    scale = 1.0 / (HEAD_DIM ** 0.5)
    q_bf = (qkv[:, :E] * scale).astype(jnp.bfloat16).reshape(B2, T, E)
    k_bf = qkv[:, E:2 * E].astype(jnp.bfloat16).reshape(B2, T, E)
    v_bf = qkv[:, 2 * E:].astype(jnp.bfloat16).reshape(B2, T, E)

    head_outs = []
    for h in range(N_HEAD):                               # static unroll: heads only
        sl = slice(h * HEAD_DIM, (h + 1) * HEAD_DIM)
        s = jnp.einsum('bqd,bkd->bqk', q_bf[:, :, sl], k_bf[:, :, sl],
                       preferred_element_type=jnp.float32)          # (B2, T, T)
        s = s - jnp.max(s, axis=-1, keepdims=True)
        p = jnp.exp(s)
        p = p * pl.reciprocal(jnp.sum(p, axis=-1, keepdims=True), approx=True)
        head_outs.append(jnp.einsum('bqk,bkd->bqd', p.astype(jnp.bfloat16),
                                    v_bf[:, :, sl],
                                    preferred_element_type=jnp.float32))
    attn = jnp.concatenate(head_outs, axis=-1).reshape(BT, E)
    attn = jnp.dot(attn.astype(jnp.bfloat16), wo_ref[...],
                   preferred_element_type=jnp.float32) + bo_ref[...]

    # Residual + LayerNorm1 (post-norm, matches norm_first=False).
    y = _layer_norm(x2d + attn, ln1g_ref[...], ln1b_ref[...])

    # FFN: Linear(E, F) -> ReLU -> Linear(F, E).
    hdn = jnp.dot(y.astype(jnp.bfloat16), w1_ref[...],
                  preferred_element_type=jnp.float32) + b1_ref[...]
    hdn = jnp.maximum(hdn, 0.0)
    ffn = jnp.dot(hdn.astype(jnp.bfloat16), w2_ref[...],
                  preferred_element_type=jnp.float32) + b2_ref[...]

    # Residual + LayerNorm2.
    z = _layer_norm(y + ffn, ln2g_ref[...], ln2b_ref[...])
    act_ref[...] = z

    # Intensity head, fused into the last layer's grid step.
    # mean_t(x + emb) == mean_t(x) + emb, so emb is only (B2, E).
    @pl.when(l == pl.num_programs(0) - 1)
    def _():
        h_mix = jnp.mean(z.reshape(B2, T, E), axis=1) + emb_ref[...]     # (B2, E)
        r = jnp.sum(h_mix * wp_ref[...], axis=-1, keepdims=True) + bp_ref[...]
        out_ref[...] = r                                                  # (B2, 1)


def fused_intensity_forward(params, x, emb):
    """x: (2B, T, E) f32 fused batch; emb: (2B, E) f32. Returns (2B, 1) scores."""
    B2, T, E = x.shape
    L = params["wqkv"].shape[0]
    BT = B2 * T

    def wmap(l):
        return (l, 0, 0)

    def cmap3(l):
        return (0, 0, 0)

    def cmap2(l):
        return (0, 0)

    in_specs = [
        pl.BlockSpec((B2, T, E), cmap3),                 # x (read at l == 0)
        pl.BlockSpec((None, E, 3 * E), wmap),            # wqkv (bf16)
        pl.BlockSpec((None, 1, 3 * E), wmap),            # bqkv
        pl.BlockSpec((None, E, E), wmap),                # wo   (bf16)
        pl.BlockSpec((None, 1, E), wmap),                # bo
        pl.BlockSpec((None, 1, E), wmap),                # ln1_g
        pl.BlockSpec((None, 1, E), wmap),                # ln1_b
        pl.BlockSpec((None, E, FFN_DIM), wmap),          # w1   (bf16)
        pl.BlockSpec((None, 1, FFN_DIM), wmap),          # b1
        pl.BlockSpec((None, FFN_DIM, E), wmap),          # w2   (bf16)
        pl.BlockSpec((None, 1, E), wmap),                # b2
        pl.BlockSpec((None, 1, E), wmap),                # ln2_g
        pl.BlockSpec((None, 1, E), wmap),                # ln2_b
        pl.BlockSpec((B2, E), cmap2),                    # emotion embedding
        pl.BlockSpec((1, E), cmap2),                     # projector weight
        pl.BlockSpec((1, 1), cmap2),                     # projector bias
    ]
    out_specs = pl.BlockSpec((B2, 1), cmap2)

    return pl.pallas_call(
        fused_encoder_kernel,
        grid=(L,),
        in_specs=in_specs,
        out_specs=out_specs,
        out_shape=jax.ShapeDtypeStruct((B2, 1), jnp.float32),
        scratch_shapes=[pltpu.VMEM((BT, E), jnp.float32)],   # resident activation
        compiler_params=pltpu.CompilerParams(
            dimension_semantics=("arbitrary",)),
    )(x, params["wqkv"], params["bqkv"], params["wo"], params["bo"],
      params["ln1_g"], params["ln1_b"], params["w1"], params["b1"],
      params["w2"], params["b2"], params["ln2_g"], params["ln2_b"],
      emb, params["wp"], params["bp"])


# ---------------------------------------------------------------------------
# Parameter init (deterministic, synthetic).  Weights stacked over layers and
# stored as (E_in, E_out) = PyTorch W^T; big matrices in bf16.
# ---------------------------------------------------------------------------
def init_params(key, num_layers, num_emotions):
    def nrm(k, shape, scale=0.02, dtype=jnp.float32):
        return (scale * jax.random.normal(k, shape, jnp.float32)).astype(dtype)

    L = num_layers
    ks = jax.random.split(key, 6)
    return dict(
        wqkv=nrm(ks[0], (L, D_MODEL, 3 * D_MODEL), dtype=jnp.bfloat16),
        bqkv=jnp.zeros((L, 1, 3 * D_MODEL), jnp.float32),
        wo=nrm(ks[1], (L, D_MODEL, D_MODEL), dtype=jnp.bfloat16),
        bo=jnp.zeros((L, 1, D_MODEL), jnp.float32),
        ln1_g=jnp.ones((L, 1, D_MODEL), jnp.float32),
        ln1_b=jnp.zeros((L, 1, D_MODEL), jnp.float32),
        w1=nrm(ks[2], (L, D_MODEL, FFN_DIM), dtype=jnp.bfloat16),
        b1=jnp.zeros((L, 1, FFN_DIM), jnp.float32),
        w2=nrm(ks[3], (L, FFN_DIM, D_MODEL), dtype=jnp.bfloat16),
        b2=jnp.zeros((L, 1, D_MODEL), jnp.float32),
        ln2_g=jnp.ones((L, 1, D_MODEL), jnp.float32),
        ln2_b=jnp.zeros((L, 1, D_MODEL), jnp.float32),
        emb_table=nrm(ks[4], (num_emotions, D_MODEL), scale=0.1),  # EmotionEmbedding
        wp=nrm(ks[5], (1, D_MODEL)),                                # projector Linear(256, 1)
        bp=jnp.zeros((1, 1), jnp.float32),
        # NOTE: IntensityExtractor.fc exists in __init__ but is unused in
        # forward; faithfully omitted.
    )


# ---------------------------------------------------------------------------
# RankModel forward: both branches fused along batch, one encoder-stack call.
# ---------------------------------------------------------------------------
def rank_model_forward(params, x_emo, x_neu, emotion_class):
    # TODO(synk): base_Model is not defined in the reference source; treated as
    # identity (x_emo / x_neu are assumed to already be (B, T, 256) features).
    B = x_emo.shape[0]
    x = jnp.concatenate([x_emo, x_neu], axis=0)                      # (2B, T, E)
    emb = params["emb_table"][emotion_class[:, 0]].astype(jnp.float32)  # (B, E)  glue gather
    emb2 = jnp.concatenate([emb, emb], axis=0)                       # (2B, E)
    r = fused_intensity_forward(params, x, emb2)                     # (2B, 1)
    return r[:B], r[B:]


if __name__ == "__main__":
    B, T = 2, 8
    NUM_LAYERS, NUM_EMOTIONS = 2, 5

    key = jax.random.PRNGKey(0)
    kx, kn, kp = jax.random.split(key, 3)
    x_emo = jax.random.normal(kx, (B, T, D_MODEL), jnp.float32)
    x_neu = jax.random.normal(kn, (B, T, D_MODEL), jnp.float32)
    emotion_class = jnp.array([[1], [3]], dtype=jnp.int32)           # (B, 1)

    params = init_params(kp, NUM_LAYERS, NUM_EMOTIONS)

    fwd = jax.jit(rank_model_forward)
    r_i, r_j = fwd(params, x_emo, x_neu, emotion_class)
    jax.block_until_ready((r_i, r_j))
    assert r_i.shape == (B, 1) and r_j.shape == (B, 1)
    assert bool(jnp.all(jnp.isfinite(r_i))) and bool(jnp.all(jnp.isfinite(r_j)))
    print("KERNEL_OK")
</pallas_src>

<mosaic_0001>
module attributes {stable_mosaic.version = 11 : i64} {
  func.func @fused_encoder_kernel(%arg0: i32, %arg1: memref<4x8x256xf32, #tpu.memory_space<vmem>>, %arg2: memref<1x256x768xbf16, #tpu.memory_space<vmem>>, %arg3: memref<1x1x768xf32, #tpu.memory_space<vmem>>, %arg4: memref<1x256x256xbf16, #tpu.memory_space<vmem>>, %arg5: memref<1x1x256xf32, #tpu.memory_space<vmem>>, %arg6: memref<1x1x256xf32, #tpu.memory_space<vmem>>, %arg7: memref<1x1x256xf32, #tpu.memory_space<vmem>>, %arg8: memref<1x256x2048xbf16, #tpu.memory_space<vmem>>, %arg9: memref<1x1x2048xf32, #tpu.memory_space<vmem>>, %arg10: memref<1x2048x256xbf16, #tpu.memory_space<vmem>>, %arg11: memref<1x1x256xf32, #tpu.memory_space<vmem>>, %arg12: memref<1x1x256xf32, #tpu.memory_space<vmem>>, %arg13: memref<1x1x256xf32, #tpu.memory_space<vmem>>, %arg14: memref<4x256xf32, #tpu.memory_space<vmem>>, %arg15: memref<1x256xf32, #tpu.memory_space<vmem>>, %arg16: memref<1x1xf32, #tpu.memory_space<vmem>>, %arg17: memref<4x1xf32, #tpu.memory_space<vmem>>, %arg18: memref<32x256xf32, #tpu.memory_space<vmem>>) attributes {dimension_semantics = [#tpu.dimension_semantics<arbitrary>], iteration_bounds = array<i64: 2>, scalar_prefetch = 0 : i64, scratch_operands = 1 : i64, tpu.core_type = #tpu.core_type<tc>, window_params = [{pipeline_mode = #tpu.pipeline_mode<synchronous>, transform_indices = @transform_0, window_bounds = array<i64: 4, 8, 256>}, {transform_indices = @transform_1, window_bounds = array<i64: 1, 256, 768>}, {transform_indices = @transform_2, window_bounds = array<i64: 1, 1, 768>}, {transform_indices = @transform_3, window_bounds = array<i64: 1, 256, 256>}, {transform_indices = @transform_4, window_bounds = array<i64: 1, 1, 256>}, {transform_indices = @transform_5, window_bounds = array<i64: 1, 1, 256>}, {transform_indices = @transform_6, window_bounds = array<i64: 1, 1, 256>}, {transform_indices = @transform_7, window_bounds = array<i64: 1, 256, 2048>}, {transform_indices = @transform_8, window_bounds = array<i64: 1, 1, 2048>}, {transform_indices = @transform_9, window_bounds = array<i64: 1, 2048, 256>}, {transform_indices = @transform_10, window_bounds = array<i64: 1, 1, 256>}, {transform_indices = @transform_11, window_bounds = array<i64: 1, 1, 256>}, {transform_indices = @transform_12, window_bounds = array<i64: 1, 1, 256>}, {pipeline_mode = #tpu.pipeline_mode<synchronous>, transform_indices = @transform_13, window_bounds = array<i64: 4, 256>}, {pipeline_mode = #tpu.pipeline_mode<synchronous>, transform_indices = @transform_14, window_bounds = array<i64: 1, 256>}, {pipeline_mode = #tpu.pipeline_mode<synchronous>, transform_indices = @transform_15, window_bounds = array<i64: 1, 1>}, {pipeline_mode = #tpu.pipeline_mode<synchronous>, transform_indices = @transform_16, window_bounds = array<i64: 4, 1>}]} {
    %c0_i32 = arith.constant 0 : i32
    %0 = arith.cmpi eq, %arg0, %c0_i32 : i32
    %1 = arith.extui %0 : i1 to i32
    %c0_i32_0 = arith.constant 0 : i32
    %2 = arith.cmpi ne, %1, %c0_i32_0 : i32
    scf.if %2 {
      %c0_88 = arith.constant 0 : index
      %c0_89 = arith.constant 0 : index
      %c0_90 = arith.constant 0 : index
      %237 = vector.load %arg1[%c0_88, %c0_89, %c0_90] : memref<4x8x256xf32, #tpu.memory_space<vmem>>, vector<4x8x256xf32>
      %238 = vector.shape_cast %237 : vector<4x8x256xf32> to vector<32x256xf32>
      %c0_91 = arith.constant 0 : index
      %c0_92 = arith.constant 0 : index
      %239 = vector.load %arg18[%c0_91, %c0_92] : memref<32x256xf32, #tpu.memory_space<vmem>>, vector<32x256xf32>
      tpu.vector_store %arg18[%c0_91, %c0_92], %238 {strides = array<i32>} : memref<32x256xf32, #tpu.memory_space<vmem>>, vector<32x256xf32>,
    } else {
    }
    %c0 = arith.constant 0 : index
    %c0_1 = arith.constant 0 : index
    %3 = vector.load %arg18[%c0, %c0_1] : memref<32x256xf32, #tpu.memory_space<vmem>>, vector<32x256xf32>
    %4 = arith.truncf %3 : vector<32x256xf32> to vector<32x256xbf16>
    %c0_2 = arith.constant 0 : index
    %c0_3 = arith.constant 0 : index
    %c0_4 = arith.constant 0 : index
    %5 = vector.load %arg2[%c0_2, %c0_3, %c0_4] : memref<1x256x768xbf16, #tpu.memory_space<vmem>>, vector<1x256x768xbf16>
    %6 = vector.shape_cast %5 : vector<1x256x768xbf16> to vector<256x768xbf16>
    %cst = arith.constant dense<0.000000e+00> : vector<32x768xf32>
    %7 = tpu.matmul %4, %6, %cst {dimension_numbers = #tpu.dot_dimension_numbers<[1], [0], [0], [1], [0, 0, 1, 1], [], []>} : vector<32x256xbf16>, vector<256x768xbf16>, vector<32x768xf32> -> vector<32x768xf32>
    %c0_5 = arith.constant 0 : index
    %c0_6 = arith.constant 0 : index
    %c0_7 = arith.constant 0 : index
    %8 = vector.load %arg3[%c0_5, %c0_6, %c0_7] : memref<1x1x768xf32, #tpu.memory_space<vmem>>, vector<1x1x768xf32>
    %9 = vector.shape_cast %8 : vector<1x1x768xf32> to vector<1x768xf32>
    %10 = vector.broadcast %9 : vector<1x768xf32> to vector<32x768xf32>
    %11 = arith.addf %7, %10 : vector<32x768xf32>
    %12 = vector.extract_strided_slice %11 {offsets = [0, 0], sizes = [32, 256], strides = [1, 1]} : vector<32x768xf32> to vector<32x256xf32>
    %cst_8 = arith.constant 0.176776692 : f32
    %13 = vector.broadcast %cst_8 : f32 to vector<32x256xf32>
    %14 = arith.mulf %12, %13 : vector<32x256xf32>
    %15 = arith.truncf %14 : vector<32x256xf32> to vector<32x256xbf16>
    %16 = vector.shape_cast %15 : vector<32x256xbf16> to vector<4x8x256xbf16>
    %17 = vector.extract_strided_slice %11 {offsets = [0, 256], sizes = [32, 256], strides = [1, 1]} : vector<32x768xf32> to vector<32x256xf32>
    %18 = arith.truncf %17 : vector<32x256xf32> to vector<32x256xbf16>
    %19 = vector.shape_cast %18 : vector<32x256xbf16> to vector<4x8x256xbf16>
    %20 = vector.extract_strided_slice %11 {offsets = [0, 512], sizes = [32, 256], strides = [1, 1]} : vector<32x768xf32> to vector<32x256xf32>
    %21 = arith.truncf %20 : vector<32x256xf32> to vector<32x256xbf16>
    %22 = vector.shape_cast %21 : vector<32x256xbf16> to vector<4x8x256xbf16>
    %23 = vector.extract_strided_slice %16 {offsets = [0, 0, 0], sizes = [4, 8, 32], strides = [1, 1, 1]} : vector<4x8x256xbf16> to vector<4x8x32xbf16>
    %24 = vector.extract_strided_slice %19 {offsets = [0, 0, 0], sizes = [4, 8, 32], strides = [1, 1, 1]} : vector<4x8x256xbf16> to vector<4x8x32xbf16>
    "tpu.trace_start"() <{level = 10 : i32, message = "bqd,bkd->bqk"}> : () -> ()
    %cst_9 = arith.constant dense<0.000000e+00> : vector<4x8x8xf32>
    %25 = tpu.matmul %23, %24, %cst_9 {dimension_numbers = #tpu.dot_dimension_numbers<[2], [2], [1], [1], [0, 0, 0, 1, 1, 1], [0], [0]>} : vector<4x8x32xbf16>, vector<4x8x32xbf16>, vector<4x8x8xf32> -> vector<4x8x8xf32>
    "tpu.trace_stop"() : () -> ()
    %cst_10 = arith.constant dense<0xFF800000> : vector<4x8xf32>
    %26 = vector.multi_reduction <maximumf>, %25, %cst_10 [2] : vector<4x8x8xf32> to vector<4x8xf32>
    %27 = vector.shape_cast %26 : vector<4x8xf32> to vector<4x8x1xf32>
    %28 = vector.broadcast %27 : vector<4x8x1xf32> to vector<4x8x8xf32>
    %29 = arith.subf %25, %28 : vector<4x8x8xf32>
    %30 = math.exp %29 : vector<4x8x8xf32>
    %cst_11 = arith.constant dense<0.000000e+00> : vector<4x8xf32>
    %31 = vector.multi_reduction <add>, %30, %cst_11 [2] : vector<4x8x8xf32> to vector<4x8xf32>
    %32 = vector.shape_cast %31 : vector<4x8xf32> to vector<4x8x1xf32>
    %33 = tpu.reciprocal %32 {approx = true} : vector<4x8x1xf32> -> vector<4x8x1xf32>
    %34 = vector.broadcast %33 : vector<4x8x1xf32> to vector<4x8x8xf32>
    %35 = arith.mulf %30, %34 : vector<4x8x8xf32>
    %36 = arith.truncf %35 : vector<4x8x8xf32> to vector<4x8x8xbf16>
    %37 = vector.extract_strided_slice %22 {offsets = [0, 0, 0], sizes = [4, 8, 32], strides = [1, 1, 1]} : vector<4x8x256xbf16> to vector<4x8x32xbf16>
    "tpu.trace_start"() <{level = 10 : i32, message = "bqk,bkd->bqd"}> : () -> ()
    %cst_12 = arith.constant dense<0.000000e+00> : vector<4x8x32xf32>
    %38 = tpu.matmul %36, %37, %cst_12 {dimension_numbers = #tpu.dot_dimension_numbers<[2], [1], [1], [2], [0, 0, 0, 1, 1, 2], [0], [0]>} : vector<4x8x8xbf16>, vector<4x8x32xbf16>, vector<4x8x32xf32> -> vector<4x8x32xf32>
    "tpu.trace_stop"() : () -> ()
    %39 = vector.extract_strided_slice %16 {offsets = [0, 0, 32], sizes = [4, 8, 32], strides = [1, 1, 1]} : vector<4x8x256xbf16> to vector<4x8x32xbf16>
    %40 = vector.extract_strided_slice %19 {offsets = [0, 0, 32], sizes = [4, 8, 32], strides = [1, 1, 1]} : vector<4x8x256xbf16> to vector<4x8x32xbf16>
    "tpu.trace_start"() <{level = 10 : i32, message = "bqd,bkd->bqk"}> : () -> ()
    %cst_13 = arith.constant dense<0.000000e+00> : vector<4x8x8xf32>
    %41 = tpu.matmul %39, %40, %cst_13 {dimension_numbers = #tpu.dot_dimension_numbers<[2], [2], [1], [1], [0, 0, 0, 1, 1, 1], [0], [0]>} : vector<4x8x32xbf16>, vector<4x8x32xbf16>, vector<4x8x8xf32> -> vector<4x8x8xf32>
    "tpu.trace_stop"() : () -> ()
    %cst_14 = arith.constant dense<0xFF800000> : vector<4x8xf32>
    %42 = vector.multi_reduction <maximumf>, %41, %cst_14 [2] : vector<4x8x8xf32> to vector<4x8xf32>
    %43 = vector.shape_cast %42 : vector<4x8xf32> to vector<4x8x1xf32>
    %44 = vector.broadcast %43 : vector<4x8x1xf32> to vector<4x8x8xf32>
    %45 = arith.subf %41, %44 : vector<4x8x8xf32>
    %46 = math.exp %45 : vector<4x8x8xf32>
    %cst_15 = arith.constant dense<0.000000e+00> : vector<4x8xf32>
    %47 = vector.multi_reduction <add>, %46, %cst_15 [2] : vector<4x8x8xf32> to vector<4x8xf32>
    %48 = vector.shape_cast %47 : vector<4x8xf32> to vector<4x8x1xf32>
    %49 = tpu.reciprocal %48 {approx = true} : vector<4x8x1xf32> -> vector<4x8x1xf32>
    %50 = vector.broadcast %49 : vector<4x8x1xf32> to vector<4x8x8xf32>
    %51 = arith.mulf %46, %50 : vector<4x8x8xf32>
    %52 = arith.truncf %51 : vector<4x8x8xf32> to vector<4x8x8xbf16>
    %53 = vector.extract_strided_slice %22 {offsets = [0, 0, 32], sizes = [4, 8, 32], strides = [1, 1, 1]} : vector<4x8x256xbf16> to vector<4x8x32xbf16>
    "tpu.trace_start"() <{level = 10 : i32, message = "bqk,bkd->bqd"}> : () -> ()
    %cst_16 = arith.constant dense<0.000000e+00> : vector<4x8x32xf32>
    %54 = tpu.matmul %52, %53, %cst_16 {dimension_numbers = #tpu.dot_dimension_numbers<[2], [1], [1], [2], [0, 0, 0, 1, 1, 2], [0], [0]>} : vector<4x8x8xbf16>, vector<4x8x32xbf16>, vector<4x8x32xf32> -> vector<4x8x32xf32>
    "tpu.trace_stop"() : () -> ()
    %55 = vector.extract_strided_slice %16 {offsets = [0, 0, 64], sizes = [4, 8, 32], strides = [1, 1, 1]} : vector<4x8x256xbf16> to vector<4x8x32xbf16>
    %56 = vector.extract_strided_slice %19 {offsets = [0, 0, 64], sizes = [4, 8, 32], strides = [1, 1, 1]} : vector<4x8x256xbf16> to vector<4x8x32xbf16>
    "tpu.trace_start"() <{level = 10 : i32, message = "bqd,bkd->bqk"}> : () -> ()
    %cst_17 = arith.constant dense<0.000000e+00> : vector<4x8x8xf32>
    %57 = tpu.matmul %55, %56, %cst_17 {dimension_numbers = #tpu.dot_dimension_numbers<[2], [2], [1], [1], [0, 0, 0, 1, 1, 1], [0], [0]>} : vector<4x8x32xbf16>, vector<4x8x32xbf16>, vector<4x8x8xf32> -> vector<4x8x8xf32>
    "tpu.trace_stop"() : () -> ()
    %cst_18 = arith.constant dense<0xFF800000> : vector<4x8xf32>
    %58 = vector.multi_reduction <maximumf>, %57, %cst_18 [2] : vector<4x8x8xf32> to vector<4x8xf32>
    %59 = vector.shape_cast %58 : vector<4x8xf32> to vector<4x8x1xf32>
    %60 = vector.broadcast %59 : vector<4x8x1xf32> to vector<4x8x8xf32>
    %61 = arith.subf %57, %60 : vector<4x8x8xf32>
    %62 = math.exp %61 : vector<4x8x8xf32>
    %cst_19 = arith.constant dense<0.000000e+00> : vector<4x8xf32>
    %63 = vector.multi_reduction <add>, %62, %cst_19 [2] : vector<4x8x8xf32> to vector<4x8xf32>
    %64 = vector.shape_cast %63 : vector<4x8xf32> to vector<4x8x1xf32>
    %65 = tpu.reciprocal %64 {approx = true} : vector<4x8x1xf32> -> vector<4x8x1xf32>
    %66 = vector.broadcast %65 : vector<4x8x1xf32> to vector<4x8x8xf32>
    %67 = arith.mulf %62, %66 : vector<4x8x8xf32>
    %68 = arith.truncf %67 : vector<4x8x8xf32> to vector<4x8x8xbf16>
    %69 = vector.extract_strided_slice %22 {offsets = [0, 0, 64], sizes = [4, 8, 32], strides = [1, 1, 1]} : vector<4x8x256xbf16> to vector<4x8x32xbf16>
    "tpu.trace_start"() <{level = 10 : i32, message = "bqk,bkd->bqd"}> : () -> ()
    %cst_20 = arith.constant dense<0.000000e+00> : vector<4x8x32xf32>
    %70 = tpu.matmul %68, %69, %cst_20 {dimension_numbers = #tpu.dot_dimension_numbers<[2], [1], [1], [2], [0, 0, 0, 1, 1, 2], [0], [0]>} : vector<4x8x8xbf16>, vector<4x8x32xbf16>, vector<4x8x32xf32> -> vector<4x8x32xf32>
    "tpu.trace_stop"() : () -> ()
    %71 = vector.extract_strided_slice %16 {offsets = [0, 0, 96], sizes = [4, 8, 32], strides = [1, 1, 1]} : vector<4x8x256xbf16> to vector<4x8x32xbf16>
    %72 = vector.extract_strided_slice %19 {offsets = [0, 0, 96], sizes = [4, 8, 32], strides = [1, 1, 1]} : vector<4x8x256xbf16> to vector<4x8x32xbf16>
    "tpu.trace_start"() <{level = 10 : i32, message = "bqd,bkd->bqk"}> : () -> ()
    %cst_21 = arith.constant dense<0.000000e+00> : vector<4x8x8xf32>
    %73 = tpu.matmul %71, %72, %cst_21 {dimension_numbers = #tpu.dot_dimension_numbers<[2], [2], [1], [1], [0, 0, 0, 1, 1, 1], [0], [0]>} : vector<4x8x32xbf16>, vector<4x8x32xbf16>, vector<4x8x8xf32> -> vector<4x8x8xf32>
    "tpu.trace_stop"() : () -> ()
    %cst_22 = arith.constant dense<0xFF800000> : vector<4x8xf32>
    %74 = vector.multi_reduction <maximumf>, %73, %cst_22 [2] : vector<4x8x8xf32> to vector<4x8xf32>
    %75 = vector.shape_cast %74 : vector<4x8xf32> to vector<4x8x1xf32>
    %76 = vector.broadcast %75 : vector<4x8x1xf32> to vector<4x8x8xf32>
    %77 = arith.subf %73, %76 : vector<4x8x8xf32>
    %78 = math.exp %77 : vector<4x8x8xf32>
    %cst_23 = arith.constant dense<0.000000e+00> : vector<4x8xf32>
    %79 = vector.multi_reduction <add>, %78, %cst_23 [2] : vector<4x8x8xf32> to vector<4x8xf32>
    %80 = vector.shape_cast %79 : vector<4x8xf32> to vector<4x8x1xf32>
    %81 = tpu.reciprocal %80 {approx = true} : vector<4x8x1xf32> -> vector<4x8x1xf32>
    %82 = vector.broadcast %81 : vector<4x8x1xf32> to vector<4x8x8xf32>
    %83 = arith.mulf %78, %82 : vector<4x8x8xf32>
    %84 = arith.truncf %83 : vector<4x8x8xf32> to vector<4x8x8xbf16>
    %85 = vector.extract_strided_slice %22 {offsets = [0, 0, 96], sizes = [4, 8, 32], strides = [1, 1, 1]} : vector<4x8x256xbf16> to vector<4x8x32xbf16>
    "tpu.trace_start"() <{level = 10 : i32, message = "bqk,bkd->bqd"}> : () -> ()
    %cst_24 = arith.constant dense<0.000000e+00> : vector<4x8x32xf32>
    %86 = tpu.matmul %84, %85, %cst_24 {dimension_numbers = #tpu.dot_dimension_numbers<[2], [1], [1], [2], [0, 0, 0, 1, 1, 2], [0], [0]>} : vector<4x8x8xbf16>, vector<4x8x32xbf16>, vector<4x8x32xf32> -> vector<4x8x32xf32>
    "tpu.trace_stop"() : () -> ()
    %87 = vector.extract_strided_slice %16 {offsets = [0, 0, 128], sizes = [4, 8, 32], strides = [1, 1, 1]} : vector<4x8x256xbf16> to vector<4x8x32xbf16>
    %88 = vector.extract_strided_slice %19 {offsets = [0, 0, 128], sizes = [4, 8, 32], strides = [1, 1, 1]} : vector<4x8x256xbf16> to vector<4x8x32xbf16>
    "tpu.trace_start"() <{level = 10 : i32, message = "bqd,bkd->bqk"}> : () -> ()
    %cst_25 = arith.constant dense<0.000000e+00> : vector<4x8x8xf32>
    %89 = tpu.matmul %87, %88, %cst_25 {dimension_numbers = #tpu.dot_dimension_numbers<[2], [2], [1], [1], [0, 0, 0, 1, 1, 1], [0], [0]>} : vector<4x8x32xbf16>, vector<4x8x32xbf16>, vector<4x8x8xf32> -> vector<4x8x8xf32>
    "tpu.trace_stop"() : () -> ()
    %cst_26 = arith.constant dense<0xFF800000> : vector<4x8xf32>
    %90 = vector.multi_reduction <maximumf>, %89, %cst_26 [2] : vector<4x8x8xf32> to vector<4x8xf32>
    %91 = vector.shape_cast %90 : vector<4x8xf32> to vector<4x8x1xf32>
    %92 = vector.broadcast %91 : vector<4x8x1xf32> to vector<4x8x8xf32>
    %93 = arith.subf %89, %92 : vector<4x8x8xf32>
    %94 = math.exp %93 : vector<4x8x8xf32>
    %cst_27 = arith.constant dense<0.000000e+00> : vector<4x8xf32>
    %95 = vector.multi_reduction <add>, %94, %cst_27 [2] : vector<4x8x8xf32> to vector<4x8xf32>
    %96 = vector.shape_cast %95 : vector<4x8xf32> to vector<4x8x1xf32>
    %97 = tpu.reciprocal %96 {approx = true} : vector<4x8x1xf32> -> vector<4x8x1xf32>
    %98 = vector.broadcast %97 : vector<4x8x1xf32> to vector<4x8x8xf32>
    %99 = arith.mulf %94, %98 : vector<4x8x8xf32>
    %100 = arith.truncf %99 : vector<4x8x8xf32> to vector<4x8x8xbf16>
    %101 = vector.extract_strided_slice %22 {offsets = [0, 0, 128], sizes = [4, 8, 32], strides = [1, 1, 1]} : vector<4x8x256xbf16> to vector<4x8x32xbf16>
    "tpu.trace_start"() <{level = 10 : i32, message = "bqk,bkd->bqd"}> : () -> ()
    %cst_28 = arith.constant dense<0.000000e+00> : vector<4x8x32xf32>
    %102 = tpu.matmul %100, %101, %cst_28 {dimension_numbers = #tpu.dot_dimension_numbers<[2], [1], [1], [2], [0, 0, 0, 1, 1, 2], [0], [0]>} : vector<4x8x8xbf16>, vector<4x8x32xbf16>, vector<4x8x32xf32> -> vector<4x8x32xf32>
    "tpu.trace_stop"() : () -> ()
    %103 = vector.extract_strided_slice %16 {offsets = [0, 0, 160], sizes = [4, 8, 32], strides = [1, 1, 1]} : vector<4x8x256xbf16> to vector<4x8x32xbf16>
    %104 = vector.extract_strided_slice %19 {offsets = [0, 0, 160], sizes = [4, 8, 32], strides = [1, 1, 1]} : vector<4x8x256xbf16> to vector<4x8x32xbf16>
    "tpu.trace_start"() <{level = 10 : i32, message = "bqd,bkd->bqk"}> : () -> ()
    %cst_29 = arith.constant dense<0.000000e+00> : vector<4x8x8xf32>
    %105 = tpu.matmul %103, %104, %cst_29 {dimension_numbers = #tpu.dot_dimension_numbers<[2], [2], [1], [1], [0, 0, 0, 1, 1, 1], [0], [0]>} : vector<4x8x32xbf16>, vector<4x8x32xbf16>, vector<4x8x8xf32> -> vector<4x8x8xf32>
    "tpu.trace_stop"() : () -> ()
    %cst_30 = arith.constant dense<0xFF800000> : vector<4x8xf32>
    %106 = vector.multi_reduction <maximumf>, %105, %cst_30 [2] : vector<4x8x8xf32> to vector<4x8xf32>
    %107 = vector.shape_cast %106 : vector<4x8xf32> to vector<4x8x1xf32>
    %108 = vector.broadcast %107 : vector<4x8x1xf32> to vector<4x8x8xf32>
    %109 = arith.subf %105, %108 : vector<4x8x8xf32>
    %110 = math.exp %109 : vector<4x8x8xf32>
    %cst_31 = arith.constant dense<0.000000e+00> : vector<4x8xf32>
    %111 = vector.multi_reduction <add>, %110, %cst_31 [2] : vector<4x8x8xf32> to vector<4x8xf32>
    %112 = vector.shape_cast %111 : vector<4x8xf32> to vector<4x8x1xf32>
    %113 = tpu.reciprocal %112 {approx = true} : vector<4x8x1xf32> -> vector<4x8x1xf32>
    %114 = vector.broadcast %113 : vector<4x8x1xf32> to vector<4x8x8xf32>
    %115 = arith.mulf %110, %114 : vector<4x8x8xf32>
    %116 = arith.truncf %115 : vector<4x8x8xf32> to vector<4x8x8xbf16>
    %117 = vector.extract_strided_slice %22 {offsets = [0, 0, 160], sizes = [4, 8, 32], strides = [1, 1, 1]} : vector<4x8x256xbf16> to vector<4x8x32xbf16>
    "tpu.trace_start"() <{level = 10 : i32, message = "bqk,bkd->bqd"}> : () -> ()
    %cst_32 = arith.constant dense<0.000000e+00> : vector<4x8x32xf32>
    %118 = tpu.matmul %116, %117, %cst_32 {dimension_numbers = #tpu.dot_dimension_numbers<[2], [1], [1], [2], [0, 0, 0, 1, 1, 2], [0], [0]>} : vector<4x8x8xbf16>, vector<4x8x32xbf16>, vector<4x8x32xf32> -> vector<4x8x32xf32>
    "tpu.trace_stop"() : () -> ()
    %119 = vector.extract_strided_slice %16 {offsets = [0, 0, 192], sizes = [4, 8, 32], strides = [1, 1, 1]} : vector<4x8x256xbf16> to vector<4x8x32xbf16>
    %120 = vector.extract_strided_slice %19 {offsets = [0, 0, 192], sizes = [4, 8, 32], strides = [1, 1, 1]} : vector<4x8x256xbf16> to vector<4x8x32xbf16>
    "tpu.trace_start"() <{level = 10 : i32, message = "bqd,bkd->bqk"}> : () -> ()
    %cst_33 = arith.constant dense<0.000000e+00> : vector<4x8x8xf32>
    %121 = tpu.matmul %119, %120, %cst_33 {dimension_numbers = #tpu.dot_dimension_numbers<[2], [2], [1], [1], [0, 0, 0, 1, 1, 1], [0], [0]>} : vector<4x8x32xbf16>, vector<4x8x32xbf16>, vector<4x8x8xf32> -> vector<4x8x8xf32>
    "tpu.trace_stop"() : () -> ()
    %cst_34 = arith.constant dense<0xFF800000> : vector<4x8xf32>
    %122 = vector.multi_reduction <maximumf>, %121, %cst_34 [2] : vector<4x8x8xf32> to vector<4x8xf32>
    %123 = vector.shape_cast %122 : vector<4x8xf32> to vector<4x8x1xf32>
    %124 = vector.broadcast %123 : vector<4x8x1xf32> to vector<4x8x8xf32>
    %125 = arith.subf %121, %124 : vector<4x8x8xf32>
    %126 = math.exp %125 : vector<4x8x8xf32>
    %cst_35 = arith.constant dense<0.000000e+00> : vector<4x8xf32>
    %127 = vector.multi_reduction <add>, %126, %cst_35 [2] : vector<4x8x8xf32> to vector<4x8xf32>
    %128 = vector.shape_cast %127 : vector<4x8xf32> to vector<4x8x1xf32>
    %129 = tpu.reciprocal %128 {approx = true} : vector<4x8x1xf32> -> vector<4x8x1xf32>
    %130 = vector.broadcast %129 : vector<4x8x1xf32> to vector<4x8x8xf32>
    %131 = arith.mulf %126, %130 : vector<4x8x8xf32>
    %132 = arith.truncf %131 : vector<4x8x8xf32> to vector<4x8x8xbf16>
    %133 = vector.extract_strided_slice %22 {offsets = [0, 0, 192], sizes = [4, 8, 32], strides = [1, 1, 1]} : vector<4x8x256xbf16> to vector<4x8x32xbf16>
    "tpu.trace_start"() <{level = 10 : i32, message = "bqk,bkd->bqd"}> : () -> ()
    %cst_36 = arith.constant dense<0.000000e+00> : vector<4x8x32xf32>
    %134 = tpu.matmul %132, %133, %cst_36 {dimension_numbers = #tpu.dot_dimension_numbers<[2], [1], [1], [2], [0, 0, 0, 1, 1, 2], [0], [0]>} : vector<4x8x8xbf16>, vector<4x8x32xbf16>, vector<4x8x32xf32> -> vector<4x8x32xf32>
    "tpu.trace_stop"() : () -> ()
    %135 = vector.extract_strided_slice %16 {offsets = [0, 0, 224], sizes = [4, 8, 32], strides = [1, 1, 1]} : vector<4x8x256xbf16> to vector<4x8x32xbf16>
    %136 = vector.extract_strided_slice %19 {offsets = [0, 0, 224], sizes = [4, 8, 32], strides = [1, 1, 1]} : vector<4x8x256xbf16> to vector<4x8x32xbf16>
    "tpu.trace_start"() <{level = 10 : i32, message = "bqd,bkd->bqk"}> : () -> ()
    %cst_37 = arith.constant dense<0.000000e+00> : vector<4x8x8xf32>
    %137 = tpu.matmul %135, %136, %cst_37 {dimension_numbers = #tpu.dot_dimension_numbers<[2], [2], [1], [1], [0, 0, 0, 1, 1, 1], [0], [0]>} : vector<4x8x32xbf16>, vector<4x8x32xbf16>, vector<4x8x8xf32> -> vector<4x8x8xf32>
    "tpu.trace_stop"() : () -> ()
    %cst_38 = arith.constant dense<0xFF800000> : vector<4x8xf32>
    %138 = vector.multi_reduction <maximumf>, %137, %cst_38 [2] : vector<4x8x8xf32> to vector<4x8xf32>
    %139 = vector.shape_cast %138 : vector<4x8xf32> to vector<4x8x1xf32>
    %140 = vector.broadcast %139 : vector<4x8x1xf32> to vector<4x8x8xf32>
    %141 = arith.subf %137, %140 : vector<4x8x8xf32>
    %142 = math.exp %141 : vector<4x8x8xf32>
    %cst_39 = arith.constant dense<0.000000e+00> : vector<4x8xf32>
    %143 = vector.multi_reduction <add>, %142, %cst_39 [2] : vector<4x8x8xf32> to vector<4x8xf32>
    %144 = vector.shape_cast %143 : vector<4x8xf32> to vector<4x8x1xf32>
    %145 = tpu.reciprocal %144 {approx = true} : vector<4x8x1xf32> -> vector<4x8x1xf32>
    %146 = vector.broadcast %145 : vector<4x8x1xf32> to vector<4x8x8xf32>
    %147 = arith.mulf %142, %146 : vector<4x8x8xf32>
    %148 = arith.truncf %147 : vector<4x8x8xf32> to vector<4x8x8xbf16>
    %149 = vector.extract_strided_slice %22 {offsets = [0, 0, 224], sizes = [4, 8, 32], strides = [1, 1, 1]} : vector<4x8x256xbf16> to vector<4x8x32xbf16>
    "tpu.trace_start"() <{level = 10 : i32, message = "bqk,bkd->bqd"}> : () -> ()
    %cst_40 = arith.constant dense<0.000000e+00> : vector<4x8x32xf32>
    %150 = tpu.matmul %148, %149, %cst_40 {dimension_numbers = #tpu.dot_dimension_numbers<[2], [1], [1], [2], [0, 0, 0, 1, 1, 2], [0], [0]>} : vector<4x8x8xbf16>, vector<4x8x32xbf16>, vector<4x8x32xf32> -> vector<4x8x32xf32>
    "tpu.trace_stop"() : () -> ()
    %151 = tpu.concatenate %38, %54, %70, %86, %102, %118, %134, %150 in 2 : vector<4x8x32xf32>, vector<4x8x32xf32>, vector<4x8x32xf32>, vector<4x8x32xf32>, vector<4x8x32xf32>, vector<4x8x32xf32>, vector<4x8x32xf32>, vector<4x8x32xf32> -> vector<4x8x256xf32>
    %152 = vector.shape_cast %151 : vector<4x8x256xf32> to vector<32x256xf32>
    %153 = arith.truncf %152 : vector<32x256xf32> to vector<32x256xbf16>
    %c0_41 = arith.constant 0 : index
    %c0_42 = arith.constant 0 : index
    %c0_43 = arith.constant 0 : index
    %154 = vector.load %arg4[%c0_41, %c0_42, %c0_43] : memref<1x256x256xbf16, #tpu.memory_space<vmem>>, vector<1x256x256xbf16>
    %155 = vector.shape_cast %154 : vector<1x256x256xbf16> to vector<256x256xbf16>
    %cst_44 = arith.constant dense<0.000000e+00> : vector<32x256xf32>
    %156 = tpu.matmul %153, %155, %cst_44 {dimension_numbers = #tpu.dot_dimension_numbers<[1], [0], [0], [1], [0, 0, 1, 1], [], []>} : vector<32x256xbf16>, vector<256x256xbf16>, vector<32x256xf32> -> vector<32x256xf32>
    %c0_45 = arith.constant 0 : index
    %c0_46 = arith.constant 0 : index
    %c0_47 = arith.constant 0 : index
    %157 = vector.load %arg5[%c0_45, %c0_46, %c0_47] : memref<1x1x256xf32, #tpu.memory_space<vmem>>, vector<1x1x256xf32>
    %158 = vector.shape_cast %157 : vector<1x1x256xf32> to vector<1x256xf32>
    %159 = vector.broadcast %158 : vector<1x256xf32> to vector<32x256xf32>
    %160 = arith.addf %156, %159 : vector<32x256xf32>
    %161 = arith.addf %3, %160 : vector<32x256xf32>
    %c0_48 = arith.constant 0 : index
    %c0_49 = arith.constant 0 : index
    %c0_50 = arith.constant 0 : index
    %162 = vector.load %arg6[%c0_48, %c0_49, %c0_50] : memref<1x1x256xf32, #tpu.memory_space<vmem>>, vector<1x1x256xf32>
    %163 = vector.shape_cast %162 : vector<1x1x256xf32> to vector<1x256xf32>
    %c0_51 = arith.constant 0 : index
    %c0_52 = arith.constant 0 : index
    %c0_53 = arith.constant 0 : index
    %164 = vector.load %arg7[%c0_51, %c0_52, %c0_53] : memref<1x1x256xf32, #tpu.memory_space<vmem>>, vector<1x1x256xf32>
    %165 = vector.shape_cast %164 : vector<1x1x256xf32> to vector<1x256xf32>
    %cst_54 = arith.constant dense<0.000000e+00> : vector<32xf32>
    %166 = vector.multi_reduction <add>, %161, %cst_54 [1] : vector<32x256xf32> to vector<32xf32>
    %167 = vector.shape_cast %166 : vector<32xf32> to vector<32x1xf32>
    %cst_55 = arith.constant 2.560000e+02 : f32
    %168 = vector.broadcast %cst_55 : f32 to vector<32x1xf32>
    %169 = arith.divf %167, %168 : vector<32x1xf32>
    %170 = vector.broadcast %169 : vector<32x1xf32> to vector<32x256xf32>
    %171 = arith.subf %161, %170 : vector<32x256xf32>
    %172 = arith.mulf %171, %171 : vector<32x256xf32>
    %cst_56 = arith.constant dense<0.000000e+00> : vector<32xf32>
    %173 = vector.multi_reduction <add>, %172, %cst_56 [1] : vector<32x256xf32> to vector<32xf32>
    %174 = vector.shape_cast %173 : vector<32xf32> to vector<32x1xf32>
    %cst_57 = arith.constant 2.560000e+02 : f32
    %175 = vector.broadcast %cst_57 : f32 to vector<32x1xf32>
    %176 = arith.divf %174, %175 : vector<32x1xf32>
    %177 = vector.broadcast %169 : vector<32x1xf32> to vector<32x256xf32>
    %178 = arith.subf %161, %177 : vector<32x256xf32>
    %cst_58 = arith.constant 9.99999974E-6 : f32
    %179 = vector.broadcast %cst_58 : f32 to vector<32x1xf32>
    %180 = arith.addf %176, %179 : vector<32x1xf32>
    %181 = math.rsqrt %180 : vector<32x1xf32>
    %182 = vector.broadcast %181 : vector<32x1xf32> to vector<32x256xf32>
    %183 = arith.mulf %178, %182 : vector<32x256xf32>
    %184 = vector.broadcast %163 : vector<1x256xf32> to vector<32x256xf32>
    %185 = arith.mulf %183, %184 : vector<32x256xf32>
    %186 = vector.broadcast %165 : vector<1x256xf32> to vector<32x256xf32>
    %187 = arith.addf %185, %186 : vector<32x256xf32>
    %188 = arith.truncf %187 : vector<32x256xf32> to vector<32x256xbf16>
    %c0_59 = arith.constant 0 : index
    %c0_60 = arith.constant 0 : index
    %c0_61 = arith.constant 0 : index
    %189 = vector.load %arg8[%c0_59, %c0_60, %c0_61] : memref<1x256x2048xbf16, #tpu.memory_space<vmem>>, vector<1x256x2048xbf16>
    %190 = vector.shape_cast %189 : vector<1x256x2048xbf16> to vector<256x2048xbf16>
    %cst_62 = arith.constant dense<0.000000e+00> : vector<32x2048xf32>
    %191 = tpu.matmul %188, %190, %cst_62 {dimension_numbers = #tpu.dot_dimension_numbers<[1], [0], [0], [1], [0, 0, 1, 1], [], []>} : vector<32x256xbf16>, vector<256x2048xbf16>, vector<32x2048xf32> -> vector<32x2048xf32>
    %c0_63 = arith.constant 0 : index
    %c0_64 = arith.constant 0 : index
    %c0_65 = arith.constant 0 : index
    %192 = vector.load %arg9[%c0_63, %c0_64, %c0_65] : memref<1x1x2048xf32, #tpu.memory_space<vmem>>, vector<1x1x2048xf32>
    %193 = vector.shape_cast %192 : vector<1x1x2048xf32> to vector<1x2048xf32>
    %194 = vector.broadcast %193 : vector<1x2048xf32> to vector<32x2048xf32>
    %195 = arith.addf %191, %194 : vector<32x2048xf32>
    %cst_66 = arith.constant 0.000000e+00 : f32
    %196 = vector.broadcast %cst_66 : f32 to vector<32x2048xf32>
    %197 = arith.maximumf %195, %196 : vector<32x2048xf32>
    %198 = arith.truncf %197 : vector<32x2048xf32> to vector<32x2048xbf16>
    %c0_67 = arith.constant 0 : index
    %c0_68 = arith.constant 0 : index
    %c0_69 = arith.constant 0 : index
    %199 = vector.load %arg10[%c0_67, %c0_68, %c0_69] : memref<1x2048x256xbf16, #tpu.memory_space<vmem>>, vector<1x2048x256xbf16>
    %200 = vector.shape_cast %199 : vector<1x2048x256xbf16> to vector<2048x256xbf16>
    %cst_70 = arith.constant dense<0.000000e+00> : vector<32x256xf32>
    %201 = tpu.matmul %198, %200, %cst_70 {dimension_numbers = #tpu.dot_dimension_numbers<[1], [0], [0], [1], [0, 0, 1, 1], [], []>} : vector<32x2048xbf16>, vector<2048x256xbf16>, vector<32x256xf32> -> vector<32x256xf32>
    %c0_71 = arith.constant 0 : index
    %c0_72 = arith.constant 0 : index
    %c0_73 = arith.constant 0 : index
    %202 = vector.load %arg11[%c0_71, %c0_72, %c0_73] : memref<1x1x256xf32, #tpu.memory_space<vmem>>, vector<1x1x256xf32>
    %203 = vector.shape_cast %202 : vector<1x1x256xf32> to vector<1x256xf32>
    %204 = vector.broadcast %203 : vector<1x256xf32> to vector<32x256xf32>
    %205 = arith.addf %201, %204 : vector<32x256xf32>
    %206 = arith.addf %187, %205 : vector<32x256xf32>
    %c0_74 = arith.constant 0 : index
    %c0_75 = arith.constant 0 : index
    %c0_76 = arith.constant 0 : index
    %207 = vector.load %arg12[%c0_74, %c0_75, %c0_76] : memref<1x1x256xf32, #tpu.memory_space<vmem>>, vector<1x1x256xf32>
    %208 = vector.shape_cast %207 : vector<1x1x256xf32> to vector<1x256xf32>
    %c0_77 = arith.constant 0 : index
    %c0_78 = arith.constant 0 : index
    %c0_79 = arith.constant 0 : index
    %209 = vector.load %arg13[%c0_77, %c0_78, %c0_79] : memref<1x1x256xf32, #tpu.memory_space<vmem>>, vector<1x1x256xf32>
    %210 = vector.shape_cast %209 : vector<1x1x256xf32> to vector<1x256xf32>
    %cst_80 = arith.constant dense<0.000000e+00> : vector<32xf32>
    %211 = vector.multi_reduction <add>, %206, %cst_80 [1] : vector<32x256xf32> to vector<32xf32>
    %212 = vector.shape_cast %211 : vector<32xf32> to vector<32x1xf32>
    %cst_81 = arith.constant 2.560000e+02 : f32
    %213 = vector.broadcast %cst_81 : f32 to vector<32x1xf32>
    %214 = arith.divf %212, %213 : vector<32x1xf32>
    %215 = vector.broadcast %214 : vector<32x1xf32> to vector<32x256xf32>
    %216 = arith.subf %206, %215 : vector<32x256xf32>
    %217 = arith.mulf %216, %216 : vector<32x256xf32>
    %cst_82 = arith.constant dense<0.000000e+00> : vector<32xf32>
    %218 = vector.multi_reduction <add>, %217, %cst_82 [1] : vector<32x256xf32> to vector<32xf32>
    %219 = vector.shape_cast %218 : vector<32xf32> to vector<32x1xf32>
    %cst_83 = arith.constant 2.560000e+02 : f32
    %220 = vector.broadcast %cst_83 : f32 to vector<32x1xf32>
    %221 = arith.divf %219, %220 : vector<32x1xf32>
    %222 = vector.broadcast %214 : vector<32x1xf32> to vector<32x256xf32>
    %223 = arith.subf %206, %222 : vector<32x256xf32>
    %cst_84 = arith.constant 9.99999974E-6 : f32
    %224 = vector.broadcast %cst_84 : f32 to vector<32x1xf32>
    %225 = arith.addf %221, %224 : vector<32x1xf32>
    %226 = math.rsqrt %225 : vector<32x1xf32>
    %227 = vector.broadcast %226 : vector<32x1xf32> to vector<32x256xf32>
    %228 = arith.mulf %223, %227 : vector<32x256xf32>
    %229 = vector.broadcast %208 : vector<1x256xf32> to vector<32x256xf32>
    %230 = arith.mulf %228, %229 : vector<32x256xf32>
    %231 = vector.broadcast %210 : vector<1x256xf32> to vector<32x256xf32>
    %232 = arith.addf %230, %231 : vector<32x256xf32>
    %c0_85 = arith.constant 0 : index
    %c0_86 = arith.constant 0 : index
    %233 = vector.load %arg18[%c0_85, %c0_86] : memref<32x256xf32, #tpu.memory_space<vmem>>, vector<32x256xf32>
    tpu.vector_store %arg18[%c0_85, %c0_86], %232 {strides = array<i32>} : memref<32x256xf32, #tpu.memory_space<vmem>>, vector<32x256xf32>,
    %c1_i32 = arith.constant 1 : i32
    %234 = arith.cmpi eq, %arg0, %c1_i32 : i32
    %235 = arith.extui %234 : i1 to i32
    %c0_i32_87 = arith.constant 0 : i32
    %236 = arith.cmpi ne, %235, %c0_i32_87 : i32
    scf.if %236 {
      %237 = vector.shape_cast %232 : vector<32x256xf32> to vector<4x8x256xf32>
      %cst_88 = arith.constant dense<0.000000e+00> : vector<4x256xf32>
      %238 = vector.multi_reduction <add>, %237, %cst_88 [1] : vector<4x8x256xf32> to vector<4x256xf32>
      %cst_89 = arith.constant 8.000000e+00 : f32
      %239 = vector.broadcast %cst_89 : f32 to vector<4x256xf32>
      %240 = arith.divf %238, %239 : vector<4x256xf32>
      %c0_90 = arith.constant 0 : index
      %c0_91 = arith.constant 0 : index
      %241 = vector.load %arg14[%c0_90, %c0_91] : memref<4x256xf32, #tpu.memory_space<vmem>>, vector<4x256xf32>
      %242 = arith.addf %240, %241 : vector<4x256xf32>
      %c0_92 = arith.constant 0 : index
      %c0_93 = arith.constant 0 : index
      %243 = vector.load %arg15[%c0_92, %c0_93] : memref<1x256xf32, #tpu.memory_space<vmem>>, vector<1x256xf32>
      %244 = vector.broadcast %243 : vector<1x256xf32> to vector<4x256xf32>
      %245 = arith.mulf %242, %244 : vector<4x256xf32>
      %cst_94 = arith.constant dense<0.000000e+00> : vector<4xf32>
      %246 = vector.multi_reduction <add>, %245, %cst_94 [1] : vector<4x256xf32> to vector<4xf32>
      %247 = vector.shape_cast %246 : vector<4xf32> to vector<4x1xf32>
      %c0_95 = arith.constant 0 : index
      %c0_96 = arith.constant 0 : index
      %248 = vector.load %arg16[%c0_95, %c0_96] : memref<1x1xf32, #tpu.memory_space<vmem>>, vector<1x1xf32>
      %249 = vector.broadcast %248 : vector<1x1xf32> to vector<4x1xf32>
      %250 = arith.addf %247, %249 : vector<4x1xf32>
      %c0_97 = arith.constant 0 : index
      %c0_98 = arith.constant 0 : index
      %251 = vector.load %arg17[%c0_97, %c0_98] : memref<4x1xf32, #tpu.memory_space<vmem>>, vector<4x1xf32>
      tpu.vector_store %arg17[%c0_97, %c0_98], %250 {strides = array<i32>} : memref<4x1xf32, #tpu.memory_space<vmem>>, vector<4x1xf32>,
    } else {
    }
    return
  }
  func.func @transform_0(%arg0: i32) -> (i32, i32, i32) {
    %c0_i32 = arith.constant 0 : i32
    %c0_i32_0 = arith.constant 0 : i32
    %c0_i32_1 = arith.constant 0 : i32
    %c0_i32_2 = arith.constant 0 : i32
    return %c0_i32, %c0_i32_0, %c0_i32_1 : i32, i32, i32
  }
  func.func @transform_1(%arg0: i32) -> (i32, i32, i32) {
    %c0_i32 = arith.constant 0 : i32
    %c0_i32_0 = arith.constant 0 : i32
    %c0_i32_1 = arith.constant 0 : i32
    return %arg0, %c0_i32, %c0_i32_0 : i32, i32, i32
  }
  func.func @transform_2(%arg0: i32) -> (i32, i32, i32) {
    %c0_i32 = arith.constant 0 : i32
    %c0_i32_0 = arith.constant 0 : i32
    %c0_i32_1 = arith.constant 0 : i32
    return %arg0, %c0_i32, %c0_i32_0 : i32, i32, i32
  }
  func.func @transform_3(%arg0: i32) -> (i32, i32, i32) {
    %c0_i32 = arith.constant 0 : i32
    %c0_i32_0 = arith.constant 0 : i32
    %c0_i32_1 = arith.constant 0 : i32
    return %arg0, %c0_i32, %c0_i32_0 : i32, i32, i32
  }
  func.func @transform_4(%arg0: i32) -> (i32, i32, i32) {
    %c0_i32 = arith.constant 0 : i32
    %c0_i32_0 = arith.constant 0 : i32
    %c0_i32_1 = arith.constant 0 : i32
    return %arg0, %c0_i32, %c0_i32_0 : i32, i32, i32
  }
  func.func @transform_5(%arg0: i32) -> (i32, i32, i32) {
    %c0_i32 = arith.constant 0 : i32
    %c0_i32_0 = arith.constant 0 : i32
    %c0_i32_1 = arith.constant 0 : i32
    return %arg0, %c0_i32, %c0_i32_0 : i32, i32, i32
  }
  func.func @transform_6(%arg0: i32) -> (i32, i32, i32) {
    %c0_i32 = arith.constant 0 : i32
    %c0_i32_0 = arith.constant 0 : i32
    %c0_i32_1 = arith.constant 0 : i32
    return %arg0, %c0_i32, %c0_i32_0 : i32, i32, i32
  }
  func.func @transform_7(%arg0: i32) -> (i32, i32, i32) {
    %c0_i32 = arith.constant 0 : i32
    %c0_i32_0 = arith.constant 0 : i32
    %c0_i32_1 = arith.constant 0 : i32
    return %arg0, %c0_i32, %c0_i32_0 : i32, i32, i32
  }
  func.func @transform_8(%arg0: i32) -> (i32, i32, i32) {
    %c0_i32 = arith.constant 0 : i32
    %c0_i32_0 = arith.constant 0 : i32
    %c0_i32_1 = arith.constant 0 : i32
    return %arg0, %c0_i32, %c0_i32_0 : i32, i32, i32
  }
  func.func @transform_9(%arg0: i32) -> (i32, i32, i32) {
    %c0_i32 = arith.constant 0 : i32
    %c0_i32_0 = arith.constant 0 : i32
    %c0_i32_1 = arith.constant 0 : i32
    return %arg0, %c0_i32, %c0_i32_0 : i32, i32, i32
  }
  func.func @transform_10(%arg0: i32) -> (i32, i32, i32) {
    %c0_i32 = arith.constant 0 : i32
    %c0_i32_0 = arith.constant 0 : i32
    %c0_i32_1 = arith.constant 0 : i32
    return %arg0, %c0_i32, %c0_i32_0 : i32, i32, i32
  }
  func.func @transform_11(%arg0: i32) -> (i32, i32, i32) {
    %c0_i32 = arith.constant 0 : i32
    %c0_i32_0 = arith.constant 0 : i32
    %c0_i32_1 = arith.constant 0 : i32
    return %arg0, %c0_i32, %c0_i32_0 : i32, i32, i32
  }
  func.func @transform_12(%arg0: i32) -> (i32, i32, i32) {
    %c0_i32 = arith.constant 0 : i32
    %c0_i32_0 = arith.constant 0 : i32
    %c0_i32_1 = arith.constant 0 : i32
    return %arg0, %c0_i32, %c0_i32_0 : i32, i32, i32
  }
  func.func @transform_13(%arg0: i32) -> (i32, i32) {
    %c0_i32 = arith.constant 0 : i32
    %c0_i32_0 = arith.constant 0 : i32
    %c0_i32_1 = arith.constant 0 : i32
    return %c0_i32, %c0_i32_0 : i32, i32
  }
  func.func @transform_14(%arg0: i32) -> (i32, i32) {
    %c0_i32 = arith.constant 0 : i32
    %c0_i32_0 = arith.constant 0 : i32
    %c0_i32_1 = arith.constant 0 : i32
    return %c0_i32, %c0_i32_0 : i32, i32
  }
  func.func @transform_15(%arg0: i32) -> (i32, i32) {
    %c0_i32 = arith.constant 0 : i32
    %c0_i32_0 = arith.constant 0 : i32
    %c0_i32_1 = arith.constant 0 : i32
    return %c0_i32, %c0_i32_0 : i32, i32
  }
  func.func @transform_16(%arg0: i32) -> (i32, i32) {
    %c0_i32 = arith.constant 0 : i32
    %c0_i32_0 = arith.constant 0 : i32
    %c0_i32_1 = arith.constant 0 : i32
    return %c0_i32, %c0_i32_0 : i32, i32
  }
}

</mosaic_0001>

<bundles_post_ra>
// kernel: rank_model_forward.1
= control target key start
LH: loop header
LB: loop body
LE: loop exit
PB: predicated region body
PF: predicated region fallthrough
CT: control target
= control target key end

     0   :  { %s15769_s0 = inlined_call_operand.vmem [shape: f32[4,8,256], index: 0, kind: input, shape index: {}]   ;;  %s15770_s1 = inlined_call_operand.hbm [shape: bf16[2,256,768], index: 1, kind: input, shape index: {}]   ;;  %s15771_s2 = inlined_call_operand.hbm [shape: f32[2,1,768], index: 2, kind: input, shape index: {}]   ;;  %s15772_s3 = inlined_call_operand.hbm [shape: bf16[2,256,256], index: 3, kind: input, shape index: {}]   ;;  %s15773_s4 = inlined_call_operand.hbm [shape: f32[2,1,256], index: 4, kind: input, shape index: {}]   ;;  %s15774_s5 = inlined_call_operand.hbm [shape: f32[2,1,256], index: 5, kind: input, shape index: {}]   ;;  %s15775_s6 = inlined_call_operand.hbm [shape: f32[2,1,256], index: 6, kind: input, shape index: {}]   ;;  %s15776_s7 = inlined_call_operand.hbm [shape: bf16[2,256,2048], index: 7, kind: input, shape index: {}]   ;;  %s15777_s8 = inlined_call_operand.hbm [shape: f32[2,1,2048], index: 8, kind: input, shape index: {}]   ;;  %s15778_s9 = inlined_call_operand.hbm [shape: bf16[2,2048,256], index: 9, kind: input, shape index: {}]   ;;  %s15779_s10 = inlined_call_operand.hbm [shape: f32[2,1,256], index: 10, kind: input, shape index: {}]   ;;  %s15780_s11 = inlined_call_operand.hbm [shape: f32[2,1,256], index: 11, kind: input, shape index: {}]   ;;  %s15781_s12 = inlined_call_operand.hbm [shape: f32[2,1,256], index: 12, kind: input, shape index: {}]   ;;  %s15782_s13 = inlined_call_operand.vmem [shape: f32[4,256], index: 13, kind: input, shape index: {}]   ;;  %s15783_s14 = inlined_call_operand.hbm [shape: f32[1,256], index: 14, kind: input, shape index: {}]   ;;  %s15784_s15 = inlined_call_operand.<no memory space> [shape: f32[1,1], index: 15, kind: input, shape index: {}]   ;;  %s15785_s16 = inlined_call_operand.vmem [shape: f32[4,1], index: 16, kind: output, shape index: {}]  }
   0x1   :  { %15814 = sst [smem:[#allocation48_spill]] %s15769_s0  ;;  %v21_v0 = vstv %s15784_s15 }
   0x2   :  { %15815 = sst [smem:[#allocation49_spill]] %s15770_s1  ;;  %22 = vst [vmem:[#allocation3] sm:$0x1] %v21_v0 }
   0x3   :  { %15816 = sst [smem:[#allocation50_spill]] %s15771_s2 }
   0x4   :  { %15817 = sst [smem:[#allocation51_spill]] %s15773_s4 }
   0x5   :  { %15818 = sst [smem:[#allocation52_spill]] %s15782_s13 }
   0x6   :  { %15819 = sst [smem:[#allocation53_spill]] %s15783_s14 }
   0x7   :  { %15820 = sst [smem:[#allocation54_spill]] %s15785_s16 }
   0x8   :  { %23 = vsyncpa [#allocation5], 0 }
   0x9   :  { %25 = vsyncpa [#allocation5 + $0x1], 0 }
   0xa   :  { %26 = vsyncpa [#allocation7], 0 }
   0xb   :  { %28 = vsyncpa [#allocation7 + $0x1], 0 }
   0xc   :  { %29 = vsyncpa [#allocation10], 0 }
   0xd   :  { %31 = vsyncpa [#allocation10 + $0x1], 0 }
   0xe   :  { %32 = vsyncpa [#allocation13], 0 }
   0xf   :  { %34 = vsyncpa [#allocation13 + $0x1], 0 }
  0x10   :  { %35 = vsyncpa [#allocation16], 0 }
  0x11   :  { %37 = vsyncpa [#allocation16 + $0x1], 0 }
  0x12   :  { %38 = vsyncpa [#allocation19], 0 }
  0x13   :  { %40 = vsyncpa [#allocation19 + $0x1], 0 }
  0x14   :  { %41 = vsyncpa [#allocation22], 0 }
  0x15   :  { %43 = vsyncpa [#allocation22 + $0x1], 0  ;;  %s13325_s23 = smov 0   ;;  %s13327_s24 = smov 0  }
  0x16   :  { %s13329_s15 = smov 0   ;;  %s13331_s25 = smov 0  }
  0x17 LB: > { %15821 = sst [smem:[#allocation32_spill]] %s13203_s24  ;;  %s13344_s26 = sadd.s32 4294967295, %s13211_s25   ;;  %s13211_s25 = sphi %s13331_s25, %s15885_s25   ;;  %s13207_s15 = sphi %s13329_s15, %s15888_s15   ;;  %s13203_s24 = sphi %s13327_s24, %s15887_s24   ;;  %s13199_s23 = sphi %s13325_s23, %s15886_s23  }
  0x18   : > { %15822 = sst [smem:[#allocation33_spill]] %s13207_s15  ;;  %s13347_s27 = sadd.s32 1, %s13211_s25  }
  0x19   : > { %15823 = sst [smem:[#allocation34_spill]] %s13344_s26  ;;  %s74_s28 = ssub.s32 %s13211_s25, %s13347_s27 }
  0x1a   : > { %15824 = sst [smem:[#allocation35_spill]] %s13347_s27  ;;  %s77_s29 = sadd.s32 1, %s13207_s15 }
  0x1b   : > { %p75_p0 = scmp.eq.s32.totalorder %s74_s28, 0  ;;  %p84_p1 = scmp.ne.s32.totalorder %s13207_s15, %s13203_s24 }
  0x1c   : > { %p85_p2 = scmp.eq.s32.totalorder %s13211_s25, 0  ;;  %p90_p3 = scmp.ne.s32.totalorder %s13203_s24, %s13199_s23 }
  0x1d   : > { %s13357_s30 = scalar_select %p75_p0, %s13207_s15, %s77_s29  }
  0x1e   : > { %p13359_p4 = por %p85_p2, %p84_p1  ;;  %p15787_p5 = scmp.eq.s32.totalorder %s13344_s26, 0 }
  0x1f   : > { %15825 = sst [smem:[#allocation36_spill]] %s13357_s30  ;;  %p10518_p6 = scmp.ge.s32.totalorder %s13211_s25, 1 }
  0x20   : > { %p471_p7 = scmp.lt.s32.totalorder %s13211_s25, 3  ;;  %p13368_p8 = por %p15787_p5, %p90_p3 }
  0x21   : > { %s13213_s19 = smov [#allocation23]   ;;  %p11952_p12 = scmp.lt.s32.totalorder %s13211_s25, 2 }
  0x22   : > { %s15827_s17 = scalar_select %p13368_p8, 1, 0 }
  0x23   : > { %p13373_p10 = pnand %p10518_p6, %p471_p7  ;;  %s490_s20 = sshll.u32 %s13213_s19, 4  ;;  %s491_s20 = int_to_ptr.vmem [resolvable:$true] %s490_s20 }
  0x24   : > { %15828 = sst [smem:[#allocation37_spill]] %s15827_s17  ;;  %s13381_s21 = sand.u32 1, %s13207_s15  }
  0x25   : > { %s15829_s18 = scalar_select %p13373_p10, 1, 0 }
  0x26   : > { %p11910_p11 = pneg %p13373_p10  ;;  %s13390_s23 = sand.u32 1, %s13211_s25  }
  0x27   : > { %p13394_p0 = pnand %p11952_p12, %p13359_p4  ;;  %s11878_s29 = smul.u32 6, %s13381_s21 }
  0x28   : > { %p13385_p13 = pnand %p11910_p11, %p15787_p5  ;;  %s12798_s19 = scalar_lea.vmem %s491_s20, 32 }
  0x29   : > { %p12799_p2 = scmp.ne.s32.totalorder %s491_s20, %s12798_s19  ;;  %p12806_p7 = scmp.lt.s32.totalorder %s491_s20, %s491_s20 }
  0x2a   : > { %p12789_p1 = pneg %p13385_p13  ;;  %p12807_p11 = scmp.lt.s32.totalorder %s12798_s19, %s12798_s19 }
  0x2c   : > { %p12801_p3 = pnand %p12799_p2, %p12789_p1  ;;  %p12808_p9 = por %p12807_p11, %p12806_p7 }
  0x2e   : > { %p12802_p6 = pneg %p12801_p3 }
  0x30   : > { %p12809_p5 = pnand %p12808_p9, %p12802_p6 }
  0x32   : > { %12812 = shalt.err (!%p12809_p5)
}
  0x33   : > { %s15832_s14 = sld [smem:[#allocation53_spill]]  ;;  %s11879_s15 = smul.u32 96, %s13211_s25 }
  0x34   : > { %s529_s27 = scalar_lea.vmem [#allocation6], %s11878_s29  ;;  %s15833_s2 = sld [smem:[#allocation50_spill]] }
  0x35   : > { %s537_s16 = sshll.u32 %s529_s27, 4  ;;  %s13413_s17 = sshll.u32 %s13381_s21, 1  ;;  %s13407_s16 = int_to_ptr.vmem [resolvable:$true] %s537_s16 }
  0x36   : > { %s15798_s22 = scalar_lea.sflag [#allocation7], %s13390_s23  ;;  %p13418_p5 = pneg %p13394_p0 }
  0x39   : > { %11913 = dma.hbm_to_vmem [thread:$0]  (!%p13385_p13), %s15832_s14, 32, %s491_s20, [#allocation22]  }
  0x3a   : > { %s535_s26 = scalar_lea.hbm %s15833_s2, %s11879_s15  ;;  %s12818_s29 = scalar_lea.hbm %s15833_s2, 192 }
  0x3b   : > { %s12813_s24 = scalar_lea.hbm %s535_s26, 96  ;;  %p12819_p13 = scmp.lt.s32.totalorder %s535_s26, %s15833_s2 }
  0x3c   : > { %p12814_p4 = scmp.ne.s32.totalorder %s535_s26, %s12813_s24  ;;  %p12820_p1 = scmp.lt.s32.totalorder %s12818_s29, %s12813_s24 }
  0x3e   : > { %p12816_p9 = pnand %p13418_p5, %p12814_p4  ;;  %p12821_p2 = por %p12820_p1, %p12819_p13 }
  0x40   : > { %p12817_p12 = pneg %p12816_p9 }
  0x42   : > { %p12822_p3 = pnand %p12821_p2, %p12817_p12 }
  0x44   : > { %12825 = shalt.err (!%p12822_p3)
}
  0x45   : > { %s12826_s0 = scalar_lea.vmem %s13407_s16, 96  ;;  %s13214_s19 = smov [#allocation6]  }
  0x46   : > { %p12827_p6 = scmp.ne.s32.totalorder %s13407_s16, %s12826_s0  ;;  %s12831_s27 = sshll.u32 %s13214_s19, 4  ;;  %s12832_s27 = int_to_ptr.vmem [resolvable:$false] %s12831_s27 }
  0x47   : > { %s12833_s20 = scalar_lea.vmem %s12832_s27, 192  ;;  %p12834_p4 = scmp.lt.s32.totalorder %s13407_s16, %s12832_s27 }
  0x48   : > { %p12829_p7 = pnand %p12827_p6, %p13418_p5  ;;  %p12835_p9 = scmp.lt.s32.totalorder %s12833_s20, %s12826_s0 }
  0x4a   : > { %p12830_p11 = pneg %p12829_p7  ;;  %p12836_p8 = por %p12835_p9, %p12834_p4 }
  0x4c   : > { %p12837_p10 = pnand %p12836_p8, %p12830_p11 }
  0x4e   : > { %12840 = shalt.err (!%p12837_p10)
}
  0x4f   : > { %11920 = dma.hbm_to_vmem [thread:$0]  (!%p13394_p0), %s535_s26, 96, %s13407_s16, %s15798_s22  }
  0x50   : > { %s13441_s24 = sshll.u32 %s13211_s25, 5  ;;  %s15835_s4 = sld [smem:[#allocation51_spill]] }
  0x51   : > { %s569_s0 = scalar_lea.vmem [#allocation9], %s13413_s17 }
  0x52   : > { %s577_s19 = sshll.u32 %s569_s0, 4  ;;  %s578_s19 = int_to_ptr.vmem [resolvable:$true] %s577_s19 }
  0x56   : > { %s13447_s15 = scalar_lea.hbm %s15835_s4, %s13441_s24  ;;  %s12846_s22 = scalar_lea.hbm %s15835_s4, 64 }
  0x57   : > { %s12841_s20 = scalar_lea.hbm %s13447_s15, 32  ;;  %p12847_p13 = scmp.lt.s32.totalorder %s13447_s15, %s15835_s4 }
  0x58   : > { %p12842_p8 = scmp.ne.s32.totalorder %s13447_s15, %s12841_s20  ;;  %p12848_p1 = scmp.lt.s32.totalorder %s12846_s22, %s12841_s20 }
  0x5a   : > { %p12844_p10 = pnand %p12842_p8, %p13418_p5  ;;  %p12849_p2 = por %p12848_p1, %p12847_p13 }
  0x5c   : > { %p12845_p12 = pneg %p12844_p10 }
  0x5e   : > { %p12850_p3 = pnand %p12849_p2, %p12845_p12 }
  0x60   : > { %12853 = shalt.err (!%p12850_p3)
}
  0x61   : > { %s12854_s13 = scalar_lea.vmem %s578_s19, 32  ;;  %s13215_s0 = smov [#allocation9]  }
  0x62   : > { %p12855_p6 = scmp.ne.s32.totalorder %s578_s19, %s12854_s13  ;;  %s12859_s27 = sshll.u32 %s13215_s0, 4  ;;  %s12860_s27 = int_to_ptr.vmem [resolvable:$false] %s12859_s27 }
  0x63   : > { %s12861_s14 = scalar_lea.vmem %s12860_s27, 64  ;;  %p12862_p4 = scmp.lt.s32.totalorder %s578_s19, %s12860_s27 }
  0x64   : > { %p12857_p7 = pnand %p12855_p6, %p13418_p5  ;;  %p12863_p9 = scmp.lt.s32.totalorder %s12861_s14, %s12854_s13 }
  0x66   : > { %p12858_p11 = pneg %p12857_p7  ;;  %p12864_p8 = por %p12863_p9, %p12862_p4 }
  0x68   : > { %p12865_p10 = pnand %p12864_p8, %p12858_p11 }
  0x6a   : > { %12868 = shalt.err (!%p12865_p10)
}
  0x6b   : > { %s15836_s2 = scalar_lea.sflag [#allocation10], %s13390_s23  ;;  %s13473_s16 = scalar_lea.hbm %s15775_s6, %s13441_s24 }
  0x6c   : > { %11926 = dma.hbm_to_vmem [thread:$0]  (!%p13394_p0), %s13447_s15, 32, %s578_s19, %s15836_s2  }
  0x6d   : > { %s607_s14 = scalar_lea.vmem [#allocation12], %s13413_s17  ;;  %s10538_s26 = sshll.u32 %s13381_s21, 4 }
  0x6e   : > { %s615_s27 = sshll.u32 %s607_s14, 4  ;;  %s12869_s13 = scalar_lea.hbm %s13473_s16, 32  ;;  %s616_s27 = int_to_ptr.vmem [resolvable:$true] %s615_s27 }
  0x6f   : > { %p12870_p12 = scmp.ne.s32.totalorder %s13473_s16, %s12869_s13  ;;  %s12874_s19 = scalar_lea.hbm %s15775_s6, 64 }
  0x70   : > { %p12875_p2 = scmp.lt.s32.totalorder %s13473_s16, %s15775_s6  ;;  %p12876_p3 = scmp.lt.s32.totalorder %s12874_s19, %s12869_s13 }
  0x71   : > { %p12872_p13 = pnand %p12870_p12, %p13418_p5 }
  0x72   : > { %p12877_p6 = por %p12876_p3, %p12875_p2 }
  0x73   : > { %p12873_p1 = pneg %p12872_p13 }
  0x75   : > { %p12878_p7 = pnand %p12877_p6, %p12873_p1 }
  0x77   : > { %12881 = shalt.err (!%p12878_p7)
}
  0x78   : > { %s12882_s20 = scalar_lea.vmem %s616_s27, 32  ;;  %s13216_s14 = smov [#allocation12]  }
  0x79   : > { %p12883_p11 = scmp.ne.s32.totalorder %s616_s27, %s12882_s20  ;;  %s12887_s29 = sshll.u32 %s13216_s14, 4  ;;  %s12888_s29 = int_to_ptr.vmem [resolvable:$false] %s12887_s29 }
  0x7a   : > { %s12889_s4 = scalar_lea.vmem %s12888_s29, 64  ;;  %p12890_p8 = scmp.lt.s32.totalorder %s616_s27, %s12888_s29 }
  0x7b   : > { %p12885_p4 = pnand %p12883_p11, %p13418_p5  ;;  %p12891_p10 = scmp.lt.s32.totalorder %s12889_s4, %s12882_s20 }
  0x7d   : > { %p12886_p9 = pneg %p12885_p4  ;;  %p12892_p12 = por %p12891_p10, %p12890_p8 }
  0x7f   : > { %p12893_p13 = pnand %p12892_p12, %p12886_p9 }
  0x81   : > { %12896 = shalt.err (!%p12893_p13)
}
  0x82   : > { %s15837_s13 = scalar_lea.sflag [#allocation13], %s13390_s23  ;;  %s11303_s0 = sshll.u32 %s13211_s25, 8 }
  0x83   : > { %11932 = dma.hbm_to_vmem [thread:$0]  (!%p13394_p0), %s13473_s16, 32, %s616_s27, %s15837_s13  }
  0x84   : > { %s13500_s2 = scalar_lea.hbm %s15777_s8, %s11303_s0  ;;  %s647_s4 = scalar_lea.vmem [#allocation15], %s10538_s26 }
  0x85   : > { %s655_s29 = sshll.u32 %s647_s4, 4  ;;  %s15799_s22 = scalar_lea.sflag [#allocation16], %s13390_s23  ;;  %s656_s29 = int_to_ptr.vmem [resolvable:$true] %s655_s29 }
  0x86   : > { %s12897_s20 = scalar_lea.hbm %s13500_s2, 256  ;;  %s12902_s27 = scalar_lea.hbm %s15777_s8, 512 }
  0x87   : > { %p12898_p1 = scmp.ne.s32.totalorder %s13500_s2, %s12897_s20  ;;  %p12903_p6 = scmp.lt.s32.totalorder %s13500_s2, %s15777_s8 }
  0x88   : > { %p12904_p7 = scmp.lt.s32.totalorder %s12902_s27, %s12897_s20 }
  0x89   : > { %p12900_p2 = pnand %p12898_p1, %p13418_p5 }
  0x8a   : > { %p12905_p11 = por %p12904_p7, %p12903_p6 }
  0x8b   : > { %p12901_p3 = pneg %p12900_p2 }
  0x8d   : > { %p12906_p4 = pnand %p12905_p11, %p12901_p3 }
  0x8f   : > { %12909 = shalt.err (!%p12906_p4)
}
  0x90   : > { %s12910_s26 = scalar_lea.vmem %s656_s29, 256  ;;  %s13217_s0 = smov [#allocation15]  }
  0x91   : > { %p12911_p9 = scmp.ne.s32.totalorder %s656_s29, %s12910_s26  ;;  %s12915_s19 = sshll.u32 %s13217_s0, 4  ;;  %s12916_s19 = int_to_ptr.vmem [resolvable:$false] %s12915_s19 }
  0x92   : > { %s12917_s4 = scalar_lea.vmem %s12916_s19, 512  ;;  %p12918_p12 = scmp.lt.s32.totalorder %s656_s29, %s12916_s19 }
  0x93   : > { %p12913_p8 = pnand %p12911_p9, %p13418_p5  ;;  %p12919_p13 = scmp.lt.s32.totalorder %s12917_s4, %s12910_s26 }
  0x95   : > { %p12914_p10 = pneg %p12913_p8  ;;  %p12920_p1 = por %p12919_p13, %p12918_p12 }
  0x97   : > { %p12921_p2 = pnand %p12920_p1, %p12914_p10 }
  0x99   : > { %12924 = shalt.err (!%p12921_p2)
}
  0x9a   : > { %11938 = dma.hbm_to_vmem [thread:$0]  (!%p13394_p0), %s13500_s2, 256, %s656_s29, %s15799_s22  }
  0x9b   : > { %s13525_s16 = scalar_lea.hbm %s15779_s10, %s13441_s24  ;;  %s687_s27 = scalar_lea.vmem [#allocation18], %s13413_s17 }
  0x9c   : > { %s695_s13 = sshll.u32 %s687_s27, 4  ;;  %s11876_s15 = smul.u32 768, %s13381_s21  ;;  %s696_s13 = int_to_ptr.vmem [resolvable:$true] %s695_s13 }
  0x9d   : > { %s12925_s0 = scalar_lea.hbm %s13525_s16, 32  ;;  %s12930_s29 = scalar_lea.hbm %s15779_s10, 64 }
  0x9e   : > { %p12926_p3 = scmp.ne.s32.totalorder %s13525_s16, %s12925_s0  ;;  %p12931_p11 = scmp.lt.s32.totalorder %s13525_s16, %s15779_s10 }
  0x9f   : > { %p12932_p4 = scmp.lt.s32.totalorder %s12930_s29, %s12925_s0 }
  0xa0   : > { %p12928_p6 = pnand %p12926_p3, %p13418_p5 }
  0xa1   : > { %p12933_p9 = por %p12932_p4, %p12931_p11 }
  0xa2   : > { %p12929_p7 = pneg %p12928_p6 }
  0xa4   : > { %p12934_p8 = pnand %p12933_p9, %p12929_p7 }
  0xa6   : > { %12937 = shalt.err (!%p12934_p8)
}
  0xa7   : > { %s12938_s14 = scalar_lea.vmem %s696_s13, 32  ;;  %s13218_s27 = smov [#allocation18]  }
  0xa8   : > { %p12939_p10 = scmp.ne.s32.totalorder %s696_s13, %s12938_s14  ;;  %s12943_s22 = sshll.u32 %s13218_s27, 4  ;;  %s12944_s22 = int_to_ptr.vmem [resolvable:$false] %s12943_s22 }
  0xa9   : > { %s12945_s26 = scalar_lea.vmem %s12944_s22, 64  ;;  %p12946_p1 = scmp.lt.s32.totalorder %s696_s13, %s12944_s22 }
  0xaa   : > { %p12941_p12 = pnand %p12939_p10, %p13418_p5  ;;  %p12947_p2 = scmp.lt.s32.totalorder %s12945_s26, %s12938_s14 }
  0xac   : > { %p12942_p13 = pneg %p12941_p12  ;;  %p12948_p3 = por %p12947_p2, %p12946_p1 }
  0xae   : > { %p12949_p6 = pnand %p12948_p3, %p12942_p13 }
  0xb0   : > { %12952 = shalt.err (!%p12949_p6)
}
  0xb1   : > { %s15838_s0 = scalar_lea.sflag [#allocation19], %s13390_s23  ;;  %s11877_s19 = smul.u32 12288, %s13211_s25 }
  0xb2   : > { %11944 = dma.hbm_to_vmem [thread:$0]  (!%p13394_p0), %s13525_s16, 32, %s696_s13, %s15838_s0  }
  0xb3   : > { %s508_s2 = scalar_lea.vmem [#allocation4], %s11876_s15  ;;  %s15839_s1 = sld [smem:[#allocation49_spill]] }
  0xb4   : > { %s515_s29 = sshll.u32 %s508_s2, 4  ;;  %s10523_s26 = sshll.u32 %s13381_s21, 8  ;;  %s13554_s29 = int_to_ptr.vmem [resolvable:$true] %s515_s29 }
  0xb5   : > { %s505_s14 = scalar_lea.sflag [#allocation5], %s13381_s21 }
  0xb9   : > { %s13552_s22 = scalar_lea.hbm %s15839_s1, %s11877_s19  ;;  %s12958_s15 = scalar_lea.hbm %s15839_s1, 24576 }
  0xba   : > { %s12953_s27 = scalar_lea.hbm %s13552_s22, 12288  ;;  %p12959_p9 = scmp.lt.s32.totalorder %s13552_s22, %s15839_s1 }
  0xbb   : > { %p12954_p7 = scmp.ne.s32.totalorder %s13552_s22, %s12953_s27  ;;  %p12960_p8 = scmp.lt.s32.totalorder %s12958_s15, %s12953_s27 }
  0xbd   : > { %p12956_p11 = pnand %p12954_p7, %p13418_p5  ;;  %p12961_p10 = por %p12960_p8, %p12959_p9 }
  0xbf   : > { %p12957_p4 = pneg %p12956_p11 }
  0xc1   : > { %p12962_p12 = pnand %p12961_p10, %p12957_p4 }
  0xc3   : > { %12965 = shalt.err (!%p12962_p12)
}
  0xc4   : > { %s12966_s19 = scalar_lea.vmem %s13554_s29, 12288  ;;  %s13219_s4 = smov [#allocation4]  }
  0xc5   : > { %p12967_p13 = scmp.ne.s32.totalorder %s13554_s29, %s12966_s19  ;;  %s12971_s20 = sshll.u32 %s13219_s4, 4  ;;  %s12972_s20 = int_to_ptr.vmem [resolvable:$false] %s12971_s20 }
  0xc6   : > { %s12973_s16 = scalar_lea.vmem %s12972_s20, 24576  ;;  %p12974_p3 = scmp.lt.s32.totalorder %s13554_s29, %s12972_s20 }
  0xc7   : > { %p12969_p1 = pnand %p12967_p13, %p13418_p5  ;;  %p12975_p6 = scmp.lt.s32.totalorder %s12973_s16, %s12966_s19 }
  0xc9   : > { %p12970_p2 = pneg %p12969_p1  ;;  %p12976_p7 = por %p12975_p6, %p12974_p3 }
  0xcb   : > { %p12977_p11 = pnand %p12976_p7, %p12970_p2 }
  0xcd   : > { %12980 = shalt.err (!%p12977_p11)
}
  0xce   : > { %s13220_s27 = smov 384   ;;  %s13221_s13 = smov 24  }
  0xcf   : > { %11917 = dma.hbm_to_vmem [thread:$0]  (!%p13394_p0), %s13552_s22, 12288, %s13554_s29, %s505_s14, %s13220_s27, %s13220_s27, %s13221_s13  }
  0xd0   : > { %s11298_s15 = sshll.u32 %s13211_s25, 12  ;;  %s548_s4 = scalar_lea.vmem [#allocation8], %s10523_s26 }
  0xd1   : > { %s13584_s19 = scalar_lea.hbm %s15772_s3, %s11298_s15  ;;  %s555_s20 = sshll.u32 %s548_s4, 4  ;;  %s13588_s20 = int_to_ptr.vmem [resolvable:$true] %s555_s20 }
  0xd2   : > { %s12981_s16 = scalar_lea.hbm %s13584_s19, 4096  ;;  %s12986_s14 = scalar_lea.hbm %s15772_s3, 8192 }
  0xd3   : > { %p12982_p4 = scmp.ne.s32.totalorder %s13584_s19, %s12981_s16  ;;  %p12987_p10 = scmp.lt.s32.totalorder %s13584_s19, %s15772_s3 }
  0xd4   : > { %p12988_p12 = scmp.lt.s32.totalorder %s12986_s14, %s12981_s16 }
  0xd5   : > { %p12984_p9 = pnand %p12982_p4, %p13418_p5 }
  0xd6   : > { %p12989_p13 = por %p12988_p12, %p12987_p10 }
  0xd7   : > { %p12985_p8 = pneg %p12984_p9 }
  0xd9   : > { %p12990_p1 = pnand %p12989_p13, %p12985_p8 }
  0xdb   : > { %12993 = shalt.err (!%p12990_p1)
}
  0xdc   : > { %s12994_s26 = scalar_lea.vmem %s13588_s20, 4096  ;;  %s13222_s15 = smov [#allocation8]  }
  0xdd   : > { %p12995_p2 = scmp.ne.s32.totalorder %s13588_s20, %s12994_s26  ;;  %s12999_s0 = sshll.u32 %s13222_s15, 4  ;;  %s13000_s0 = int_to_ptr.vmem [resolvable:$false] %s12999_s0 }
  0xde   : > { %s13001_s2 = scalar_lea.vmem %s13000_s0, 8192  ;;  %p13002_p7 = scmp.lt.s32.totalorder %s13588_s20, %s13000_s0 }
  0xdf   : > { %p12997_p3 = pnand %p12995_p2, %p13418_p5  ;;  %p13003_p11 = scmp.lt.s32.totalorder %s13001_s2, %s12994_s26 }
  0xe1   : > { %p12998_p6 = pneg %p12997_p3  ;;  %p13004_p4 = por %p13003_p11, %p13002_p7 }
  0xe3   : > { %p13005_p9 = pnand %p13004_p4, %p12998_p6 }
  0xe5   : > { %13008 = shalt.err (!%p13005_p9)
}
  0xe6   : > { %s15800_s4 = smov 128   ;;  %s15801_s16 = smov 8  }
  0xe7   : > { %s15840_s29 = scalar_lea.sflag [#allocation7], %s13390_s23  ;;  %s13619_s27 = scalar_lea.hbm %s15774_s5, %s13441_s24 }
  0xe8   : > { %11923 = dma.hbm_to_vmem [thread:$0]  (!%p13394_p0), %s13584_s19, 4096, %s13588_s20, %s15840_s29, %s15800_s4, %s15800_s4, %s15801_s16  }
  0xe9   : > { %s588_s13 = scalar_lea.vmem [#allocation11], %s13413_s17  ;;  %s10535_s15 = sshll.u32 %s13381_s21, 11 }
  0xea   : > { %s596_s26 = sshll.u32 %s588_s13, 4  ;;  %s13009_s0 = scalar_lea.hbm %s13619_s27, 32  ;;  %s597_s26 = int_to_ptr.vmem [resolvable:$true] %s596_s26 }
  0xeb   : > { %p13010_p8 = scmp.ne.s32.totalorder %s13619_s27, %s13009_s0  ;;  %s13014_s19 = scalar_lea.hbm %s15774_s5, 64 }
  0xec   : > { %p13015_p13 = scmp.lt.s32.totalorder %s13619_s27, %s15774_s5  ;;  %p13016_p1 = scmp.lt.s32.totalorder %s13014_s19, %s13009_s0 }
  0xed   : > { %p13012_p10 = pnand %p13010_p8, %p13418_p5 }
  0xee   : > { %p13017_p2 = por %p13016_p1, %p13015_p13 }
  0xef   : > { %p13013_p12 = pneg %p13012_p10 }
  0xf1   : > { %p13018_p3 = pnand %p13017_p2, %p13013_p12 }
  0xf3   : > { %13021 = shalt.err (!%p13018_p3)
}
  0xf4   : > { %s13022_s22 = scalar_lea.vmem %s597_s26, 32  ;;  %s13225_s14 = smov [#allocation11]  }
  0xf5   : > { %p13023_p6 = scmp.ne.s32.totalorder %s597_s26, %s13022_s22  ;;  %s13027_s13 = sshll.u32 %s13225_s14, 4  ;;  %s13028_s13 = int_to_ptr.vmem [resolvable:$false] %s13027_s13 }
  0xf6   : > { %s13029_s4 = scalar_lea.vmem %s13028_s13, 64  ;;  %p13030_p4 = scmp.lt.s32.totalorder %s597_s26, %s13028_s13 }
  0xf7   : > { %p13025_p7 = pnand %p13023_p6, %p13418_p5  ;;  %p13031_p9 = scmp.lt.s32.totalorder %s13029_s4, %s13022_s22 }
  0xf9   : > { %p13026_p11 = pneg %p13025_p7  ;;  %p13032_p8 = por %p13031_p9, %p13030_p4 }
  0xfb   : > { %p13033_p10 = pnand %p13032_p8, %p13026_p11 }
  0xfd   : > { %13036 = shalt.err (!%p13033_p10)
}
  0xfe   : > { %s15841_s1 = scalar_lea.sflag [#allocation10], %s13390_s23  ;;  %s11302_s0 = sshll.u32 %s13211_s25, 15 }
  0xff   : > { %11929 = dma.hbm_to_vmem [thread:$0]  (!%p13394_p0), %s13619_s27, 32, %s597_s26, %s15841_s1  }
 0x100   : > { %s13647_s20 = scalar_lea.hbm %s15776_s7, %s11302_s0  ;;  %s626_s4 = scalar_lea.vmem [#allocation14], %s10535_s15 }
 0x101   : > { %s633_s29 = sshll.u32 %s626_s4, 4  ;;  %s13037_s22 = scalar_lea.hbm %s13647_s20, 32768  ;;  %s13651_s29 = int_to_ptr.vmem [resolvable:$true] %s633_s29 }
 0x102   : > { %p13038_p12 = scmp.ne.s32.totalorder %s13647_s20, %s13037_s22  ;;  %s13042_s14 = scalar_lea.hbm %s15776_s7, 65536 }
 0x103   : > { %p13043_p2 = scmp.lt.s32.totalorder %s13647_s20, %s15776_s7  ;;  %p13044_p3 = scmp.lt.s32.totalorder %s13042_s14, %s13037_s22 }
 0x104   : > { %p13040_p13 = pnand %p13038_p12, %p13418_p5 }
 0x105   : > { %p13045_p6 = por %p13044_p3, %p13043_p2 }
 0x106   : > { %p13041_p1 = pneg %p13040_p13 }
 0x108   : > { %p13046_p7 = pnand %p13045_p6, %p13041_p1 }
 0x10a   : > { %13049 = shalt.err (!%p13046_p7)
}
 0x10b   : > { %s13050_s2 = scalar_lea.vmem %s13651_s29, 32768  ;;  %s13226_s19 = smov [#allocation14]  }
 0x10c   : > { %p13051_p11 = scmp.ne.s32.totalorder %s13651_s29, %s13050_s2  ;;  %s13055_s4 = sshll.u32 %s13226_s19, 4  ;;  %s13056_s4 = int_to_ptr.vmem [resolvable:$false] %s13055_s4 }
 0x10d   : > { %s13057_s27 = scalar_lea.vmem %s13056_s4, 65536  ;;  %p13058_p8 = scmp.lt.s32.totalorder %s13651_s29, %s13056_s4 }
 0x10e   : > { %p13053_p4 = pnand %p13051_p11, %p13418_p5  ;;  %p13059_p10 = scmp.lt.s32.totalorder %s13057_s27, %s13050_s2 }
 0x110   : > { %p13054_p9 = pneg %p13053_p4  ;;  %p13060_p12 = por %p13059_p10, %p13058_p8 }
 0x112   : > { %p13061_p13 = pnand %p13060_p12, %p13054_p9 }
 0x114   : > { %13064 = shalt.err (!%p13061_p13)
}
 0x115   : > { %s13227_s22 = smov 1024   ;;  %s13228_s26 = smov 64  }
 0x116   : > { %s15842_s14 = scalar_lea.sflag [#allocation13], %s13390_s23  ;;  %s13680_s2 = scalar_lea.hbm %s15778_s9, %s11302_s0 }
 0x117   : > { %11935 = dma.hbm_to_vmem [thread:$0]  (!%p13394_p0), %s13647_s20, 32768, %s13651_s29, %s15842_s14, %s13227_s22, %s13227_s22, %s13228_s26  }
 0x118   : > { %s666_s19 = scalar_lea.vmem [#allocation17], %s10535_s15  ;;  %s13065_s27 = scalar_lea.hbm %s13680_s2, 32768 }
 0x119   : > { %s673_s4 = sshll.u32 %s666_s19, 4  ;;  %p13066_p1 = scmp.ne.s32.totalorder %s13680_s2, %s13065_s27  ;;  %s674_s4 = int_to_ptr.vmem [resolvable:$true] %s673_s4 }
 0x11a   : > { %s13070_s25 = scalar_lea.hbm %s15778_s9, 65536  ;;  %p13071_p6 = scmp.lt.s32.totalorder %s13680_s2, %s15778_s9 }
 0x11b   : > { %p13068_p2 = pnand %p13066_p1, %p13418_p5  ;;  %p13072_p7 = scmp.lt.s32.totalorder %s13070_s25, %s13065_s27 }
 0x11d   : > { %p13069_p3 = pneg %p13068_p2  ;;  %p13073_p11 = por %p13072_p7, %p13071_p6 }
 0x11f   : > { %p13074_p4 = pnand %p13073_p11, %p13069_p3 }
 0x121   : > { %13077 = shalt.err (!%p13074_p4)
}
 0x122   : > { %s13078_s21 = scalar_lea.vmem %s674_s4, 32768  ;;  %s13229_s15 = smov [#allocation17]  }
 0x123   : > { %p13079_p9 = scmp.ne.s32.totalorder %s674_s4, %s13078_s21  ;;  %s13083_s0 = sshll.u32 %s13229_s15, 4  ;;  %s13084_s0 = int_to_ptr.vmem [resolvable:$false] %s13083_s0 }
 0x124   : > { %s13085_s26 = scalar_lea.vmem %s13084_s0, 65536  ;;  %p13086_p12 = scmp.lt.s32.totalorder %s674_s4, %s13084_s0 }
 0x125   : > { %p13081_p8 = pnand %p13079_p9, %p13418_p5  ;;  %p13087_p13 = scmp.lt.s32.totalorder %s13085_s26, %s13078_s21 }
 0x127   : > { %p13082_p10 = pneg %p13081_p8  ;;  %p13088_p1 = por %p13087_p13, %p13086_p12 }
 0x129   : > { %p13089_p2 = pnand %p13088_p1, %p13082_p10 }
 0x12b   : > { %13092 = shalt.err (!%p13089_p2)
}
 0x12c   : > { %s15843_s16 = smov 8   ;;  %s15844_s14 = smov 128  }
 0x12d   : > { %s15845_s13 = scalar_lea.sflag [#allocation16], %s13390_s23  ;;  %s712_s27 = scalar_lea.hbm %s15780_s11, %s13441_s24 }
 0x12e   : > { %11941 = dma.hbm_to_vmem [thread:$0]  (!%p13394_p0), %s13680_s2, 32768, %s674_s4, %s15845_s13, %s15844_s14, %s15844_s14, %s15843_s16  }
 0x12f   : > { %s706_s20 = scalar_lea.vmem [#allocation20], %s13413_s17  ;;  %s13093_s29 = scalar_lea.hbm %s712_s27, 32 }
 0x130   : > { %s714_s25 = sshll.u32 %s706_s20, 4  ;;  %p13094_p3 = scmp.ne.s32.totalorder %s712_s27, %s13093_s29  ;;  %s715_s25 = int_to_ptr.vmem [resolvable:$true] %s714_s25 }
 0x131   : > { %s13098_s15 = scalar_lea.hbm %s15780_s11, 64  ;;  %p13099_p11 = scmp.lt.s32.totalorder %s712_s27, %s15780_s11 }
 0x132   : > { %p13096_p6 = pnand %p13094_p3, %p13418_p5  ;;  %p13100_p4 = scmp.lt.s32.totalorder %s13098_s15, %s13093_s29 }
 0x134   : > { %p13097_p7 = pneg %p13096_p6  ;;  %p13101_p9 = por %p13100_p4, %p13099_p11 }
 0x136   : > { %p13102_p8 = pnand %p13101_p9, %p13097_p7 }
 0x138   : > { %13105 = shalt.err (!%p13102_p8)
}
 0x139   : > { %s13106_s2 = scalar_lea.vmem %s715_s25, 32  ;;  %s13230_s4 = smov [#allocation20]  }
 0x13a   : > { %p13107_p10 = scmp.ne.s32.totalorder %s715_s25, %s13106_s2  ;;  %s13111_s16 = sshll.u32 %s13230_s4, 4  ;;  %s13112_s16 = int_to_ptr.vmem [resolvable:$false] %s13111_s16 }
 0x13b   : > { %s13113_s14 = scalar_lea.vmem %s13112_s16, 64  ;;  %p13114_p1 = scmp.lt.s32.totalorder %s715_s25, %s13112_s16 }
 0x13c   : > { %p13109_p12 = pnand %p13107_p10, %p13418_p5  ;;  %p13115_p2 = scmp.lt.s32.totalorder %s13113_s14, %s13106_s2 }
 0x13e   : > { %p13110_p13 = pneg %p13109_p12  ;;  %p13116_p3 = por %p13115_p2, %p13114_p1 }
 0x140   : > { %p13117_p6 = pnand %p13116_p3, %p13110_p13 }
 0x142   : > { %13120 = shalt.err (!%p13117_p6)
}
 0x143   : > { %s15846_s13 = scalar_lea.sflag [#allocation19], %s13390_s23  ;;  %s13728_s20 = scalar_lea.hbm %s15781_s12, %s13441_s24 }
 0x144   : > { %11947 = dma.hbm_to_vmem [thread:$0]  (!%p13394_p0), %s712_s27, 32, %s715_s25, %s15846_s13  }
 0x145   : > { %s725_s29 = scalar_lea.vmem [#allocation21], %s13413_s17  ;;  %s722_s21 = scalar_lea.sflag [#allocation22], %s13390_s23 }
 0x146   : > { %s733_s22 = sshll.u32 %s725_s29, 4  ;;  %s13121_s15 = scalar_lea.hbm %s13728_s20, 32  ;;  %s734_s22 = int_to_ptr.vmem [resolvable:$true] %s733_s22 }
 0x147   : > { %p13122_p7 = scmp.ne.s32.totalorder %s13728_s20, %s13121_s15  ;;  %s13126_s27 = scalar_lea.hbm %s15781_s12, 64 }
 0x148   : > { %p13127_p9 = scmp.lt.s32.totalorder %s13728_s20, %s15781_s12  ;;  %p13128_p8 = scmp.lt.s32.totalorder %s13126_s27, %s13121_s15 }
 0x149   : > { %p13124_p11 = pnand %p13122_p7, %p13418_p5 }
 0x14a   : > { %p13129_p10 = por %p13128_p8, %p13127_p9 }
 0x14b   : > { %p13125_p4 = pneg %p13124_p11 }
 0x14d   : > { %p13130_p12 = pnand %p13129_p10, %p13125_p4 }
 0x14f   : > { %13133 = shalt.err (!%p13130_p12)
}
 0x150   : > { %s13134_s17 = scalar_lea.vmem %s734_s22, 32  ;;  %s13231_s23 = smov [#allocation21]  }
 0x151   : > { %p13135_p13 = scmp.ne.s32.totalorder %s734_s22, %s13134_s17  ;;  %s13139_s24 = sshll.u32 %s13231_s23, 4  ;;  %s13140_s24 = int_to_ptr.vmem [resolvable:$false] %s13139_s24 }
 0x152   : > { %s13141_s4 = scalar_lea.vmem %s13140_s24, 64  ;;  %p13142_p3 = scmp.lt.s32.totalorder %s734_s22, %s13140_s24 }
 0x153   : > { %p13137_p1 = pnand %p13135_p13, %p13418_p5  ;;  %p13143_p6 = scmp.lt.s32.totalorder %s13141_s4, %s13134_s17 }
 0x155   : > { %p13138_p2 = pneg %p13137_p1  ;;  %p13144_p7 = por %p13143_p6, %p13142_p3 }
 0x157   : > { %p13145_p11 = pnand %p13144_p7, %p13138_p2 }
 0x159   : > { %13148 = shalt.err (!%p13145_p11)
}
 0x15a   : > { %11950 = dma.hbm_to_vmem [thread:$0]  (!%p13394_p0), %s13728_s20, 32, %s734_s22, %s722_s21  }
 0x15b   : > { %p15847_p4 = scmp.ne.s32.totalorder %s15829_s18, 0 }
 0x15d   : > { %742 = sbr.rel (%p15847_p4) target bundleno = 7107 (0x1bc3), region = 84 }
 0x162   : > { %s15848_s16 = sld [smem:[#allocation32_spill]] }
 0x163   : > { %s15849_s30 = sld [smem:[#allocation37_spill]] }
 0x168   : > { %s13751_s14 = sand.u32 1, %s15848_s16  }
 0x169   : > { %s11880_s13 = smul.u32 768, %s13751_s14  ;;  %s745_s1 = scalar_lea.sflag [#allocation5], %s13751_s14 }
 0x16a   : > { %p15850_p5 = scmp.ne.s32.totalorder %s15849_s30, 0 }
 0x16b   : > { %s13755_s19 = scalar_lea.vmem [#allocation4], %s11880_s13 }
 0x16c   : > { %13166 = dma.done.wait (%p15850_p5), %s745_s1, 12288  }
 0x16d   : > { %13168 = vsyncadd (%p15850_p5), %s745_s1, 4294955008  ;;  %s15851_s28 = sld [smem:[#allocation34_spill]]  ;;  %s11881_s20 = smul.u32 6, %s13751_s14 }
 0x16f   : > { %s13766_s22 = scalar_lea.vmem [#allocation6], %s11881_s20 }
 0x173   : > { %s13762_s18 = sand.u32 1, %s15851_s28  }
 0x174   : > { %s754_s29 = scalar_lea.sflag [#allocation7], %s13762_s18 }
 0x175   : > { %13170 = dma.done.wait (%p15850_p5), %s754_s29, 4192  }
 0x176   : > { %13172 = vsyncadd (%p15850_p5), %s754_s29, 4294963104  ;;  %s10554_s21 = sshll.u32 %s13751_s14, 8  ;;  %s13774_s15 = sshll.u32 %s13751_s14, 1 }
 0x177   : > { %s13776_s0 = scalar_lea.vmem [#allocation8], %s10554_s21  ;;  %s772_s26 = scalar_lea.sflag [#allocation10], %s13762_s18 }
 0x178   : > { %s775_s27 = scalar_lea.vmem [#allocation9], %s13774_s15 }
 0x179   : > { %13174 = dma.done.wait (%p15850_p5), %s772_s26, 64  }
 0x17a   : > { %13176 = vsyncadd (%p15850_p5), %s772_s26, 4294967232  ;;  %s784_s25 = scalar_lea.vmem [#allocation11], %s13774_s15  ;;  %s790_s2 = scalar_lea.sflag [#allocation13], %s13762_s18 }
 0x17b   : > { %s793_s17 = scalar_lea.vmem [#allocation12], %s13774_s15 }
 0x17c   : > { %13178 = dma.done.wait (%p15850_p5), %s790_s2, 32800  }
 0x17d   : > { %13180 = vsyncadd (%p15850_p5), %s790_s2, 4294934496  ;;  %s10558_s23 = sshll.u32 %s13751_s14, 11  ;;  %s10559_s24 = sshll.u32 %s13751_s14, 4 }
 0x17e   : > { %s13793_s4 = scalar_lea.vmem [#allocation14], %s10558_s23  ;;  %s808_s16 = scalar_lea.sflag [#allocation16], %s13762_s18 }
 0x17f   : > { %s13796_s13 = scalar_lea.vmem [#allocation15], %s10559_s24 }
 0x180   : > { %13182 = dma.done.wait (%p15850_p5), %s808_s16, 33024  }
 0x181   : > { %13184 = vsyncadd (%p15850_p5), %s808_s16, 4294934272  ;;  %s13802_s1 = scalar_lea.vmem [#allocation17], %s10558_s23  ;;  %s826_s20 = scalar_lea.sflag [#allocation19], %s13762_s18 }
 0x182   : > { %13186 = dma.done.wait (%p15850_p5), %s826_s20, 64  }
 0x183   : > { %13188 = vsyncadd (%p15850_p5), %s826_s20, 4294967232  ;;  %s844_s21 = scalar_lea.sflag [#allocation22], %s13762_s18 }
 0x184   : > { %13190 = dma.done.wait (%p15850_p5), %s844_s21, 32  }
 0x185   : > { %13192 = vsyncadd (%p15850_p5), %s844_s21, 4294967264  ;;  %p15852_p0 = scmp.eq.s32.totalorder %s15851_s28, 0 }
 0x187   : > { %13194 = dma.done.wait (%p15852_p0), [#allocation22], 32   ;;  %p15853_p9 = pmov %p15852_p0 }
 0x188   : > { %p15854_p8 = scmp.ne.s32.totalorder %s15851_s28, 0 }
 0x189   : > { %13196 = vsyncadd (%p15853_p9), [#allocation22], 4294967264  ;;  %s15855_s24 = sld [smem:[#allocation48_spill]] (!%p15854_p8) }
 0x18a   : > { %954 = sbr.rel (%p15854_p8) target bundleno = 405 (0x195), region = 140 }
 0x18f   : > { %s15856_s16 = smov %s15855_s24  ;;  %v955_v1 = vld [vmem:[%s15855_s24] sm:$0xff] }
 0x190   : > { %v956_v2 = vld [vmem:[%s15856_s16 + $0x8] sm:$0xff]  ;;  %v957_v3 = vld [vmem:[%s15856_s16 + $0x10] sm:$0xff]  ;;  %963 = vst [vmem:[#allocation2 + $0x30] sm:$0xff] %v955_v1  ;;  %v958_v4 = vld [vmem:[%s15856_s16 + $0x18] sm:$0xff] }
 0x191   : > { %964 = vst [vmem:[#allocation2] sm:$0xff] %v956_v2  ;;  %965 = vst [vmem:[#allocation2 + $0x18] sm:$0xff] %v957_v3  ;;  %v959_v5 = vld [vmem:[%s15856_s16 + $0x20] sm:$0xff]  ;;  %v960_v6 = vld [vmem:[%s15856_s16 + $0x28] sm:$0xff] }
 0x192   : > { %966 = vst [vmem:[#allocation2 + $0x10] sm:$0xff] %v958_v4  ;;  %967 = vst [vmem:[#allocation2 + $0x8] sm:$0xff] %v959_v5  ;;  %v961_v7 = vld [vmem:[%s15856_s16 + $0x30] sm:$0xff]  ;;  %v962_v8 = vld [vmem:[%s15856_s16 + $0x38] sm:$0xff] }
 0x193   : > { %968 = vst [vmem:[#allocation2 + $0x20] sm:$0xff] %v960_v6  ;;  %969 = vst [vmem:[#allocation2 + $0x28] sm:$0xff] %v961_v7 }
 0x194   : > { %970 = vst [vmem:[#allocation2 + $0x38] sm:$0xff] %v962_v8 }
 0x195 PF: > { %v12058_v9 = vld [vmem:[%s13755_s19 + $0x15c] ss:$24 sps:$4 sm:$0xff]   ;;  %v12062_v11 = vld [vmem:[%s13755_s19 + $0x158] ss:$24 sps:$4 sm:$0xff]   ;;  %v12064_v13 = vld [vmem:[%s13755_s19 + $0x12c] ss:$24 sps:$4 sm:$0xff]  }
 0x196   : > { %v12060_v10 = vld [vmem:[%s13755_s19 + $0x154] ss:$24 sps:$4 sm:$0xff]   ;;  %1644 = vmatprep.subr.bf16.mxu1 %v12058_v9  ;;  %v12063_v12 = vld [vmem:[%s13755_s19 + $0x150] ss:$24 sps:$4 sm:$0xff]   ;;  %v12066_v14 = vld [vmem:[%s13755_s19 + $0x124] ss:$24 sps:$4 sm:$0xff]  }
 0x197   : > { %1591 = vmatprep.subr.bf16.mxu0 %v12060_v10  ;;  %1645 = vmatpush1.bf16.msra.mxu1 %v12062_v11  ;;  %v12068_v15 = vld [vmem:[%s13755_s19 + $0x128] ss:$24 sps:$4 sm:$0xff]   ;;  %v12070_v17 = vld [vmem:[%s13755_s19 + $0xfc] ss:$24 sps:$4 sm:$0xff]   ;;  %v12074_v19 = vld [vmem:[%s13755_s19 + $0xf8] ss:$24 sps:$4 sm:$0xff]  }
 0x198   : > { %1592 = vmatpush1.bf16.msra.mxu0 %v12063_v12  ;;  %1646 = vmatprep.subr.bf16.mxu1 %v12064_v13  ;;  %v12069_v16 = vld [vmem:[%s13755_s19 + $0x120] ss:$24 sps:$4 sm:$0xff]   ;;  %v12072_v18 = vld [vmem:[%s13755_s19 + $0xf4] ss:$24 sps:$4 sm:$0xff]   ;;  %v12075_v20 = vld [vmem:[%s13755_s19 + $0xf0] ss:$24 sps:$4 sm:$0xff]  }
 0x199   : > { %1593 = vmatprep.subr.bf16.mxu0 %v12066_v14  ;;  %v12076_v21 = vld [vmem:[%s13755_s19 + $0xcc] ss:$24 sps:$4 sm:$0xff]   ;;  %v12080_v23 = vld [vmem:[%s13755_s19 + $0xc8] ss:$24 sps:$4 sm:$0xff]   ;;  %v12082_v25 = vld [vmem:[%s13755_s19 + $0x9c] ss:$24 sps:$4 sm:$0xff]  }
 0x19a   : > { %v12078_v22 = vld [vmem:[%s13755_s19 + $0xc4] ss:$24 sps:$4 sm:$0xff]   ;;  %v12081_v24 = vld [vmem:[%s13755_s19 + $0xc0] ss:$24 sps:$4 sm:$0xff]   ;;  %v12084_v26 = vld [vmem:[%s13755_s19 + $0x94] ss:$24 sps:$4 sm:$0xff]  }
 0x19b   : > { %1647 = vmatpush1.bf16.msra.mxu1 %v12068_v15  ;;  %v12086_v27 = vld [vmem:[%s13755_s19 + $0x98] ss:$24 sps:$4 sm:$0xff]   ;;  %v12088_v29 = vld [vmem:[%s13755_s19 + $0x6c] ss:$24 sps:$4 sm:$0xff]   ;;  %v12092_v31 = vld [vmem:[%s13755_s19 + $0x68] ss:$24 sps:$4 sm:$0xff]  }
 0x19c   : > { %1594 = vmatpush1.bf16.msra.mxu0 %v12069_v16  ;;  %1648 = vmatprep.subr.bf16.mxu1 %v12070_v17  ;;  %v12087_v28 = vld [vmem:[%s13755_s19 + $0x90] ss:$24 sps:$4 sm:$0xff]   ;;  %v12090_v30 = vld [vmem:[%s13755_s19 + $0x64] ss:$24 sps:$4 sm:$0xff]   ;;  %v12093_v32 = vld [vmem:[%s13755_s19 + $0x60] ss:$24 sps:$4 sm:$0xff]  }
 0x19d   : > { %1595 = vmatprep.subr.bf16.mxu0 %v12072_v18  ;;  %v12094_v33 = vld [vmem:[%s13755_s19 + $0x3c] ss:$24 sps:$4 sm:$0xff]   ;;  %v12098_v35 = vld [vmem:[%s13755_s19 + $0x38] ss:$24 sps:$4 sm:$0xff]   ;;  %v12100_v37 = vld [vmem:[%s13755_s19 + $0xc] ss:$24 sps:$4 sm:$0xff]  }
 0x19e   : > { %v12096_v34 = vld [vmem:[%s13755_s19 + $0x34] ss:$24 sps:$4 sm:$0xff]   ;;  %v12099_v36 = vld [vmem:[%s13755_s19 + $0x30] ss:$24 sps:$4 sm:$0xff]   ;;  %v12102_v38 = vld [vmem:[%s13755_s19 + $0x4] ss:$24 sps:$4 sm:$0xff]  }
 0x19f   : > { %1649 = vmatpush1.bf16.msra.mxu1 %v12074_v19  ;;  %v12104_v39 = vld [vmem:[%s13755_s19 + $0x8] ss:$24 sps:$4 sm:$0xff]   ;;  %v12106_v41 = vld [vmem:[%s13755_s19 + $0x2dc] ss:$24 sps:$4 sm:$0xff]   ;;  %v12110_v43 = vld [vmem:[%s13755_s19 + $0x2d8] ss:$24 sps:$4 sm:$0xff]  }
 0x1a0   : > { %1596 = vmatpush1.bf16.msra.mxu0 %v12075_v20  ;;  %1650 = vmatprep.subr.bf16.mxu1 %v12076_v21  ;;  %v12105_v40 = vld [vmem:[%s13755_s19] ss:$24 sps:$4 sm:$0xff]   ;;  %v12108_v42 = vld [vmem:[%s13755_s19 + $0x2d4] ss:$24 sps:$4 sm:$0xff]   ;;  %v12111_v44 = vld [vmem:[%s13755_s19 + $0x2d0] ss:$24 sps:$4 sm:$0xff]  }
 0x1a1   : > { %1597 = vmatprep.subr.bf16.mxu0 %v12078_v22  ;;  %v12112_v45 = vld [vmem:[%s13755_s19 + $0x2ac] ss:$24 sps:$4 sm:$0xff]   ;;  %v12116_v47 = vld [vmem:[%s13755_s19 + $0x2a8] ss:$24 sps:$4 sm:$0xff]   ;;  %v12118_v49 = vld [vmem:[%s13755_s19 + $0x27c] ss:$24 sps:$4 sm:$0xff]  }
 0x1a2   : > { %v12114_v46 = vld [vmem:[%s13755_s19 + $0x2a4] ss:$24 sps:$4 sm:$0xff]   ;;  %v12117_v48 = vld [vmem:[%s13755_s19 + $0x2a0] ss:$24 sps:$4 sm:$0xff]   ;;  %v12120_v50 = vld [vmem:[%s13755_s19 + $0x274] ss:$24 sps:$4 sm:$0xff]  }
 0x1a3   : > { %1651 = vmatpush1.bf16.msra.mxu1 %v12080_v23  ;;  %v12122_v51 = vld [vmem:[%s13755_s19 + $0x278] ss:$24 sps:$4 sm:$0xff]   ;;  %v12124_v53 = vld [vmem:[%s13755_s19 + $0x24c] ss:$24 sps:$4 sm:$0xff]   ;;  %v12128_v57 = vld [vmem:[%s13755_s19 + $0x248] ss:$24 sps:$4 sm:$0xff]  }
 0x1a4   : > { %1598 = vmatpush1.bf16.msra.mxu0 %v12081_v24  ;;  %1652 = vmatprep.subr.bf16.mxu1 %v12082_v25  ;;  %v12123_v52 = vld [vmem:[%s13755_s19 + $0x270] ss:$24 sps:$4 sm:$0xff]   ;;  %v12126_v54 = vld [vmem:[%s13755_s19 + $0x244] ss:$24 sps:$4 sm:$0xff]   ;;  %v12129_v58 = vld [vmem:[%s13755_s19 + $0x240] ss:$24 sps:$4 sm:$0xff]  }
 0x1a5   : > { %1599 = vmatprep.subr.bf16.mxu0 %v12084_v26  ;;  %v972_v55 = vld [vmem:[#allocation2] sm:$0xff]  ;;  %v974_v56 = vld [vmem:[#allocation2 + $0x10] sm:$0xff]  ;;  %v973_v13 = vld [vmem:[#allocation2 + $0x18] sm:$0xff]  ;;  %vm13233_vm0 = vmmov 0   ;;  %vm1818_vm1 = vcmask 261120   ;;  %vm2003_vm2 = vcmask 64512  }
 0x1a6   : > { %v12130_v59 = vld [vmem:[%s13755_s19 + $0x21c] ss:$24 sps:$4 sm:$0xff]   ;;  %v13896_v60 = vpack.c.bf16 %v974_v56, %v972_v55  ;;  %v12134_v62 = vld [vmem:[%s13755_s19 + $0x218] ss:$24 sps:$4 sm:$0xff]   ;;  %v12136_v0 = vld [vmem:[%s13755_s19 + $0x1ec] ss:$24 sps:$4 sm:$0xff]  }
 0x1a7   : > { %1653 = vmatpush1.bf16.msra.mxu1 %v12086_v27  ;;  %v12132_v61 = vld [vmem:[%s13755_s19 + $0x214] ss:$24 sps:$4 sm:$0xff]   ;;  %v12135_v63 = vld [vmem:[%s13755_s19 + $0x210] ss:$24 sps:$4 sm:$0xff]   ;;  %v12138_v1 = vld [vmem:[%s13755_s19 + $0x1e4] ss:$24 sps:$4 sm:$0xff]  }
 0x1a8   : > { %1600 = vmatpush1.bf16.msra.mxu0 %v12087_v28  ;;  %1654 = vmatprep.subr.bf16.mxu1 %v12088_v29  ;;  %v12140_v2 = vld [vmem:[%s13755_s19 + $0x1e8] ss:$24 sps:$4 sm:$0xff]   ;;  %v12142_v4 = vld [vmem:[%s13755_s19 + $0x1bc] ss:$24 sps:$4 sm:$0xff]   ;;  %v12146_v6 = vld [vmem:[%s13755_s19 + $0x1b8] ss:$24 sps:$4 sm:$0xff]  }
 0x1a9   : > { %1601 = vmatprep.subr.bf16.mxu0 %v12090_v30  ;;  %1676 = vmatprep.mubr.bf16.mxu1 %v13896_v60  ;;  %v12141_v3 = vld [vmem:[%s13755_s19 + $0x1e0] ss:$24 sps:$4 sm:$0xff]   ;;  %v12144_v5 = vld [vmem:[%s13755_s19 + $0x1b4] ss:$24 sps:$4 sm:$0xff]   ;;  %v12147_v7 = vld [vmem:[%s13755_s19 + $0x1b0] ss:$24 sps:$4 sm:$0xff]  }
 0x1aa   : > { %1623 = vmatprep.mubr.bf16.mxu0 %v13896_v60  ;;  %v12148_v8 = vld [vmem:[%s13755_s19 + $0x18c] ss:$24 sps:$4 sm:$0xff]   ;;  %v12152_v10 = vld [vmem:[%s13755_s19 + $0x188] ss:$24 sps:$4 sm:$0xff]   ;;  %v978_v15 = vld [vmem:[#allocation2 + $0x38] sm:$0xff]  ;;  %vm2055_vm3 = vcmask 1043456  }
 0x1ab   : > { %1655 = vmatpush1.bf16.msra.mxu1 %v12092_v31  ;;  %v12150_v9 = vld [vmem:[%s13755_s19 + $0x184] ss:$24 sps:$4 sm:$0xff]   ;;  %v12153_v11 = vld [vmem:[%s13755_s19 + $0x180] ss:$24 sps:$4 sm:$0xff]   ;;  %v971_v12 = vld [vmem:[#allocation2 + $0x30] sm:$0xff]  ;;  %s13236_s29 = smov 32  }
 0x1ac   : > { %1602 = vmatpush1.bf16.msra.mxu0 %v12093_v32  ;;  %1656 = vmatprep.subr.bf16.mxu1 %v12094_v33  ;;  %v976_v14 = vld [vmem:[#allocation2 + $0x20] sm:$0xff]  ;;  %v13916_v17 = vpack.c.bf16 %v973_v13, %v971_v12  ;;  %v975_v20 = vld [vmem:[#allocation2 + $0x8] sm:$0xff]  ;;  %vm5453_vm4 = vcmask 523264   ;;  %vm5458_vm5 = vcmask 785408  }
 0x1ad   : > { %1603 = vmatprep.subr.bf16.mxu0 %v12096_v34  ;;  %v12156_v16 = vld [vmem:[%s13755_s19 + $0x164] ss:$24 sps:$4 sm:$0xff]   ;;  %v982_v18 = vpack.c.bf16 %v978_v15, %v976_v14  ;;  %v12154_v19 = vld [vmem:[%s13755_s19 + $0x160] ss:$24 sps:$4 sm:$0xff]   ;;  %v12159_v22 = vld [vmem:[%s13755_s19 + $0x134] ss:$24 sps:$4 sm:$0xff]  }
 0x1ae   : > { %v977_v21 = vld [vmem:[#allocation2 + $0x28] sm:$0xff]  ;;  %v12160_v26 = vld [vmem:[%s13755_s19 + $0x100] ss:$24 sps:$4 sm:$0xff]  }
 0x1af   : > { %1657 = vmatpush1.bf16.msra.mxu1 %v12098_v35  ;;  %v12157_v23 = vld [vmem:[%s13755_s19 + $0x130] ss:$24 sps:$4 sm:$0xff]   ;;  %v12162_v24 = vld [vmem:[%s13755_s19 + $0x104] ss:$24 sps:$4 sm:$0xff]   ;;  %v13924_v25 = vpack.c.bf16 %v977_v21, %v975_v20  ;;  %v12165_v27 = vld [vmem:[%s13755_s19 + $0xd4] ss:$24 sps:$4 sm:$0xff]  }
 0x1b0   : > { %1604 = vmatpush1.bf16.msra.mxu0 %v12099_v36  ;;  %1658 = vmatprep.subr.bf16.mxu1 %v12100_v37  ;;  %v12163_v28 = vld [vmem:[%s13755_s19 + $0xd0] ss:$24 sps:$4 sm:$0xff]   ;;  %v12168_v29 = vld [vmem:[%s13755_s19 + $0xa4] ss:$24 sps:$4 sm:$0xff]   ;;  %v12166_v30 = vld [vmem:[%s13755_s19 + $0xa0] ss:$24 sps:$4 sm:$0xff]  }
 0x1b1   : > { %1605 = vmatprep.subr.bf16.mxu0 %v12102_v38  ;;  %v12171_v31 = vld [vmem:[%s13755_s19 + $0x74] ss:$24 sps:$4 sm:$0xff]   ;;  %v12169_v32 = vld [vmem:[%s13755_s19 + $0x70] ss:$24 sps:$4 sm:$0xff]   ;;  %v12174_v33 = vld [vmem:[%s13755_s19 + $0x44] ss:$24 sps:$4 sm:$0xff]  }
 0x1b2   : > { %v12172_v34 = vld [vmem:[%s13755_s19 + $0x40] ss:$24 sps:$4 sm:$0xff]   ;;  %v12177_v35 = vld [vmem:[%s13755_s19 + $0x14] ss:$24 sps:$4 sm:$0xff]   ;;  %v12175_v36 = vld [vmem:[%s13755_s19 + $0x10] ss:$24 sps:$4 sm:$0xff]  }
 0x1b3   : > { %1659 = vmatpush1.bf16.msra.mxu1 %v12104_v39  ;;  %v12180_v37 = vld [vmem:[%s13755_s19 + $0x2e4] ss:$24 sps:$4 sm:$0xff]   ;;  %v12178_v38 = vld [vmem:[%s13755_s19 + $0x2e0] ss:$24 sps:$4 sm:$0xff]   ;;  %v12183_v39 = vld [vmem:[%s13755_s19 + $0x2b4] ss:$24 sps:$4 sm:$0xff]  }
 0x1b4   : > { %1606 = vmatpush1.bf16.msra.mxu0 %v12105_v40  ;;  %1660 = vmatprep.subr.bf16.mxu1 %v12106_v41  ;;  %v12181_v40 = vld [vmem:[%s13755_s19 + $0x2b0] ss:$24 sps:$4 sm:$0xff]   ;;  %v12186_v41 = vld [vmem:[%s13755_s19 + $0x284] ss:$24 sps:$4 sm:$0xff]  }
 0x1b5   : > { %1607 = vmatprep.subr.bf16.mxu0 %v12108_v42  ;;  %v12184_v42 = vld [vmem:[%s13755_s19 + $0x280] ss:$24 sps:$4 sm:$0xff]  }
 0x1b7   : > { %1661 = vmatpush2.bf16.msra.mxu1 %v12110_v43  ;;  %v12189_v43 = vld [vmem:[%s13755_s19 + $0x254] ss:$24 sps:$4 sm:$0xff]  }
 0x1b8   : > { %1608 = vmatpush2.bf16.msra.mxu0 %v12111_v44  ;;  %1662 = vmatprep.subr.bf16.mxu1 %v12112_v45  ;;  %v12187_v44 = vld [vmem:[%s13755_s19 + $0x250] ss:$24 sps:$4 sm:$0xff]   ;;  %v12192_v45 = vld [vmem:[%s13755_s19 + $0x224] ss:$24 sps:$4 sm:$0xff]  }
 0x1b9   : > { %1609 = vmatprep.subr.bf16.mxu0 %v12114_v46  ;;  %v12190_v46 = vld [vmem:[%s13755_s19 + $0x220] ss:$24 sps:$4 sm:$0xff]  }
 0x1bb   : > { %1663 = vmatpush2.bf16.msra.mxu1 %v12116_v47  ;;  %v12195_v47 = vld [vmem:[%s13755_s19 + $0x1f4] ss:$24 sps:$4 sm:$0xff]  }
 0x1bc   : > { %1610 = vmatpush2.bf16.msra.mxu0 %v12117_v48  ;;  %1664 = vmatprep.subr.bf16.mxu1 %v12118_v49  ;;  %v12193_v48 = vld [vmem:[%s13755_s19 + $0x1f0] ss:$24 sps:$4 sm:$0xff]   ;;  %v12198_v49 = vld [vmem:[%s13755_s19 + $0x1c4] ss:$24 sps:$4 sm:$0xff]  }
 0x1bd   : > { %1611 = vmatprep.subr.bf16.mxu0 %v12120_v50  ;;  %v12196_v50 = vld [vmem:[%s13755_s19 + $0x1c0] ss:$24 sps:$4 sm:$0xff]  }
 0x1bf   : > { %1665 = vmatpush2.bf16.msra.mxu1 %v12122_v51  ;;  %v12201_v51 = vld [vmem:[%s13755_s19 + $0x194] ss:$24 sps:$4 sm:$0xff]  }
 0x1c0   : > { %1612 = vmatpush2.bf16.msra.mxu0 %v12123_v52  ;;  %1666 = vmatprep.subr.bf16.mxu1 %v12124_v53  ;;  %v12199_v52 = vld [vmem:[%s13755_s19 + $0x190] ss:$24 sps:$4 sm:$0xff]   ;;  %v13232_v53 = vmov 0.0   ;;  %s13234_s19 = smov 96  }
 0x1c1   : > { %1613 = vmatprep.subr.bf16.mxu0 %v12126_v54  ;;  %v1081_v54 = vlaneseq }
 0x1c3   : > { %1667 = vmatpush2.bf16.msra.mxu1 %v12128_v57  ;;  %v13964_v55 = vshrl.u32 %v1081_v54, 7 }
 0x1c4   : > { %1614 = vmatpush2.bf16.msra.mxu0 %v12129_v58  ;;  %1668 = vmatprep.subr.bf16.mxu1 %v12130_v59  ;;  %v13973_v58 = vld [vmem:[%s13766_s22] sm:$0x3f]  ;;  %s13235_s22 = smov 64  }
 0x1c5   : > { %1615 = vmatprep.subr.bf16.mxu0 %v12132_v61  ;;  %v13967_v56 = vsub.s32 2, %v13964_v55  ;;  %v13970_v57 = vsub.s32 3, %v13964_v55  ;;  %v13976_v59 = vsub.s32 0, %v13964_v55  ;;  %v14058_v54 = vsub.s32 4, %v13964_v55 }
 0x1c7   : > { %1669 = vmatpush2.bf16.msra.mxu1 %v12134_v62  ;;  %15857 = vst [vmem:[#allocation38_spill] sm:$0xff] %v13976_v59  ;;  %v1092_v61 = vrot.slane %v13973_v58, %v13967_v56  ;;  %v1096_v62 = vrot.slane %v13973_v58, %v13970_v57 }
 0x1c8   : > { %1616 = vmatpush2.bf16.msra.mxu0 %v12135_v63  ;;  %1670 = vmatprep.subr.bf16.mxu1 %v12136_v0 }
 0x1c9   : > { %1617 = vmatprep.subr.bf16.mxu0 %v12138_v1  ;;  %v1084_v1 = vrot.slane %v13973_v58, %v13976_v59 }
 0x1cb   : > { %1671 = vmatpush2.bf16.msra.mxu1 %v12140_v2 }
 0x1cc   : > { %1618 = vmatpush2.bf16.msra.mxu0 %v12141_v3  ;;  %1672 = vmatprep.subr.bf16.mxu1 %v12142_v4 }
 0x1cd   : > { %1619 = vmatprep.subr.bf16.mxu0 %v12144_v5 }
 0x1cf   : > { %1673 = vmatpush2.bf16.msra.mxu1 %v12146_v6 }
 0x1d0   : > { %1620 = vmatpush2.bf16.msra.mxu0 %v12147_v7  ;;  %1674 = vmatprep.subr.bf16.mxu1 %v12148_v8 }
 0x1d1   : > { %1621 = vmatprep.subr.bf16.mxu0 %v12150_v9 }
 0x1d3   : > { %1675 = vmatpush2.bf16.msra.mxu1 %v12152_v10 }
 0x1d4   : > { %1622 = vmatpush2.bf16.msra.mxu0 %v12153_v11  ;;  %11844 = vmatprep.subr.bf16.mxu1 %v12156_v16 }
 0x1d5   : > { %1697 = vmatprep.subr.bf16.mxu0 %v12156_v16 }
 0x1d6   : > { %1677 = vmatmul.mubr.bf16.vlgmr.msra.gmra.mxu1 %v13916_v17 }
 0x1d7   : > { %1624 = vmatmul.mubr.bf16.vlgmr.msra.gmra.mxu0 %v13916_v17  ;;  %1686 = vmatprep.mubr.bf16.mxu1 %v982_v18 }
 0x1d8   : > { %1633 = vmatprep.mubr.bf16.mxu0 %v982_v18  ;;  %11860 = vmatpush1.bf16.msra.mxu1 %v12154_v19 }
 0x1d9   : > { %1698 = vmatpush1.bf16.msra.mxu0 %v12154_v19  ;;  %11845 = vmatprep.subr.bf16.mxu1 %v12159_v22 }
 0x1da   : > { %1699 = vmatprep.subr.bf16.mxu0 %v12159_v22 }
 0x1dc   : > { %11861 = vmatpush1.bf16.msra.mxu1 %v12157_v23 }
 0x1dd   : > { %1700 = vmatpush1.bf16.msra.mxu0 %v12157_v23  ;;  %11846 = vmatprep.subr.bf16.mxu1 %v12162_v24 }
 0x1de   : > { %1701 = vmatprep.subr.bf16.mxu0 %v12162_v24  ;;  %1687 = vmatmul.mubr.bf16.gmra.mxu1 %v13924_v25 }
 0x1df   : > { %1634 = vmatmul.mubr.bf16.gmra.mxu0 %v13924_v25  ;;  %1739 = vmatprep.mubr.bf16.mxu1 %v982_v18 }
 0x1e0   : > { %1729 = vmatprep.mubr.bf16.mxu0 %v13896_v60  ;;  %11862 = vmatpush1.bf16.msra.mxu1 %v12160_v26  ;;  %v13979_v60 = vsub.s32 1, %v13964_v55 }
 0x1e1   : > { %1702 = vmatpush1.bf16.msra.mxu0 %v12160_v26  ;;  %11847 = vmatprep.subr.bf16.mxu1 %v12165_v27 }
 0x1e2   : > { %1703 = vmatprep.subr.bf16.mxu0 %v12165_v27  ;;  %15858 = vst [vmem:[#allocation39_spill] sm:$0xff] %v13979_v60  ;;  %v1088_v3 = vrot.slane %v13973_v58, %v13979_v60 }
 0x1e4   : > { %11863 = vmatpush1.bf16.msra.mxu1 %v12163_v28 }
 0x1e5   : > { %1704 = vmatpush1.bf16.msra.mxu0 %v12163_v28  ;;  %11848 = vmatprep.subr.bf16.mxu1 %v12168_v29 }
 0x1e6   : > { %1705 = vmatprep.subr.bf16.mxu0 %v12168_v29 }
 0x1e8   : > { %11864 = vmatpush1.bf16.msra.mxu1 %v12166_v30 }
 0x1e9   : > { %1706 = vmatpush1.bf16.msra.mxu0 %v12166_v30  ;;  %11849 = vmatprep.subr.bf16.mxu1 %v12171_v31 }
 0x1ea   : > { %1707 = vmatprep.subr.bf16.mxu0 %v12171_v31 }
 0x1ec   : > { %11865 = vmatpush1.bf16.msra.mxu1 %v12169_v32 }
 0x1ed   : > { %1708 = vmatpush1.bf16.msra.mxu0 %v12169_v32  ;;  %11850 = vmatprep.subr.bf16.mxu1 %v12174_v33 }
 0x1ee   : > { %1709 = vmatprep.subr.bf16.mxu0 %v12174_v33 }
 0x1f0   : > { %11866 = vmatpush1.bf16.msra.mxu1 %v12172_v34 }
 0x1f1   : > { %1710 = vmatpush1.bf16.msra.mxu0 %v12172_v34  ;;  %11851 = vmatprep.subr.bf16.mxu1 %v12177_v35 }
 0x1f2   : > { %1711 = vmatprep.subr.bf16.mxu0 %v12177_v35 }
 0x1f4   : > { %11867 = vmatpush1.bf16.msra.mxu1 %v12175_v36 }
 0x1f5   : > { %1712 = vmatpush1.bf16.msra.mxu0 %v12175_v36  ;;  %11852 = vmatprep.subr.bf16.mxu1 %v12180_v37 }
 0x1f6   : > { %1713 = vmatprep.subr.bf16.mxu0 %v12180_v37 }
 0x1f8   : > { %11868 = vmatpush2.bf16.msra.mxu1 %v12178_v38 }
 0x1f9   : > { %1714 = vmatpush2.bf16.msra.mxu0 %v12178_v38  ;;  %11853 = vmatprep.subr.bf16.mxu1 %v12183_v39 }
 0x1fa   : > { %1715 = vmatprep.subr.bf16.mxu0 %v12183_v39 }
 0x1fc   : > { %11869 = vmatpush2.bf16.msra.mxu1 %v12181_v40 }
 0x1fd   : > { %1716 = vmatpush2.bf16.msra.mxu0 %v12181_v40  ;;  %11854 = vmatprep.subr.bf16.mxu1 %v12186_v41 }
 0x1fe   : > { %1717 = vmatprep.subr.bf16.mxu0 %v12186_v41 }
 0x200   : > { %11870 = vmatpush2.bf16.msra.mxu1 %v12184_v42 }
 0x201   : > { %1718 = vmatpush2.bf16.msra.mxu0 %v12184_v42  ;;  %11855 = vmatprep.subr.bf16.mxu1 %v12189_v43 }
 0x202   : > { %1719 = vmatprep.subr.bf16.mxu0 %v12189_v43 }
 0x204   : > { %11871 = vmatpush2.bf16.msra.mxu1 %v12187_v44 }
 0x205   : > { %1720 = vmatpush2.bf16.msra.mxu0 %v12187_v44  ;;  %11856 = vmatprep.subr.bf16.mxu1 %v12192_v45 }
 0x206   : > { %1721 = vmatprep.subr.bf16.mxu0 %v12192_v45 }
 0x208   : > { %11872 = vmatpush2.bf16.msra.mxu1 %v12190_v46 }
 0x209   : > { %1722 = vmatpush2.bf16.msra.mxu0 %v12190_v46  ;;  %11857 = vmatprep.subr.bf16.mxu1 %v12195_v47 }
 0x20a   : > { %1723 = vmatprep.subr.bf16.mxu0 %v12195_v47 }
 0x20c   : > { %11873 = vmatpush2.bf16.msra.mxu1 %v12193_v48 }
 0x20d   : > { %1724 = vmatpush2.bf16.msra.mxu0 %v12193_v48  ;;  %11858 = vmatprep.subr.bf16.mxu1 %v12198_v49 }
 0x20e   : > { %1725 = vmatprep.subr.bf16.mxu0 %v12198_v49 }
 0x210   : > { %11874 = vmatpush2.bf16.msra.mxu1 %v12196_v50 }
 0x211   : > { %1726 = vmatpush2.bf16.msra.mxu0 %v12196_v50  ;;  %11859 = vmatprep.subr.bf16.mxu1 %v12201_v51 }
 0x212   : > { %1727 = vmatprep.subr.bf16.mxu0 %v12201_v51 }
 0x214   : > { %11875 = vmatpush2.bf16.msra.mxu1 %v12199_v52 }
 0x215   : > { %1728 = vmatpush2.bf16.msra.mxu0 %v12199_v52  ;;  %11460 = vmatprep.subr.bf16.mxu1 %v13232_v53 }
 0x216   : > { %11508 = vmatprep.subr.bf16.mxu0 %v13232_v53 }
 0x217   : > { %1740 = vmatmul.mubr.bf16.vlgmr.msra.gmra.mxu1 %v13924_v25 }
 0x218   : > { %1730 = vmatmul.mubr.bf16.vlgmr.msra.gmra.mxu0 %v13916_v17  ;;  %11462 = vmatprep.mubr.msk.bf16.mxu1 %vm13233_vm0, %v13232_v53 }
 0x219   : > { %11510 = vmatprep.mubr.msk.bf16.mxu0 %vm13233_vm0, %v13232_v53 }
 0x296   : > { %v1678_v63 = vpop.f32.mrf.mxu1 }
 0x297   : > { %v1625_v0 = vpop.f32.mrf.mxu0  ;;  %v13989_v4 = vadd.f32 %v1678_v63, %v1092_v61 }
 0x298   : > { %v1680_v2 = vpop.f32.mrf.mxu1  ;;  %v1626_v9 = vadd.f32 %v1625_v0, %v1084_v1 }
 0x299   : > { %v1681_v5 = vadd.f32 %v1680_v2, %v1096_v62  ;;  %v1627_v6 = vpop.f32.mrf.mxu0 }
 0x29a   : > { %v1682_v7 = vpop.f32.mrf.mxu1  ;;  %v1628_v10 = vadd.f32 %v1627_v6, %v1088_v3  ;;  %v13996_v16 = vmul.f32 0.17677669, %v1626_v9 }
 0x29b   : > { %v13992_v8 = vpack.c.bf16 %v1681_v5, %v13989_v4  ;;  %v1629_v12 = vpop.f32.mrf.mxu0  ;;  %v13998_v18 = vadd.f32 %v1682_v7, %v1092_v61 }
 0x29c   : > { %v1684_v11 = vpop.f32.mrf.mxu1  ;;  %v1751_v17 = vmul.f32 0.17677669, %v1628_v10  ;;  %v1630_v22 = vadd.f32 %v1629_v12, %v1084_v1 }
 0x29d   : > { %v1685_v13 = vadd.f32 %v1684_v11, %v1096_v62  ;;  %v1823_v14 = vsel %vm1818_vm1, %v13992_v8, 0  ;;  %v1631_v19 = vpop.f32.mrf.mxu0 }
 0x29e   : > { %v1688_v15 = vpop.f32.mrf.mxu1  ;;  %11461 = vmatpush3.bf16.xpose.msra.mxu1 %v1823_v14  ;;  %v14005_v24 = vpack.c.bf16 %v1751_v17, %v13996_v16  ;;  %v1632_v25 = vadd.f32 %v1631_v19, %v1088_v3  ;;  %v14015_v31 = vmul.f32 0.17677669, %v1630_v22 }
 0x29f   : > { %11466 = vmatprep.subr.bf16.mxu1 %v13232_v53  ;;  %v14002_v21 = vpack.c.bf16 %v1685_v13, %v13998_v18  ;;  %v1635_v23 = vpop.f32.mrf.mxu0  ;;  %v14007_v26 = vadd.f32 %v1688_v15, %v1092_v61 }
 0x2a0   : > { %v1690_v20 = vpop.f32.mrf.mxu1  ;;  %v1753_v32 = vmul.f32 0.17677669, %v1632_v25  ;;  %v1636_v35 = vadd.f32 %v1635_v23, %v1084_v1 }
 0x2a1   : > { %v1691_v27 = vadd.f32 %v1690_v20, %v1096_v62  ;;  %v1869_v29 = vsel %vm1818_vm1, %v14002_v21, 0  ;;  %v1637_v30 = vpop.f32.mrf.mxu0 }
 0x2a2   : > { %v1692_v28 = vpop.f32.mrf.mxu1  ;;  %v1638_v36 = vadd.f32 %v1637_v30, %v1088_v3  ;;  %v14022_v38 = vpack.c.bf16 %v1753_v32, %v14015_v31  ;;  %v14028_v42 = vmul.f32 0.17677669, %v1636_v35 }
 0x2a3   : > { %v14018_v33 = vpack.c.bf16 %v1691_v27, %v14007_v26  ;;  %v1639_v37 = vpop.f32.mrf.mxu0  ;;  %v14024_v39 = vadd.f32 %v1692_v28, %v1092_v61  ;;  %v14061_v61 = vsub.s32 5, %v13964_v55 }
 0x2a4   : > { %v1694_v34 = vpop.f32.mrf.mxu1  ;;  %v1755_v43 = vmul.f32 0.17677669, %v1638_v36  ;;  %v1640_v47 = vadd.f32 %v1639_v37, %v1084_v1 }
 0x2a5   : > { %11463 = vmatmul.mubr.msk.bf16.vlgmr.msra.gmra.mxu1 %vm1818_vm1, %v14005_v24  ;;  %v1915_v40 = vsel %vm1818_vm1, %v14018_v33, 0  ;;  %v1695_v41 = vadd.f32 %v1694_v34, %v1096_v62  ;;  %v1641_v44 = vpop.f32.mrf.mxu0  ;;  %v14065_v62 = vrot.slane %v13973_v58, %v14058_v54  ;;  %v14069_v63 = vrot.slane %v13973_v58, %v14061_v61 }
 0x2a6   : > { %11467 = vmatpush3.bf16.xpose.msra.mxu1 %v1869_v29  ;;  %11468 = vmatprep.mubr.msk.bf16.mxu1 %vm13233_vm0, %v13232_v53  ;;  %v14039_v46 = vpack.c.bf16 %v1755_v43, %v14028_v42  ;;  %v1642_v48 = vadd.f32 %v1641_v44, %v1088_v3  ;;  %v14043_v50 = vmul.f32 0.17677669, %v1640_v47 }
 0x2a7   : > { %11472 = vmatprep.subr.bf16.mxu1 %v13232_v53  ;;  %v14035_v45 = vpack.c.bf16 %v1695_v41, %v14024_v39 }
 0x2a8   : > { %v1757_v51 = vmul.f32 0.17677669, %v1642_v48 }
 0x2a9   : > { %v1961_v49 = vsel %vm1818_vm1, %v14035_v45, 0 }
 0x2aa   : > { %v14051_v52 = vpack.c.bf16 %v1757_v51, %v14043_v50 }
 0x2ad   : > { %11469 = vmatmul.mubr.msk.bf16.vlgmr.msra.gmra.mxu1 %vm1818_vm1, %v14022_v38 }
 0x2ae   : > { %11473 = vmatpush3.bf16.xpose.msra.mxu1 %v1915_v40  ;;  %11474 = vmatprep.mubr.msk.bf16.mxu1 %vm13233_vm0, %v13232_v53 }
 0x2af   : > { %11478 = vmatprep.subr.bf16.mxu1 %v13232_v53 }
 0x2b5   : > { %11475 = vmatmul.mubr.msk.bf16.vlgmr.msra.gmra.mxu1 %vm1818_vm1, %v14039_v46 }
 0x2b6   : > { %11479 = vmatpush3.bf16.xpose.msra.mxu1 %v1961_v49  ;;  %11480 = vmatprep.mubr.msk.bf16.mxu1 %vm13233_vm0, %v13232_v53 }
 0x2b7   : > { %11484 = vmatprep.subr.bf16.mxu1 %v13232_v53 }
 0x2bd   : > { %11481 = vmatmul.mubr.msk.bf16.vlgmr.msra.gmra.mxu1 %vm1818_vm1, %v14051_v52 }
 0x2be   : > { %11486 = vmatprep.mubr.msk.bf16.mxu1 %vm13233_vm0, %v13232_v53 }
 0x2d7   : > { %v1741_v0 = vpop.f32.mrf.mxu1 }
 0x2d8   : > { %v14072_v1 = vadd.f32 %v1741_v0, %v14065_v62 }
 0x2d9   : > { %v1743_v2 = vpop.f32.mrf.mxu1 }
 0x2da   : > { %v1744_v3 = vadd.f32 %v1743_v2, %v14069_v63 }
 0x2db   : > { %v14078_v6 = vpop.f32.mrf.mxu1 }
 0x2dc   : > { %v14076_v5 = vpack.c.bf16 %v1744_v3, %v14072_v1 }
 0x2dd   : > { %v14080_v7 = vpop.f32.mrf.mxu1 }
 0x365   : > { %v1859_v9 = vpop.f32.mrf.mxu1 }
 0x366   : > { %v2004_v10 = vsel %vm2003_vm2, %v1859_v9, -inf }
 0x367   : > { %2005 = vmax.xlane.f32.xlu0 %v2004_v10  ;;  %v11464_v58 = vpop.f32.mrf.mxu1 }
 0x369   : > { %v1862_v11 = vpop.f32.mrf.mxu1 }
 0x36b   : > { %v11465_v12 = vpop.f32.mrf.mxu1 }
 0x36d   : > { %v1905_v13 = vpop.f32.mrf.mxu1 }
 0x36e   : > { %v2007_v14 = vsel %vm2003_vm2, %v1905_v13, -inf }
 0x36f   : > { %2008 = vmax.xlane.f32.xlu0 %v2007_v14  ;;  %v11470_v15 = vpop.f32.mrf.mxu1  ;;  %v14104_v14 = vpack.c.bf16 %v13998_v18, %v13998_v18  ;;  %v14119_v18 = vpack.c.bf16 %v13989_v4, %v13989_v4 }
 0x371   : > { %v1908_v17 = vpop.f32.mrf.mxu1 }
 0x372   : > { %v14113_v17 = vpack.c.bf16 %v13996_v16, %v13996_v16  ;;  %v14131_v16 = vpack.c.bf16 %v14028_v42, %v14028_v42  ;;  %v14147_v42 = vpack.c.bf16 %v14024_v39, %v14024_v39 }
 0x373   : > { %v11471_v19 = vpop.f32.mrf.mxu1 }
 0x375   : > { %v1951_v20 = vpop.f32.mrf.mxu1 }
 0x376   : > { %v2010_v22 = vsel %vm2003_vm2, %v1951_v20, -inf }
 0x377   : > { %2011 = vmax.xlane.f32.xlu1 %v2010_v22  ;;  %v11476_v23 = vpop.f32.mrf.mxu1 }
 0x379   : > { %v1954_v25 = vpop.f32.mrf.mxu1 }
 0x37b   : > { %v11477_v27 = vpop.f32.mrf.mxu1 }
 0x37c   : > { %v14153_v27 = vpack.c.bf16 %v14043_v50, %v14043_v50 }
 0x37d   : > { %v1997_v28 = vpop.f32.mrf.mxu1 }
 0x37e   : > { %v2013_v29 = vsel %vm2003_vm2, %v1997_v28, -inf }
 0x37f   : > { %2014 = vmax.xlane.f32.xlu1 %v2013_v29  ;;  %v11482_v30 = vpop.f32.mrf.mxu1 }
 0x381   : > { %v2000_v32 = vpop.f32.mrf.mxu1 }
 0x383   : > { %v11483_v34 = vpop.f32.mrf.mxu1 }
 0x3f0   : > { %v2006_v35 = vpop.xlane.xlu0 %2005 }
 0x3f1   : > { %v2016_v36 = vsub.f32 %v1859_v9, %v2006_v35  ;;  %v1731_v9 = vpop.f32.mrf.mxu0 }
 0x3f2   : > { %v14096_v58 = vadd.f32 %v1731_v9, %v14065_v62  ;;  %v1748_v9 = vadd.f32 %v14080_v7, %v14069_v63 }
 0x3f3   : > { %v2020_v37 = vmul.f32 1.442695, %v2016_v36  ;;  %v1733_v11 = vpop.f32.mrf.mxu0 }
 0x3f4   : > { %v1734_v12 = vadd.f32 %v1733_v11, %v14069_v63 }
 0x3f5   : > { %12634 = vpow2.f32 %v2020_v37 }
 0x3f8   : > { %v2009_v40 = vpop.xlane.xlu0 %2008 }
 0x3f9   : > { %v2017_v41 = vsub.f32 %v1905_v13, %v2009_v40  ;;  %v14100_v13 = vpack.c.bf16 %v1734_v12, %v14096_v58 }
 0x3fb   : > { %v2022_v43 = vmul.f32 1.442695, %v2017_v41  ;;  %v2057_v15 = vsel %vm2055_vm3, %v14100_v13, 0 }
 0x3fc   : > { %11485 = vmatpush3.bf16.msra.mxu1 %v2057_v15 }
 0x3fd   : > { %12636 = vpow2.f32 %v2022_v43  ;;  %11490 = vmatprep.subr.bf16.mxu1 %v13232_v53 }
 0x400   : > { %v2012_v44 = vpop.xlane.xlu1 %2011 }
 0x401   : > { %v2018_v47 = vsub.f32 %v1951_v20, %v2012_v44  ;;  %v14125_v20 = vpack.c.bf16 %v14007_v26, %v14007_v26  ;;  %v14141_v26 = vpack.c.bf16 %v14015_v31, %v14015_v31  ;;  %v1735_v31 = vpop.f32.mrf.mxu0 }
 0x402   : > { %v12635_v48 = vpop.eup %12634  ;;  %v14158_v32 = vadd.f32 %v1735_v31, %v14065_v62 }
 0x403   : > { %v2024_v49 = vmul.f32 1.442695, %v2018_v47  ;;  %v2028_v51 = vsel %vm2003_vm2, %v12635_v48, 0.0  ;;  %v1737_v29 = vpop.f32.mrf.mxu0 }
 0x404   : > { %2029 = vadd.xlane.f32.xlu0 %v2028_v51  ;;  %v1738_v39 = vadd.f32 %v1737_v29, %v14069_v63 }
 0x405   : > { %12638 = vpow2.f32 %v2024_v49 }
 0x406   : > { %v14162_v34 = vpack.c.bf16 %v1738_v39, %v14158_v32 }
 0x408   : > { %v2015_v19 = vpop.xlane.xlu1 %2014  ;;  %v2103_v40 = vsel %vm2055_vm3, %v14162_v34, 0 }
 0x409   : > { %v2019_v22 = vsub.f32 %v1997_v28, %v2015_v19 }
 0x40a   : > { %v14087_v0 = vpop.eup %12636 }
 0x40b   : > { %v2031_v2 = vsel %vm2003_vm2, %v14087_v0, 0.0  ;;  %v2026_v23 = vmul.f32 1.442695, %v2019_v22 }
 0x40c   : > { %2032 = vadd.xlane.f32.xlu1 %v2031_v2  ;;  %v14175_v2 = vadd.f32 %v14078_v6, %v14065_v62 }
 0x40d   : > { %12640 = vpow2.f32 %v2026_v23 }
 0x40e   : > { %v14190_v63 = vpack.c.bf16 %v1748_v9, %v14175_v2 }
 0x410   : > { %v2195_v12 = vsel %vm2055_vm3, %v14190_v63, 0 }
 0x412   : > { %v14091_v3 = vpop.eup %12638 }
 0x413   : > { %v2034_v10 = vsel %vm2003_vm2, %v14091_v3, 0.0 }
 0x414   : > { %2035 = vadd.xlane.f32.xlu0 %v2034_v10  ;;  %v2149_v10 = vsel %vm2055_vm3, %v14076_v5, 0 }
 0x41a   : > { %v14135_v4 = vpop.eup %12640 }
 0x41b   : > { %v2037_v25 = vsel %vm2003_vm2, %v14135_v4, 0.0 }
 0x41d   : > { %2293 = vrot.lane.b32.xlu1 %v14104_v14, %s13234_s19 }
 0x421   : > { %2238 = vrot.lane.b32.xlu1 %v14113_v17, %s13234_s19 }
 0x42a   : > { %2241 = vrot.lane.b32.xlu0 %v14119_v18, %s13234_s19 }
 0x42e   : > { %2345 = vrot.lane.b32.xlu0 %v14125_v20, %s13234_s19 }
 0x432   : > { %2342 = vrot.lane.b32.xlu0 %v14131_v16, %s13234_s19 }
 0x445   : > { %2038 = vadd.xlane.f32.xlu1 %v2037_v25 }
 0x456   : > { %2290 = vrot.lane.b32.xlu1 %v14141_v26, %s13234_s19 }
 0x45a   : > { %2397 = vrot.lane.b32.xlu1 %v14147_v42, %s13234_s19 }
 0x45e   : > { %2394 = vrot.lane.b32.xlu1 %v14153_v27, %s13234_s19 }
 0x48d   : > { %v2030_v28 = vpop.xlane.xlu0 %2029 }
 0x48e   : > { %12642 = vrcp.f32 %v2030_v28 }
 0x495   : > { %v2033_v30 = vpop.xlane.xlu1 %2032 }
 0x496   : > { %12644 = vrcp.f32 %v2033_v30 }
 0x499   : > { %v2294_v47 = vpop.permute.xlu1 %2293 }
 0x49a   : > { %v2299_v28 = vsel %vm1818_vm1, %v2294_v47, 0 }
 0x49b   : > { %v12643_v35 = vpop.eup %12642 }
 0x49c   : > { %v2044_v50 = vmul.f32 %v12643_v35, %v12635_v48 }
 0x49d   : > { %v2036_v36 = vpop.xlane.xlu0 %2035  ;;  %v2239_v11 = vpop.permute.xlu1 %2238 }
 0x49e   : > { %12646 = vrcp.f32 %v2036_v36  ;;  %v2048_v37 = vpack.c.bf16 %v2044_v50, %v2044_v50 }
 0x4a0   : > { %11487 = vmatmul.mubr.msk.bf16.vlgmr.msra.gmra.mxu1 %vm2003_vm2, %v2048_v37 }
 0x4a1   : > { %v2242_v41 = vpop.permute.xlu0 %2241  ;;  %11491 = vmatpush3.bf16.msra.mxu1 %v2103_v40  ;;  %11492 = vmatprep.mubr.msk.bf16.mxu1 %vm13233_vm0, %v13232_v53 }
 0x4a2   : > { %v2247_v43 = vsel %vm1818_vm1, %v2242_v41, 0  ;;  %11496 = vmatprep.subr.bf16.mxu1 %v13232_v53 }
 0x4a3   : > { %v12645_v44 = vpop.eup %12644  ;;  %11509 = vmatpush3.bf16.xpose.msra.mxu0 %v2247_v43 }
 0x4a4   : > { %v2045_v48 = vmul.f32 %v12645_v44, %v14087_v0  ;;  %11520 = vmatprep.subr.bf16.mxu0 %v13232_v53 }
 0x4a5   : > { %v2346_v51 = vpop.permute.xlu0 %2345 }
 0x4a6   : > { %v2049_v49 = vpack.c.bf16 %v2045_v48, %v2045_v48  ;;  %v2351_v0 = vsel %vm1818_vm1, %v2346_v51, 0 }
 0x4a8   : > { %11493 = vmatmul.mubr.msk.bf16.vlgmr.msra.gmra.mxu1 %vm2003_vm2, %v2049_v49 }
 0x4a9   : > { %11497 = vmatpush3.bf16.msra.mxu1 %v2149_v10  ;;  %11498 = vmatprep.mubr.msk.bf16.mxu1 %vm13233_vm0, %v13232_v53  ;;  %v2343_v15 = vpop.permute.xlu0 %2342 }
 0x4aa   : > { %11511 = vmatmul.mubr.msk.bf16.vlgmr.msra.gmra.mxu0 %vm1818_vm1, %v2239_v11  ;;  %11502 = vmatprep.subr.bf16.mxu1 %v13232_v53 }
 0x4ab   : > { %v12647_v62 = vpop.eup %12646  ;;  %11521 = vmatpush3.bf16.xpose.msra.mxu0 %v2351_v0  ;;  %11522 = vmatprep.mubr.msk.bf16.mxu0 %vm13233_vm0, %v13232_v53 }
 0x4ac   : > { %v2046_v6 = vmul.f32 %v12647_v62, %v14091_v3  ;;  %11532 = vmatprep.subr.bf16.mxu0 %v13232_v53 }
 0x4ae   : > { %v2050_v7 = vpack.c.bf16 %v2046_v6, %v2046_v6 }
 0x4b0   : > { %11499 = vmatmul.mubr.msk.bf16.vlgmr.msra.gmra.mxu1 %vm2003_vm2, %v2050_v7 }
 0x4b1   : > { %11503 = vmatpush3.bf16.msra.mxu1 %v2195_v12  ;;  %11504 = vmatprep.mubr.msk.bf16.mxu1 %vm13233_vm0, %v13232_v53 }
 0x4b2   : > { %11523 = vmatmul.mubr.msk.bf16.vlgmr.msra.gmra.mxu0 %vm1818_vm1, %v2343_v15  ;;  %11514 = vmatprep.subr.bf16.mxu1 %v13232_v53 }
 0x4b3   : > { %11534 = vmatprep.mubr.msk.bf16.mxu0 %vm13233_vm0, %v13232_v53 }
 0x4ce   : > { %v2039_v3 = vpop.xlane.xlu1 %2038 }
 0x4cf   : > { %12648 = vrcp.f32 %v2039_v3 }
 0x4d2   : > { %v2291_v25 = vpop.permute.xlu1 %2290 }
 0x4d6   : > { %v2398_v31 = vpop.permute.xlu1 %2397 }
 0x4d7   : > { %v2403_v29 = vsel %vm1818_vm1, %v2398_v31, 0 }
 0x4dc   : > { %v12649_v19 = vpop.eup %12648 }
 0x4dd   : > { %v2047_v22 = vmul.f32 %v12649_v19, %v14135_v4  ;;  %v2395_v4 = vpop.permute.xlu1 %2394 }
 0x4df   : > { %v2051_v23 = vpack.c.bf16 %v2047_v22, %v2047_v22 }
 0x4e1   : > { %11505 = vmatmul.mubr.msk.bf16.vlgmr.msra.gmra.mxu1 %vm2003_vm2, %v2051_v23 }
 0x4e2   : > { %11515 = vmatpush3.bf16.xpose.msra.mxu1 %v2299_v28  ;;  %11516 = vmatprep.mubr.msk.bf16.mxu1 %vm13233_vm0, %v13232_v53 }
 0x4e3   : > { %11526 = vmatprep.subr.bf16.mxu1 %v13232_v53 }
 0x4e9   : > { %11517 = vmatmul.mubr.msk.bf16.vlgmr.msra.gmra.mxu1 %vm1818_vm1, %v2291_v25 }
 0x4ea   : > { %11527 = vmatpush3.bf16.xpose.msra.mxu1 %v2403_v29  ;;  %11528 = vmatprep.mubr.msk.bf16.mxu1 %vm13233_vm0, %v13232_v53 }
 0x4eb   : > { %11538 = vmatprep.subr.bf16.mxu1 %v13232_v53 }
 0x4f1   : > { %11529 = vmatmul.mubr.msk.bf16.vlgmr.msra.gmra.mxu1 %vm1818_vm1, %v2395_v4 }
 0x4f2   : > { %11540 = vmatprep.mubr.msk.bf16.mxu1 %vm13233_vm0, %v13232_v53 }
 0x560   : > { %v14217_v30 = vpop.f32.mrf.mxu1 }
 0x562   : > { %v11488_v39 = vpop.f32.mrf.mxu1 }
 0x564   : > { %v2096_v35 = vpop.f32.mrf.mxu1 }
 0x566   : > { %v11489_v50 = vpop.f32.mrf.mxu1 }
 0x568   : > { %v14219_v36 = vpop.f32.mrf.mxu1 }
 0x56a   : > { %v11494_v37 = vpop.f32.mrf.mxu1  ;;  %v2283_v40 = vpop.f32.mrf.mxu0 }
 0x56b   : > { %v2445_v41 = vsel %vm2003_vm2, %v2283_v40, -inf }
 0x56c   : > { %2446 = vmax.xlane.f32.xlu0 %v2445_v41  ;;  %v2142_v43 = vpop.f32.mrf.mxu1  ;;  %v11512_v44 = vpop.f32.mrf.mxu0  ;;  %v14231_v41 = vpack.c.bf16 %v14158_v32, %v14158_v32 }
 0x56d   : > { %v14237_v43 = vpack.c.bf16 %v14072_v1, %v14072_v1  ;;  %v14243_v44 = vpack.c.bf16 %v14175_v2, %v14175_v2  ;;  %v14251_v2 = vpack.c.bf16 %v14096_v58, %v14096_v58 }
 0x56e   : > { %v11495_v47 = vpop.f32.mrf.mxu1  ;;  %v2286_v48 = vpop.f32.mrf.mxu0 }
 0x570   : > { %v14222_v49 = vpop.f32.mrf.mxu1  ;;  %v11513_v51 = vpop.f32.mrf.mxu0 }
 0x572   : > { %v11500_v9 = vpop.f32.mrf.mxu1  ;;  %v2387_v10 = vpop.f32.mrf.mxu0 }
 0x573   : > { %v2451_v11 = vsel %vm2003_vm2, %v2387_v10, -inf }
 0x574   : > { %2452 = vmax.xlane.f32.xlu0 %v2451_v11  ;;  %v2188_v0 = vpop.f32.mrf.mxu1  ;;  %v11524_v62 = vpop.f32.mrf.mxu0 }
 0x576   : > { %v11501_v6 = vpop.f32.mrf.mxu1  ;;  %v2390_v7 = vpop.f32.mrf.mxu0 }
 0x578   : > { %v11525_v12 = vpop.f32.mrf.mxu0 }
 0x5a1   : > { %v14225_v15 = vpop.f32.mrf.mxu1 }
 0x5a3   : > { %v11506_v3 = vpop.f32.mrf.mxu1 }
 0x5a5   : > { %v2234_v19 = vpop.f32.mrf.mxu1 }
 0x5a7   : > { %v11507_v22 = vpop.f32.mrf.mxu1 }
 0x5a9   : > { %v2335_v23 = vpop.f32.mrf.mxu1 }
 0x5aa   : > { %v2448_v25 = vsel %vm2003_vm2, %v2335_v23, -inf }
 0x5ab   : > { %2449 = vmax.xlane.f32.xlu1 %v2448_v25  ;;  %v11518_v28 = vpop.f32.mrf.mxu1 }
 0x5ad   : > { %v2338_v31 = vpop.f32.mrf.mxu1 }
 0x5af   : > { %v11519_v29 = vpop.f32.mrf.mxu1 }
 0x5b1   : > { %v2439_v4 = vpop.f32.mrf.mxu1 }
 0x5b2   : > { %v2454_v39 = vsel %vm2003_vm2, %v2439_v4, -inf }
 0x5b3   : > { %2455 = vmax.xlane.f32.xlu0 %v2454_v39  ;;  %v11530_v35 = vpop.f32.mrf.mxu1 }
 0x5b5   : > { %v2442_v50 = vpop.f32.mrf.mxu1 }
 0x5b7   : > { %v11531_v37 = vpop.f32.mrf.mxu1 }
 0x5bc   : > { %2543 = vrot.lane.b32.xlu1 %v14231_v41, %s13234_s19 }
 0x5c0   : > { %2592 = vrot.lane.b32.xlu1 %v14237_v43, %s13234_s19 }
 0x5c4   : > { %2641 = vrot.lane.b32.xlu1 %v14243_v44, %s13234_s19 }
 0x5f5   : > { %v2447_v47 = vpop.xlane.xlu0 %2446 }
 0x5f6   : > { %v2457_v32 = vsub.f32 %v2283_v40, %v2447_v47 }
 0x5f8   : > { %v2461_v48 = vmul.f32 1.442695, %v2457_v32 }
 0x5fa   : > { %12650 = vpow2.f32 %v2461_v48 }
 0x5fd   : > { %v2453_v51 = vpop.xlane.xlu0 %2452 }
 0x5fe   : > { %v2459_v9 = vsub.f32 %v2387_v10, %v2453_v51 }
 0x600   : > { %v2465_v11 = vmul.f32 1.442695, %v2459_v9 }
 0x602   : > { %12652 = vpow2.f32 %v2465_v11 }
 0x607   : > { %v12651_v1 = vpop.eup %12650 }
 0x608   : > { %v2469_v0 = vsel %vm2003_vm2, %v12651_v1, 0.0 }
 0x609   : > { %2470 = vadd.xlane.f32.xlu0 %v2469_v0 }
 0x60f   : > { %v12653_v62 = vpop.eup %12652 }
 0x610   : > { %v2475_v6 = vsel %vm2003_vm2, %v12653_v62, 0.0 }
 0x611   : > { %2476 = vadd.xlane.f32.xlu0 %v2475_v6 }
 0x627   : > { %2494 = vrot.lane.b32.xlu0 %v14251_v2, %s13234_s19 }
 0x62b   : > { %2691 = vrot.lane.b32.xlu0 %v14119_v18, %s13235_s22 }
 0x62f   : > { %2689 = vrot.lane.b32.xlu0 %v14113_v17, %s13235_s22 }
 0x633   : > { %2791 = vrot.lane.b32.xlu0 %v14125_v20, %s13235_s22 }
 0x634   : > { %v2450_v40 = vpop.xlane.xlu1 %2449 }
 0x635   : > { %v2458_v10 = vsub.f32 %v2335_v23, %v2450_v40 }
 0x637   : > { %v2463_v7 = vmul.f32 1.442695, %v2458_v10  ;;  %2789 = vrot.lane.b32.xlu0 %v14131_v16, %s13235_s22 }
 0x638   : > { %v2544_v58 = vpop.permute.xlu1 %2543 }
 0x639   : > { %12654 = vpow2.f32 %v2463_v7  ;;  %v2549_v12 = vsel %vm2055_vm3, %v2544_v58, 0 }
 0x63a   : > { %11539 = vmatpush3.bf16.msra.mxu1 %v2549_v12 }
 0x63b   : > { %11550 = vmatprep.subr.bf16.mxu1 %v13232_v53 }
 0x63c   : > { %v2456_v22 = vpop.xlane.xlu0 %2455  ;;  %v2593_v47 = vpop.permute.xlu1 %2592 }
 0x63d   : > { %v2460_v23 = vsub.f32 %v2439_v4, %v2456_v22  ;;  %v2598_v48 = vsel %vm2055_vm3, %v2593_v47, 0 }
 0x63f   : > { %v2467_v25 = vmul.f32 1.442695, %v2460_v23 }
 0x640   : > { %v2642_v7 = vpop.permute.xlu1 %2641 }
 0x641   : > { %12656 = vpow2.f32 %v2467_v25  ;;  %v2647_v23 = vsel %vm2055_vm3, %v2642_v7, 0 }
 0x646   : > { %v12655_v3 = vpop.eup %12654 }
 0x647   : > { %v2472_v19 = vsel %vm2003_vm2, %v12655_v3, 0.0 }
 0x648   : > { %2473 = vadd.xlane.f32.xlu1 %v2472_v19 }
 0x64e   : > { %v12657_v28 = vpop.eup %12656 }
 0x64f   : > { %v2478_v31 = vsel %vm2003_vm2, %v12657_v28, 0.0 }
 0x659   : > { %2741 = vrot.lane.b32.xlu1 %v14104_v14, %s13235_s22 }
 0x67d   : > { %2479 = vadd.xlane.f32.xlu1 %v2478_v31 }
 0x68e   : > { %2739 = vrot.lane.b32.xlu1 %v14141_v26, %s13235_s22 }
 0x692   : > { %2841 = vrot.lane.b32.xlu1 %v14147_v42, %s13235_s22  ;;  %v2471_v29 = vpop.xlane.xlu0 %2470 }
 0x693   : > { %12658 = vrcp.f32 %v2471_v29 }
 0x696   : > { %2839 = vrot.lane.b32.xlu1 %v14153_v27, %s13235_s22 }
 0x69a   : > { %v2477_v39 = vpop.xlane.xlu0 %2476 }
 0x69b   : > { %12660 = vrcp.f32 %v2477_v39 }
 0x69e   : > { %v2495_v4 = vpop.permute.xlu0 %2494 }
 0x69f   : > { %v2500_v35 = vsel %vm2055_vm3, %v2495_v4, 0 }
 0x6a0   : > { %v12659_v50 = vpop.eup %12658  ;;  %11533 = vmatpush3.bf16.msra.mxu0 %v2500_v35 }
 0x6a1   : > { %11544 = vmatprep.subr.bf16.mxu0 %v13232_v53  ;;  %v2485_v37 = vmul.f32 %v12659_v50, %v12651_v1 }
 0x6a2   : > { %v2692_v51 = vpop.permute.xlu0 %2691 }
 0x6a3   : > { %v2489_v32 = vpack.c.bf16 %v2485_v37, %v2485_v37  ;;  %v2697_v40 = vsel %vm1818_vm1, %v2692_v51, 0 }
 0x6a5   : > { %11535 = vmatmul.mubr.msk.bf16.vlgmr.msra.gmra.mxu0 %vm2003_vm2, %v2489_v32 }
 0x6a6   : > { %11545 = vmatpush3.bf16.msra.mxu0 %v2598_v48  ;;  %11546 = vmatprep.mubr.msk.bf16.mxu0 %vm13233_vm0, %v13232_v53  ;;  %v2690_v6 = vpop.permute.xlu0 %2689 }
 0x6a7   : > { %11556 = vmatprep.subr.bf16.mxu0 %v13232_v53 }
 0x6a8   : > { %v12661_v9 = vpop.eup %12660 }
 0x6a9   : > { %v2487_v11 = vmul.f32 %v12661_v9, %v12653_v62 }
 0x6aa   : > { %v2792_v1 = vpop.permute.xlu0 %2791 }
 0x6ab   : > { %v2491_v0 = vpack.c.bf16 %v2487_v11, %v2487_v11  ;;  %v2797_v10 = vsel %vm1818_vm1, %v2792_v1, 0 }
 0x6ad   : > { %11547 = vmatmul.mubr.msk.bf16.vlgmr.msra.gmra.mxu0 %vm2003_vm2, %v2491_v0 }
 0x6ae   : > { %11557 = vmatpush3.bf16.xpose.msra.mxu0 %v2697_v40  ;;  %11558 = vmatprep.mubr.msk.bf16.mxu0 %vm13233_vm0, %v13232_v53  ;;  %v2790_v62 = vpop.permute.xlu0 %2789 }
 0x6af   : > { %11568 = vmatprep.subr.bf16.mxu0 %v13232_v53 }
 0x6b5   : > { %11559 = vmatmul.mubr.msk.bf16.vlgmr.msra.gmra.mxu0 %vm1818_vm1, %v2690_v6 }
 0x6b6   : > { %11569 = vmatpush3.bf16.xpose.msra.mxu0 %v2797_v10  ;;  %11570 = vmatprep.mubr.msk.bf16.mxu0 %vm13233_vm0, %v13232_v53 }
 0x6b7   : > { %11580 = vmatprep.subr.bf16.mxu0 %v13232_v53 }
 0x6bd   : > { %11571 = vmatmul.mubr.msk.bf16.vlgmr.msra.gmra.mxu0 %vm1818_vm1, %v2790_v62 }
 0x6be   : > { %11582 = vmatprep.mubr.msk.bf16.mxu0 %vm13233_vm0, %v13232_v53 }
 0x6d1   : > { %v2474_v58 = vpop.xlane.xlu1 %2473 }
 0x6d2   : > { %12662 = vrcp.f32 %v2474_v58 }
 0x6d5   : > { %v2742_v25 = vpop.permute.xlu1 %2741 }
 0x6df   : > { %v12663_v12 = vpop.eup %12662 }
 0x6e0   : > { %v2486_v19 = vmul.f32 %v12663_v12, %v12655_v3  ;;  %v2747_v3 = vsel %vm1818_vm1, %v2742_v25, 0 }
 0x6e2   : > { %v2490_v22 = vpack.c.bf16 %v2486_v19, %v2486_v19 }
 0x6e4   : > { %11541 = vmatmul.mubr.msk.bf16.vlgmr.msra.gmra.mxu1 %vm2003_vm2, %v2490_v22 }
 0x6e5   : > { %11551 = vmatpush3.bf16.msra.mxu1 %v2647_v23  ;;  %11552 = vmatprep.mubr.msk.bf16.mxu1 %vm13233_vm0, %v13232_v53 }
 0x6e6   : > { %11562 = vmatprep.subr.bf16.mxu1 %v13232_v53 }
 0x706   : > { %v2480_v31 = vpop.xlane.xlu1 %2479 }
 0x707   : > { %12664 = vrcp.f32 %v2480_v31 }
 0x70a   : > { %v2740_v35 = vpop.permute.xlu1 %2739 }
 0x70e   : > { %v2842_v50 = vpop.permute.xlu1 %2841 }
 0x70f   : > { %v2847_v37 = vsel %vm1818_vm1, %v2842_v50, 0 }
 0x714   : > { %v12665_v29 = vpop.eup %12664 }
 0x715   : > { %v2488_v39 = vmul.f32 %v12665_v29, %v12657_v28  ;;  %v2840_v28 = vpop.permute.xlu1 %2839 }
 0x717   : > { %v2492_v4 = vpack.c.bf16 %v2488_v39, %v2488_v39 }
 0x719   : > { %11553 = vmatmul.mubr.msk.bf16.vlgmr.msra.gmra.mxu1 %vm2003_vm2, %v2492_v4 }
 0x71a   : > { %11563 = vmatpush3.bf16.xpose.msra.mxu1 %v2747_v3  ;;  %11564 = vmatprep.mubr.msk.bf16.mxu1 %vm13233_vm0, %v13232_v53 }
 0x71b   : > { %11574 = vmatprep.subr.bf16.mxu1 %v13232_v53 }
 0x721   : > { %11565 = vmatmul.mubr.msk.bf16.vlgmr.msra.gmra.mxu1 %vm1818_vm1, %v2740_v35 }
 0x722   : > { %11575 = vmatpush3.bf16.xpose.msra.mxu1 %v2847_v37  ;;  %11576 = vmatprep.mubr.msk.bf16.mxu1 %vm13233_vm0, %v13232_v53 }
 0x723   : > { %11586 = vmatprep.subr.bf16.mxu1 %v13232_v53 }
 0x729   : > { %11577 = vmatmul.mubr.msk.bf16.vlgmr.msra.gmra.mxu1 %vm1818_vm1, %v2840_v28 }
 0x72a   : > { %11588 = vmatprep.mubr.msk.bf16.mxu1 %vm13233_vm0, %v13232_v53 }
 0x765   : > { %v14313_v47 = vpop.f32.mrf.mxu0 }
 0x767   : > { %v11536_v32 = vpop.f32.mrf.mxu0 }
 0x769   : > { %v2539_v48 = vpop.f32.mrf.mxu0 }
 0x76b   : > { %v11537_v51 = vpop.f32.mrf.mxu0 }
 0x76d   : > { %v14315_v9 = vpop.f32.mrf.mxu0 }
 0x76f   : > { %v11548_v11 = vpop.f32.mrf.mxu0 }
 0x771   : > { %v2637_v0 = vpop.f32.mrf.mxu0 }
 0x773   : > { %v11549_v6 = vpop.f32.mrf.mxu0 }
 0x775   : > { %v2733_v40 = vpop.f32.mrf.mxu0 }
 0x776   : > { %v2889_v1 = vsel %vm2003_vm2, %v2733_v40, -inf }
 0x777   : > { %2890 = vmax.xlane.f32.xlu0 %v2889_v1  ;;  %v11560_v10 = vpop.f32.mrf.mxu0 }
 0x779   : > { %v2736_v62 = vpop.f32.mrf.mxu0 }
 0x77b   : > { %v11561_v7 = vpop.f32.mrf.mxu0 }
 0x77d   : > { %v2833_v58 = vpop.f32.mrf.mxu0 }
 0x77e   : > { %v2895_v12 = vsel %vm2003_vm2, %v2833_v58, -inf }
 0x77f   : > { %2896 = vmax.xlane.f32.xlu0 %v2895_v12  ;;  %v11572_v19 = vpop.f32.mrf.mxu0 }
 0x781   : > { %v2836_v22 = vpop.f32.mrf.mxu0 }
 0x783   : > { %v11573_v23 = vpop.f32.mrf.mxu0 }
 0x7a4   : > { %v14319_v25 = vpop.f32.mrf.mxu1 }
 0x7a5   : > { %v12003_v31 = vpack.i.bf16 %v14319_v25, %v14313_v47 }
 0x7a6   : > { %v11542_v29 = vpop.f32.mrf.mxu1 }
 0x7a8   : > { %v2588_v39 = vpop.f32.mrf.mxu1 }
 0x7aa   : > { %v11543_v4 = vpop.f32.mrf.mxu1 }
 0x7d9   : > { %v14323_v35 = vpop.f32.mrf.mxu1 }
 0x7db   : > { %v11554_v3 = vpop.f32.mrf.mxu1 }
 0x7dd   : > { %v2686_v50 = vpop.f32.mrf.mxu1 }
 0x7df   : > { %v11555_v37 = vpop.f32.mrf.mxu1 }
 0x7e1   : > { %v2783_v28 = vpop.f32.mrf.mxu1 }
 0x7e2   : > { %v2892_v32 = vsel %vm2003_vm2, %v2783_v28, -inf }
 0x7e3   : > { %2893 = vmax.xlane.f32.xlu1 %v2892_v32  ;;  %v11566_v48 = vpop.f32.mrf.mxu1 }
 0x7e5   : > { %v2786_v51 = vpop.f32.mrf.mxu1 }
 0x7e7   : > { %v11567_v11 = vpop.f32.mrf.mxu1 }
 0x7e9   : > { %v2883_v0 = vpop.f32.mrf.mxu1 }
 0x7ea   : > { %v2898_v6 = vsel %vm2003_vm2, %v2883_v0, -inf }
 0x7eb   : > { %2899 = vmax.xlane.f32.xlu0 %v2898_v6  ;;  %v11578_v1 = vpop.f32.mrf.mxu1 }
 0x7ed   : > { %v2886_v10 = vpop.f32.mrf.mxu1 }
 0x7ef   : > { %v11579_v62 = vpop.f32.mrf.mxu1 }
 0x7f4   : > { %2985 = vrot.lane.b32.xlu1 %v14231_v41, %s13235_s22 }
 0x7f8   : > { %3033 = vrot.lane.b32.xlu1 %v14237_v43, %s13235_s22 }
 0x7fc   : > { %3081 = vrot.lane.b32.xlu1 %v14243_v44, %s13235_s22 }
 0x800   : > { %v2891_v7 = vpop.xlane.xlu0 %2890 }
 0x801   : > { %v2901_v12 = vsub.f32 %v2733_v40, %v2891_v7 }
 0x803   : > { %v2905_v19 = vmul.f32 1.442695, %v2901_v12 }
 0x805   : > { %12666 = vpow2.f32 %v2905_v19 }
 0x808   : > { %v2897_v22 = vpop.xlane.xlu0 %2896 }
 0x809   : > { %v2903_v23 = vsub.f32 %v2833_v58, %v2897_v22 }
 0x80b   : > { %v2909_v29 = vmul.f32 1.442695, %v2903_v23 }
 0x80d   : > { %12668 = vpow2.f32 %v2909_v29 }
 0x812   : > { %v12667_v39 = vpop.eup %12666 }
 0x813   : > { %v2913_v4 = vsel %vm2003_vm2, %v12667_v39, 0.0 }
 0x814   : > { %2914 = vadd.xlane.f32.xlu0 %v2913_v4 }
 0x81a   : > { %v12669_v3 = vpop.eup %12668 }
 0x81b   : > { %v2919_v50 = vsel %vm2003_vm2, %v12669_v3, 0.0 }
 0x81c   : > { %2920 = vadd.xlane.f32.xlu0 %v2919_v50 }
 0x832   : > { %2937 = vrot.lane.b32.xlu0 %v14251_v2, %s13235_s22 }
 0x836   : > { %3131 = vrot.lane.b32.xlu0 %v14119_v18, %s13236_s29 }
 0x83a   : > { %3129 = vrot.lane.b32.xlu0 %v14113_v17, %s13236_s29 }
 0x83e   : > { %3231 = vrot.lane.b32.xlu0 %v14125_v20, %s13236_s29 }
 0x842   : > { %3229 = vrot.lane.b32.xlu0 %v14131_v16, %s13236_s29 }
 0x86c   : > { %v2894_v40 = vpop.xlane.xlu1 %2893 }
 0x86d   : > { %v2902_v58 = vsub.f32 %v2783_v28, %v2894_v40 }
 0x86f   : > { %v2907_v37 = vmul.f32 1.442695, %v2902_v58 }
 0x870   : > { %v2986_v32 = vpop.permute.xlu1 %2985 }
 0x871   : > { %12670 = vpow2.f32 %v2907_v37  ;;  %v2991_v48 = vsel %vm2055_vm3, %v2986_v32, 0 }
 0x872   : > { %11587 = vmatpush3.bf16.msra.mxu1 %v2991_v48 }
 0x873   : > { %11598 = vmatprep.subr.bf16.mxu1 %v13232_v53 }
 0x874   : > { %v2900_v17 = vpop.xlane.xlu0 %2899  ;;  %v3034_v7 = vpop.permute.xlu1 %3033 }
 0x875   : > { %v2904_v20 = vsub.f32 %v2883_v0, %v2900_v17 }
 0x877   : > { %v2911_v28 = vmul.f32 1.442695, %v2904_v20 }
 0x878   : > { %v3082_v37 = vpop.permute.xlu1 %3081 }
 0x87e   : > { %v12671_v18 = vpop.eup %12670 }
 0x87f   : > { %v2916_v51 = vsel %vm2003_vm2, %v12671_v18, 0.0 }
 0x880   : > { %2917 = vadd.xlane.f32.xlu1 %v2916_v51 }
 0x891   : > { %3181 = vrot.lane.b32.xlu1 %v14104_v14, %s13236_s29  ;;  %v3039_v14 = vsel %vm2055_vm3, %v3034_v7, 0 }
 0x89d   : > { %v2915_v16 = vpop.xlane.xlu0 %2914 }
 0x89e   : > { %12672 = vrcp.f32 %v2915_v16 }
 0x89f   : > { %12674 = vpow2.f32 %v2911_v28 }
 0x8a5   : > { %v2921_v11 = vpop.xlane.xlu0 %2920 }
 0x8a6   : > { %12676 = vrcp.f32 %v2921_v11 }
 0x8a9   : > { %v2938_v6 = vpop.permute.xlu0 %2937 }
 0x8aa   : > { %v2943_v1 = vsel %vm2055_vm3, %v2938_v6, 0 }
 0x8ab   : > { %v12673_v10 = vpop.eup %12672  ;;  %11581 = vmatpush3.bf16.msra.mxu0 %v2943_v1 }
 0x8ac   : > { %11592 = vmatprep.subr.bf16.mxu0 %v13232_v53  ;;  %v2929_v62 = vmul.f32 %v12673_v10, %v12667_v39  ;;  %v12675_v0 = vpop.eup %12674 }
 0x8ad   : > { %v3132_v19 = vpop.permute.xlu0 %3131  ;;  %v2922_v23 = vsel %vm2003_vm2, %v12675_v0, 0.0 }
 0x8ae   : > { %v2933_v12 = vpack.c.bf16 %v2929_v62, %v2929_v62  ;;  %v3137_v50 = vsel %vm1818_vm1, %v3132_v19, 0 }
 0x8b0   : > { %11583 = vmatmul.mubr.msk.bf16.vlgmr.msra.gmra.mxu0 %vm2003_vm2, %v2933_v12 }
 0x8b1   : > { %11593 = vmatpush3.bf16.msra.mxu0 %v3039_v14  ;;  %11594 = vmatprep.mubr.msk.bf16.mxu0 %vm13233_vm0, %v13232_v53  ;;  %v3130_v4 = vpop.permute.xlu0 %3129 }
 0x8b2   : > { %11604 = vmatprep.subr.bf16.mxu0 %v13232_v53 }
 0x8b3   : > { %v12677_v22 = vpop.eup %12676 }
 0x8b4   : > { %v2931_v29 = vmul.f32 %v12677_v22, %v12669_v3 }
 0x8b5   : > { %2923 = vadd.xlane.f32.xlu1 %v2922_v23  ;;  %v3232_v40 = vpop.permute.xlu0 %3231 }
 0x8b6   : > { %v2935_v39 = vpack.c.bf16 %v2931_v29, %v2931_v29  ;;  %v3237_v58 = vsel %vm1818_vm1, %v3232_v40, 0 }
 0x8b8   : > { %11595 = vmatmul.mubr.msk.bf16.vlgmr.msra.gmra.mxu0 %vm2003_vm2, %v2935_v39 }
 0x8b9   : > { %11605 = vmatpush3.bf16.xpose.msra.mxu0 %v3137_v50  ;;  %11606 = vmatprep.mubr.msk.bf16.mxu0 %vm13233_vm0, %v13232_v53  ;;  %v3230_v3 = vpop.permute.xlu0 %3229 }
 0x8ba   : > { %11616 = vmatprep.subr.bf16.mxu0 %v13232_v53 }
 0x8c0   : > { %11607 = vmatmul.mubr.msk.bf16.vlgmr.msra.gmra.mxu0 %vm1818_vm1, %v3130_v4 }
 0x8c1   : > { %11617 = vmatpush3.bf16.xpose.msra.mxu0 %v3237_v58  ;;  %11618 = vmatprep.mubr.msk.bf16.mxu0 %vm13233_vm0, %v13232_v53 }
 0x8c2   : > { %11628 = vmatprep.subr.bf16.mxu0 %v13232_v53 }
 0x8c6   : > { %3179 = vrot.lane.b32.xlu1 %v14141_v26, %s13236_s29  ;;  %v3087_v26 = vsel %vm2055_vm3, %v3082_v37, 0 }
 0x8c8   : > { %11619 = vmatmul.mubr.msk.bf16.vlgmr.msra.gmra.mxu0 %vm1818_vm1, %v3230_v3 }
 0x8c9   : > { %11630 = vmatprep.mubr.msk.bf16.mxu0 %vm13233_vm0, %v13232_v53 }
 0x8ca   : > { %3281 = vrot.lane.b32.xlu1 %v14147_v42, %s13236_s29 }
 0x8ce   : > { %3279 = vrot.lane.b32.xlu1 %v14153_v27, %s13236_s29 }
 0x909   : > { %v2918_v32 = vpop.xlane.xlu1 %2917 }
 0x90a   : > { %12678 = vrcp.f32 %v2918_v32 }
 0x90d   : > { %v3182_v42 = vpop.permute.xlu1 %3181 }
 0x917   : > { %v12679_v48 = vpop.eup %12678 }
 0x918   : > { %v2930_v51 = vmul.f32 %v12679_v48, %v12671_v18  ;;  %v3187_v18 = vsel %vm1818_vm1, %v3182_v42, 0 }
 0x91a   : > { %v2934_v17 = vpack.c.bf16 %v2930_v51, %v2930_v51 }
 0x91c   : > { %11589 = vmatmul.mubr.msk.bf16.vlgmr.msra.gmra.mxu1 %vm2003_vm2, %v2934_v17 }
 0x91d   : > { %11599 = vmatpush3.bf16.msra.mxu1 %v3087_v26  ;;  %11600 = vmatprep.mubr.msk.bf16.mxu1 %vm13233_vm0, %v13232_v53 }
 0x91e   : > { %11610 = vmatprep.subr.bf16.mxu1 %v13232_v53 }
 0x93e   : > { %v2924_v20 = vpop.xlane.xlu1 %2923 }
 0x93f   : > { %12680 = vrcp.f32 %v2924_v20 }
 0x942   : > { %v3180_v11 = vpop.permute.xlu1 %3179 }
 0x946   : > { %v3282_v6 = vpop.permute.xlu1 %3281 }
 0x947   : > { %v3287_v1 = vsel %vm1818_vm1, %v3282_v6, 0 }
 0x94a   : > { %v3280_v10 = vpop.permute.xlu1 %3279 }
 0x94c   : > { %v12681_v27 = vpop.eup %12680 }
 0x94d   : > { %v2932_v16 = vmul.f32 %v12681_v27, %v12675_v0 }
 0x94f   : > { %v2936_v28 = vpack.c.bf16 %v2932_v16, %v2932_v16 }
 0x951   : > { %11601 = vmatmul.mubr.msk.bf16.vlgmr.msra.gmra.mxu1 %vm2003_vm2, %v2936_v28 }
 0x952   : > { %11611 = vmatpush3.bf16.xpose.msra.mxu1 %v3187_v18  ;;  %11612 = vmatprep.mubr.msk.bf16.mxu1 %vm13233_vm0, %v13232_v53 }
 0x953   : > { %11622 = vmatprep.subr.bf16.mxu1 %v13232_v53 }
 0x959   : > { %11613 = vmatmul.mubr.msk.bf16.vlgmr.msra.gmra.mxu1 %vm1818_vm1, %v3180_v11 }
 0x95a   : > { %11623 = vmatpush3.bf16.xpose.msra.mxu1 %v3287_v1  ;;  %11624 = vmatprep.mubr.msk.bf16.mxu1 %vm13233_vm0, %v13232_v53 }
 0x95b   : > { %11634 = vmatprep.subr.bf16.mxu1 %v13232_v53 }
 0x961   : > { %11625 = vmatmul.mubr.msk.bf16.vlgmr.msra.gmra.mxu1 %vm1818_vm1, %v3280_v10 }
 0x962   : > { %11636 = vmatprep.mubr.msk.bf16.mxu1 %vm13233_vm0, %v13232_v53 }
 0x970   : > { %v14395_v62 = vpop.f32.mrf.mxu0 }
 0x972   : > { %v11584_v7 = vpop.f32.mrf.mxu0 }
 0x974   : > { %v2982_v12 = vpop.f32.mrf.mxu0 }
 0x976   : > { %v11585_v14 = vpop.f32.mrf.mxu0 }
 0x978   : > { %v14397_v0 = vpop.f32.mrf.mxu0 }
 0x97a   : > { %v11596_v19 = vpop.f32.mrf.mxu0 }
 0x97c   : > { %v3078_v22 = vpop.f32.mrf.mxu0 }
 0x97e   : > { %v11597_v23 = vpop.f32.mrf.mxu0 }
 0x980   : > { %v3173_v29 = vpop.f32.mrf.mxu0 }
 0x981   : > { %v3329_v39 = vsel %vm2003_vm2, %v3173_v29, -inf }
 0x982   : > { %3330 = vmax.xlane.f32.xlu0 %v3329_v39  ;;  %v11608_v4 = vpop.f32.mrf.mxu0 }
 0x984   : > { %v3176_v50 = vpop.f32.mrf.mxu0 }
 0x986   : > { %v11609_v40 = vpop.f32.mrf.mxu0 }
 0x988   : > { %v3273_v58 = vpop.f32.mrf.mxu0 }
 0x989   : > { %v3335_v3 = vsel %vm2003_vm2, %v3273_v58, -inf }
 0x98a   : > { %3336 = vmax.xlane.f32.xlu0 %v3335_v3  ;;  %v11620_v37 = vpop.f32.mrf.mxu0 }
 0x98c   : > { %v3276_v32 = vpop.f32.mrf.mxu0 }
 0x98e   : > { %v11621_v48 = vpop.f32.mrf.mxu0 }
 0x9dc   : > { %v14401_v51 = vpop.f32.mrf.mxu1 }
 0x9de   : > { %v11590_v17 = vpop.f32.mrf.mxu1 }
 0x9e0   : > { %v3030_v26 = vpop.f32.mrf.mxu1 }
 0x9e2   : > { %v11591_v42 = vpop.f32.mrf.mxu1 }
 0xa0b   : > { %v3331_v20 = vpop.xlane.xlu0 %3330 }
 0xa0c   : > { %v3341_v27 = vsub.f32 %v3173_v29, %v3331_v20 }
 0xa0e   : > { %v3345_v28 = vmul.f32 1.442695, %v3341_v27 }
 0xa10   : > { %12682 = vpow2.f32 %v3345_v28 }
 0xa11   : > { %v14403_v16 = vpop.f32.mrf.mxu1 }
 0xa13   : > { %v3337_v11 = vpop.xlane.xlu0 %3336  ;;  %v11602_v18 = vpop.f32.mrf.mxu1 }
 0xa14   : > { %v3343_v6 = vsub.f32 %v3273_v58, %v3337_v11 }
 0xa15   : > { %v3126_v1 = vpop.f32.mrf.mxu1 }
 0xa16   : > { %v3349_v10 = vmul.f32 1.442695, %v3343_v6 }
 0xa17   : > { %v11603_v7 = vpop.f32.mrf.mxu1 }
 0xa18   : > { %12684 = vpow2.f32 %v3349_v10 }
 0xa19   : > { %v3223_v12 = vpop.f32.mrf.mxu1 }
 0xa1a   : > { %v3332_v14 = vsel %vm2003_vm2, %v3223_v12, -inf }
 0xa1b   : > { %3333 = vmax.xlane.f32.xlu1 %v3332_v14  ;;  %v11614_v19 = vpop.f32.mrf.mxu1 }
 0xa1d   : > { %v3226_v22 = vpop.f32.mrf.mxu1  ;;  %v12683_v4 = vpop.eup %12682 }
 0xa1e   : > { %v3353_v58 = vsel %vm2003_vm2, %v12683_v4, 0.0 }
 0xa1f   : > { %v11615_v23 = vpop.f32.mrf.mxu1 }
 0xa21   : > { %v3323_v39 = vpop.f32.mrf.mxu1 }
 0xa22   : > { %v3338_v29 = vsel %vm2003_vm2, %v3323_v39, -inf }
 0xa23   : > { %3339 = vmax.xlane.f32.xlu0 %v3338_v29  ;;  %v11626_v50 = vpop.f32.mrf.mxu1 }
 0xa24   : > { %v3570_v50 = vrot.slane %v13992_v8, 4 }
 0xa25   : > { %v3326_v40 = vpop.f32.mrf.mxu1  ;;  %v12685_v3 = vpop.eup %12684 }
 0xa26   : > { %v3359_v32 = vsel %vm2003_vm2, %v12685_v3, 0.0 }
 0xa27   : > { %3354 = vadd.xlane.f32.xlu0 %v3353_v58  ;;  %v11627_v37 = vpop.f32.mrf.mxu1  ;;  %v3666_v58 = vrot.slane %v14018_v33, 4 }
 0xa29   : > { %v3671_v37 = vsel %vm1818_vm1, %v3666_v58, 0 }
 0xa2b   : > { %3360 = vadd.xlane.f32.xlu0 %v3359_v32  ;;  %v3809_v32 = vrot.slane %v14100_v13, 4 }
 0xa2c   : > { %3425 = vrot.lane.b32.xlu1 %v14231_v41, %s13236_s29 }
 0xa30   : > { %3473 = vrot.lane.b32.xlu1 %v14237_v43, %s13236_s29 }
 0xa41   : > { %3377 = vrot.lane.b32.xlu0 %v14251_v2, %s13236_s29 }
 0xaa4   : > { %v3334_v48 = vpop.xlane.xlu1 %3333 }
 0xaa5   : > { %v3342_v17 = vsub.f32 %v3223_v12, %v3334_v48  ;;  %v3665_v48 = vrot.slane %v14039_v46, 4 }
 0xaa7   : > { %v3347_v26 = vmul.f32 1.442695, %v3342_v17 }
 0xaa8   : > { %v3426_v42 = vpop.permute.xlu1 %3425 }
 0xaa9   : > { %12686 = vpow2.f32 %v3347_v26  ;;  %v3431_v20 = vsel %vm2055_vm3, %v3426_v42, 0 }
 0xaaa   : > { %11635 = vmatpush3.bf16.msra.mxu1 %v3431_v20 }
 0xaab   : > { %11646 = vmatprep.subr.bf16.mxu1 %v13232_v53 }
 0xaac   : > { %v3340_v27 = vpop.xlane.xlu0 %3339  ;;  %v3474_v19 = vpop.permute.xlu1 %3473 }
 0xaad   : > { %v3344_v28 = vsub.f32 %v3323_v39, %v3340_v27  ;;  %v3479_v39 = vsel %vm2055_vm3, %v3474_v19, 0 }
 0xaaf   : > { %v3351_v11 = vmul.f32 1.442695, %v3344_v28 }
 0xab0   : > { %v3355_v41 = vpop.xlane.xlu0 %3354 }
 0xab1   : > { %12688 = vpow2.f32 %v3351_v11 }
 0xab2   : > { %12690 = vrcp.f32 %v3355_v41 }
 0xab4   : > { %v3361_v43 = vpop.xlane.xlu0 %3360 }
 0xab5   : > { %12692 = vrcp.f32 %v3361_v43 }
 0xab6   : > { %v12687_v18 = vpop.eup %12686 }
 0xab7   : > { %v3356_v2 = vsel %vm2003_vm2, %v12687_v18, 0.0 }
 0xab8   : > { %3357 = vadd.xlane.f32.xlu1 %v3356_v2  ;;  %v3378_v6 = vpop.permute.xlu0 %3377  ;;  %v3618_v2 = vrot.slane %v14002_v21, 4 }
 0xab9   : > { %v3383_v1 = vsel %vm2055_vm3, %v3378_v6, 0 }
 0xaba   : > { %11629 = vmatpush3.bf16.msra.mxu0 %v3383_v1  ;;  %v3714_v1 = vrot.slane %v14035_v45, 4 }
 0xabb   : > { %11640 = vmatprep.subr.bf16.mxu0 %v13232_v53 }
 0xabe   : > { %v12689_v10 = vpop.eup %12688 }
 0xabf   : > { %v12691_v7 = vpop.eup %12690  ;;  %v3362_v12 = vsel %vm2003_vm2, %v12689_v10, 0.0 }
 0xac0   : > { %3363 = vadd.xlane.f32.xlu1 %v3362_v12  ;;  %v3369_v14 = vmul.f32 %v12691_v7, %v12683_v4  ;;  %v3575_v4 = vsel %vm1818_vm1, %v3570_v50, 0  ;;  %v3617_v7 = vrot.slane %v14022_v38, 4  ;;  %v3856_v12 = vrot.slane %v14162_v34, 4 }
 0xac2   : > { %v3373_v22 = vpack.c.bf16 %v3369_v14, %v3369_v14  ;;  %v12693_v23 = vpop.eup %12692  ;;  %v3713_v14 = vrot.slane %v14051_v52, 4  ;;  %v3861_v19 = vsel %vm2055_vm3, %v3856_v12, 0 }
 0xac3   : > { %v3371_v29 = vmul.f32 %v12693_v23, %v12685_v3  ;;  %v3569_v3 = vrot.slane %v14005_v24, 4 }
 0xac4   : > { %11631 = vmatmul.mubr.msk.bf16.vlgmr.msra.gmra.mxu0 %vm2003_vm2, %v3373_v22 }
 0xac5   : > { %11641 = vmatpush3.bf16.msra.mxu0 %v3479_v39  ;;  %11642 = vmatprep.mubr.msk.bf16.mxu0 %vm13233_vm0, %v13232_v53  ;;  %v3375_v40 = vpack.c.bf16 %v3371_v29, %v3371_v29 }
 0xac6   : > { %11652 = vmatprep.subr.bf16.mxu0 %v13232_v53 }
 0xacc   : > { %11643 = vmatmul.mubr.msk.bf16.vlgmr.msra.gmra.mxu0 %vm2003_vm2, %v3375_v40 }
 0xacd   : > { %11653 = vmatpush3.bf16.xpose.msra.mxu0 %v3575_v4  ;;  %11654 = vmatprep.mubr.msk.bf16.mxu0 %vm13233_vm0, %v13232_v53 }
 0xace   : > { %11664 = vmatprep.subr.bf16.mxu0 %v13232_v53 }
 0xad1   : > { %3521 = vrot.lane.b32.xlu1 %v14243_v44, %s13236_s29  ;;  %v3814_v44 = vsel %vm2055_vm3, %v3809_v32, 0 }
 0xad4   : > { %11655 = vmatmul.mubr.msk.bf16.vlgmr.msra.gmra.mxu0 %vm1818_vm1, %v3569_v3 }
 0xad5   : > { %11665 = vmatpush3.bf16.xpose.msra.mxu0 %v3671_v37  ;;  %11666 = vmatprep.mubr.msk.bf16.mxu0 %vm13233_vm0, %v13232_v53 }
 0xad6   : > { %11676 = vmatprep.subr.bf16.mxu0 %v13232_v53 }
 0xadc   : > { %11667 = vmatmul.mubr.msk.bf16.vlgmr.msra.gmra.mxu0 %vm1818_vm1, %v3665_v48 }
 0xadd   : > { %11677 = vmatpush3.bf16.msra.mxu0 %v3814_v44  ;;  %11678 = vmatprep.mubr.msk.bf16.mxu0 %vm13233_vm0, %v13232_v53 }
 0xade   : > { %11688 = vmatprep.subr.bf16.mxu0 %v13232_v53 }
 0xb41   : > { %v3358_v17 = vpop.xlane.xlu1 %3357 }
 0xb42   : > { %12694 = vrcp.f32 %v3358_v17 }
 0xb49   : > { %v3364_v26 = vpop.xlane.xlu1 %3363 }
 0xb4a   : > { %12696 = vrcp.f32 %v3364_v26 }
 0xb4d   : > { %v3522_v27 = vpop.permute.xlu1 %3521 }
 0xb4e   : > { %v3527_v11 = vsel %vm2055_vm3, %v3522_v27, 0 }
 0xb4f   : > { %v12695_v42 = vpop.eup %12694 }
 0xb50   : > { %v3370_v20 = vmul.f32 %v12695_v42, %v12687_v18  ;;  %v3623_v18 = vsel %vm1818_vm1, %v3618_v2, 0 }
 0xb52   : > { %v3374_v28 = vpack.c.bf16 %v3370_v20, %v3370_v20 }
 0xb54   : > { %11637 = vmatmul.mubr.msk.bf16.vlgmr.msra.gmra.mxu1 %vm2003_vm2, %v3374_v28 }
 0xb55   : > { %11647 = vmatpush3.bf16.msra.mxu1 %v3527_v11  ;;  %11648 = vmatprep.mubr.msk.bf16.mxu1 %vm13233_vm0, %v13232_v53 }
 0xb56   : > { %11658 = vmatprep.subr.bf16.mxu1 %v13232_v53 }
 0xb57   : > { %v12697_v41 = vpop.eup %12696 }
 0xb58   : > { %v3372_v43 = vmul.f32 %v12697_v41, %v12689_v10  ;;  %v3719_v10 = vsel %vm1818_vm1, %v3714_v1, 0 }
 0xb5a   : > { %v3376_v6 = vpack.c.bf16 %v3372_v43, %v3372_v43 }
 0xb5c   : > { %11649 = vmatmul.mubr.msk.bf16.vlgmr.msra.gmra.mxu1 %vm2003_vm2, %v3376_v6 }
 0xb5d   : > { %11659 = vmatpush3.bf16.xpose.msra.mxu1 %v3623_v18  ;;  %11660 = vmatprep.mubr.msk.bf16.mxu1 %vm13233_vm0, %v13232_v53 }
 0xb5e   : > { %11670 = vmatprep.subr.bf16.mxu1 %v13232_v53 }
 0xb64   : > { %11661 = vmatmul.mubr.msk.bf16.vlgmr.msra.gmra.mxu1 %vm1818_vm1, %v3617_v7 }
 0xb65   : > { %11671 = vmatpush3.bf16.xpose.msra.mxu1 %v3719_v10  ;;  %11672 = vmatprep.mubr.msk.bf16.mxu1 %vm13233_vm0, %v13232_v53 }
 0xb66   : > { %11682 = vmatprep.subr.bf16.mxu1 %v13232_v53 }
 0xb6c   : > { %11673 = vmatmul.mubr.msk.bf16.vlgmr.msra.gmra.mxu1 %vm1818_vm1, %v3713_v14 }
 0xb6d   : > { %11683 = vmatpush3.bf16.msra.mxu1 %v3861_v19  ;;  %11684 = vmatprep.mubr.msk.bf16.mxu1 %vm13233_vm0, %v13232_v53 }
 0xb6e   : > { %11694 = vmatprep.subr.bf16.mxu1 %v13232_v53 }
 0xb84   : > { %v14473_v22 = vpop.f32.mrf.mxu0 }
 0xb86   : > { %v11632_v23 = vpop.f32.mrf.mxu0 }
 0xb88   : > { %v3422_v39 = vpop.f32.mrf.mxu0 }
 0xb8a   : > { %v11633_v29 = vpop.f32.mrf.mxu0 }
 0xb8c   : > { %v14475_v50 = vpop.f32.mrf.mxu0 }
 0xb8e   : > { %v11644_v40 = vpop.f32.mrf.mxu0 }
 0xb90   : > { %v3518_v4 = vpop.f32.mrf.mxu0 }
 0xb92   : > { %v11645_v58 = vpop.f32.mrf.mxu0 }
 0xb94   : > { %v3611_v3 = vpop.f32.mrf.mxu0 }
 0xb95   : > { %v3761_v37 = vsel %vm2003_vm2, %v3611_v3, -inf }
 0xb96   : > { %3762 = vmax.xlane.f32.xlu0 %v3761_v37  ;;  %v11656_v32 = vpop.f32.mrf.mxu0 }
 0xb98   : > { %v3614_v48 = vpop.f32.mrf.mxu0 }
 0xb9a   : > { %v11657_v44 = vpop.f32.mrf.mxu0 }
 0xb9c   : > { %v3707_v17 = vpop.f32.mrf.mxu0 }
 0xb9d   : > { %v3767_v26 = vsel %vm2003_vm2, %v3707_v17, -inf }
 0xb9e   : > { %3768 = vmax.xlane.f32.xlu0 %v3767_v26  ;;  %v11668_v42 = vpop.f32.mrf.mxu0 }
 0xba0   : > { %v3710_v20 = vpop.f32.mrf.mxu0 }
 0xba2   : > { %v11669_v27 = vpop.f32.mrf.mxu0 }
 0xc14   : > { %v14479_v28 = vpop.f32.mrf.mxu1 }
 0xc16   : > { %v11638_v11 = vpop.f32.mrf.mxu1 }
 0xc18   : > { %v3470_v41 = vpop.f32.mrf.mxu1 }
 0xc1a   : > { %v11639_v43 = vpop.f32.mrf.mxu1 }
 0xc1c   : > { %v14481_v2 = vpop.f32.mrf.mxu1 }
 0xc1d   : > { %v12053_v47 = vpack.i.bf16 %v14481_v2, %v14475_v50 }
 0xc1e   : > { %v11650_v6 = vpop.f32.mrf.mxu1 }
 0xc1f   : > { %v3763_v18 = vpop.xlane.xlu0 %3762 }
 0xc20   : > { %v3773_v1 = vsub.f32 %v3611_v3, %v3763_v18  ;;  %v3566_v7 = vpop.f32.mrf.mxu1 }
 0xc22   : > { %v3777_v10 = vmul.f32 1.442695, %v3773_v1  ;;  %v11651_v12 = vpop.f32.mrf.mxu1 }
 0xc24   : > { %12698 = vpow2.f32 %v3777_v10  ;;  %v3659_v14 = vpop.f32.mrf.mxu1 }
 0xc25   : > { %v3764_v19 = vsel %vm2003_vm2, %v3659_v14, -inf }
 0xc26   : > { %3765 = vmax.xlane.f32.xlu1 %v3764_v19  ;;  %v11662_v23 = vpop.f32.mrf.mxu1  ;;  %v3903_v19 = vrot.slane %v14076_v5, 4 }
 0xc27   : > { %v3769_v39 = vpop.xlane.xlu0 %3768 }
 0xc28   : > { %v3775_v29 = vsub.f32 %v3707_v17, %v3769_v39  ;;  %v3662_v40 = vpop.f32.mrf.mxu1 }
 0xc2a   : > { %v3781_v4 = vmul.f32 1.442695, %v3775_v29  ;;  %v11663_v58 = vpop.f32.mrf.mxu1 }
 0xc2c   : > { %12700 = vpow2.f32 %v3781_v4  ;;  %v3755_v37 = vpop.f32.mrf.mxu1 }
 0xc2d   : > { %v3770_v32 = vsel %vm2003_vm2, %v3755_v37, -inf }
 0xc2e   : > { %3771 = vmax.xlane.f32.xlu0 %v3770_v32  ;;  %v11674_v3 = vpop.f32.mrf.mxu1 }
 0xc30   : > { %v3758_v48 = vpop.f32.mrf.mxu1 }
 0xc31   : > { %v12699_v44 = vpop.eup %12698 }
 0xc32   : > { %v3785_v26 = vsel %vm2003_vm2, %v12699_v44, 0.0  ;;  %v11675_v42 = vpop.f32.mrf.mxu1 }
 0xc33   : > { %3786 = vadd.xlane.f32.xlu0 %v3785_v26 }
 0xc37   : > { %4052 = vrot.lane.b32.xlu1 %v14002_v21, %s13234_s19 }
 0xc39   : > { %v12701_v20 = vpop.eup %12700 }
 0xc3a   : > { %v3791_v17 = vsel %vm2003_vm2, %v12701_v20, 0.0 }
 0xc3b   : > { %3792 = vadd.xlane.f32.xlu0 %v3791_v17  ;;  %3997 = vrot.lane.b32.xlu1 %v14005_v24, %s13234_s19 }
 0xc51   : > { %4000 = vrot.lane.b32.xlu0 %v13992_v8, %s13234_s19 }
 0xc55   : > { %4104 = vrot.lane.b32.xlu0 %v14018_v33, %s13234_s19 }
 0xc59   : > { %4101 = vrot.lane.b32.xlu0 %v14039_v46, %s13234_s19 }
 0xcaf   : > { %v3766_v27 = vpop.xlane.xlu1 %3765 }
 0xcb0   : > { %v3774_v11 = vsub.f32 %v3659_v14, %v3766_v27  ;;  %v3908_v14 = vsel %vm2055_vm3, %v3903_v19, 0 }
 0xcb2   : > { %v3779_v41 = vmul.f32 1.442695, %v3774_v11 }
 0xcb3   : > { %v4053_v58 = vpop.permute.xlu1 %4052 }
 0xcb4   : > { %12702 = vpow2.f32 %v3779_v41 }
 0xcb7   : > { %v3772_v43 = vpop.xlane.xlu0 %3771 }
 0xcbc   : > { %v3787_v6 = vpop.xlane.xlu0 %3786 }
 0xcbd   : > { %12704 = vrcp.f32 %v3787_v6 }
 0xcc1   : > { %v12703_v18 = vpop.eup %12702 }
 0xcc2   : > { %v3788_v1 = vsel %vm2003_vm2, %v12703_v18, 0.0 }
 0xcc3   : > { %3789 = vadd.xlane.f32.xlu1 %v3788_v1 }
 0xcc4   : > { %v3793_v7 = vpop.xlane.xlu0 %3792 }
 0xcc5   : > { %12706 = vrcp.f32 %v3793_v7 }
 0xcc8   : > { %v4001_v39 = vpop.permute.xlu0 %4000 }
 0xcc9   : > { %v4002_v40 = vrot.slane %v4001_v39, 4 }
 0xcca   : > { %v12705_v10 = vpop.eup %12704 }
 0xccb   : > { %v3801_v12 = vmul.f32 %v12705_v10, %v12699_v44  ;;  %v4007_v3 = vsel %vm1818_vm1, %v4002_v40, 0  ;;  %v3998_v44 = vpop.permute.xlu1 %3997  ;;  %v3950_v10 = vrot.slane %v14190_v63, 4 }
 0xccc   : > { %v4105_v48 = vpop.permute.xlu0 %4104  ;;  %v3999_v42 = vrot.slane %v3998_v44, 4 }
 0xccd   : > { %v3805_v23 = vpack.c.bf16 %v3801_v12, %v3801_v12  ;;  %v4106_v26 = vrot.slane %v4105_v48, 4  ;;  %v3955_v19 = vsel %vm2055_vm3, %v3950_v10, 0 }
 0xccf   : > { %11679 = vmatmul.mubr.msk.bf16.vlgmr.msra.gmra.mxu0 %vm2003_vm2, %v3805_v23  ;;  %v4111_v17 = vsel %vm1818_vm1, %v4106_v26, 0 }
 0xcd0   : > { %11689 = vmatpush3.bf16.msra.mxu0 %v3908_v14  ;;  %11690 = vmatprep.mubr.msk.bf16.mxu0 %vm13233_vm0, %v13232_v53  ;;  %v4102_v27 = vpop.permute.xlu0 %4101 }
 0xcd1   : > { %11700 = vmatprep.subr.bf16.mxu0 %v13232_v53  ;;  %v4103_v41 = vrot.slane %v4102_v27, 4 }
 0xcd2   : > { %v12707_v29 = vpop.eup %12706 }
 0xcd3   : > { %v3803_v4 = vmul.f32 %v12707_v29, %v12701_v20  ;;  %v3776_v20 = vsub.f32 %v3755_v37, %v3772_v43 }
 0xcd4   : > { %4049 = vrot.lane.b32.xlu1 %v14022_v38, %s13234_s19 }
 0xcd5   : > { %v3807_v32 = vpack.c.bf16 %v3803_v4, %v3803_v4  ;;  %v3783_v11 = vmul.f32 1.442695, %v3776_v20 }
 0xcd7   : > { %11691 = vmatmul.mubr.msk.bf16.vlgmr.msra.gmra.mxu0 %vm2003_vm2, %v3807_v32  ;;  %12708 = vpow2.f32 %v3783_v11 }
 0xcd8   : > { %11701 = vmatpush3.bf16.xpose.msra.mxu0 %v4007_v3  ;;  %11702 = vmatprep.mubr.msk.bf16.mxu0 %vm13233_vm0, %v13232_v53 }
 0xcd9   : > { %11712 = vmatprep.subr.bf16.mxu0 %v13232_v53 }
 0xcdf   : > { %11703 = vmatmul.mubr.msk.bf16.vlgmr.msra.gmra.mxu0 %vm1818_vm1, %v3999_v42 }
 0xce0   : > { %11713 = vmatpush3.bf16.xpose.msra.mxu0 %v4111_v17  ;;  %11714 = vmatprep.mubr.msk.bf16.mxu0 %vm13233_vm0, %v13232_v53 }
 0xce1   : > { %11724 = vmatprep.subr.bf16.mxu0 %v13232_v53 }
 0xce4   : > { %v12709_v37 = vpop.eup %12708 }
 0xce5   : > { %v3794_v43 = vsel %vm2003_vm2, %v12709_v37, 0.0 }
 0xce7   : > { %11715 = vmatmul.mubr.msk.bf16.vlgmr.msra.gmra.mxu0 %vm1818_vm1, %v4103_v41 }
 0xce8   : > { %11726 = vmatprep.mubr.msk.bf16.mxu0 %vm13233_vm0, %v13232_v53 }
 0xcf8   : > { %3795 = vadd.xlane.f32.xlu1 %v3794_v43 }
 0xd09   : > { %4156 = vrot.lane.b32.xlu1 %v14035_v45, %s13234_s19 }
 0xd0d   : > { %4153 = vrot.lane.b32.xlu1 %v14051_v52, %s13234_s19 }
 0xd4c   : > { %v3790_v6 = vpop.xlane.xlu1 %3789 }
 0xd4d   : > { %12710 = vrcp.f32 %v3790_v6 }
 0xd50   : > { %v4050_v23 = vpop.permute.xlu1 %4049 }
 0xd51   : > { %v4051_v17 = vrot.slane %v4050_v23, 4 }
 0xd5a   : > { %v12711_v1 = vpop.eup %12710 }
 0xd5b   : > { %v3802_v7 = vmul.f32 %v12711_v1, %v12703_v18  ;;  %v4054_v18 = vrot.slane %v4053_v58, 4 }
 0xd5d   : > { %v3806_v12 = vpack.c.bf16 %v3802_v7, %v3802_v7  ;;  %v4059_v48 = vsel %vm1818_vm1, %v4054_v18, 0 }
 0xd5f   : > { %11685 = vmatmul.mubr.msk.bf16.vlgmr.msra.gmra.mxu1 %vm2003_vm2, %v3806_v12 }
 0xd60   : > { %11695 = vmatpush3.bf16.msra.mxu1 %v3955_v19  ;;  %11696 = vmatprep.mubr.msk.bf16.mxu1 %vm13233_vm0, %v13232_v53 }
 0xd61   : > { %11706 = vmatprep.subr.bf16.mxu1 %v13232_v53 }
 0xd81   : > { %v3796_v14 = vpop.xlane.xlu1 %3795 }
 0xd82   : > { %12712 = vrcp.f32 %v3796_v14 }
 0xd85   : > { %v4157_v44 = vpop.permute.xlu1 %4156 }
 0xd86   : > { %v4158_v20 = vrot.slane %v4157_v44, 4 }
 0xd88   : > { %v4163_v11 = vsel %vm1818_vm1, %v4158_v20, 0 }
 0xd8f   : > { %v12713_v39 = vpop.eup %12712  ;;  %v14530_v29 = vpop.f32.mrf.mxu0 }
 0xd90   : > { %v3804_v40 = vmul.f32 %v12713_v39, %v12709_v37  ;;  %v4154_v37 = vpop.permute.xlu1 %4153 }
 0xd91   : > { %v11680_v4 = vpop.f32.mrf.mxu0  ;;  %v4155_v7 = vrot.slane %v4154_v37, 4 }
 0xd92   : > { %v3808_v32 = vpack.c.bf16 %v3804_v40, %v3804_v40 }
 0xd93   : > { %v3853_v3 = vpop.f32.mrf.mxu0 }
 0xd94   : > { %11697 = vmatmul.mubr.msk.bf16.vlgmr.msra.gmra.mxu1 %vm2003_vm2, %v3808_v32 }
 0xd95   : > { %v11681_v26 = vpop.f32.mrf.mxu0  ;;  %11707 = vmatpush3.bf16.xpose.msra.mxu1 %v4059_v48  ;;  %11708 = vmatprep.mubr.msk.bf16.mxu1 %vm13233_vm0, %v13232_v53 }
 0xd96   : > { %11718 = vmatprep.subr.bf16.mxu1 %v13232_v53 }
 0xd97   : > { %v14537_v42 = vpop.f32.mrf.mxu0 }
 0xd99   : > { %v11692_v58 = vpop.f32.mrf.mxu0 }
 0xd9b   : > { %v3947_v27 = vpop.f32.mrf.mxu0 }
 0xd9c   : > { %11709 = vmatmul.mubr.msk.bf16.vlgmr.msra.gmra.mxu1 %vm1818_vm1, %v4051_v17 }
 0xd9d   : > { %v11693_v41 = vpop.f32.mrf.mxu0  ;;  %11719 = vmatpush3.bf16.xpose.msra.mxu1 %v4163_v11  ;;  %11720 = vmatprep.mubr.msk.bf16.mxu1 %vm13233_vm0, %v13232_v53 }
 0xd9e   : > { %11730 = vmatprep.subr.bf16.mxu1 %v13232_v53 }
 0xd9f   : > { %v4043_v43 = vpop.f32.mrf.mxu0 }
 0xda0   : > { %v4205_v6 = vsel %vm2003_vm2, %v4043_v43, -inf }
 0xda1   : > { %4206 = vmax.xlane.f32.xlu0 %v4205_v6  ;;  %v11704_v1 = vpop.f32.mrf.mxu0 }
 0xda3   : > { %v4046_v10 = vpop.f32.mrf.mxu0 }
 0xda4   : > { %11721 = vmatmul.mubr.msk.bf16.vlgmr.msra.gmra.mxu1 %vm1818_vm1, %v4155_v7 }
 0xda5   : > { %v11705_v12 = vpop.f32.mrf.mxu0  ;;  %11732 = vmatprep.mubr.msk.bf16.mxu1 %vm13233_vm0, %v13232_v53 }
 0xda7   : > { %v4147_v19 = vpop.f32.mrf.mxu0 }
 0xda8   : > { %v4211_v23 = vsel %vm2003_vm2, %v4147_v19, -inf }
 0xda9   : > { %4212 = vmax.xlane.f32.xlu0 %v4211_v23  ;;  %v11716_v14 = vpop.f32.mrf.mxu0 }
 0xdab   : > { %v4150_v39 = vpop.f32.mrf.mxu0 }
 0xdad   : > { %v11717_v18 = vpop.f32.mrf.mxu0 }
 0xe1f   : > { %v14549_v40 = vpop.f32.mrf.mxu1 }
 0xe21   : > { %v11686_v4 = vpop.f32.mrf.mxu1 }
 0xe23   : > { %v3900_v32 = vpop.f32.mrf.mxu1 }
 0xe25   : > { %v11687_v3 = vpop.f32.mrf.mxu1 }
 0xe2a   : > { %v4207_v48 = vpop.xlane.xlu0 %4206 }
 0xe2b   : > { %v4217_v44 = vsub.f32 %v4043_v43, %v4207_v48 }
 0xe2d   : > { %v4221_v58 = vmul.f32 1.442695, %v4217_v44 }
 0xe2f   : > { %12714 = vpow2.f32 %v4221_v58 }
 0xe32   : > { %v4213_v26 = vpop.xlane.xlu0 %4212 }
 0xe33   : > { %v4219_v17 = vsub.f32 %v4147_v19, %v4213_v26 }
 0xe35   : > { %v4225_v41 = vmul.f32 1.442695, %v4219_v17 }
 0xe37   : > { %12716 = vpow2.f32 %v4225_v41 }
 0xe3c   : > { %v12715_v14 = vpop.eup %12714 }
 0xe3d   : > { %v4229_v18 = vsel %vm2003_vm2, %v12715_v14, 0.0 }
 0xe44   : > { %v12717_v4 = vpop.eup %12716 }
 0xe45   : > { %v4235_v3 = vsel %vm2003_vm2, %v12717_v4, 0.0 }
 0xe54   : > { %v14551_v20 = vpop.f32.mrf.mxu1 }
 0xe56   : > { %v11698_v27 = vpop.f32.mrf.mxu1 }
 0xe58   : > { %v3994_v11 = vpop.f32.mrf.mxu1 }
 0xe5a   : > { %v11699_v37 = vpop.f32.mrf.mxu1 }
 0xe5c   : > { %v4095_v6 = vpop.f32.mrf.mxu1 }
 0xe5d   : > { %v4208_v1 = vsel %vm2003_vm2, %v4095_v6, -inf }
 0xe5e   : > { %4209 = vmax.xlane.f32.xlu1 %v4208_v1  ;;  %v11710_v7 = vpop.f32.mrf.mxu1 }
 0xe60   : > { %v4098_v10 = vpop.f32.mrf.mxu1 }
 0xe62   : > { %v11711_v12 = vpop.f32.mrf.mxu1 }
 0xe64   : > { %v14554_v23 = vpop.f32.mrf.mxu1 }
 0xe65   : > { %v4214_v43 = vsel %vm2003_vm2, %v14554_v23, -inf }
 0xe66   : > { %4215 = vmax.xlane.f32.xlu0 %v4214_v43  ;;  %v11722_v19 = vpop.f32.mrf.mxu1 }
 0xe68   : > { %v4202_v39 = vpop.f32.mrf.mxu1 }
 0xe6a   : > { %4230 = vadd.xlane.f32.xlu0 %v4229_v18  ;;  %v11723_v32 = vpop.f32.mrf.mxu1 }
 0xe6e   : > { %4236 = vadd.xlane.f32.xlu0 %v4235_v3 }
 0xe6f   : > { %4302 = vrot.lane.b32.xlu1 %v14162_v34, %s13234_s19 }
 0xe73   : > { %4351 = vrot.lane.b32.xlu1 %v14076_v5, %s13234_s19 }
 0xe77   : > { %4400 = vrot.lane.b32.xlu1 %v14190_v63, %s13234_s19 }
 0xe7b   : > { %4504 = vrot.lane.b32.xlu1 %v14002_v21, %s13235_s22 }
 0xe84   : > { %4253 = vrot.lane.b32.xlu0 %v14100_v13, %s13234_s19 }
 0xe88   : > { %4452 = vrot.lane.b32.xlu0 %v13992_v8, %s13235_s22 }
 0xe8c   : > { %4449 = vrot.lane.b32.xlu0 %v14005_v24, %s13235_s22 }
 0xe90   : > { %4556 = vrot.lane.b32.xlu0 %v14018_v33, %s13235_s22 }
 0xe94   : > { %4553 = vrot.lane.b32.xlu0 %v14039_v46, %s13235_s22 }
 0xee7   : > { %v4210_v48 = vpop.xlane.xlu1 %4209 }
 0xee8   : > { %v4218_v44 = vsub.f32 %v4095_v6, %v4210_v48 }
 0xeea   : > { %v4223_v26 = vmul.f32 1.442695, %v4218_v44 }
 0xeeb   : > { %v4303_v58 = vpop.permute.xlu1 %4302 }
 0xeec   : > { %12718 = vpow2.f32 %v4223_v26  ;;  %v4304_v17 = vrot.slane %v4303_v58, 4 }
 0xeee   : > { %v4309_v27 = vsel %vm2055_vm3, %v4304_v17, 0 }
 0xeef   : > { %11731 = vmatpush3.bf16.msra.mxu1 %v4309_v27  ;;  %v4216_v11 = vpop.xlane.xlu0 %4215  ;;  %v4352_v43 = vpop.permute.xlu1 %4351 }
 0xef0   : > { %11742 = vmatprep.subr.bf16.mxu1 %v13232_v53  ;;  %v4353_v39 = vrot.slane %v4352_v43, 4 }
 0xef2   : > { %v4358_v44 = vsel %vm2055_vm3, %v4353_v39, 0 }
 0xef3   : > { %v4231_v41 = vpop.xlane.xlu0 %4230 }
 0xef4   : > { %12720 = vrcp.f32 %v4231_v41 }
 0xef7   : > { %v4237_v37 = vpop.xlane.xlu0 %4236 }
 0xef8   : > { %12722 = vrcp.f32 %v4237_v37 }
 0xef9   : > { %v12719_v1 = vpop.eup %12718 }
 0xefa   : > { %v4232_v7 = vsel %vm2003_vm2, %v12719_v1, 0.0 }
 0xefb   : > { %4233 = vadd.xlane.f32.xlu1 %v4232_v7  ;;  %v4254_v10 = vpop.permute.xlu0 %4253 }
 0xefc   : > { %v4255_v6 = vrot.slane %v4254_v10, 4 }
 0xefe   : > { %v4260_v12 = vsel %vm2055_vm3, %v4255_v6, 0 }
 0xeff   : > { %11725 = vmatpush3.bf16.msra.mxu0 %v4260_v12  ;;  %v4453_v32 = vpop.permute.xlu0 %4452 }
 0xf00   : > { %11736 = vmatprep.subr.bf16.mxu0 %v13232_v53  ;;  %v4454_v17 = vrot.slane %v4453_v32, 4 }
 0xf01   : > { %v12721_v19 = vpop.eup %12720 }
 0xf02   : > { %v4245_v18 = vmul.f32 %v12721_v19, %v12715_v14  ;;  %v4459_v27 = vsel %vm1818_vm1, %v4454_v17, 0  ;;  %v4401_v19 = vpop.permute.xlu1 %4400 }
 0xf03   : > { %v4450_v58 = vpop.permute.xlu0 %4449 }
 0xf04   : > { %v4249_v3 = vpack.c.bf16 %v4245_v18, %v4245_v18  ;;  %v4451_v7 = vrot.slane %v4450_v58, 4 }
 0xf05   : > { %v12723_v48 = vpop.eup %12722 }
 0xf06   : > { %11727 = vmatmul.mubr.msk.bf16.vlgmr.msra.gmra.mxu0 %vm2003_vm2, %v4249_v3  ;;  %v4247_v26 = vmul.f32 %v12723_v48, %v12717_v4  ;;  %v4220_v4 = vsub.f32 %v14554_v23, %v4216_v11  ;;  %v4505_v39 = vpop.permute.xlu1 %4504  ;;  %v4402_v3 = vrot.slane %v4401_v19, 4 }
 0xf07   : > { %11737 = vmatpush3.bf16.msra.mxu0 %v4358_v44  ;;  %11738 = vmatprep.mubr.msk.bf16.mxu0 %vm13233_vm0, %v13232_v53  ;;  %v4557_v41 = vpop.permute.xlu0 %4556 }
 0xf08   : > { %11748 = vmatprep.subr.bf16.mxu0 %v13232_v53  ;;  %v4251_v14 = vpack.c.bf16 %v4247_v26, %v4247_v26  ;;  %v4558_v37 = vrot.slane %v4557_v41, 4  ;;  %v4227_v12 = vmul.f32 1.442695, %v4220_v4  ;;  %v4407_v26 = vsel %vm2055_vm3, %v4402_v3, 0 }
 0xf09   : > { %v4506_v41 = vrot.slane %v4505_v39, 4 }
 0xf0a   : > { %v4563_v10 = vsel %vm1818_vm1, %v4558_v37, 0  ;;  %12724 = vpow2.f32 %v4227_v12 }
 0xf0b   : > { %v4554_v6 = vpop.permute.xlu0 %4553 }
 0xf0c   : > { %4501 = vrot.lane.b32.xlu1 %v14022_v38, %s13235_s22  ;;  %v4555_v43 = vrot.slane %v4554_v6, 4 }
 0xf0e   : > { %11739 = vmatmul.mubr.msk.bf16.vlgmr.msra.gmra.mxu0 %vm2003_vm2, %v4251_v14 }
 0xf0f   : > { %11749 = vmatpush3.bf16.xpose.msra.mxu0 %v4459_v27  ;;  %11750 = vmatprep.mubr.msk.bf16.mxu0 %vm13233_vm0, %v13232_v53 }
 0xf10   : > { %11760 = vmatprep.subr.bf16.mxu0 %v13232_v53 }
 0xf16   : > { %11751 = vmatmul.mubr.msk.bf16.vlgmr.msra.gmra.mxu0 %vm1818_vm1, %v4451_v7 }
 0xf17   : > { %11761 = vmatpush3.bf16.xpose.msra.mxu0 %v4563_v10  ;;  %11762 = vmatprep.mubr.msk.bf16.mxu0 %vm13233_vm0, %v13232_v53  ;;  %v12725_v23 = vpop.eup %12724  ;;  %v4511_v10 = vsel %vm1818_vm1, %v4506_v41, 0 }
 0xf18   : > { %11772 = vmatprep.subr.bf16.mxu0 %v13232_v53  ;;  %v4238_v11 = vsel %vm2003_vm2, %v12725_v23, 0.0 }
 0xf1e   : > { %11763 = vmatmul.mubr.msk.bf16.vlgmr.msra.gmra.mxu0 %vm1818_vm1, %v4555_v43 }
 0xf1f   : > { %11774 = vmatprep.mubr.msk.bf16.mxu0 %vm13233_vm0, %v13232_v53 }
 0xf30   : > { %4239 = vadd.xlane.f32.xlu1 %v4238_v11 }
 0xf41   : > { %4608 = vrot.lane.b32.xlu1 %v14035_v45, %s13235_s22 }
 0xf45   : > { %4605 = vrot.lane.b32.xlu1 %v14051_v52, %s13235_s22 }
 0xf84   : > { %v4234_v18 = vpop.xlane.xlu1 %4233 }
 0xf85   : > { %12726 = vrcp.f32 %v4234_v18 }
 0xf88   : > { %v4502_v58 = vpop.permute.xlu1 %4501 }
 0xf92   : > { %v12727_v32 = vpop.eup %12726 }
 0xf93   : > { %v4246_v48 = vmul.f32 %v12727_v32, %v12719_v1 }
 0xf95   : > { %v4250_v44 = vpack.c.bf16 %v4246_v48, %v4246_v48 }
 0xf97   : > { %11733 = vmatmul.mubr.msk.bf16.vlgmr.msra.gmra.mxu1 %vm2003_vm2, %v4250_v44 }
 0xf98   : > { %11743 = vmatpush3.bf16.msra.mxu1 %v4407_v26  ;;  %11744 = vmatprep.mubr.msk.bf16.mxu1 %vm13233_vm0, %v13232_v53 }
 0xf99   : > { %11754 = vmatprep.subr.bf16.mxu1 %v13232_v53 }
 0xfb9   : > { %v4240_v17 = vpop.xlane.xlu1 %4239 }
 0xfba   : > { %12728 = vrcp.f32 %v4240_v17 }
 0xfbd   : > { %v4609_v6 = vpop.permute.xlu1 %4608 }
 0xfbe   : > { %v4610_v11 = vrot.slane %v4609_v6, 4 }
 0xfc0   : > { %v4615_v18 = vsel %vm1818_vm1, %v4610_v11, 0 }
 0xfc1   : > { %v4606_v3 = vpop.permute.xlu1 %4605 }
 0xfc2   : > { %v4607_v17 = vrot.slane %v4606_v3, 4 }
 0xfc6   : > { %v14614_v27 = vpop.f32.mrf.mxu0 }
 0xfc7   : > { %v12729_v14 = vpop.eup %12728 }
 0xfc8   : > { %v4248_v37 = vmul.f32 %v12729_v14, %v12725_v23  ;;  %v11728_v1 = vpop.f32.mrf.mxu0  ;;  %v4503_v23 = vrot.slane %v4502_v58, 4 }
 0xfca   : > { %v4252_v7 = vpack.c.bf16 %v4248_v37, %v4248_v37  ;;  %v4299_v4 = vpop.f32.mrf.mxu0 }
 0xfcc   : > { %11745 = vmatmul.mubr.msk.bf16.vlgmr.msra.gmra.mxu1 %vm2003_vm2, %v4252_v7  ;;  %v11729_v12 = vpop.f32.mrf.mxu0 }
 0xfcd   : > { %11755 = vmatpush3.bf16.xpose.msra.mxu1 %v4511_v10  ;;  %11756 = vmatprep.mubr.msk.bf16.mxu1 %vm13233_vm0, %v13232_v53 }
 0xfce   : > { %11766 = vmatprep.subr.bf16.mxu1 %v13232_v53  ;;  %v14621_v43 = vpop.f32.mrf.mxu0 }
 0xfd0   : > { %v11740_v19 = vpop.f32.mrf.mxu0 }
 0xfd2   : > { %v4397_v39 = vpop.f32.mrf.mxu0 }
 0xfd4   : > { %11757 = vmatmul.mubr.msk.bf16.vlgmr.msra.gmra.mxu1 %vm1818_vm1, %v4503_v23  ;;  %v11741_v32 = vpop.f32.mrf.mxu0 }
 0xfd5   : > { %11767 = vmatpush3.bf16.xpose.msra.mxu1 %v4615_v18  ;;  %11768 = vmatprep.mubr.msk.bf16.mxu1 %vm13233_vm0, %v13232_v53 }
 0xfd6   : > { %11778 = vmatprep.subr.bf16.mxu1 %v13232_v53  ;;  %v4495_v48 = vpop.f32.mrf.mxu0 }
 0xfd7   : > { %v4657_v44 = vsel %vm2003_vm2, %v4495_v48, -inf }
 0xfd8   : > { %4658 = vmax.xlane.f32.xlu0 %v4657_v44  ;;  %v11752_v26 = vpop.f32.mrf.mxu0 }
 0xfda   : > { %v4498_v58 = vpop.f32.mrf.mxu0 }
 0xfdc   : > { %11769 = vmatmul.mubr.msk.bf16.vlgmr.msra.gmra.mxu1 %vm1818_vm1, %v4607_v17  ;;  %v11753_v14 = vpop.f32.mrf.mxu0 }
 0xfdd   : > { %11780 = vmatprep.mubr.msk.bf16.mxu1 %vm13233_vm0, %v13232_v53 }
 0xfde   : > { %v4599_v41 = vpop.f32.mrf.mxu0 }
 0xfdf   : > { %v4663_v37 = vsel %vm2003_vm2, %v4599_v41, -inf }
 0xfe0   : > { %4664 = vmax.xlane.f32.xlu0 %v4663_v37  ;;  %v11764_v1 = vpop.f32.mrf.mxu0 }
 0xfe2   : > { %v4602_v7 = vpop.f32.mrf.mxu0 }
 0xfe4   : > { %v11765_v4 = vpop.f32.mrf.mxu0 }
0x1057   : > { %v14633_v10 = vpop.f32.mrf.mxu1 }
0x1059   : > { %v11734_v6 = vpop.f32.mrf.mxu1 }
0x105b   : > { %v4348_v12 = vpop.f32.mrf.mxu1 }
0x105d   : > { %v11735_v11 = vpop.f32.mrf.mxu1 }
0x1061   : > { %v4659_v19 = vpop.xlane.xlu0 %4658 }
0x1062   : > { %v4669_v23 = vsub.f32 %v4495_v48, %v4659_v19 }
0x1064   : > { %v4673_v32 = vmul.f32 1.442695, %v4669_v23 }
0x1066   : > { %12730 = vpow2.f32 %v4673_v32 }
0x1069   : > { %v4665_v39 = vpop.xlane.xlu0 %4664 }
0x106a   : > { %v4671_v3 = vsub.f32 %v4599_v41, %v4665_v39 }
0x106c   : > { %v4677_v17 = vmul.f32 1.442695, %v4671_v3 }
0x106e   : > { %12732 = vpow2.f32 %v4677_v17 }
0x1073   : > { %v12731_v12 = vpop.eup %12730 }
0x1074   : > { %v4681_v19 = vsel %vm2003_vm2, %v12731_v12, 0.0 }
0x107b   : > { %v12733_v23 = vpop.eup %12732 }
0x107c   : > { %v4687_v32 = vsel %vm2003_vm2, %v12733_v23, 0.0 }
0x108c   : > { %v14635_v18 = vpop.f32.mrf.mxu1 }
0x108e   : > { %v11746_v44 = vpop.f32.mrf.mxu1 }
0x1090   : > { %v4446_v26 = vpop.f32.mrf.mxu1 }
0x1092   : > { %v11747_v58 = vpop.f32.mrf.mxu1 }
0x1094   : > { %v4547_v14 = vpop.f32.mrf.mxu1 }
0x1095   : > { %v4660_v37 = vsel %vm2003_vm2, %v4547_v14, -inf }
0x1096   : > { %4661 = vmax.xlane.f32.xlu1 %v4660_v37  ;;  %v11758_v1 = vpop.f32.mrf.mxu1 }
0x1098   : > { %v4550_v7 = vpop.f32.mrf.mxu1 }
0x109a   : > { %v11759_v4 = vpop.f32.mrf.mxu1 }
0x109c   : > { %v14638_v6 = vpop.f32.mrf.mxu1 }
0x109d   : > { %v4666_v48 = vsel %vm2003_vm2, %v14638_v6, -inf }
0x109e   : > { %4667 = vmax.xlane.f32.xlu0 %v4666_v48  ;;  %v11770_v41 = vpop.f32.mrf.mxu1 }
0x10a0   : > { %v4654_v11 = vpop.f32.mrf.mxu1 }
0x10a2   : > { %4682 = vadd.xlane.f32.xlu0 %v4681_v19  ;;  %v11771_v39 = vpop.f32.mrf.mxu1 }
0x10a6   : > { %4688 = vadd.xlane.f32.xlu0 %v4687_v32 }
0x10a7   : > { %4754 = vrot.lane.b32.xlu1 %v14162_v34, %s13235_s22 }
0x10ab   : > { %4803 = vrot.lane.b32.xlu1 %v14076_v5, %s13235_s22 }
0x10af   : > { %4852 = vrot.lane.b32.xlu1 %v14190_v63, %s13235_s22 }
0x10bc   : > { %4705 = vrot.lane.b32.xlu0 %v14100_v13, %s13235_s22 }
0x10c0   : > { %4904 = vrot.lane.b32.xlu0 %v13992_v8, %s13236_s29 }
0x10c4   : > { %4901 = vrot.lane.b32.xlu0 %v14005_v24, %s13236_s29 }
0x10c8   : > { %5008 = vrot.lane.b32.xlu0 %v14018_v33, %s13236_s29 }
0x10cc   : > { %5005 = vrot.lane.b32.xlu0 %v14039_v46, %s13236_s29 }
0x111f   : > { %v4662_v3 = vpop.xlane.xlu1 %4661 }
0x1120   : > { %v4670_v44 = vsub.f32 %v4547_v14, %v4662_v3 }
0x1122   : > { %v4675_v26 = vmul.f32 1.442695, %v4670_v44 }
0x1123   : > { %v4755_v17 = vpop.permute.xlu1 %4754 }
0x1124   : > { %12734 = vpow2.f32 %v4675_v26  ;;  %v4756_v58 = vrot.slane %v4755_v17, 4 }
0x1126   : > { %v4761_v37 = vsel %vm2055_vm3, %v4756_v58, 0 }
0x1127   : > { %11779 = vmatpush3.bf16.msra.mxu1 %v4761_v37  ;;  %v4668_v1 = vpop.xlane.xlu0 %4667  ;;  %v4804_v48 = vpop.permute.xlu1 %4803 }
0x1128   : > { %11790 = vmatprep.subr.bf16.mxu1 %v13232_v53  ;;  %v4805_v11 = vrot.slane %v4804_v48, 4 }
0x112a   : > { %v4810_v44 = vsel %vm2055_vm3, %v4805_v11, 0 }
0x112b   : > { %v4683_v8 = vpop.xlane.xlu0 %4682  ;;  %v4853_v48 = vpop.permute.xlu1 %4852 }
0x112c   : > { %12736 = vrcp.f32 %v4683_v8 }
0x112f   : > { %v4689_v24 = vpop.xlane.xlu0 %4688 }
0x1130   : > { %12738 = vrcp.f32 %v4689_v24 }
0x1131   : > { %v12735_v7 = vpop.eup %12734 }
0x1132   : > { %v4684_v33 = vsel %vm2003_vm2, %v12735_v7, 0.0 }
0x1133   : > { %4685 = vadd.xlane.f32.xlu1 %v4684_v33  ;;  %v4706_v46 = vpop.permute.xlu0 %4705 }
0x1134   : > { %v4707_v14 = vrot.slane %v4706_v46, 4 }
0x1136   : > { %v4712_v4 = vsel %vm2055_vm3, %v4707_v14, 0 }
0x1137   : > { %11773 = vmatpush3.bf16.msra.mxu0 %v4712_v4  ;;  %v4905_v39 = vpop.permute.xlu0 %4904 }
0x1138   : > { %11784 = vmatprep.subr.bf16.mxu0 %v13232_v53  ;;  %v4906_v58 = vrot.slane %v4905_v39, 4 }
0x1139   : > { %v12737_v41 = vpop.eup %12736 }
0x113a   : > { %v4697_v19 = vmul.f32 %v12737_v41, %v12731_v12  ;;  %v4911_v37 = vsel %vm1818_vm1, %v4906_v58, 0 }
0x113b   : > { %v4902_v17 = vpop.permute.xlu0 %4901 }
0x113c   : > { %v4701_v32 = vpack.c.bf16 %v4697_v19, %v4697_v19  ;;  %v4903_v33 = vrot.slane %v4902_v17, 4  ;;  %v4854_v19 = vrot.slane %v4853_v48, 4 }
0x113d   : > { %v12739_v3 = vpop.eup %12738 }
0x113e   : > { %11775 = vmatmul.mubr.msk.bf16.vlgmr.msra.gmra.mxu0 %vm2003_vm2, %v4701_v32  ;;  %v4699_v26 = vmul.f32 %v12739_v3, %v12733_v23  ;;  %v4672_v23 = vsub.f32 %v14638_v6, %v4668_v1  ;;  %v4859_v3 = vsel %vm2055_vm3, %v4854_v19, 0 }
0x113f   : > { %11785 = vmatpush3.bf16.msra.mxu0 %v4810_v44  ;;  %11786 = vmatprep.mubr.msk.bf16.mxu0 %vm13233_vm0, %v13232_v53  ;;  %v5009_v8 = vpop.permute.xlu0 %5008 }
0x1140   : > { %11796 = vmatprep.subr.bf16.mxu0 %v13232_v53  ;;  %v4703_v12 = vpack.c.bf16 %v4699_v26, %v4699_v26  ;;  %v5010_v24 = vrot.slane %v5009_v8, 4  ;;  %v4679_v14 = vmul.f32 1.442695, %v4672_v23 }
0x1142   : > { %v5015_v46 = vsel %vm1818_vm1, %v5010_v24, 0  ;;  %12740 = vpow2.f32 %v4679_v14 }
0x1144   : > { %4956 = vrot.lane.b32.xlu1 %v14002_v21, %s13236_s29  ;;  %v5006_v21 = vpop.permute.xlu0 %5005 }
0x1145   : > { %v5007_v4 = vrot.slane %v5006_v21, 4 }
0x1146   : > { %11787 = vmatmul.mubr.msk.bf16.vlgmr.msra.gmra.mxu0 %vm2003_vm2, %v4703_v12 }
0x1147   : > { %11797 = vmatpush3.bf16.xpose.msra.mxu0 %v4911_v37  ;;  %11798 = vmatprep.mubr.msk.bf16.mxu0 %vm13233_vm0, %v13232_v53 }
0x1148   : > { %11808 = vmatprep.subr.bf16.mxu0 %v13232_v53 }
0x114e   : > { %11799 = vmatmul.mubr.msk.bf16.vlgmr.msra.gmra.mxu0 %vm1818_vm1, %v4903_v33 }
0x114f   : > { %11809 = vmatpush3.bf16.xpose.msra.mxu0 %v5015_v46  ;;  %11810 = vmatprep.mubr.msk.bf16.mxu0 %vm13233_vm0, %v13232_v53  ;;  %v12741_v6 = vpop.eup %12740 }
0x1150   : > { %11820 = vmatprep.subr.bf16.mxu0 %v13232_v53  ;;  %v4690_v1 = vsel %vm2003_vm2, %v12741_v6, 0.0 }
0x1156   : > { %11811 = vmatmul.mubr.msk.bf16.vlgmr.msra.gmra.mxu0 %vm1818_vm1, %v5007_v4 }
0x1157   : > { %11822 = vmatprep.mubr.msk.bf16.mxu0 %vm13233_vm0, %v13232_v53 }
0x1168   : > { %4691 = vadd.xlane.f32.xlu1 %v4690_v1 }
0x1179   : > { %4953 = vrot.lane.b32.xlu1 %v14022_v38, %s13236_s29 }
0x117d   : > { %5060 = vrot.lane.b32.xlu1 %v14035_v45, %s13236_s29 }
0x1181   : > { %5057 = vrot.lane.b32.xlu1 %v14051_v52, %s13236_s29 }
0x11bc   : > { %v4686_v41 = vpop.xlane.xlu1 %4685 }
0x11bd   : > { %12742 = vrcp.f32 %v4686_v41 }
0x11c0   : > { %v4957_v38 = vpop.permute.xlu1 %4956 }
0x11c1   : > { %v4958_v17 = vrot.slane %v4957_v38, 4 }
0x11c3   : > { %v4963_v8 = vsel %vm1818_vm1, %v4958_v17, 0 }
0x11ca   : > { %v12743_v11 = vpop.eup %12742 }
0x11cb   : > { %v4698_v39 = vmul.f32 %v12743_v11, %v12735_v7 }
0x11cd   : > { %v4702_v32 = vpack.c.bf16 %v4698_v39, %v4698_v39 }
0x11cf   : > { %11781 = vmatmul.mubr.msk.bf16.vlgmr.msra.gmra.mxu1 %vm2003_vm2, %v4702_v32 }
0x11d0   : > { %11791 = vmatpush3.bf16.msra.mxu1 %v4859_v3  ;;  %11792 = vmatprep.mubr.msk.bf16.mxu1 %vm13233_vm0, %v13232_v53 }
0x11d1   : > { %11802 = vmatprep.subr.bf16.mxu1 %v13232_v53 }
0x11f1   : > { %v4692_v45 = vpop.xlane.xlu1 %4691 }
0x11f2   : > { %12744 = vrcp.f32 %v4692_v45 }
0x11f5   : > { %v4954_v44 = vpop.permute.xlu1 %4953 }
0x11f6   : > { %v4955_v14 = vrot.slane %v4954_v44, 4 }
0x11f9   : > { %v5061_v24 = vpop.permute.xlu1 %5060 }
0x11fa   : > { %v5062_v46 = vrot.slane %v5061_v24, 4 }
0x11fd   : > { %v5058_v48 = vpop.permute.xlu1 %5057 }
0x11fe   : > { %v14698_v26 = vpop.f32.mrf.mxu0  ;;  %v5059_v39 = vrot.slane %v5058_v48, 4 }
0x11ff   : > { %v12745_v52 = vpop.eup %12744 }
0x1200   : > { %v4700_v7 = vmul.f32 %v12745_v52, %v12741_v6  ;;  %v11776_v58 = vpop.f32.mrf.mxu0  ;;  %v5067_v6 = vsel %vm1818_vm1, %v5062_v46, 0 }
0x1202   : > { %v4704_v12 = vpack.c.bf16 %v4700_v7, %v4700_v7  ;;  %v4751_v37 = vpop.f32.mrf.mxu0 }
0x1204   : > { %11793 = vmatmul.mubr.msk.bf16.vlgmr.msra.gmra.mxu1 %vm2003_vm2, %v4704_v12  ;;  %v11777_v33 = vpop.f32.mrf.mxu0 }
0x1205   : > { %11803 = vmatpush3.bf16.xpose.msra.mxu1 %v4963_v8  ;;  %11804 = vmatprep.mubr.msk.bf16.mxu1 %vm13233_vm0, %v13232_v53 }
0x1206   : > { %11814 = vmatprep.subr.bf16.mxu1 %v13232_v53  ;;  %v14705_v23 = vpop.f32.mrf.mxu0 }
0x1208   : > { %v11788_v21 = vpop.f32.mrf.mxu0 }
0x120a   : > { %v4849_v4 = vpop.f32.mrf.mxu0 }
0x120c   : > { %11805 = vmatmul.mubr.msk.bf16.vlgmr.msra.gmra.mxu1 %vm1818_vm1, %v4955_v14  ;;  %v11789_v1 = vpop.f32.mrf.mxu0 }
0x120d   : > { %11815 = vmatpush3.bf16.xpose.msra.mxu1 %v5067_v6  ;;  %11816 = vmatprep.mubr.msk.bf16.mxu1 %vm13233_vm0, %v13232_v53 }
0x120e   : > { %11826 = vmatprep.subr.bf16.mxu1 %v13232_v53  ;;  %v4947_v41 = vpop.f32.mrf.mxu0 }
0x120f   : > { %v5109_v11 = vsel %vm2003_vm2, %v4947_v41, -inf }
0x1210   : > { %5110 = vmax.xlane.f32.xlu0 %v5109_v11  ;;  %v11800_v19 = vpop.f32.mrf.mxu0 }
0x1212   : > { %v4950_v32 = vpop.f32.mrf.mxu0 }
0x1214   : > { %11817 = vmatmul.mubr.msk.bf16.vlgmr.msra.gmra.mxu1 %vm1818_vm1, %v5059_v39  ;;  %v11801_v3 = vpop.f32.mrf.mxu0 }
0x1215   : > { %11828 = vmatprep.mubr.msk.bf16.mxu1 %vm13233_vm0, %v13232_v53 }
0x1216   : > { %v14716_v38 = vpop.f32.mrf.mxu0 }
0x1217   : > { %v5115_v45 = vsel %vm2003_vm2, %v14716_v38, -inf }
0x1218   : > { %5116 = vmax.xlane.f32.xlu0 %v5115_v45  ;;  %v11812_v52 = vpop.f32.mrf.mxu0 }
0x121a   : > { %v5054_v44 = vpop.f32.mrf.mxu0 }
0x121c   : > { %v11813_v17 = vpop.f32.mrf.mxu0 }
0x128f   : > { %v4797_v7 = vpop.f32.mrf.mxu1 }
0x1291   : > { %v11782_v58 = vpop.f32.mrf.mxu1 }
0x1293   : > { %v4800_v12 = vpop.f32.mrf.mxu1 }
0x1295   : > { %v11783_v37 = vpop.f32.mrf.mxu1 }
0x1299   : > { %v5111_v8 = vpop.xlane.xlu0 %5110 }
0x129a   : > { %v5121_v24 = vsub.f32 %v4947_v41, %v5111_v8 }
0x129c   : > { %v5125_v46 = vmul.f32 1.442695, %v5121_v24 }
0x129e   : > { %12746 = vpow2.f32 %v5125_v46 }
0x12a1   : > { %v5117_v37 = vpop.xlane.xlu0 %5116 }
0x12ab   : > { %v12747_v3 = vpop.eup %12746 }
0x12ac   : > { %v5133_v52 = vsel %vm2003_vm2, %v12747_v3, 0.0 }
0x12c4   : > { %v14720_v33 = vpop.f32.mrf.mxu1 }
0x12c6   : > { %v11794_v21 = vpop.f32.mrf.mxu1 }
0x12c8   : > { %v4898_v14 = vpop.f32.mrf.mxu1 }
0x12ca   : > { %v11795_v4 = vpop.f32.mrf.mxu1 }
0x12cc   : > { %v4999_v6 = vpop.f32.mrf.mxu1 }
0x12cd   : > { %v5112_v1 = vsel %vm2003_vm2, %v4999_v6, -inf }
0x12ce   : > { %5113 = vmax.xlane.f32.xlu1 %v5112_v1  ;;  %v11806_v48 = vpop.f32.mrf.mxu1 }
0x12d0   : > { %v5002_v11 = vpop.f32.mrf.mxu1 }
0x12d2   : > { %v11807_v19 = vpop.f32.mrf.mxu1 }
0x12d4   : > { %v5103_v39 = vpop.f32.mrf.mxu1 }
0x12d5   : > { %v5118_v32 = vsel %vm2003_vm2, %v5103_v39, -inf }
0x12d6   : > { %5119 = vmax.xlane.f32.xlu0 %v5118_v32  ;;  %v11818_v41 = vpop.f32.mrf.mxu1 }
0x12d7   : > { %v5123_v41 = vsub.f32 %v14716_v38, %v5117_v37 }
0x12d8   : > { %v5106_v45 = vpop.f32.mrf.mxu1 }
0x12d9   : > { %v12008_v45 = vpack.i.bf16 %v4797_v7, %v14698_v26  ;;  %v12023_v26 = vpack.i.bf16 %v14479_v28, %v14473_v22 }
0x12da   : > { %5134 = vadd.xlane.f32.xlu0 %v5133_v52  ;;  %v11819_v44 = vpop.f32.mrf.mxu1  ;;  %v5129_v52 = vmul.f32 1.442695, %v5123_v41  ;;  %v12214_v41 = vld [vmem:[%s13776_s0 + $0x30] ss:$8 sps:$4 sm:$0xff]  }
0x12f0   : > { %5157 = vrot.lane.b32.xlu0 %v14100_v13, %s13236_s29 }
0x1357   : > { %v5114_v17 = vpop.xlane.xlu1 %5113 }
0x1358   : > { %v5122_v58 = vsub.f32 %v4999_v6, %v5114_v17 }
0x135a   : > { %v5127_v12 = vmul.f32 1.442695, %v5122_v58 }
0x135c   : > { %12748 = vpow2.f32 %v5127_v12 }
0x135f   : > { %v5120_v8 = vpop.xlane.xlu0 %5119 }
0x1360   : > { %v5124_v24 = vsub.f32 %v5103_v39, %v5120_v8 }
0x1362   : > { %v5131_v46 = vmul.f32 1.442695, %v5124_v24 }
0x1363   : > { %v5135_v21 = vpop.xlane.xlu0 %5134 }
0x1364   : > { %12750 = vpow2.f32 %v5131_v46 }
0x1365   : > { %12752 = vrcp.f32 %v5135_v21 }
0x1366   : > { %12754 = vpow2.f32 %v5129_v52  ;;  %v12217_v52 = vld [vmem:[%s13776_s0 + $0x20] ss:$8 sps:$4 sm:$0xff]  }
0x1367   : > { %v5158_v14 = vpop.permute.xlu0 %5157 }
0x1368   : > { %v5159_v4 = vrot.slane %v5158_v14, 4 }
0x1369   : > { %v12749_v1 = vpop.eup %12748 }
0x136a   : > { %v5164_v48 = vsel %vm2055_vm3, %v5159_v4, 0  ;;  %v5136_v11 = vsel %vm2003_vm2, %v12749_v1, 0.0  ;;  %v12202_v4 = vld [vmem:[%s13776_s0 + $0x70] ss:$8 sps:$4 sm:$0xff]  }
0x136b   : > { %5137 = vadd.xlane.f32.xlu1 %v5136_v11  ;;  %11821 = vmatpush3.bf16.msra.mxu0 %v5164_v48  ;;  %v12207_v48 = vld [vmem:[%s13776_s0 + $0x64] ss:$8 sps:$4 sm:$0xff]   ;;  %v12205_v11 = vld [vmem:[%s13776_s0 + $0x60] ss:$8 sps:$4 sm:$0xff]  }
0x136c   : > { %11832 = vmatprep.subr.bf16.mxu0 %v13232_v53 }
0x1371   : > { %v12751_v13 = vpop.eup %12750 }
0x1372   : > { %v12753_v6 = vpop.eup %12752  ;;  %v5142_v19 = vsel %vm2003_vm2, %v12751_v13, 0.0 }
0x1373   : > { %v5149_v39 = vmul.f32 %v12753_v6, %v12747_v3  ;;  %5143 = vadd.xlane.f32.xlu0 %v5142_v19  ;;  %v12755_v3 = vpop.eup %12754  ;;  %v12208_v6 = vld [vmem:[%s13776_s0 + $0x50] ss:$8 sps:$4 sm:$0xff]   ;;  %v12213_v19 = vld [vmem:[%s13776_s0 + $0x44] ss:$8 sps:$4 sm:$0xff]  }
0x1374   : > { %v5139_v44 = vsel %vm2003_vm2, %v12755_v3, 0.0 }
0x1375   : > { %v5153_v32 = vpack.c.bf16 %v5149_v39, %v5149_v39  ;;  %v12211_v39 = vld [vmem:[%s13776_s0 + $0x40] ss:$8 sps:$4 sm:$0xff]  }
0x1377   : > { %11823 = vmatmul.mubr.msk.bf16.vlgmr.msra.gmra.mxu0 %vm2003_vm2, %v5153_v32  ;;  %v12216_v32 = vld [vmem:[%s13776_s0 + $0x34] ss:$8 sps:$4 sm:$0xff]  }
0x1378   : > { %11834 = vmatprep.mubr.msk.bf16.mxu0 %vm13233_vm0, %v13232_v53 }
0x137c   : > { %5206 = vrot.lane.b32.xlu1 %v14162_v34, %s13236_s29  ;;  %v11998_v34 = vpack.i.bf16 %v14633_v10, %v14614_v27  ;;  %v12043_v27 = vpack.i.bf16 %v14403_v16, %v14397_v0 }
0x1389   : > { %5255 = vrot.lane.b32.xlu0 %v14076_v5, %s13236_s29  ;;  %v12013_v5 = vpack.i.bf16 %v14401_v51, %v14395_v62 }
0x138d   : > { %12009 = vrot.lane.b32.xlu0 %v12008_v45, %s13235_s22  ;;  %v12219_v45 = vld [vmem:[%s13776_s0 + $0x24] ss:$8 sps:$4 sm:$0xff]  }
0x13a0   : > { %5140 = vadd.xlane.f32.xlu1 %v5139_v44  ;;  %v12220_v44 = vld [vmem:[%s13776_s0 + $0x10] ss:$8 sps:$4 sm:$0xff]  }
0x13b1   : > { %5304 = vrot.lane.b32.xlu1 %v14190_v63, %s13236_s29  ;;  %v12033_v63 = vpack.i.bf16 %v14323_v35, %v14315_v9 }
0x13b5   : > { %11999 = vrot.lane.b32.xlu1 %v11998_v34, %s13236_s29  ;;  %v12225_v34 = vld [vmem:[%s13776_s0 + $0x4] ss:$8 sps:$4 sm:$0xff]  }
0x13b9   : > { %12004 = vrot.lane.b32.xlu1 %v12003_v31, %s13236_s29 }
0x13bd   : > { %12014 = vrot.lane.b32.xlu1 %v12013_v5, %s13235_s22  ;;  %v12223_v5 = vld [vmem:[%s13776_s0] ss:$8 sps:$4 sm:$0xff]  }
0x13c1   : > { %12024 = vrot.lane.b32.xlu1 %v12023_v26, %s13234_s19  ;;  %v12228_v26 = vld [vmem:[%s13776_s0 + $0xf4] ss:$8 sps:$4 sm:$0xff]  }
0x13c5   : > { %12034 = vrot.lane.b32.xlu1 %v12033_v63, %s13236_s29  ;;  %v12226_v63 = vld [vmem:[%s13776_s0 + $0xf0] ss:$8 sps:$4 sm:$0xff]  }
0x13c9   : > { %12044 = vrot.lane.b32.xlu1 %v12043_v27, %s13235_s22  ;;  %v12231_v27 = vld [vmem:[%s13776_s0 + $0xe4] ss:$8 sps:$4 sm:$0xff]  }
0x13cd   : > { %12054 = vrot.lane.b32.xlu1 %v12053_v47, %s13234_s19  ;;  %v12229_v47 = vld [vmem:[%s13776_s0 + $0xe0] ss:$8 sps:$4 sm:$0xff]  }
0x13f4   : > { %v5138_v25 = vpop.xlane.xlu1 %5137 }
0x13f5   : > { %12756 = vrcp.f32 %v5138_v25  ;;  %v12234_v25 = vld [vmem:[%s13776_s0 + $0xd4] ss:$8 sps:$4 sm:$0xff]  }
0x13f8   : > { %v5207_v31 = vpop.permute.xlu1 %5206 }
0x13f9   : > { %v5208_v62 = vrot.slane %v5207_v31, 4  ;;  %v12232_v31 = vld [vmem:[%s13776_s0 + $0xd0] ss:$8 sps:$4 sm:$0xff]  }
0x13fb   : > { %v5213_v51 = vsel %vm2055_vm3, %v5208_v62, 0  ;;  %v12237_v62 = vld [vmem:[%s13776_s0 + $0xc4] ss:$8 sps:$4 sm:$0xff]  }
0x13fc   : > { %11827 = vmatpush3.bf16.msra.mxu1 %v5213_v51  ;;  %v5144_v9 = vpop.xlane.xlu0 %5143  ;;  %v12235_v51 = vld [vmem:[%s13776_s0 + $0xc0] ss:$8 sps:$4 sm:$0xff]  }
0x13fd   : > { %11838 = vmatprep.subr.bf16.mxu1 %v13232_v53  ;;  %12758 = vrcp.f32 %v5144_v9  ;;  %v12240_v9 = vld [vmem:[%s13776_s0 + $0xb4] ss:$8 sps:$4 sm:$0xff]  }
0x1400   : > { %v5256_v35 = vpop.permute.xlu0 %5255 }
0x1401   : > { %v5257_v22 = vrot.slane %v5256_v35, 4  ;;  %v12238_v35 = vld [vmem:[%s13776_s0 + $0xb0] ss:$8 sps:$4 sm:$0xff]  }
0x1402   : > { %v12757_v0 = vpop.eup %12756 }
0x1403   : > { %v5150_v16 = vmul.f32 %v12757_v0, %v12749_v1  ;;  %v5262_v28 = vsel %vm2055_vm3, %v5257_v22, 0  ;;  %v12204_v1 = vld [vmem:[%s13776_s0 + $0x74] ss:$8 sps:$4 sm:$0xff]   ;;  %v12243_v22 = vld [vmem:[%s13776_s0 + $0xa4] ss:$8 sps:$4 sm:$0xff]  }
0x1404   : > { %11833 = vmatpush3.bf16.msra.mxu0 %v5262_v28  ;;  %v12241_v0 = vld [vmem:[%s13776_s0 + $0xa0] ss:$8 sps:$4 sm:$0xff]   ;;  %v12244_v28 = vld [vmem:[%s13776_s0 + $0x90] ss:$8 sps:$4 sm:$0xff]  }
0x1405   : > { %v5154_v50 = vpack.c.bf16 %v5150_v16, %v5150_v16  ;;  %5683 = vmatprep.subr.bf16.mxu0 %v12204_v1  ;;  %v12246_v16 = vld [vmem:[%s13776_s0 + $0x94] ss:$8 sps:$4 sm:$0xff]  }
0x1407   : > { %11829 = vmatmul.mubr.msk.bf16.vlgmr.msra.gmra.mxu1 %vm2003_vm2, %v5154_v50  ;;  %v12247_v50 = vld [vmem:[%s13776_s0 + $0x80] ss:$8 sps:$4 sm:$0xff]  }
0x1408   : > { %11840 = vmatprep.mubr.msk.bf16.mxu1 %vm13233_vm0, %v13232_v53 }
0x140a   : > { %v12759_v10 = vpop.eup %12758 }
0x140b   : > { %v5152_v7 = vmul.f32 %v12759_v10, %v12751_v13  ;;  %v12210_v13 = vld [vmem:[%s13776_s0 + $0x54] ss:$8 sps:$4 sm:$0xff]  }
0x140d   : > { %v5156_v12 = vpack.c.bf16 %v5152_v7, %v5152_v7 }
0x1429   : > { %v5141_v2 = vpop.xlane.xlu1 %5140 }
0x142a   : > { %12760 = vrcp.f32 %v5141_v2  ;;  %v12249_v2 = vld [vmem:[%s13776_s0 + $0x84] ss:$8 sps:$4 sm:$0xff]  }
0x142d   : > { %v5305_v38 = vpop.permute.xlu1 %5304 }
0x142e   : > { %v5306_v17 = vrot.slane %v5305_v38, 4 }
0x1430   : > { %v5311_v58 = vsel %vm2055_vm3, %v5306_v17, 0 }
0x1431   : > { %11839 = vmatpush3.bf16.msra.mxu1 %v5311_v58  ;;  %v12028_v58 = vpack.i.bf16 %v14635_v18, %v14621_v43  ;;  %v12000_v43 = vpop.permute.xlu1 %11999 }
0x1434   : > { %11841 = vmatmul.mubr.msk.bf16.vlgmr.msra.gmra.mxu1 %vm2003_vm2, %v5156_v12 }
0x1435   : > { %v12005_v18 = vpop.permute.xlu1 %12004 }
0x1437   : > { %v12761_v37 = vpop.eup %12760  ;;  %v14774_v53 = vpop.f32.mrf.mxu0 }
0x1438   : > { %v5151_v8 = vmul.f32 %v12761_v37, %v12755_v3  ;;  %v12222_v3 = vld [vmem:[%s13776_s0 + $0x14] ss:$8 sps:$4 sm:$0xff]   ;;  %v12038_v37 = vpack.i.bf16 %v14720_v33, %v14705_v23  ;;  %v12010_v23 = vpop.permute.xlu0 %12009  ;;  %v12007_v33 = vunpack.i.h.bf16 %v12005_v18  ;;  %s15867_s0 = scalar_lea.vmem [#allocation18], %s13774_s15 }
0x1439   : > { %v11824_v24 = vpop.f32.mrf.mxu0 }
0x143a   : > { %v5155_v46 = vpack.c.bf16 %v5151_v8, %v5151_v8 }
0x143b   : > { %v5203_v21 = vpop.f32.mrf.mxu0 }
0x143c   : > { %11835 = vmatmul.mubr.msk.bf16.vlgmr.msra.gmra.mxu0 %vm2003_vm2, %v5155_v46 }
0x143d   : > { %v11825_v14 = vpop.f32.mrf.mxu0  ;;  %5684 = vmatpush1.bf16.msra.mxu0 %v12202_v4 }
0x143e   : > { %5685 = vmatprep.subr.bf16.mxu0 %v12207_v48 }
0x1441   : > { %5686 = vmatpush1.bf16.msra.mxu0 %v12205_v11  ;;  %v12015_v11 = vpop.permute.xlu1 %12014 }
0x1442   : > { %5687 = vmatprep.subr.bf16.mxu0 %v12210_v13  ;;  %v12002_v13 = vunpack.i.h.bf16 %v12000_v43 }
0x1445   : > { %5688 = vmatpush1.bf16.msra.mxu0 %v12208_v6  ;;  %v12001_v6 = vunpack.i.l.bf16 %v12000_v43 }
0x1446   : > { %5689 = vmatprep.subr.bf16.mxu0 %v12213_v19  ;;  %v12025_v19 = vpop.permute.xlu1 %12024 }
0x1449   : > { %5690 = vmatpush1.bf16.msra.mxu0 %v12211_v39  ;;  %v12006_v39 = vunpack.i.l.bf16 %v12005_v18 }
0x144a   : > { %5691 = vmatprep.subr.bf16.mxu0 %v12216_v32  ;;  %v12017_v32 = vunpack.i.h.bf16 %v12015_v11 }
0x144d   : > { %5692 = vmatpush1.bf16.msra.mxu0 %v12214_v41  ;;  %v12016_v41 = vunpack.i.l.bf16 %v12015_v11 }
0x144e   : > { %5693 = vmatprep.subr.bf16.mxu0 %v12219_v45  ;;  %v12027_v45 = vunpack.i.h.bf16 %v12025_v19 }
0x1451   : > { %5694 = vmatpush1.bf16.msra.mxu0 %v12217_v52  ;;  %v12026_v52 = vunpack.i.l.bf16 %v12025_v19 }
0x1452   : > { %5695 = vmatprep.subr.bf16.mxu0 %v12222_v3  ;;  %v5464_v3 = vsel %vm1818_vm1, %v14549_v40, %v12002_v13 }
0x1455   : > { %5696 = vmatpush1.bf16.msra.mxu0 %v12220_v44  ;;  %v5463_v44 = vsel %vm1818_vm1, %v14530_v29, %v12001_v6 }
0x1456   : > { %5697 = vmatprep.subr.bf16.mxu0 %v12225_v34  ;;  %v12012_v34 = vunpack.i.h.bf16 %v12010_v23 }
0x1459   : > { %5698 = vmatpush1.bf16.msra.mxu0 %v12223_v5  ;;  %v12011_v5 = vunpack.i.l.bf16 %v12010_v23 }
0x145a   : > { %5699 = vmatprep.subr.bf16.mxu0 %v12228_v26  ;;  %v5450_v26 = vsel %vm1818_vm1, %v14219_v36, %v12007_v33 }
0x145d   : > { %5700 = vmatpush2.bf16.msra.mxu0 %v12226_v63  ;;  %v5449_v63 = vsel %vm1818_vm1, %v14217_v30, %v12006_v39 }
0x145e   : > { %5701 = vmatprep.subr.bf16.mxu0 %v12231_v27 }
0x1461   : > { %5702 = vmatpush2.bf16.msra.mxu0 %v12229_v47  ;;  %v5454_v47 = vsel %vm5453_vm4, %v5449_v63, %v12016_v41 }
0x1462   : > { %5703 = vmatprep.subr.bf16.mxu0 %v12234_v25  ;;  %v5455_v25 = vsel %vm5453_vm4, %v5450_v26, %v12017_v32  ;;  %v12779_v26 = vld [vmem:[#allocation2] sm:$0xff] }
0x1463   : > { %v5460_v29 = vsel %vm5458_vm5, %v5455_v25, %v12027_v45 }
0x1465   : > { %5704 = vmatpush2.bf16.msra.mxu0 %v12232_v31 }
0x1466   : > { %5705 = vmatprep.subr.bf16.mxu0 %v12237_v62  ;;  %v5459_v62 = vsel %vm5458_vm5, %v5454_v47, %v12026_v52 }
0x1469   : > { %5706 = vmatpush2.bf16.msra.mxu0 %v12235_v51  ;;  %v5467_v51 = vsel %vm5453_vm4, %v5463_v44, %v12011_v5 }
0x146a   : > { %5707 = vmatprep.subr.bf16.mxu0 %v12240_v9  ;;  %v5468_v9 = vsel %vm5453_vm4, %v5464_v3, %v12012_v34  ;;  %v12778_v34 = vld [vmem:[#allocation2 + $0x30] sm:$0xff] }
0x146d   : > { %5708 = vmatpush2.bf16.msra.mxu0 %v12238_v35 }
0x146e   : > { %5709 = vmatprep.subr.bf16.mxu0 %v12243_v22  ;;  %v5475_v22 = vpack.c.bf16 %v5460_v29, %v5459_v62  ;;  %v12781_v29 = vld [vmem:[#allocation2 + $0x10] sm:$0xff] }
0x1471   : > { %5710 = vmatpush2.bf16.msra.mxu0 %v12241_v0  ;;  %v12035_v0 = vpop.permute.xlu1 %12034 }
0x1472   : > { %5711 = vmatprep.subr.bf16.mxu0 %v12246_v16 }
0x1475   : > { %5712 = vmatpush2.bf16.msra.mxu0 %v12244_v28  ;;  %v12045_v16 = vpop.permute.xlu1 %12044 }
0x1476   : > { %5713 = vmatprep.subr.bf16.mxu0 %v12249_v2  ;;  %v12036_v2 = vunpack.i.l.bf16 %v12035_v0 }
0x1479   : > { %5714 = vmatpush2.bf16.msra.mxu0 %v12247_v50  ;;  %v12037_v50 = vunpack.i.h.bf16 %v12035_v0 }
0x14c7   : > { %v5249_v10 = vpop.f32.mrf.mxu1 }
0x14c8   : > { %v12018_v38 = vpack.i.bf16 %v5249_v10, %v14774_v53  ;;  %v12055_v10 = vpop.permute.xlu1 %12054 }
0x14c9   : > { %v11830_v7 = vpop.f32.mrf.mxu1 }
0x14ca   : > { %12019 = vrot.lane.b32.xlu0 %v12018_v38, %s13234_s19  ;;  %v12047_v7 = vunpack.i.h.bf16 %v12045_v16 }
0x14cb   : > { %v5252_v17 = vpop.f32.mrf.mxu1 }
0x14cc   : > { %v12046_v17 = vunpack.i.l.bf16 %v12045_v16  ;;  %v12782_v16 = vld [vmem:[#allocation2 + $0x8] sm:$0xff] }
0x14cd   : > { %v11831_v12 = vpop.f32.mrf.mxu1 }
0x14ce   : > { %12029 = vrot.lane.b32.xlu0 %v12028_v58, %s13236_s29 }
0x14d2   : > { %12039 = vrot.lane.b32.xlu0 %v12038_v37, %s13235_s22  ;;  %v12057_v37 = vunpack.i.h.bf16 %v12055_v10 }
0x14f4   : > { %v5347_v8 = vpop.f32.mrf.mxu1 }
0x14f6   : > { %v11842_v24 = vpop.f32.mrf.mxu1 }
0x14f8   : > { %v5350_v46 = vpop.f32.mrf.mxu1 }
0x14fa   : > { %v11843_v21 = vpop.f32.mrf.mxu1 }
0x14fb   : > { %v5452_v21 = vsel %vm1818_vm1, %v14225_v15, %v12037_v50  ;;  %v12783_v50 = vld [vmem:[#allocation2 + $0x20] sm:$0xff] }
0x14fc   : > { %v5298_v53 = vpop.f32.mrf.mxu0 }
0x14fd   : > { %v12048_v14 = vpack.i.bf16 %v5347_v8, %v5298_v53  ;;  %v12056_v8 = vunpack.i.l.bf16 %v12055_v10  ;;  %v5451_v53 = vsel %vm1818_vm1, %v14222_v49, %v12036_v2 }
0x14fe   : > { %v11836_v4 = vpop.f32.mrf.mxu0 }
0x14ff   : > { %12049 = vrot.lane.b32.xlu0 %v12048_v14, %s13234_s19  ;;  %v5456_v14 = vsel %vm5453_vm4, %v5451_v53, %v12046_v17  ;;  %v5457_v4 = vsel %vm5453_vm4, %v5452_v21, %v12047_v7  ;;  %v5973_v21 = vld [vmem:[%s13793_s4 + $0x3c0] sm:$0xff]  ;;  %v5966_v53 = vld [vmem:[%s13793_s4 + $0x388] sm:$0xff] }
0x1500   : > { %v5301_v1 = vpop.f32.mrf.mxu0  ;;  %v5461_v13 = vsel %vm5458_vm5, %v5456_v14, %v12056_v8  ;;  %v5462_v15 = vsel %vm5458_vm5, %v5457_v4, %v12057_v37  ;;  %v12785_v37 = vld [vmem:[#allocation2 + $0x38] sm:$0xff] }
0x1501   : > { %v5477_v39 = vpack.c.bf16 %v5462_v15, %v5461_v13  ;;  %v5950_v15 = vld [vmem:[%s13793_s4 + $0x308] sm:$0xff] }
0x1502   : > { %v11837_v48 = vpop.f32.mrf.mxu0 }
0x153c   : > { %v12020_v27 = vpop.permute.xlu0 %12019 }
0x153d   : > { %v12022_v31 = vunpack.i.h.bf16 %v12020_v27  ;;  %v12021_v40 = vunpack.i.l.bf16 %v12020_v27 }
0x153f   : > { %v5471_v36 = vsel %vm5458_vm5, %v5467_v51, %v12021_v40  ;;  %v5472_v35 = vsel %vm5458_vm5, %v5468_v9, %v12022_v31  ;;  %v12780_v40 = vld [vmem:[#allocation2 + $0x18] sm:$0xff] }
0x1540   : > { %v5476_v30 = vpack.c.bf16 %v5472_v35, %v5471_v36  ;;  %v12030_v28 = vpop.permute.xlu0 %12029 }
0x1541   : > { %v12032_v58 = vunpack.i.h.bf16 %v12030_v28  ;;  %v12031_v12 = vunpack.i.l.bf16 %v12030_v28 }
0x1542   : > { %5715 = vmatprep.mubr.bf16.mxu0 %v5476_v30 }
0x1543   : > { %5716 = vmatmul.mubr.bf16.vlgmr.msra.gmra.mxu0 %v5475_v22  ;;  %v5466_v48 = vsel %vm1818_vm1, %v14551_v20, %v12032_v58  ;;  %v5465_v43 = vsel %vm1818_vm1, %v14537_v42, %v12031_v12  ;;  %v5511_v42 = vld [vmem:[%s775_s27] sm:$0x3]  ;;  %s15876_s27 = scalar_lea.vmem [#allocation20], %s13774_s15 }
0x1544   : > { %v12040_v38 = vpop.permute.xlu0 %12039  ;;  %v5516_v20 = vrot.slane %v5511_v42, %v13976_v59  ;;  %v5520_v32 = vrot.slane %v5511_v42, %v13979_v60  ;;  %v12784_v58 = vld [vmem:[#allocation2 + $0x28] sm:$0xff] }
0x1545   : > { %v12042_v24 = vunpack.i.h.bf16 %v12040_v38  ;;  %v12041_v46 = vunpack.i.l.bf16 %v12040_v38 }
0x1547   : > { %v5469_v49 = vsel %vm5453_vm4, %v5465_v43, %v12041_v46  ;;  %v5470_v6 = vsel %vm5453_vm4, %v5466_v48, %v12042_v24  ;;  %v5965_v46 = vld [vmem:[%s13793_s4 + $0x380] sm:$0xff] }
0x1548   : > { %v10894_v14 = vcombine.low %v5965_v46, %v5973_v21  ;;  %v10895_v4 = vcombine.high %v5965_v46, %v5973_v21  ;;  %v5949_v48 = vld [vmem:[%s13793_s4 + $0x300] sm:$0xff]  ;;  %v5878_v46 = vld [vmem:[%s13793_s4 + $0xc8] sm:$0xff] }
0x1549   : > { %v5957_v43 = vld [vmem:[%s13793_s4 + $0x340] sm:$0xff] }
0x154a   : > { %v10879_v13 = vcombine.high %v5949_v48, %v5957_v43  ;;  %7473 = vmatprep.subr.bf16.mxu1 %v10895_v4  ;;  %v10878_v42 = vcombine.low %v5949_v48, %v5957_v43  ;;  %v5861_v48 = vld [vmem:[%s13793_s4 + $0x40] sm:$0xff]  ;;  %v5854_v43 = vld [vmem:[%s13793_s4 + $0x8] sm:$0xff] }
0x154b   : > { %7474 = vmatpush1.bf16.msra.mxu1 %v10894_v14 }
0x154c   : > { %7475 = vmatprep.subr.bf16.mxu1 %v10879_v13 }
0x154f   : > { %7476 = vmatpush1.bf16.msra.mxu1 %v10878_v42 }
0x1571   : > { %v12050_v1 = vpop.permute.xlu0 %12049 }
0x1572   : > { %v12052_v18 = vunpack.i.h.bf16 %v12050_v1  ;;  %v12051_v11 = vunpack.i.l.bf16 %v12050_v1  ;;  %v5974_v1 = vld [vmem:[%s13793_s4 + $0x3c8] sm:$0xff] }
0x1574   : > { %v5473_v19 = vsel %vm5458_vm5, %v5469_v49, %v12051_v11  ;;  %v5474_v23 = vsel %vm5458_vm5, %v5470_v6, %v12052_v18  ;;  %v10896_v18 = vcombine.low %v5966_v53, %v5974_v1  ;;  %v10897_v11 = vcombine.high %v5966_v53, %v5974_v1  ;;  %v5958_v49 = vld [vmem:[%s13793_s4 + $0x348] sm:$0xff]  ;;  %v5933_v6 = vld [vmem:[%s13793_s4 + $0x280] sm:$0xff] }
0x1575   : > { %v5478_v33 = vpack.c.bf16 %v5474_v23, %v5473_v19  ;;  %v10881_v19 = vcombine.high %v5950_v15, %v5958_v49  ;;  %v5941_v23 = vld [vmem:[%s13793_s4 + $0x2c0] sm:$0xff] }
0x1576   : > { %7526 = vmatprep.subr.bf16.mxu0 %v10897_v11  ;;  %v5853_v1 = vld [vmem:[%s13793_s4] sm:$0xff] }
0x1577   : > { %5725 = vmatprep.mubr.bf16.mxu0 %v5478_v33  ;;  %v5934_v33 = vld [vmem:[%s13793_s4 + $0x288] sm:$0xff]  ;;  %7527 = vmatpush1.bf16.msra.mxu0 %v10896_v18 }
0x1578   : > { %5726 = vmatmul.mubr.bf16.gmra.mxu0 %v5477_v39  ;;  %v5942_v39 = vld [vmem:[%s13793_s4 + $0x2c8] sm:$0xff]  ;;  %7528 = vmatprep.subr.bf16.mxu0 %v10881_v19  ;;  %v6101_v19 = vld [vmem:[%s13793_s4 + $0x7c0] sm:$0xff] }
0x1579   : > { %v5862_v18 = vld [vmem:[%s13793_s4 + $0x48] sm:$0xff] }
0x157a   : > { %v10784_v42 = vcombine.low %v5854_v43, %v5862_v18 }
0x1603   : > { %v5717_v41 = vpop.f32.mrf.mxu0 }
0x1604   : > { %v5718_v45 = vadd.f32 %v5717_v41, %v5516_v20  ;;  %v10865_v41 = vcombine.high %v5934_v33, %v5942_v39 }
0x1605   : > { %v5719_v52 = vpop.f32.mrf.mxu0 }
0x1606   : > { %v5720_v3 = vadd.f32 %v5719_v52, %v5520_v32  ;;  %v14854_v5 = vadd.f32 %v12778_v34, %v5718_v45  ;;  %v5917_v45 = vld [vmem:[%s13793_s4 + $0x200] sm:$0xff]  ;;  %v10862_v34 = vcombine.low %v5933_v6, %v5941_v23 }
0x1607   : > { %v5721_v44 = vpop.f32.mrf.mxu0  ;;  %v5925_v52 = vld [vmem:[%s13793_s4 + $0x240] sm:$0xff] }
0x1608   : > { %v14856_v63 = vadd.f32 %v12779_v26, %v5720_v3  ;;  %v5722_v27 = vadd.f32 %v5721_v44, %v5516_v20  ;;  %v5918_v3 = vld [vmem:[%s13793_s4 + $0x208] sm:$0xff]  ;;  %v10864_v26 = vcombine.low %v5934_v33, %v5942_v39  ;;  %v10782_v39 = vcombine.low %v5853_v1, %v5861_v48 }
0x1609   : > { %v5723_v47 = vpop.f32.mrf.mxu0  ;;  %v5926_v44 = vld [vmem:[%s13793_s4 + $0x248] sm:$0xff] }
0x160a   : > { %v5724_v25 = vadd.f32 %v5723_v47, %v5520_v32  ;;  %v5746_v31 = vadd.f32 %v14856_v63, %v14854_v5  ;;  %v14860_v62 = vadd.f32 %v12780_v40, %v5722_v27  ;;  %v10847_v27 = vcombine.high %v5917_v45, %v5925_v52  ;;  %v5902_v40 = vld [vmem:[%s13793_s4 + $0x188] sm:$0xff] }
0x160b   : > { %v10849_v47 = vcombine.high %v5918_v3, %v5926_v44  ;;  %v6102_v33 = vld [vmem:[%s13793_s4 + $0x7c8] sm:$0xff] }
0x160c   : > { %v14862_v51 = vadd.f32 %v12781_v29, %v5724_v25  ;;  %5747 = vadd.xlane.f32.xlu0 %v5746_v31  ;;  %v5901_v25 = vld [vmem:[%s13793_s4 + $0x180] sm:$0xff]  ;;  %v5910_v29 = vld [vmem:[%s13793_s4 + $0x1c8] sm:$0xff] }
0x160d   : > { %v5909_v31 = vld [vmem:[%s13793_s4 + $0x1c0] sm:$0xff] }
0x160e   : > { %v5749_v9 = vadd.f32 %v14862_v51, %v14860_v62 }
0x1610   : > { %5750 = vadd.xlane.f32.xlu1 %v5749_v9  ;;  %v10846_v9 = vcombine.low %v5917_v45, %v5925_v52 }
0x1638   : > { %v5727_v36 = vpop.f32.mrf.mxu0 }
0x1639   : > { %v5728_v35 = vadd.f32 %v5727_v36, %v5516_v20  ;;  %v10848_v36 = vcombine.low %v5918_v3, %v5926_v44 }
0x163a   : > { %v5729_v30 = vpop.f32.mrf.mxu0 }
0x163b   : > { %v5730_v22 = vadd.f32 %v5729_v30, %v5520_v32  ;;  %v14866_v28 = vadd.f32 %v12782_v16, %v5728_v35  ;;  %v10831_v35 = vcombine.high %v5901_v25, %v5909_v31  ;;  %v10833_v30 = vcombine.high %v5902_v40, %v5910_v29  ;;  %v5886_v16 = vld [vmem:[%s13793_s4 + $0x108] sm:$0xff] }
0x163c   : > { %v5731_v0 = vpop.f32.mrf.mxu0 }
0x163d   : > { %v14868_v2 = vadd.f32 %v12783_v50, %v5730_v22  ;;  %v5732_v10 = vadd.f32 %v5731_v0, %v5516_v20  ;;  %v10880_v20 = vcombine.low %v5950_v15, %v5958_v49  ;;  %v5885_v22 = vld [vmem:[%s13793_s4 + $0x100] sm:$0xff]  ;;  %v5894_v50 = vld [vmem:[%s13793_s4 + $0x148] sm:$0xff]  ;;  %v10783_v15 = vcombine.high %v5853_v1, %v5861_v48 }
0x163e   : > { %v5733_v38 = vpop.f32.mrf.mxu0  ;;  %v5893_v0 = vld [vmem:[%s13793_s4 + $0x140] sm:$0xff]  ;;  %v10816_v53 = vcombine.low %v5886_v16, %v5894_v50  ;;  %v10785_v49 = vcombine.high %v5854_v43, %v5862_v18 }
0x163f   : > { %v5734_v7 = vadd.f32 %v5733_v38, %v5520_v32  ;;  %v5752_v17 = vadd.f32 %v14868_v2, %v14866_v28  ;;  %v14872_v12 = vadd.f32 %v12784_v58, %v5732_v10  ;;  %v10863_v32 = vcombine.high %v5933_v6, %v5941_v23  ;;  %7529 = vmatpush1.bf16.msra.mxu0 %v10880_v20  ;;  %v5869_v58 = vld [vmem:[%s13793_s4 + $0x80] sm:$0xff]  ;;  %v6094_v23 = vld [vmem:[%s13793_s4 + $0x788] sm:$0xff] }
0x1640   : > { %7530 = vmatprep.subr.bf16.mxu0 %v10865_v41  ;;  %v10830_v10 = vcombine.low %v5901_v25, %v5909_v31  ;;  %v10832_v38 = vcombine.low %v5902_v40, %v5910_v29  ;;  %v10814_v21 = vcombine.low %v5885_v22, %v5893_v0  ;;  %v6093_v6 = vld [vmem:[%s13793_s4 + $0x780] sm:$0xff]  ;;  %v11024_v45 = vcombine.low %v6094_v23, %v6102_v33 }
0x1641   : > { %v14874_v8 = vadd.f32 %v12785_v37, %v5734_v7  ;;  %5753 = vadd.xlane.f32.xlu0 %v5752_v17  ;;  %7477 = vmatprep.subr.bf16.mxu1 %v10863_v32  ;;  %v10815_v7 = vcombine.high %v5885_v22, %v5893_v0  ;;  %v10817_v17 = vcombine.high %v5886_v16, %v5894_v50  ;;  %v5877_v37 = vld [vmem:[%s13793_s4 + $0xc0] sm:$0xff] }
0x1642   : > { %7478 = vmatpush1.bf16.msra.mxu1 %v10862_v34  ;;  %v10799_v14 = vcombine.high %v5869_v58, %v5877_v37  ;;  %v10798_v11 = vcombine.low %v5869_v58, %v5877_v37  ;;  %v11023_v20 = vcombine.high %v6093_v6, %v6101_v19  ;;  %v11025_v32 = vcombine.high %v6094_v23, %v6102_v33  ;;  %v6061_v50 = vld [vmem:[%s13793_s4 + $0x680] sm:$0xff] }
0x1643   : > { %v5755_v24 = vadd.f32 %v14874_v8, %v14872_v12  ;;  %7531 = vmatpush1.bf16.msra.mxu0 %v10864_v26  ;;  %7479 = vmatprep.subr.bf16.mxu1 %v10847_v27  ;;  %v11022_v41 = vcombine.low %v6093_v6, %v6101_v19  ;;  %v6029_v18 = vld [vmem:[%s13793_s4 + $0x580] sm:$0xff] }
0x1644   : > { %7532 = vmatprep.subr.bf16.mxu0 %v10849_v47  ;;  %v6013_v33 = vld [vmem:[%s13793_s4 + $0x500] sm:$0xff] }
0x1645   : > { %5756 = vadd.xlane.f32.xlu0 %v5755_v24  ;;  %v5870_v24 = vld [vmem:[%s13793_s4 + $0x88] sm:$0xff] }
0x1646   : > { %7480 = vmatpush1.bf16.msra.mxu1 %v10846_v9  ;;  %v10801_v4 = vcombine.high %v5870_v24, %v5878_v46  ;;  %v10800_v13 = vcombine.low %v5870_v24, %v5878_v46  ;;  %v6045_v46 = vld [vmem:[%s13793_s4 + $0x600] sm:$0xff] }
0x1647   : > { %7533 = vmatpush1.bf16.msra.mxu0 %v10848_v36  ;;  %7481 = vmatprep.subr.bf16.mxu1 %v10831_v35  ;;  %v6077_v36 = vld [vmem:[%s13793_s4 + $0x700] sm:$0xff]  ;;  %v6078_v35 = vld [vmem:[%s13793_s4 + $0x708] sm:$0xff] }
0x1648   : > { %7534 = vmatprep.subr.bf16.mxu0 %v10833_v30 }
0x164a   : > { %7482 = vmatpush1.bf16.msra.mxu1 %v10830_v10  ;;  %v6069_v10 = vld [vmem:[%s13793_s4 + $0x6c0] sm:$0xff] }
0x164b   : > { %7535 = vmatpush1.bf16.msra.mxu0 %v10832_v38  ;;  %7483 = vmatprep.subr.bf16.mxu1 %v10815_v7  ;;  %v6062_v38 = vld [vmem:[%s13793_s4 + $0x688] sm:$0xff]  ;;  %v10991_v7 = vcombine.high %v6061_v50, %v6069_v10  ;;  %v10990_v58 = vcombine.low %v6061_v50, %v6069_v10  ;;  %v14966_v50 = vld [vmem:[%s13793_s4 + $0x3d0] sm:$0xff]  ;;  %v14969_v10 = vld [vmem:[%s13793_s4 + $0x398] sm:$0xff] }
0x164c   : > { %7536 = vmatprep.subr.bf16.mxu0 %v10817_v17  ;;  %v6070_v17 = vld [vmem:[%s13793_s4 + $0x6c8] sm:$0xff] }
0x164d   : > { %v10992_v37 = vcombine.low %v6062_v38, %v6070_v17  ;;  %v10993_v24 = vcombine.high %v6062_v38, %v6070_v17  ;;  %v14976_v17 = vld [vmem:[%s13793_s4 + $0x3d8] sm:$0xff] }
0x164e   : > { %7484 = vmatpush1.bf16.msra.mxu1 %v10814_v21  ;;  %v6053_v21 = vld [vmem:[%s13793_s4 + $0x640] sm:$0xff] }
0x164f   : > { %7537 = vmatpush1.bf16.msra.mxu0 %v10816_v53  ;;  %7485 = vmatprep.subr.bf16.mxu1 %v10799_v14  ;;  %v6046_v53 = vld [vmem:[%s13793_s4 + $0x608] sm:$0xff]  ;;  %v10975_v14 = vcombine.high %v6045_v46, %v6053_v21  ;;  %v10974_v1 = vcombine.low %v6045_v46, %v6053_v21 }
0x1650   : > { %7538 = vmatprep.subr.bf16.mxu0 %v10801_v4  ;;  %v6054_v4 = vld [vmem:[%s13793_s4 + $0x648] sm:$0xff] }
0x1651   : > { %v10976_v48 = vcombine.low %v6046_v53, %v6054_v4  ;;  %v10977_v43 = vcombine.high %v6046_v53, %v6054_v4 }
0x1652   : > { %7486 = vmatpush1.bf16.msra.mxu1 %v10798_v11  ;;  %v6037_v11 = vld [vmem:[%s13793_s4 + $0x5c0] sm:$0xff] }
0x1653   : > { %7539 = vmatpush1.bf16.msra.mxu0 %v10800_v13  ;;  %7487 = vmatprep.subr.bf16.mxu1 %v10783_v15  ;;  %v6030_v13 = vld [vmem:[%s13793_s4 + $0x588] sm:$0xff]  ;;  %v10959_v15 = vcombine.high %v6029_v18, %v6037_v11  ;;  %v10958_v6 = vcombine.low %v6029_v18, %v6037_v11 }
0x1654   : > { %7540 = vmatprep.subr.bf16.mxu0 %v10785_v49  ;;  %v6038_v49 = vld [vmem:[%s13793_s4 + $0x5c8] sm:$0xff] }
0x1655   : > { %v10960_v19 = vcombine.low %v6030_v13, %v6038_v49  ;;  %v10961_v23 = vcombine.high %v6030_v13, %v6038_v49 }
0x1656   : > { %7488 = vmatpush1.bf16.msra.mxu1 %v10782_v39  ;;  %v6021_v39 = vld [vmem:[%s13793_s4 + $0x540] sm:$0xff] }
0x1657   : > { %7541 = vmatpush1.bf16.msra.mxu0 %v10784_v42  ;;  %7489 = vmatprep.subr.bf16.mxu1 %v11023_v20  ;;  %v6014_v42 = vld [vmem:[%s13793_s4 + $0x508] sm:$0xff]  ;;  %v10943_v20 = vcombine.high %v6013_v33, %v6021_v39 }
0x1658   : > { %7542 = vmatprep.subr.bf16.mxu0 %v11025_v32  ;;  %v6022_v32 = vld [vmem:[%s13793_s4 + $0x548] sm:$0xff] }
0x165a   : > { %7490 = vmatpush2.bf16.msra.mxu1 %v11022_v41  ;;  %v10942_v41 = vcombine.low %v6013_v33, %v6021_v39  ;;  %v5745_v39 = vld [vmem:[%s793_s17] sm:$0x3] }
0x165b   : > { %7543 = vmatpush2.bf16.msra.mxu0 %v11024_v45  ;;  %v10944_v45 = vcombine.low %v6014_v42, %v6022_v32 }
0x1695   : > { %v5748_v52 = vpop.xlane.xlu0 %5747 }
0x1696   : > { %v5759_v3 = vmul.f32 0.00390625, %v5748_v52  ;;  %v10945_v52 = vcombine.high %v6014_v42, %v6022_v32 }
0x1698   : > { %v14915_v44 = vsub.f32 %v14854_v5, %v5759_v3  ;;  %v14918_v34 = vsub.f32 %v14856_v63, %v5759_v3  ;;  %v5997_v3 = vld [vmem:[%s13793_s4 + $0x480] sm:$0xff] }
0x1699   : > { %v5751_v26 = vpop.xlane.xlu1 %5750 }
0x169a   : > { %v5771_v27 = vmul.f32 %v14915_v44, %v14915_v44  ;;  %v5772_v47 = vmul.f32 %v14918_v34, %v14918_v34  ;;  %v5760_v25 = vmul.f32 0.00390625, %v5751_v26  ;;  %v6005_v26 = vld [vmem:[%s13793_s4 + $0x4c0] sm:$0xff] }
0x169c   : > { %v14925_v31 = vsub.f32 %v14860_v62, %v5760_v25  ;;  %v14928_v40 = vsub.f32 %v14862_v51, %v5760_v25  ;;  %v5779_v5 = vadd.f32 %v5772_v47, %v5771_v27  ;;  %v6085_v62 = vld [vmem:[%s13793_s4 + $0x740] sm:$0xff]  ;;  %v6086_v51 = vld [vmem:[%s13793_s4 + $0x748] sm:$0xff]  ;;  %v10927_v47 = vcombine.high %v5997_v3, %v6005_v26 }
0x169d   : > { %v11007_v30 = vcombine.high %v6077_v36, %v6085_v62  ;;  %v11006_v22 = vcombine.low %v6077_v36, %v6085_v62  ;;  %v11008_v0 = vcombine.low %v6078_v35, %v6086_v51  ;;  %v11009_v16 = vcombine.high %v6078_v35, %v6086_v51  ;;  %v5998_v27 = vld [vmem:[%s13793_s4 + $0x488] sm:$0xff]  ;;  %v5989_v36 = vld [vmem:[%s13793_s4 + $0x440] sm:$0xff] }
0x169e   : > { %v5773_v63 = vmul.f32 %v14925_v31, %v14925_v31  ;;  %v5774_v29 = vmul.f32 %v14928_v40, %v14928_v40  ;;  %5780 = vadd.xlane.f32.xlu0 %v5779_v5  ;;  %v6006_v25 = vld [vmem:[%s13793_s4 + $0x4c8] sm:$0xff]  ;;  %v10926_v5 = vcombine.low %v5997_v3, %v6005_v26  ;;  %v15018_v3 = vrot.slane %v5745_v39, %v13979_v60 }
0x169f   : > { %7491 = vmatprep.subr.bf16.mxu1 %v11007_v30  ;;  %7544 = vmatprep.subr.bf16.mxu0 %v11009_v16  ;;  %v5982_v62 = vld [vmem:[%s13793_s4 + $0x408] sm:$0xff]  ;;  %v14963_v16 = vld [vmem:[%s13793_s4 + $0x390] sm:$0xff] }
0x16a0   : > { %v5782_v9 = vadd.f32 %v5774_v29, %v5773_v63  ;;  %7492 = vmatpush2.bf16.msra.mxu1 %v11006_v22  ;;  %7545 = vmatpush2.bf16.msra.mxu0 %v11008_v0  ;;  %v10928_v63 = vcombine.low %v5998_v27, %v6006_v25  ;;  %v10929_v29 = vcombine.high %v5998_v27, %v6006_v25  ;;  %v5990_v30 = vld [vmem:[%s13793_s4 + $0x448] sm:$0xff] }
0x16a1   : > { %7493 = vmatprep.subr.bf16.mxu1 %v10991_v7  ;;  %7546 = vmatprep.subr.bf16.mxu0 %v10993_v24  ;;  %v10912_v22 = vcombine.low %v5982_v62, %v5990_v30  ;;  %v10913_v0 = vcombine.high %v5982_v62, %v5990_v30  ;;  %v10898_v38 = vcombine.low %v14963_v16, %v14966_v50  ;;  %v5960_v62 = vld [vmem:[%s13793_s4 + $0x358] sm:$0xff] }
0x16a2   : > { %5783 = vadd.xlane.f32.xlu1 %v5782_v9  ;;  %v5981_v9 = vld [vmem:[%s13793_s4 + $0x400] sm:$0xff]  ;;  %v10899_v7 = vcombine.high %v14963_v16, %v14966_v50 }
0x16a3   : > { %v10911_v35 = vcombine.high %v5981_v9, %v5989_v36  ;;  %v10910_v51 = vcombine.low %v5981_v9, %v5989_v36  ;;  %v5952_v36 = vld [vmem:[%s13793_s4 + $0x318] sm:$0xff] }
0x16a4   : > { %7494 = vmatpush2.bf16.msra.mxu1 %v10990_v58  ;;  %7547 = vmatpush2.bf16.msra.mxu0 %v10992_v37  ;;  %v10900_v58 = vcombine.low %v14969_v10, %v14976_v17  ;;  %v10901_v37 = vcombine.high %v14969_v10, %v14976_v17  ;;  %v5903_v17 = vld [vmem:[%s13793_s4 + $0x190] sm:$0xff] }
0x16a5   : > { %7495 = vmatprep.subr.bf16.mxu1 %v10975_v14  ;;  %7548 = vmatprep.subr.bf16.mxu0 %v10977_v43 }
0x16a8   : > { %7496 = vmatpush2.bf16.msra.mxu1 %v10974_v1  ;;  %7549 = vmatpush2.bf16.msra.mxu0 %v10976_v48 }
0x16a9   : > { %7497 = vmatprep.subr.bf16.mxu1 %v10959_v15  ;;  %7550 = vmatprep.subr.bf16.mxu0 %v10961_v23 }
0x16ac   : > { %7498 = vmatpush2.bf16.msra.mxu1 %v10958_v6  ;;  %7551 = vmatpush2.bf16.msra.mxu0 %v10960_v19 }
0x16ad   : > { %7499 = vmatprep.subr.bf16.mxu1 %v10943_v20  ;;  %7552 = vmatprep.subr.bf16.mxu0 %v10945_v52  ;;  %v15015_v52 = vrot.slane %v5745_v39, %v13976_v59  ;;  %v5896_v39 = vld [vmem:[%s13793_s4 + $0x158] sm:$0xff] }
0x16b0   : > { %7500 = vmatpush2.bf16.msra.mxu1 %v10942_v41  ;;  %7553 = vmatpush2.bf16.msra.mxu0 %v10944_v45 }
0x16b1   : > { %7501 = vmatprep.subr.bf16.mxu1 %v10927_v47  ;;  %7554 = vmatprep.subr.bf16.mxu0 %v10929_v29 }
0x16b4   : > { %7502 = vmatpush2.bf16.msra.mxu1 %v10926_v5  ;;  %7555 = vmatpush2.bf16.msra.mxu0 %v10928_v63  ;;  %v5951_v5 = vld [vmem:[%s13793_s4 + $0x310] sm:$0xff] }
0x16b5   : > { %7503 = vmatprep.subr.bf16.mxu1 %v10911_v35  ;;  %7556 = vmatprep.subr.bf16.mxu0 %v10913_v0  ;;  %v5935_v0 = vld [vmem:[%s13793_s4 + $0x290] sm:$0xff] }
0x16b8   : > { %7504 = vmatpush2.bf16.msra.mxu1 %v10910_v51  ;;  %7557 = vmatpush2.bf16.msra.mxu0 %v10912_v22  ;;  %v10885_v22 = vcombine.high %v5952_v36, %v5960_v62 }
0x16b9   : > { %7579 = vmatprep.subr.bf16.mxu1 %v10899_v7  ;;  %7632 = vmatprep.subr.bf16.mxu0 %v10901_v37  ;;  %v5943_v7 = vld [vmem:[%s13793_s4 + $0x2d0] sm:$0xff]  ;;  %v5936_v37 = vld [vmem:[%s13793_s4 + $0x298] sm:$0xff] }
0x16ba   : > { %v10866_v16 = vcombine.low %v5935_v0, %v5943_v7 }
0x16ca   : > { %v5754_v24 = vpop.xlane.xlu0 %5753 }
0x16cb   : > { %v5761_v46 = vmul.f32 0.00390625, %v5754_v24  ;;  %v5944_v24 = vld [vmem:[%s13793_s4 + $0x2d8] sm:$0xff] }
0x16cc   : > { %v10868_v50 = vcombine.low %v5936_v37, %v5944_v24 }
0x16cd   : > { %v14983_v21 = vsub.f32 %v14866_v28, %v5761_v46  ;;  %v14986_v53 = vsub.f32 %v14868_v2, %v5761_v46 }
0x16ce   : > { %v5757_v14 = vpop.xlane.xlu0 %5756 }
0x16cf   : > { %v5775_v4 = vmul.f32 %v14983_v21, %v14983_v21  ;;  %v5776_v1 = vmul.f32 %v14986_v53, %v14986_v53  ;;  %v5762_v48 = vmul.f32 0.00390625, %v5757_v14  ;;  %v10884_v14 = vcombine.low %v5952_v36, %v5960_v62  ;;  %v5855_v62 = vld [vmem:[%s13793_s4 + $0x10] sm:$0xff] }
0x16d1   : > { %v14993_v43 = vsub.f32 %v14872_v12, %v5762_v48  ;;  %v14996_v18 = vsub.f32 %v14874_v8, %v5762_v48  ;;  %v5785_v28 = vadd.f32 %v5776_v1, %v5775_v4  ;;  %v5744_v8 = vld [vmem:[%s784_s25] sm:$0x3]  ;;  %v10867_v4 = vcombine.high %v5935_v0, %v5943_v7  ;;  %v5919_v48 = vld [vmem:[%s13793_s4 + $0x210] sm:$0xff]  ;;  %s15877_s25 = scalar_lea.vmem [#allocation21], %s13774_s15  ;;  %s15880_s15 = sld [smem:[#allocation34_spill]] }
0x16d2   : > { %v15007_v42 = vrot.slane %v5744_v8, %v13976_v59  ;;  %v15010_v20 = vrot.slane %v5744_v8, %v13979_v60  ;;  %v10869_v1 = vcombine.high %v5936_v37, %v5944_v24  ;;  %v5895_v8 = vld [vmem:[%s13793_s4 + $0x150] sm:$0xff]  ;;  %v5864_v0 = vld [vmem:[%s13793_s4 + $0x58] sm:$0xff] }
0x16d3   : > { %v5777_v2 = vmul.f32 %v14993_v43, %v14993_v43  ;;  %v5778_v11 = vmul.f32 %v14996_v18, %v14996_v18  ;;  %5786 = vadd.xlane.f32.xlu0 %v5785_v28  ;;  %v5927_v28 = vld [vmem:[%s13793_s4 + $0x250] sm:$0xff] }
0x16d4   : > { %v10851_v10 = vcombine.high %v5919_v48, %v5927_v28 }
0x16d5   : > { %v5788_v13 = vadd.f32 %v5778_v11, %v5777_v2  ;;  %v5920_v2 = vld [vmem:[%s13793_s4 + $0x218] sm:$0xff] }
0x16d6   : > { %v5928_v11 = vld [vmem:[%s13793_s4 + $0x258] sm:$0xff] }
0x16d7   : > { %5789 = vadd.xlane.f32.xlu1 %v5788_v13  ;;  %v5904_v13 = vld [vmem:[%s13793_s4 + $0x198] sm:$0xff]  ;;  %p11294_p10 = scmp.ne.s32.totalorder %s15880_s15, 1 }
0x16d8   : > { %s15884_s30 = sld [smem:[#allocation54_spill]] (!%p11294_p10) }
0x1727   : > { %v5781_v15 = vpop.xlane.xlu0 %5780 }
0x1728   : > { %v5791_v49 = vmul.f32 0.00390625, %v5781_v15  ;;  %v5912_v15 = vld [vmem:[%s13793_s4 + $0x1d8] sm:$0xff] }
0x172a   : > { %v5795_v6 = vadd.f32 1e-05, %v5791_v49  ;;  %v10850_v49 = vcombine.low %v5919_v48, %v5927_v28  ;;  %v6103_v48 = vld [vmem:[%s13793_s4 + $0x7d0] sm:$0xff]  ;;  %v6096_v28 = vld [vmem:[%s13793_s4 + $0x798] sm:$0xff] }
0x172b   : > { %v5784_v12 = vpop.xlane.xlu1 %5783 }
0x172c   : > { %12762 = vrsqrt.f32 %v5795_v6  ;;  %v5792_v19 = vmul.f32 0.00390625, %v5784_v12  ;;  %v10852_v6 = vcombine.low %v5920_v2, %v5928_v11 }
0x172e   : > { %v5796_v23 = vadd.f32 1e-05, %v5792_v19  ;;  %v10837_v19 = vcombine.high %v5904_v13, %v5912_v15 }
0x1730   : > { %12764 = vrsqrt.f32 %v5796_v23  ;;  %v5887_v23 = vld [vmem:[%s13793_s4 + $0x110] sm:$0xff] }
0x1739   : > { %v12763_v33 = vpop.eup %12762 }
0x173a   : > { %v5803_v32 = vmul.f32 %v12763_v33, %v14915_v44  ;;  %v5804_v41 = vmul.f32 %v12763_v33, %v14918_v34  ;;  %v5888_v33 = vld [vmem:[%s13793_s4 + $0x118] sm:$0xff] }
0x173c   : > { %v5822_v26 = vmul.f32 %v15007_v42, %v5803_v32  ;;  %v5823_v27 = vmul.f32 %v15010_v20, %v5804_v41  ;;  %v10836_v41 = vcombine.low %v5904_v13, %v5912_v15  ;;  %v6079_v13 = vld [vmem:[%s13793_s4 + $0x710] sm:$0xff] }
0x173d   : > { %v12765_v45 = vpop.eup %12764  ;;  %v6087_v15 = vld [vmem:[%s13793_s4 + $0x750] sm:$0xff] }
0x173e   : > { %v5805_v47 = vmul.f32 %v12765_v45, %v14925_v31  ;;  %v5806_v44 = vmul.f32 %v12765_v45, %v14928_v40  ;;  %v15028_v63 = vadd.f32 %v15015_v52, %v5822_v26  ;;  %v15031_v29 = vadd.f32 %v15018_v3, %v5823_v27  ;;  %v5959_v40 = vld [vmem:[%s13793_s4 + $0x350] sm:$0xff] }
0x173f   : > { %v10883_v51 = vcombine.high %v5951_v5, %v5959_v40  ;;  %v10882_v46 = vcombine.low %v5951_v5, %v5959_v40  ;;  %v10819_v45 = vcombine.high %v5887_v23, %v5895_v8  ;;  %v10821_v26 = vcombine.high %v5888_v33, %v5896_v39  ;;  %v5871_v27 = vld [vmem:[%s13793_s4 + $0x90] sm:$0xff] }
0x1740   : > { %v5824_v34 = vmul.f32 %v15007_v42, %v5805_v47  ;;  %v5825_v25 = vmul.f32 %v15010_v20, %v5806_v44  ;;  %15859 = vst [vmem:[#allocation40_spill] sm:$0xff] %v15028_v63  ;;  %15860 = vst [vmem:[#allocation41_spill] sm:$0xff] %v15031_v29  ;;  %v5879_v47 = vld [vmem:[%s13793_s4 + $0xd0] sm:$0xff]  ;;  %v5872_v44 = vld [vmem:[%s13793_s4 + $0x98] sm:$0xff]  ;;  %v10820_v5 = vcombine.low %v5888_v33, %v5896_v39 }
0x1741   : > { %v10803_v40 = vcombine.high %v5871_v27, %v5879_v47  ;;  %v10802_v37 = vcombine.low %v5871_v27, %v5879_v47  ;;  %v6063_v39 = vld [vmem:[%s13793_s4 + $0x690] sm:$0xff] }
0x1742   : > { %v15034_v9 = vadd.f32 %v15015_v52, %v5824_v34  ;;  %v15037_v31 = vadd.f32 %v15018_v3, %v5825_v25  ;;  %v5880_v34 = vld [vmem:[%s13793_s4 + $0xd8] sm:$0xff]  ;;  %v10818_v25 = vcombine.low %v5887_v23, %v5895_v8  ;;  %v11011_v8 = vcombine.high %v6079_v13, %v6087_v15 }
0x1743   : > { %v10805_v36 = vcombine.high %v5872_v44, %v5880_v34  ;;  %v10804_v24 = vcombine.low %v5872_v44, %v5880_v34  ;;  %v6047_v34 = vld [vmem:[%s13793_s4 + $0x610] sm:$0xff] }
0x1744   : > { %15861 = vst [vmem:[#allocation42_spill] sm:$0xff] %v15034_v9  ;;  %15862 = vst [vmem:[#allocation43_spill] sm:$0xff] %v15037_v31  ;;  %v15044_v35 = vpack.c.bf16 %v15034_v9, %v15028_v63  ;;  %v15048_v30 = vpack.c.bf16 %v15037_v31, %v15031_v29 }
0x1746   : > { %7505 = vmatprep.mubr.bf16.mxu1 %v15048_v30  ;;  %7558 = vmatprep.mubr.bf16.mxu0 %v15048_v30 }
0x1747   : > { %7506 = vmatmul.mubr.bf16.vlgmr.msra.gmra.mxu1 %v15044_v35  ;;  %7559 = vmatmul.mubr.bf16.vlgmr.msra.gmra.mxu0 %v15044_v35 }
0x1748   : > { %7580 = vmatpush1.bf16.msra.mxu1 %v10898_v38  ;;  %7633 = vmatpush1.bf16.msra.mxu0 %v10900_v58  ;;  %v10853_v38 = vcombine.high %v5920_v2, %v5928_v11  ;;  %v5911_v58 = vld [vmem:[%s13793_s4 + $0x1d0] sm:$0xff]  ;;  %v6104_v2 = vld [vmem:[%s13793_s4 + $0x7d8] sm:$0xff] }
0x1749   : > { %7581 = vmatprep.subr.bf16.mxu1 %v10883_v51  ;;  %7634 = vmatprep.subr.bf16.mxu0 %v10885_v22  ;;  %v10835_v12 = vcombine.high %v5903_v17, %v5911_v58  ;;  %v10834_v32 = vcombine.low %v5903_v17, %v5911_v58  ;;  %v5863_v51 = vld [vmem:[%s13793_s4 + $0x50] sm:$0xff]  ;;  %v5856_v22 = vld [vmem:[%s13793_s4 + $0x18] sm:$0xff]  ;;  %v11029_v58 = vcombine.high %v6096_v28, %v6104_v2 }
0x174a   : > { %v11028_v23 = vcombine.low %v6096_v28, %v6104_v2 }
0x174c   : > { %7582 = vmatpush1.bf16.msra.mxu1 %v10882_v46  ;;  %7635 = vmatpush1.bf16.msra.mxu0 %v10884_v14  ;;  %v10787_v14 = vcombine.high %v5855_v62, %v5863_v51 }
0x174d   : > { %7583 = vmatprep.subr.bf16.mxu1 %v10867_v4  ;;  %7636 = vmatprep.subr.bf16.mxu0 %v10869_v1  ;;  %v10789_v4 = vcombine.high %v5856_v22, %v5864_v0  ;;  %v6095_v1 = vld [vmem:[%s13793_s4 + $0x790] sm:$0xff] }
0x174e   : > { %v11027_v17 = vcombine.high %v6095_v1, %v6103_v48 }
0x1750   : > { %7584 = vmatpush1.bf16.msra.mxu1 %v10866_v16  ;;  %7637 = vmatpush1.bf16.msra.mxu0 %v10868_v50  ;;  %v10786_v50 = vcombine.low %v5855_v62, %v5863_v51 }
0x1751   : > { %7585 = vmatprep.subr.bf16.mxu1 %v10851_v10  ;;  %7638 = vmatprep.subr.bf16.mxu0 %v10853_v38  ;;  %v10788_v10 = vcombine.low %v5856_v22, %v5864_v0  ;;  %v6031_v0 = vld [vmem:[%s13793_s4 + $0x590] sm:$0xff] }
0x1754   : > { %7586 = vmatpush1.bf16.msra.mxu1 %v10850_v49  ;;  %7639 = vmatpush1.bf16.msra.mxu0 %v10852_v6  ;;  %v6080_v49 = vld [vmem:[%s13793_s4 + $0x718] sm:$0xff] }
0x1755   : > { %7587 = vmatprep.subr.bf16.mxu1 %v10835_v12  ;;  %7640 = vmatprep.subr.bf16.mxu0 %v10837_v19  ;;  %v6088_v6 = vld [vmem:[%s13793_s4 + $0x758] sm:$0xff]  ;;  %v11026_v19 = vcombine.low %v6095_v1, %v6103_v48 }
0x1756   : > { %v11013_v33 = vcombine.high %v6080_v49, %v6088_v6  ;;  %v11012_v27 = vcombine.low %v6080_v49, %v6088_v6 }
0x1758   : > { %7588 = vmatpush1.bf16.msra.mxu1 %v10834_v32  ;;  %7641 = vmatpush1.bf16.msra.mxu0 %v10836_v41  ;;  %v6071_v32 = vld [vmem:[%s13793_s4 + $0x6d0] sm:$0xff]  ;;  %v6064_v41 = vld [vmem:[%s13793_s4 + $0x698] sm:$0xff] }
0x1759   : > { %7589 = vmatprep.subr.bf16.mxu1 %v10819_v45  ;;  %7642 = vmatprep.subr.bf16.mxu0 %v10821_v26  ;;  %v6072_v45 = vld [vmem:[%s13793_s4 + $0x6d8] sm:$0xff]  ;;  %v11010_v26 = vcombine.low %v6079_v13, %v6087_v15  ;;  %v10995_v47 = vcombine.high %v6063_v39, %v6071_v32 }
0x175a   : > { %v10997_v44 = vcombine.high %v6064_v41, %v6072_v45  ;;  %v10996_v62 = vcombine.low %v6064_v41, %v6072_v45  ;;  %v6008_v41 = vld [vmem:[%s13793_s4 + $0x4d8] sm:$0xff] }
0x175c   : > { %7590 = vmatpush1.bf16.msra.mxu1 %v10818_v25  ;;  %7643 = vmatpush1.bf16.msra.mxu0 %v10820_v5  ;;  %v5787_v7 = vpop.xlane.xlu0 %5786  ;;  %v6055_v25 = vld [vmem:[%s13793_s4 + $0x650] sm:$0xff]  ;;  %v6048_v5 = vld [vmem:[%s13793_s4 + $0x618] sm:$0xff] }
0x175d   : > { %v5793_v46 = vmul.f32 0.00390625, %v5787_v7  ;;  %7591 = vmatprep.subr.bf16.mxu1 %v10803_v40  ;;  %7644 = vmatprep.subr.bf16.mxu0 %v10805_v36  ;;  %v6056_v40 = vld [vmem:[%s13793_s4 + $0x658] sm:$0xff]  ;;  %v10994_v36 = vcombine.low %v6063_v39, %v6071_v32  ;;  %v10979_v51 = vcombine.high %v6047_v34, %v6055_v25  ;;  %v10978_v1 = vcombine.low %v6047_v34, %v6055_v25  ;;  %v6007_v39 = vld [vmem:[%s13793_s4 + $0x4d0] sm:$0xff] }
0x175e   : > { %v10981_v22 = vcombine.high %v6048_v5, %v6056_v40  ;;  %v10980_v48 = vcombine.low %v6048_v5, %v6056_v40  ;;  %v6000_v32 = vld [vmem:[%s13793_s4 + $0x498] sm:$0xff] }
0x175f   : > { %v5797_v11 = vadd.f32 1e-05, %v5793_v46  ;;  %v6040_v46 = vld [vmem:[%s13793_s4 + $0x5d8] sm:$0xff]  ;;  %v10933_v34 = vcombine.high %v6000_v32, %v6008_v41  ;;  %v10932_v5 = vcombine.low %v6000_v32, %v6008_v41  ;;  %v5913_v32 = vld [vmem:[%s13793_s4 + $0x1e0] sm:$0xff]  ;;  %v5906_v41 = vld [vmem:[%s13793_s4 + $0x1a8] sm:$0xff] }
0x1760   : > { %7592 = vmatpush1.bf16.msra.mxu1 %v10802_v37  ;;  %7645 = vmatpush1.bf16.msra.mxu0 %v10804_v24  ;;  %v5790_v16 = vpop.xlane.xlu1 %5789  ;;  %v6039_v37 = vld [vmem:[%s13793_s4 + $0x5d0] sm:$0xff]  ;;  %v6032_v24 = vld [vmem:[%s13793_s4 + $0x598] sm:$0xff] }
0x1761   : > { %12766 = vrsqrt.f32 %v5797_v11  ;;  %v5794_v38 = vmul.f32 0.00390625, %v5790_v16  ;;  %7593 = vmatprep.subr.bf16.mxu1 %v10787_v14  ;;  %7646 = vmatprep.subr.bf16.mxu0 %v10789_v4  ;;  %v10963_v28 = vcombine.high %v6031_v0, %v6039_v37  ;;  %v10965_v2 = vcombine.high %v6032_v24, %v6040_v46  ;;  %v6015_v11 = vld [vmem:[%s13793_s4 + $0x510] sm:$0xff] }
0x1762   : > { %v6023_v16 = vld [vmem:[%s13793_s4 + $0x550] sm:$0xff]  ;;  %v10962_v13 = vcombine.low %v6031_v0, %v6039_v37  ;;  %v10964_v15 = vcombine.low %v6032_v24, %v6040_v46  ;;  %v5978_v0 = vld [vmem:[%s13793_s4 + $0x3e8] sm:$0xff] }
0x1763   : > { %v5798_v12 = vadd.f32 1e-05, %v5794_v38  ;;  %v6024_v38 = vld [vmem:[%s13793_s4 + $0x558] sm:$0xff]  ;;  %v10947_v49 = vcombine.high %v6015_v11, %v6023_v16 }
0x1764   : > { %7594 = vmatpush1.bf16.msra.mxu1 %v10786_v50  ;;  %7647 = vmatpush1.bf16.msra.mxu0 %v10788_v10  ;;  %v6016_v10 = vld [vmem:[%s13793_s4 + $0x518] sm:$0xff] }
0x1765   : > { %12768 = vrsqrt.f32 %v5798_v12  ;;  %7595 = vmatprep.subr.bf16.mxu1 %v11027_v17  ;;  %7648 = vmatprep.subr.bf16.mxu0 %v11029_v58 }
0x1768   : > { %7596 = vmatpush2.bf16.msra.mxu1 %v11026_v19  ;;  %7649 = vmatpush2.bf16.msra.mxu0 %v11028_v23  ;;  %v10949_v19 = vcombine.high %v6016_v10, %v6024_v38 }
0x1769   : > { %7597 = vmatprep.subr.bf16.mxu1 %v11011_v8  ;;  %7650 = vmatprep.subr.bf16.mxu0 %v11013_v33  ;;  %v10946_v8 = vcombine.low %v6015_v11, %v6023_v16  ;;  %v10948_v33 = vcombine.low %v6016_v10, %v6024_v38  ;;  %v5945_v10 = vld [vmem:[%s13793_s4 + $0x2e0] sm:$0xff]  ;;  %v5938_v38 = vld [vmem:[%s13793_s4 + $0x2a8] sm:$0xff] }
0x176c   : > { %7598 = vmatpush2.bf16.msra.mxu1 %v11010_v26  ;;  %7651 = vmatpush2.bf16.msra.mxu0 %v11012_v27  ;;  %v5991_v26 = vld [vmem:[%s13793_s4 + $0x450] sm:$0xff]  ;;  %v5984_v27 = vld [vmem:[%s13793_s4 + $0x418] sm:$0xff] }
0x176d   : > { %7599 = vmatprep.subr.bf16.mxu1 %v10995_v47  ;;  %7652 = vmatprep.subr.bf16.mxu0 %v10997_v44  ;;  %v5992_v47 = vld [vmem:[%s13793_s4 + $0x458] sm:$0xff] }
0x176e   : > { %v12767_v7 = vpop.eup %12766  ;;  %v10916_v37 = vcombine.low %v5984_v27, %v5992_v47 }
0x176f   : > { %v5807_v14 = vmul.f32 %v12767_v7, %v14983_v21  ;;  %v5808_v4 = vmul.f32 %v12767_v7, %v14986_v53 }
0x1770   : > { %7600 = vmatpush2.bf16.msra.mxu1 %v10994_v36  ;;  %7653 = vmatpush2.bf16.msra.mxu0 %v10996_v62  ;;  %v10917_v36 = vcombine.high %v5984_v27, %v5992_v47  ;;  %v5969_v62 = vld [vmem:[%s13793_s4 + $0x3a0] sm:$0xff] }
0x1771   : > { %7601 = vmatprep.subr.bf16.mxu1 %v10979_v51  ;;  %7654 = vmatprep.subr.bf16.mxu0 %v10981_v22  ;;  %v5826_v17 = vmul.f32 %v15007_v42, %v5807_v14  ;;  %v5827_v58 = vmul.f32 %v15010_v20, %v5808_v4  ;;  %v5977_v51 = vld [vmem:[%s13793_s4 + $0x3e0] sm:$0xff]  ;;  %v5970_v22 = vld [vmem:[%s13793_s4 + $0x3a8] sm:$0xff] }
0x1772   : > { %v12769_v50 = vpop.eup %12768  ;;  %v10903_v24 = vcombine.high %v5969_v62, %v5977_v51  ;;  %v10905_v46 = vcombine.high %v5970_v22, %v5978_v0  ;;  %v5953_v14 = vld [vmem:[%s13793_s4 + $0x320] sm:$0xff] }
0x1773   : > { %v5809_v21 = vmul.f32 %v12769_v50, %v14993_v43  ;;  %v5810_v53 = vmul.f32 %v12769_v50, %v14996_v18  ;;  %v15117_v43 = vadd.f32 %v15015_v52, %v5826_v17  ;;  %v15120_v18 = vadd.f32 %v15018_v3, %v5827_v58  ;;  %v5961_v4 = vld [vmem:[%s13793_s4 + $0x360] sm:$0xff]  ;;  %v5946_v17 = vld [vmem:[%s13793_s4 + $0x2e8] sm:$0xff] }
0x1774   : > { %7602 = vmatpush2.bf16.msra.mxu1 %v10978_v1  ;;  %7655 = vmatpush2.bf16.msra.mxu0 %v10980_v48  ;;  %v5954_v1 = vld [vmem:[%s13793_s4 + $0x328] sm:$0xff]  ;;  %v10887_v11 = vcombine.high %v5953_v14, %v5961_v4  ;;  %v5937_v50 = vld [vmem:[%s13793_s4 + $0x2a0] sm:$0xff]  ;;  %v10886_v58 = vcombine.low %v5953_v14, %v5961_v4 }
0x1775   : > { %v5828_v6 = vmul.f32 %v15007_v42, %v5809_v21  ;;  %v5829_v12 = vmul.f32 %v15010_v20, %v5810_v53  ;;  %7603 = vmatprep.subr.bf16.mxu1 %v10963_v28  ;;  %7656 = vmatprep.subr.bf16.mxu0 %v10965_v2  ;;  %15863 = vst [vmem:[#allocation44_spill] sm:$0xff] %v15117_v43  ;;  %15864 = vst [vmem:[#allocation45_spill] sm:$0xff] %v15120_v18  ;;  %v5999_v20 = vld [vmem:[%s13793_s4 + $0x490] sm:$0xff]  ;;  %v5962_v48 = vld [vmem:[%s13793_s4 + $0x368] sm:$0xff] }
0x1776   : > { %v10931_v44 = vcombine.high %v5999_v20, %v6007_v39  ;;  %v10930_v25 = vcombine.low %v5999_v20, %v6007_v39  ;;  %v10902_v28 = vcombine.low %v5969_v62, %v5977_v51  ;;  %v10904_v2 = vcombine.low %v5970_v22, %v5978_v0  ;;  %v5905_v39 = vld [vmem:[%s13793_s4 + $0x1a0] sm:$0xff] }
0x1777   : > { %v15123_v23 = vadd.f32 %v15015_v52, %v5828_v6  ;;  %v15126_v42 = vadd.f32 %v15018_v3, %v5829_v12  ;;  %v5983_v3 = vld [vmem:[%s13793_s4 + $0x410] sm:$0xff]  ;;  %v10889_v16 = vcombine.high %v5954_v1, %v5962_v48  ;;  %v10888_v21 = vcombine.low %v5954_v1, %v5962_v48  ;;  %v5922_v6 = vld [vmem:[%s13793_s4 + $0x228] sm:$0xff]  ;;  %v5873_v0 = vld [vmem:[%s13793_s4 + $0xa0] sm:$0xff] }
0x1778   : > { %7604 = vmatpush2.bf16.msra.mxu1 %v10962_v13  ;;  %7657 = vmatpush2.bf16.msra.mxu0 %v10964_v15  ;;  %v10915_v40 = vcombine.high %v5983_v3, %v5991_v26  ;;  %v10914_v7 = vcombine.low %v5983_v3, %v5991_v26  ;;  %v10871_v53 = vcombine.high %v5937_v50, %v5945_v10  ;;  %v5921_v15 = vld [vmem:[%s13793_s4 + $0x220] sm:$0xff]  ;;  %v5930_v12 = vld [vmem:[%s13793_s4 + $0x268] sm:$0xff] }
0x1779   : > { %15865 = vst [vmem:[#allocation46_spill] sm:$0xff] %v15123_v23  ;;  %15866 = vst [vmem:[#allocation47_spill] sm:$0xff] %v15126_v42  ;;  %v15134_v45 = vpack.c.bf16 %v15123_v23, %v15117_v43  ;;  %v15138_v52 = vpack.c.bf16 %v15126_v42, %v15120_v18  ;;  %7605 = vmatprep.subr.bf16.mxu1 %v10947_v49  ;;  %7658 = vmatprep.subr.bf16.mxu0 %v10949_v19  ;;  %v5929_v49 = vld [vmem:[%s13793_s4 + $0x260] sm:$0xff]  ;;  %v5914_v3 = vld [vmem:[%s13793_s4 + $0x1e8] sm:$0xff] }
0x177a   : > { %v10873_v13 = vcombine.high %v5938_v38, %v5946_v17  ;;  %v10870_v19 = vcombine.low %v5937_v50, %v5945_v10  ;;  %v10872_v20 = vcombine.low %v5938_v38, %v5946_v17  ;;  %v10854_v26 = vcombine.low %v5921_v15, %v5929_v49  ;;  %v5857_v48 = vld [vmem:[%s13793_s4 + $0x20] sm:$0xff] }
0x177b   : > { %7515 = vmatprep.mubr.bf16.mxu1 %v15138_v52  ;;  %7568 = vmatprep.mubr.bf16.mxu0 %v15138_v52  ;;  %v10856_v27 = vcombine.low %v5922_v6, %v5930_v12  ;;  %v10839_v47 = vcombine.high %v5905_v39, %v5913_v32  ;;  %v10840_v62 = vcombine.low %v5906_v41, %v5914_v3  ;;  %v6097_v17 = vld [vmem:[%s13793_s4 + $0x7a0] sm:$0xff] }
0x177c   : > { %7606 = vmatpush2.bf16.msra.mxu1 %v10946_v8  ;;  %7659 = vmatpush2.bf16.msra.mxu0 %v10948_v33  ;;  %v10855_v8 = vcombine.high %v5921_v15, %v5929_v49  ;;  %v10857_v33 = vcombine.high %v5922_v6, %v5930_v12  ;;  %v6081_v12 = vld [vmem:[%s13793_s4 + $0x720] sm:$0xff] }
0x177d   : > { %7516 = vmatmul.mubr.bf16.gmra.mxu1 %v15134_v45  ;;  %7569 = vmatmul.mubr.bf16.gmra.mxu0 %v15134_v45 }
0x177e   : > { %7611 = vmatprep.mubr.bf16.mxu1 %v15048_v30  ;;  %7664 = vmatprep.mubr.bf16.mxu0 %v15048_v30 }
0x177f   : > { %7607 = vmatprep.subr.bf16.mxu1 %v10931_v44  ;;  %7660 = vmatprep.subr.bf16.mxu0 %v10933_v34  ;;  %v10841_v44 = vcombine.high %v5906_v41, %v5914_v3  ;;  %v5889_v34 = vld [vmem:[%s13793_s4 + $0x120] sm:$0xff] }
0x1780   : > { %7608 = vmatpush2.bf16.msra.mxu1 %v10930_v25  ;;  %7661 = vmatpush2.bf16.msra.mxu0 %v10932_v5  ;;  %v5897_v25 = vld [vmem:[%s13793_s4 + $0x160] sm:$0xff]  ;;  %v5890_v5 = vld [vmem:[%s13793_s4 + $0x128] sm:$0xff] }
0x1781   : > { %7609 = vmatprep.subr.bf16.mxu1 %v10915_v40  ;;  %7662 = vmatprep.subr.bf16.mxu0 %v10917_v36  ;;  %v5898_v40 = vld [vmem:[%s13793_s4 + $0x168] sm:$0xff]  ;;  %v10838_v36 = vcombine.low %v5905_v39, %v5913_v32  ;;  %v10823_v51 = vcombine.high %v5889_v34, %v5897_v25  ;;  %v6065_v3 = vld [vmem:[%s13793_s4 + $0x6a0] sm:$0xff] }
0x1782   : > { %v10825_v22 = vcombine.high %v5890_v5, %v5898_v40  ;;  %v10824_v14 = vcombine.low %v5890_v5, %v5898_v40  ;;  %v6049_v40 = vld [vmem:[%s13793_s4 + $0x620] sm:$0xff] }
0x1784   : > { %7610 = vmatpush2.bf16.msra.mxu1 %v10914_v7  ;;  %7663 = vmatpush2.bf16.msra.mxu0 %v10916_v37  ;;  %v5881_v7 = vld [vmem:[%s13793_s4 + $0xe0] sm:$0xff]  ;;  %v5874_v37 = vld [vmem:[%s13793_s4 + $0xa8] sm:$0xff] }
0x1785   : > { %7685 = vmatprep.subr.bf16.mxu1 %v10903_v24  ;;  %7738 = vmatprep.subr.bf16.mxu0 %v10905_v46  ;;  %v5882_v24 = vld [vmem:[%s13793_s4 + $0xe8] sm:$0xff]  ;;  %v10822_v46 = vcombine.low %v5889_v34, %v5897_v25  ;;  %v10807_v4 = vcombine.high %v5873_v0, %v5881_v7 }
0x1786   : > { %v10809_v1 = vcombine.high %v5874_v37, %v5882_v24  ;;  %v10808_v50 = vcombine.low %v5874_v37, %v5882_v24  ;;  %v6033_v24 = vld [vmem:[%s13793_s4 + $0x5a0] sm:$0xff] }
0x1787   : > { %7612 = vmatmul.mubr.bf16.vlgmr.msra.gmra.mxu1 %v15044_v35  ;;  %7665 = vmatmul.mubr.bf16.vlgmr.msra.gmra.mxu0 %v15044_v35 }
0x1788   : > { %7621 = vmatprep.mubr.bf16.mxu1 %v15138_v52  ;;  %7674 = vmatprep.mubr.bf16.mxu0 %v15138_v52 }
0x1789   : > { %7686 = vmatpush1.bf16.msra.mxu1 %v10902_v28  ;;  %7739 = vmatpush1.bf16.msra.mxu0 %v10904_v2  ;;  %v5865_v28 = vld [vmem:[%s13793_s4 + $0x60] sm:$0xff]  ;;  %v5858_v2 = vld [vmem:[%s13793_s4 + $0x28] sm:$0xff] }
0x178a   : > { %7687 = vmatprep.subr.bf16.mxu1 %v10887_v11  ;;  %7740 = vmatprep.subr.bf16.mxu0 %v10889_v16  ;;  %v5866_v11 = vld [vmem:[%s13793_s4 + $0x68] sm:$0xff]  ;;  %v10806_v16 = vcombine.low %v5873_v0, %v5881_v7  ;;  %v10791_v10 = vcombine.high %v5857_v48, %v5865_v28 }
0x178b   : > { %v10793_v38 = vcombine.high %v5858_v2, %v5866_v11  ;;  %v10792_v15 = vcombine.low %v5858_v2, %v5866_v11  ;;  %v6017_v11 = vld [vmem:[%s13793_s4 + $0x520] sm:$0xff] }
0x178d   : > { %7688 = vmatpush1.bf16.msra.mxu1 %v10886_v58  ;;  %7741 = vmatpush1.bf16.msra.mxu0 %v10888_v21  ;;  %v6105_v58 = vld [vmem:[%s13793_s4 + $0x7e0] sm:$0xff]  ;;  %v6098_v21 = vld [vmem:[%s13793_s4 + $0x7a8] sm:$0xff] }
0x178e   : > { %7689 = vmatprep.subr.bf16.mxu1 %v10871_v53  ;;  %7742 = vmatprep.subr.bf16.mxu0 %v10873_v13  ;;  %v6106_v53 = vld [vmem:[%s13793_s4 + $0x7e8] sm:$0xff]  ;;  %v10790_v13 = vcombine.low %v5857_v48, %v5865_v28  ;;  %v11031_v49 = vcombine.high %v6097_v17, %v6105_v58 }
0x178f   : > { %7622 = vmatmul.mubr.bf16.gmra.mxu1 %v15134_v45  ;;  %7675 = vmatmul.mubr.bf16.gmra.mxu0 %v15134_v45  ;;  %v11033_v6 = vcombine.high %v6098_v21, %v6106_v53  ;;  %v11032_v39 = vcombine.low %v6098_v21, %v6106_v53  ;;  %v6001_v53 = vld [vmem:[%s13793_s4 + $0x4a0] sm:$0xff] }
0x1790   : > { %7717 = vmatprep.mubr.bf16.mxu1 %v15048_v30  ;;  %7770 = vmatprep.mubr.bf16.mxu0 %v15048_v30 }
0x1791   : > { %7690 = vmatpush1.bf16.msra.mxu1 %v10870_v19  ;;  %7743 = vmatpush1.bf16.msra.mxu0 %v10872_v20  ;;  %v6089_v19 = vld [vmem:[%s13793_s4 + $0x760] sm:$0xff]  ;;  %v6082_v20 = vld [vmem:[%s13793_s4 + $0x728] sm:$0xff] }
0x1792   : > { %7691 = vmatprep.subr.bf16.mxu1 %v10855_v8  ;;  %7744 = vmatprep.subr.bf16.mxu0 %v10857_v33  ;;  %v6090_v8 = vld [vmem:[%s13793_s4 + $0x768] sm:$0xff]  ;;  %v11030_v33 = vcombine.low %v6097_v17, %v6105_v58  ;;  %v11015_v32 = vcombine.high %v6081_v12, %v6089_v19 }
0x1793   : > { %v11017_v41 = vcombine.high %v6082_v20, %v6090_v8  ;;  %v11016_v34 = vcombine.low %v6082_v20, %v6090_v8  ;;  %v5985_v8 = vld [vmem:[%s13793_s4 + $0x420] sm:$0xff] }
0x1795   : > { %7692 = vmatpush1.bf16.msra.mxu1 %v10854_v26  ;;  %7745 = vmatpush1.bf16.msra.mxu0 %v10856_v27  ;;  %v6073_v26 = vld [vmem:[%s13793_s4 + $0x6e0] sm:$0xff]  ;;  %v6066_v27 = vld [vmem:[%s13793_s4 + $0x6a8] sm:$0xff] }
0x1796   : > { %7693 = vmatprep.subr.bf16.mxu1 %v10839_v47  ;;  %7746 = vmatprep.subr.bf16.mxu0 %v10841_v44  ;;  %v6074_v47 = vld [vmem:[%s13793_s4 + $0x6e8] sm:$0xff]  ;;  %v11014_v44 = vcombine.low %v6081_v12, %v6089_v19  ;;  %v10999_v25 = vcombine.high %v6065_v3, %v6073_v26 }
0x1797   : > { %v11001_v5 = vcombine.high %v6066_v27, %v6074_v47  ;;  %v11000_v0 = vcombine.low %v6066_v27, %v6074_v47  ;;  %v5971_v47 = vld [vmem:[%s13793_s4 + $0x3b0] sm:$0xff] }
0x1799   : > { %7694 = vmatpush1.bf16.msra.mxu1 %v10838_v36  ;;  %7747 = vmatpush1.bf16.msra.mxu0 %v10840_v62  ;;  %v6057_v36 = vld [vmem:[%s13793_s4 + $0x660] sm:$0xff]  ;;  %v6050_v62 = vld [vmem:[%s13793_s4 + $0x628] sm:$0xff] }
0x179a   : > { %7695 = vmatprep.subr.bf16.mxu1 %v10823_v51  ;;  %7748 = vmatprep.subr.bf16.mxu0 %v10825_v22  ;;  %v6058_v51 = vld [vmem:[%s13793_s4 + $0x668] sm:$0xff]  ;;  %v10998_v22 = vcombine.low %v6065_v3, %v6073_v26  ;;  %v10983_v7 = vcombine.high %v6049_v40, %v6057_v36 }
0x179b   : > { %v10985_v37 = vcombine.high %v6050_v62, %v6058_v51  ;;  %v10984_v48 = vcombine.low %v6050_v62, %v6058_v51  ;;  %v5955_v51 = vld [vmem:[%s13793_s4 + $0x330] sm:$0xff] }
0x179d   : > { %7696 = vmatpush1.bf16.msra.mxu1 %v10822_v46  ;;  %7749 = vmatpush1.bf16.msra.mxu0 %v10824_v14  ;;  %v6041_v46 = vld [vmem:[%s13793_s4 + $0x5e0] sm:$0xff]  ;;  %v6034_v14 = vld [vmem:[%s13793_s4 + $0x5a8] sm:$0xff] }
0x179e   : > { %7697 = vmatprep.subr.bf16.mxu1 %v10807_v4  ;;  %7750 = vmatprep.subr.bf16.mxu0 %v10809_v1  ;;  %v6042_v4 = vld [vmem:[%s13793_s4 + $0x5e8] sm:$0xff]  ;;  %v10982_v1 = vcombine.low %v6049_v40, %v6057_v36  ;;  %v10967_v28 = vcombine.high %v6033_v24, %v6041_v46 }
0x179f   : > { %v10969_v2 = vcombine.high %v6034_v14, %v6042_v4  ;;  %v10968_v17 = vcombine.low %v6034_v14, %v6042_v4  ;;  %v5939_v4 = vld [vmem:[%s13793_s4 + $0x2b0] sm:$0xff] }
0x17a1   : > { %7698 = vmatpush1.bf16.msra.mxu1 %v10806_v16  ;;  %7751 = vmatpush1.bf16.msra.mxu0 %v10808_v50  ;;  %v6025_v16 = vld [vmem:[%s13793_s4 + $0x560] sm:$0xff]  ;;  %v6018_v50 = vld [vmem:[%s13793_s4 + $0x528] sm:$0xff] }
0x17a2   : > { %7699 = vmatprep.subr.bf16.mxu1 %v10791_v10  ;;  %7752 = vmatprep.subr.bf16.mxu0 %v10793_v38  ;;  %v6026_v10 = vld [vmem:[%s13793_s4 + $0x568] sm:$0xff]  ;;  %v10966_v38 = vcombine.low %v6033_v24, %v6041_v46  ;;  %v10951_v58 = vcombine.high %v6017_v11, %v6025_v16 }
0x17a3   : > { %v10953_v21 = vcombine.high %v6018_v50, %v6026_v10  ;;  %v10952_v12 = vcombine.low %v6018_v50, %v6026_v10  ;;  %v5923_v10 = vld [vmem:[%s13793_s4 + $0x230] sm:$0xff] }
0x17a5   : > { %7700 = vmatpush1.bf16.msra.mxu1 %v10790_v13  ;;  %7753 = vmatpush1.bf16.msra.mxu0 %v10792_v15  ;;  %v6009_v13 = vld [vmem:[%s13793_s4 + $0x4e0] sm:$0xff]  ;;  %v6002_v15 = vld [vmem:[%s13793_s4 + $0x4a8] sm:$0xff] }
0x17a6   : > { %7701 = vmatprep.subr.bf16.mxu1 %v11031_v49  ;;  %7754 = vmatprep.subr.bf16.mxu0 %v11033_v6  ;;  %v6010_v49 = vld [vmem:[%s13793_s4 + $0x4e8] sm:$0xff]  ;;  %v10950_v6 = vcombine.low %v6017_v11, %v6025_v16  ;;  %v10935_v19 = vcombine.high %v6001_v53, %v6009_v13 }
0x17a7   : > { %v10937_v20 = vcombine.high %v6002_v15, %v6010_v49  ;;  %v10936_v3 = vcombine.low %v6002_v15, %v6010_v49  ;;  %v5907_v49 = vld [vmem:[%s13793_s4 + $0x1b0] sm:$0xff] }
0x17a9   : > { %7702 = vmatpush2.bf16.msra.mxu1 %v11030_v33  ;;  %7755 = vmatpush2.bf16.msra.mxu0 %v11032_v39  ;;  %v5993_v33 = vld [vmem:[%s13793_s4 + $0x460] sm:$0xff]  ;;  %v5986_v39 = vld [vmem:[%s13793_s4 + $0x428] sm:$0xff] }
0x17aa   : > { %7703 = vmatprep.subr.bf16.mxu1 %v11015_v32  ;;  %7756 = vmatprep.subr.bf16.mxu0 %v11017_v41  ;;  %v5994_v32 = vld [vmem:[%s13793_s4 + $0x468] sm:$0xff]  ;;  %v10934_v41 = vcombine.low %v6001_v53, %v6009_v13  ;;  %v10919_v26 = vcombine.high %v5985_v8, %v5993_v33 }
0x17ab   : > { %v10921_v27 = vcombine.high %v5986_v39, %v5994_v32  ;;  %v10920_v40 = vcombine.low %v5986_v39, %v5994_v32  ;;  %v5891_v32 = vld [vmem:[%s13793_s4 + $0x130] sm:$0xff] }
0x17ad   : > { %7704 = vmatpush2.bf16.msra.mxu1 %v11014_v44  ;;  %7757 = vmatpush2.bf16.msra.mxu0 %v11016_v34  ;;  %v5979_v44 = vld [vmem:[%s13793_s4 + $0x3f0] sm:$0xff]  ;;  %v5972_v34 = vld [vmem:[%s13793_s4 + $0x3b8] sm:$0xff] }
0x17ae   : > { %7705 = vmatprep.subr.bf16.mxu1 %v10999_v25  ;;  %7758 = vmatprep.subr.bf16.mxu0 %v11001_v5  ;;  %v5980_v25 = vld [vmem:[%s13793_s4 + $0x3f8] sm:$0xff]  ;;  %v10918_v5 = vcombine.low %v5985_v8, %v5993_v33  ;;  %v10907_v36 = vcombine.high %v5971_v47, %v5979_v44 }
0x17af   : > { %v10909_v62 = vcombine.high %v5972_v34, %v5980_v25  ;;  %v10908_v24 = vcombine.low %v5972_v34, %v5980_v25  ;;  %v5875_v34 = vld [vmem:[%s13793_s4 + $0xb0] sm:$0xff] }
0x17b0   : > { %v5883_v25 = vld [vmem:[%s13793_s4 + $0xf0] sm:$0xff] }
0x17b1   : > { %7706 = vmatpush2.bf16.msra.mxu1 %v10998_v22  ;;  %7759 = vmatpush2.bf16.msra.mxu0 %v11000_v0  ;;  %v5963_v22 = vld [vmem:[%s13793_s4 + $0x370] sm:$0xff]  ;;  %v5956_v0 = vld [vmem:[%s13793_s4 + $0x338] sm:$0xff] }
0x17b2   : > { %7707 = vmatprep.subr.bf16.mxu1 %v10983_v7  ;;  %7760 = vmatprep.subr.bf16.mxu0 %v10985_v37  ;;  %v5964_v7 = vld [vmem:[%s13793_s4 + $0x378] sm:$0xff]  ;;  %v10906_v37 = vcombine.low %v5971_v47, %v5979_v44  ;;  %v10891_v46 = vcombine.high %v5955_v51, %v5963_v22 }
0x17b3   : > { %v10893_v14 = vcombine.high %v5956_v0, %v5964_v7  ;;  %v10892_v11 = vcombine.low %v5956_v0, %v5964_v7  ;;  %v5859_v0 = vld [vmem:[%s13793_s4 + $0x30] sm:$0xff] }
0x17b4   : > { %v5867_v7 = vld [vmem:[%s13793_s4 + $0x70] sm:$0xff] }
0x17b5   : > { %7708 = vmatpush2.bf16.msra.mxu1 %v10982_v1  ;;  %7761 = vmatpush2.bf16.msra.mxu0 %v10984_v48  ;;  %v5947_v1 = vld [vmem:[%s13793_s4 + $0x2f0] sm:$0xff]  ;;  %v5940_v48 = vld [vmem:[%s13793_s4 + $0x2b8] sm:$0xff] }
0x17b6   : > { %7709 = vmatprep.subr.bf16.mxu1 %v10967_v28  ;;  %7762 = vmatprep.subr.bf16.mxu0 %v10969_v2  ;;  %v5948_v28 = vld [vmem:[%s13793_s4 + $0x2f8] sm:$0xff]  ;;  %v10890_v2 = vcombine.low %v5955_v51, %v5963_v22  ;;  %v10875_v16 = vcombine.high %v5939_v4, %v5947_v1  ;;  %v10811_v51 = vcombine.high %v5875_v34, %v5883_v25 }
0x17b7   : > { %v10877_v50 = vcombine.high %v5940_v48, %v5948_v28  ;;  %v10876_v53 = vcombine.low %v5940_v48, %v5948_v28  ;;  %v6099_v48 = vld [vmem:[%s13793_s4 + $0x7b0] sm:$0xff] }
0x17b8   : > { %v6107_v28 = vld [vmem:[%s13793_s4 + $0x7f0] sm:$0xff] }
0x17b9   : > { %7710 = vmatpush2.bf16.msra.mxu1 %v10966_v38  ;;  %7763 = vmatpush2.bf16.msra.mxu0 %v10968_v17  ;;  %v5931_v38 = vld [vmem:[%s13793_s4 + $0x270] sm:$0xff]  ;;  %v5924_v17 = vld [vmem:[%s13793_s4 + $0x238] sm:$0xff] }
0x17ba   : > { %7711 = vmatprep.subr.bf16.mxu1 %v10951_v58  ;;  %7764 = vmatprep.subr.bf16.mxu0 %v10953_v21  ;;  %v5932_v58 = vld [vmem:[%s13793_s4 + $0x278] sm:$0xff]  ;;  %v10874_v21 = vcombine.low %v5939_v4, %v5947_v1  ;;  %v10859_v13 = vcombine.high %v5923_v10, %v5931_v38  ;;  %v10795_v4 = vcombine.high %v5859_v0, %v5867_v7 }
0x17bb   : > { %v10861_v15 = vcombine.high %v5924_v17, %v5932_v58  ;;  %v10860_v8 = vcombine.low %v5924_v17, %v5932_v58  ;;  %v6083_v17 = vld [vmem:[%s13793_s4 + $0x730] sm:$0xff] }
0x17bc   : > { %v6091_v58 = vld [vmem:[%s13793_s4 + $0x770] sm:$0xff] }
0x17bd   : > { %7712 = vmatpush2.bf16.msra.mxu1 %v10950_v6  ;;  %7765 = vmatpush2.bf16.msra.mxu0 %v10952_v12  ;;  %v5915_v6 = vld [vmem:[%s13793_s4 + $0x1f0] sm:$0xff]  ;;  %v5908_v12 = vld [vmem:[%s13793_s4 + $0x1b8] sm:$0xff] }
0x17be   : > { %7713 = vmatprep.subr.bf16.mxu1 %v10935_v19  ;;  %7766 = vmatprep.subr.bf16.mxu0 %v10937_v20  ;;  %v5916_v19 = vld [vmem:[%s13793_s4 + $0x1f8] sm:$0xff]  ;;  %v10858_v20 = vcombine.low %v5923_v10, %v5931_v38  ;;  %v10843_v33 = vcombine.high %v5907_v49, %v5915_v6  ;;  %v11035_v10 = vcombine.high %v6099_v48, %v6107_v28 }
0x17bf   : > { %v10845_v39 = vcombine.high %v5908_v12, %v5916_v19 }
0x17c1   : > { %7714 = vmatpush2.bf16.msra.mxu1 %v10934_v41  ;;  %7767 = vmatpush2.bf16.msra.mxu0 %v10936_v3  ;;  %v5899_v41 = vld [vmem:[%s13793_s4 + $0x170] sm:$0xff]  ;;  %v5892_v3 = vld [vmem:[%s13793_s4 + $0x138] sm:$0xff] }
0x17c2   : > { %7715 = vmatprep.subr.bf16.mxu1 %v10919_v26  ;;  %7768 = vmatprep.subr.bf16.mxu0 %v10921_v27  ;;  %v5900_v26 = vld [vmem:[%s13793_s4 + $0x178] sm:$0xff]  ;;  %v10842_v27 = vcombine.low %v5907_v49, %v5915_v6  ;;  %v10827_v47 = vcombine.high %v5891_v32, %v5899_v41  ;;  %v11019_v49 = vcombine.high %v6083_v17, %v6091_v58 }
0x17c3   : > { %v10829_v44 = vcombine.high %v5892_v3, %v5900_v26 }
0x17c5   : > { %7716 = vmatpush2.bf16.msra.mxu1 %v10918_v5  ;;  %7769 = vmatpush2.bf16.msra.mxu0 %v10920_v40  ;;  %v5876_v5 = vld [vmem:[%s13793_s4 + $0xb8] sm:$0xff] }
0x17c6   : > { %7791 = vmatprep.subr.bf16.mxu1 %v10907_v36  ;;  %7844 = vmatprep.subr.bf16.mxu0 %v10909_v62  ;;  %v5884_v40 = vld [vmem:[%s13793_s4 + $0xf8] sm:$0xff]  ;;  %v10826_v36 = vcombine.low %v5891_v32, %v5899_v41  ;;  %v10828_v62 = vcombine.low %v5892_v3, %v5900_v26  ;;  %v6051_v3 = vld [vmem:[%s13793_s4 + $0x630] sm:$0xff] }
0x17c7   : > { %v10813_v22 = vcombine.high %v5876_v5, %v5884_v40  ;;  %v6059_v26 = vld [vmem:[%s13793_s4 + $0x670] sm:$0xff] }
0x17c8   : > { %7718 = vmatmul.mubr.bf16.vlgmr.msra.gmra.mxu1 %v15044_v35  ;;  %7771 = vmatmul.mubr.bf16.vlgmr.msra.gmra.mxu0 %v15044_v35 }
0x17c9   : > { %7727 = vmatprep.mubr.bf16.mxu1 %v15138_v52  ;;  %7780 = vmatprep.mubr.bf16.mxu0 %v15138_v52 }
0x17ca   : > { %7792 = vmatpush1.bf16.msra.mxu1 %v10906_v37  ;;  %7845 = vmatpush1.bf16.msra.mxu0 %v10908_v24  ;;  %v5860_v37 = vld [vmem:[%s13793_s4 + $0x38] sm:$0xff] }
0x17cb   : > { %7793 = vmatprep.subr.bf16.mxu1 %v10891_v46  ;;  %7846 = vmatprep.subr.bf16.mxu0 %v10893_v14  ;;  %v5868_v24 = vld [vmem:[%s13793_s4 + $0x78] sm:$0xff]  ;;  %v10810_v46 = vcombine.low %v5875_v34, %v5883_v25  ;;  %v10812_v14 = vcombine.low %v5876_v5, %v5884_v40  ;;  %v10987_v34 = vcombine.high %v6051_v3, %v6059_v26  ;;  %v6035_v5 = vld [vmem:[%s13793_s4 + $0x5b0] sm:$0xff] }
0x17cc   : > { %v10797_v1 = vcombine.high %v5860_v37, %v5868_v24  ;;  %v6043_v40 = vld [vmem:[%s13793_s4 + $0x5f0] sm:$0xff] }
0x17ce   : > { %7794 = vmatpush1.bf16.msra.mxu1 %v10890_v2  ;;  %7847 = vmatpush1.bf16.msra.mxu0 %v10892_v11  ;;  %v6100_v2 = vld [vmem:[%s13793_s4 + $0x7b8] sm:$0xff] }
0x17cf   : > { %7795 = vmatprep.subr.bf16.mxu1 %v10875_v16  ;;  %7848 = vmatprep.subr.bf16.mxu0 %v10877_v50  ;;  %v6108_v11 = vld [vmem:[%s13793_s4 + $0x7f8] sm:$0xff]  ;;  %v10794_v16 = vcombine.low %v5859_v0, %v5867_v7  ;;  %v10796_v50 = vcombine.low %v5860_v37, %v5868_v24  ;;  %v10971_v0 = vcombine.high %v6035_v5, %v6043_v40  ;;  %v6019_v37 = vld [vmem:[%s13793_s4 + $0x530] sm:$0xff] }
0x17d0   : > { %7728 = vmatmul.mubr.bf16.gmra.mxu1 %v15134_v45  ;;  %7781 = vmatmul.mubr.bf16.gmra.mxu0 %v15134_v45  ;;  %v11037_v38 = vcombine.high %v6100_v2, %v6108_v11  ;;  %v6027_v24 = vld [vmem:[%s13793_s4 + $0x570] sm:$0xff] }
0x17d1   : > { %7823 = vmatprep.mubr.bf16.mxu1 %v15048_v30  ;;  %7876 = vmatprep.mubr.bf16.mxu0 %v15048_v30  ;;  %v10844_v30 = vcombine.low %v5908_v12, %v5916_v19  ;;  %v6067_v12 = vld [vmem:[%s13793_s4 + $0x6b0] sm:$0xff] }
0x17d2   : > { %7796 = vmatpush1.bf16.msra.mxu1 %v10874_v21  ;;  %7849 = vmatpush1.bf16.msra.mxu0 %v10876_v53  ;;  %v6084_v21 = vld [vmem:[%s13793_s4 + $0x738] sm:$0xff]  ;;  %v6075_v19 = vld [vmem:[%s13793_s4 + $0x6f0] sm:$0xff] }
0x17d3   : > { %7797 = vmatprep.subr.bf16.mxu1 %v10859_v13  ;;  %7850 = vmatprep.subr.bf16.mxu0 %v10861_v15  ;;  %v6092_v53 = vld [vmem:[%s13793_s4 + $0x778] sm:$0xff]  ;;  %v11034_v13 = vcombine.low %v6099_v48, %v6107_v28  ;;  %v11036_v15 = vcombine.low %v6100_v2, %v6108_v11  ;;  %v11003_v32 = vcombine.high %v6067_v12, %v6075_v19  ;;  %v6003_v2 = vld [vmem:[%s13793_s4 + $0x4b0] sm:$0xff] }
0x17d4   : > { %v11021_v6 = vcombine.high %v6084_v21, %v6092_v53  ;;  %v10955_v48 = vcombine.high %v6019_v37, %v6027_v24  ;;  %v6011_v11 = vld [vmem:[%s13793_s4 + $0x4f0] sm:$0xff] }
0x17d6   : > { %7798 = vmatpush1.bf16.msra.mxu1 %v10858_v20  ;;  %7851 = vmatpush1.bf16.msra.mxu0 %v10860_v8  ;;  %v6068_v20 = vld [vmem:[%s13793_s4 + $0x6b8] sm:$0xff] }
0x17d7   : > { %7799 = vmatprep.subr.bf16.mxu1 %v10843_v33  ;;  %7852 = vmatprep.subr.bf16.mxu0 %v10845_v39  ;;  %v6076_v8 = vld [vmem:[%s13793_s4 + $0x6f8] sm:$0xff]  ;;  %v11018_v33 = vcombine.low %v6083_v17, %v6091_v58  ;;  %v11020_v39 = vcombine.low %v6084_v21, %v6092_v53  ;;  %v10939_v17 = vcombine.high %v6003_v2, %v6011_v11  ;;  %v5987_v21 = vld [vmem:[%s13793_s4 + $0x430] sm:$0xff] }
0x17d8   : > { %v11005_v41 = vcombine.high %v6068_v20, %v6076_v8  ;;  %v5995_v53 = vld [vmem:[%s13793_s4 + $0x470] sm:$0xff] }
0x17da   : > { %7800 = vmatpush1.bf16.msra.mxu1 %v10842_v27  ;;  %7853 = vmatpush1.bf16.msra.mxu0 %v10844_v30  ;;  %v6052_v27 = vld [vmem:[%s13793_s4 + $0x638] sm:$0xff] }
0x17db   : > { %7801 = vmatprep.subr.bf16.mxu1 %v10827_v47  ;;  %7854 = vmatprep.subr.bf16.mxu0 %v10829_v44  ;;  %v6060_v30 = vld [vmem:[%s13793_s4 + $0x678] sm:$0xff]  ;;  %v11002_v47 = vcombine.low %v6067_v12, %v6075_v19  ;;  %v11004_v44 = vcombine.low %v6068_v20, %v6076_v8  ;;  %v10923_v12 = vcombine.high %v5987_v21, %v5995_v53 }
0x17dc   : > { %v10989_v25 = vcombine.high %v6052_v27, %v6060_v30  ;;  %v10922_v20 = vcombine.low %v5987_v21, %v5995_v53  ;;  %v12279_v21 = vld [vmem:[%s13802_s1 + $0x134] ss:$8 sps:$4 sm:$0xff]   ;;  %v12277_v53 = vld [vmem:[%s13802_s1 + $0x130] ss:$8 sps:$4 sm:$0xff]  }
0x17de   : > { %7802 = vmatpush1.bf16.msra.mxu1 %v10826_v36  ;;  %7855 = vmatpush1.bf16.msra.mxu0 %v10828_v62  ;;  %v6036_v36 = vld [vmem:[%s13793_s4 + $0x5b8] sm:$0xff] }
0x17df   : > { %7803 = vmatprep.subr.bf16.mxu1 %v10811_v51  ;;  %7856 = vmatprep.subr.bf16.mxu0 %v10813_v22  ;;  %v6044_v62 = vld [vmem:[%s13793_s4 + $0x5f8] sm:$0xff]  ;;  %v10986_v51 = vcombine.low %v6051_v3, %v6059_v26  ;;  %v10988_v22 = vcombine.low %v6052_v27, %v6060_v30  ;;  %v15299_v3 = vld [vmem:[%s13796_s13] sm:$0xff] }
0x17e0   : > { %v10973_v7 = vcombine.high %v6036_v36, %v6044_v62  ;;  %v15307_v30 = vrot.slane %v15299_v3, %v13979_v60 }
0x17e2   : > { %7804 = vmatpush1.bf16.msra.mxu1 %v10810_v46  ;;  %7857 = vmatpush1.bf16.msra.mxu0 %v10812_v14  ;;  %v6020_v46 = vld [vmem:[%s13793_s4 + $0x538] sm:$0xff] }
0x17e3   : > { %7805 = vmatprep.subr.bf16.mxu1 %v10795_v4  ;;  %7858 = vmatprep.subr.bf16.mxu0 %v10797_v1  ;;  %v6028_v14 = vld [vmem:[%s13793_s4 + $0x578] sm:$0xff]  ;;  %v10970_v4 = vcombine.low %v6035_v5, %v6043_v40  ;;  %v10972_v1 = vcombine.low %v6036_v36, %v6044_v62  ;;  %v12256_v40 = vld [vmem:[%s13802_s1 + $0x60] ss:$8 sps:$4 sm:$0xff]  }
0x17e4   : > { %v10957_v28 = vcombine.high %v6020_v46, %v6028_v14  ;;  %v12259_v36 = vld [vmem:[%s13802_s1 + $0x160] ss:$8 sps:$4 sm:$0xff]  }
0x17e6   : > { %7806 = vmatpush1.bf16.msra.mxu1 %v10794_v16  ;;  %7859 = vmatpush1.bf16.msra.mxu0 %v10796_v50  ;;  %v6004_v16 = vld [vmem:[%s13793_s4 + $0x4b8] sm:$0xff] }
0x17e7   : > { %7807 = vmatprep.subr.bf16.mxu1 %v11035_v10  ;;  %7860 = vmatprep.subr.bf16.mxu0 %v11037_v38  ;;  %v6012_v50 = vld [vmem:[%s13793_s4 + $0x4f8] sm:$0xff]  ;;  %v10954_v10 = vcombine.low %v6019_v37, %v6027_v24  ;;  %v10956_v38 = vcombine.low %v6020_v46, %v6028_v14 }
0x17e8   : > { %v10941_v58 = vcombine.high %v6004_v16, %v6012_v50  ;;  %v12262_v14 = vld [vmem:[%s13802_s1 + $0x50] ss:$8 sps:$4 sm:$0xff]  }
0x17ea   : > { %7808 = vmatpush2.bf16.msra.mxu1 %v11034_v13  ;;  %7861 = vmatpush2.bf16.msra.mxu0 %v11036_v15  ;;  %v5988_v13 = vld [vmem:[%s13793_s4 + $0x438] sm:$0xff] }
0x17eb   : > { %7809 = vmatprep.subr.bf16.mxu1 %v11019_v49  ;;  %7862 = vmatprep.subr.bf16.mxu0 %v11021_v6  ;;  %v5996_v15 = vld [vmem:[%s13793_s4 + $0x478] sm:$0xff]  ;;  %v10938_v49 = vcombine.low %v6003_v2, %v6011_v11  ;;  %v10940_v6 = vcombine.low %v6004_v16, %v6012_v50  ;;  %v12273_v16 = vld [vmem:[%s13802_s1 + $0x144] ss:$8 sps:$4 sm:$0xff]  }
0x17ec   : > { %v10925_v19 = vcombine.high %v5988_v13, %v5996_v15  ;;  %v10924_v8 = vcombine.low %v5988_v13, %v5996_v15  ;;  %v12282_v13 = vld [vmem:[%s13802_s1 + $0x24] ss:$8 sps:$4 sm:$0xff]  }
0x17ed   : > { %v12285_v15 = vld [vmem:[%s13802_s1 + $0x124] ss:$8 sps:$4 sm:$0xff]  }
0x17ee   : > { %7810 = vmatpush2.bf16.msra.mxu1 %v11018_v33  ;;  %7863 = vmatpush2.bf16.msra.mxu0 %v11020_v39  ;;  %v12252_v33 = vld [vmem:[%s13802_s1 + $0x74] ss:$8 sps:$4 sm:$0xff]  }
0x17ef   : > { %7811 = vmatprep.subr.bf16.mxu1 %v11003_v32  ;;  %7864 = vmatprep.subr.bf16.mxu0 %v11005_v41  ;;  %v12255_v39 = vld [vmem:[%s13802_s1 + $0x174] ss:$8 sps:$4 sm:$0xff]   ;;  %v12250_v32 = vld [vmem:[%s13802_s1 + $0x70] ss:$8 sps:$4 sm:$0xff]  }
0x17f0   : > { %v12253_v41 = vld [vmem:[%s13802_s1 + $0x170] ss:$8 sps:$4 sm:$0xff]  }
0x17f2   : > { %7812 = vmatpush2.bf16.msra.mxu1 %v11002_v47  ;;  %7865 = vmatpush2.bf16.msra.mxu0 %v11004_v44  ;;  %v15311_v47 = vrot.slane %v15299_v3, %v13970_v57  ;;  %v12258_v44 = vld [vmem:[%s13802_s1 + $0x64] ss:$8 sps:$4 sm:$0xff]  }
0x17f3   : > { %7813 = vmatprep.subr.bf16.mxu1 %v10987_v34  ;;  %7866 = vmatprep.subr.bf16.mxu0 %v10989_v25  ;;  %v12261_v34 = vld [vmem:[%s13802_s1 + $0x164] ss:$8 sps:$4 sm:$0xff]  }
0x17f6   : > { %7814 = vmatpush2.bf16.msra.mxu1 %v10986_v51  ;;  %7867 = vmatpush2.bf16.msra.mxu0 %v10988_v22 }
0x17f7   : > { %7815 = vmatprep.subr.bf16.mxu1 %v10971_v0  ;;  %7868 = vmatprep.subr.bf16.mxu0 %v10973_v7  ;;  %v12264_v0 = vld [vmem:[%s13802_s1 + $0x54] ss:$8 sps:$4 sm:$0xff]  }
0x17f8   : > { %v12267_v7 = vld [vmem:[%s13802_s1 + $0x154] ss:$8 sps:$4 sm:$0xff]  }
0x17fa   : > { %7816 = vmatpush2.bf16.msra.mxu1 %v10970_v4  ;;  %7869 = vmatpush2.bf16.msra.mxu0 %v10972_v1  ;;  %v12265_v4 = vld [vmem:[%s13802_s1 + $0x150] ss:$8 sps:$4 sm:$0xff]   ;;  %v12270_v1 = vld [vmem:[%s13802_s1 + $0x44] ss:$8 sps:$4 sm:$0xff]  }
0x17fb   : > { %7817 = vmatprep.subr.bf16.mxu1 %v10955_v48  ;;  %7870 = vmatprep.subr.bf16.mxu0 %v10957_v28 }
0x17fe   : > { %7818 = vmatpush2.bf16.msra.mxu1 %v10954_v10  ;;  %7871 = vmatpush2.bf16.msra.mxu0 %v10956_v38  ;;  %v12268_v38 = vld [vmem:[%s13802_s1 + $0x40] ss:$8 sps:$4 sm:$0xff]  }
0x17ff   : > { %7819 = vmatprep.subr.bf16.mxu1 %v10939_v17  ;;  %7872 = vmatprep.subr.bf16.mxu0 %v10941_v58  ;;  %v12271_v17 = vld [vmem:[%s13802_s1 + $0x140] ss:$8 sps:$4 sm:$0xff]   ;;  %v12276_v58 = vld [vmem:[%s13802_s1 + $0x34] ss:$8 sps:$4 sm:$0xff]  }
0x1802   : > { %7820 = vmatpush2.bf16.msra.mxu1 %v10938_v49  ;;  %7873 = vmatpush2.bf16.msra.mxu0 %v10940_v6  ;;  %v12280_v49 = vld [vmem:[%s13802_s1 + $0x20] ss:$8 sps:$4 sm:$0xff]  }
0x1803   : > { %7821 = vmatprep.subr.bf16.mxu1 %v10923_v12  ;;  %7874 = vmatprep.subr.bf16.mxu0 %v10925_v19  ;;  %v12283_v6 = vld [vmem:[%s13802_s1 + $0x120] ss:$8 sps:$4 sm:$0xff]   ;;  %v12288_v12 = vld [vmem:[%s13802_s1 + $0x14] ss:$8 sps:$4 sm:$0xff]  }
0x1804   : > { %v12291_v19 = vld [vmem:[%s13802_s1 + $0x114] ss:$8 sps:$4 sm:$0xff]  }
0x1806   : > { %7822 = vmatpush2.bf16.msra.mxu1 %v10922_v20  ;;  %7875 = vmatpush2.bf16.msra.mxu0 %v10924_v8  ;;  %v12286_v20 = vld [vmem:[%s13802_s1 + $0x10] ss:$8 sps:$4 sm:$0xff]  }
0x1807   : > { %9541 = vmatprep.subr.bf16.mxu1 %v12252_v33  ;;  %9594 = vmatprep.subr.bf16.mxu0 %v12255_v39  ;;  %v15301_v26 = vpop.f32.mrf.mxu1  ;;  %v15303_v27 = vpop.f32.mrf.mxu0  ;;  %v12289_v8 = vld [vmem:[%s13802_s1 + $0x110] ss:$8 sps:$4 sm:$0xff]   ;;  %v12294_v33 = vld [vmem:[%s13802_s1 + $0x4] ss:$8 sps:$4 sm:$0xff]  }
0x1808   : > { %v12297_v39 = vld [vmem:[%s13802_s1 + $0x104] ss:$8 sps:$4 sm:$0xff]  }
0x1809   : > { %7824 = vmatmul.mubr.bf16.vlgmr.msra.gmra.mxu1 %v15044_v35  ;;  %7877 = vmatmul.mubr.bf16.vlgmr.msra.gmra.mxu0 %v15044_v35  ;;  %v7509_v25 = vpop.f32.mrf.mxu1  ;;  %v7562_v5 = vpop.f32.mrf.mxu0 }
0x180a   : > { %7833 = vmatprep.mubr.bf16.mxu1 %v15138_v52  ;;  %7886 = vmatprep.mubr.bf16.mxu0 %v15138_v52  ;;  %v7510_v35 = vadd.f32 %v7509_v25, %v15307_v30  ;;  %v7563_v22 = vadd.f32 %v7562_v5, %v15311_v47  ;;  %v12298_v25 = vld [vmem:[%s13802_s1 + $0xf0] ss:$8 sps:$4 sm:$0xff]  }
0x180b   : > { %9542 = vmatpush1.bf16.msra.mxu1 %v12250_v32  ;;  %9595 = vmatpush1.bf16.msra.mxu0 %v12253_v41  ;;  %v15321_v62 = vpop.f32.mrf.mxu1  ;;  %v15323_v51 = vpop.f32.mrf.mxu0  ;;  %v12292_v32 = vld [vmem:[%s13802_s1] ss:$8 sps:$4 sm:$0xff]   ;;  %v12301_v5 = vld [vmem:[%s13802_s1 + $0x1f0] ss:$8 sps:$4 sm:$0xff]  }
0x180c   : > { %9543 = vmatprep.subr.bf16.mxu1 %v12258_v44  ;;  %9596 = vmatprep.subr.bf16.mxu0 %v12261_v34  ;;  %v7898_v48 = vmax.f32 %v7510_v35, 0.0  ;;  %v7900_v28 = vmax.f32 %v7563_v22, 0.0  ;;  %v12295_v41 = vld [vmem:[%s13802_s1 + $0x100] ss:$8 sps:$4 sm:$0xff]   ;;  %v12300_v44 = vld [vmem:[%s13802_s1 + $0xf4] ss:$8 sps:$4 sm:$0xff]  }
0x180d   : > { %v7513_v52 = vpop.f32.mrf.mxu1  ;;  %v7566_v37 = vpop.f32.mrf.mxu0  ;;  %v12303_v34 = vld [vmem:[%s13802_s1 + $0x1f4] ss:$8 sps:$4 sm:$0xff]   ;;  %v12304_v35 = vld [vmem:[%s13802_s1 + $0xe0] ss:$8 sps:$4 sm:$0xff]  }
0x180e   : > { %v7514_v24 = vadd.f32 %v7513_v52, %v15307_v30  ;;  %v7567_v46 = vadd.f32 %v7566_v37, %v15311_v47  ;;  %v12307_v22 = vld [vmem:[%s13802_s1 + $0x1e0] ss:$8 sps:$4 sm:$0xff]   ;;  %v12310_v52 = vld [vmem:[%s13802_s1 + $0xd0] ss:$8 sps:$4 sm:$0xff]  }
0x180f   : > { %9544 = vmatpush1.bf16.msra.mxu1 %v12256_v40  ;;  %9597 = vmatpush1.bf16.msra.mxu0 %v12259_v36  ;;  %v12306_v40 = vld [vmem:[%s13802_s1 + $0xe4] ss:$8 sps:$4 sm:$0xff]   ;;  %v12313_v37 = vld [vmem:[%s13802_s1 + $0x1d0] ss:$8 sps:$4 sm:$0xff]  }
0x1810   : > { %v7914_v2 = vmax.f32 %v7514_v24, 0.0  ;;  %v7916_v11 = vmax.f32 %v7567_v46, 0.0  ;;  %9545 = vmatprep.subr.bf16.mxu1 %v12264_v0  ;;  %9598 = vmatprep.subr.bf16.mxu0 %v12267_v7  ;;  %v12309_v36 = vld [vmem:[%s13802_s1 + $0x1e4] ss:$8 sps:$4 sm:$0xff]   ;;  %v12312_v0 = vld [vmem:[%s13802_s1 + $0xd4] ss:$8 sps:$4 sm:$0xff]  }
0x1811   : > { %7834 = vmatmul.mubr.bf16.gmra.mxu1 %v15134_v45  ;;  %7887 = vmatmul.mubr.bf16.gmra.mxu0 %v15134_v45  ;;  %v12274_v45 = vld [vmem:[%s13802_s1 + $0x30] ss:$8 sps:$4 sm:$0xff]   ;;  %v12315_v7 = vld [vmem:[%s13802_s1 + $0x1d4] ss:$8 sps:$4 sm:$0xff]   ;;  %v12318_v24 = vld [vmem:[%s13802_s1 + $0xc4] ss:$8 sps:$4 sm:$0xff]  }
0x1812   : > { %v7962_v50 = vpack.c.bf16 %v7914_v2, %v7898_v48  ;;  %v7964_v10 = vpack.c.bf16 %v7916_v11, %v7900_v28  ;;  %v12321_v46 = vld [vmem:[%s13802_s1 + $0x1c4] ss:$8 sps:$4 sm:$0xff]   ;;  %v12327_v48 = vld [vmem:[%s13802_s1 + $0x1b4] ss:$8 sps:$4 sm:$0xff]   ;;  %v12322_v28 = vld [vmem:[%s13802_s1 + $0xb0] ss:$8 sps:$4 sm:$0xff]  }
0x1813   : > { %9546 = vmatpush1.bf16.msra.mxu1 %v12262_v14  ;;  %9599 = vmatpush1.bf16.msra.mxu0 %v12265_v4  ;;  %v12316_v14 = vld [vmem:[%s13802_s1 + $0xc0] ss:$8 sps:$4 sm:$0xff]   ;;  %v12325_v2 = vld [vmem:[%s13802_s1 + $0x1b0] ss:$8 sps:$4 sm:$0xff]   ;;  %v12330_v11 = vld [vmem:[%s13802_s1 + $0xa4] ss:$8 sps:$4 sm:$0xff]  }
0x1814   : > { %9547 = vmatprep.subr.bf16.mxu1 %v12270_v1  ;;  %9600 = vmatprep.subr.bf16.mxu0 %v12273_v16  ;;  %v12319_v4 = vld [vmem:[%s13802_s1 + $0x1c0] ss:$8 sps:$4 sm:$0xff]   ;;  %v12324_v1 = vld [vmem:[%s13802_s1 + $0xb4] ss:$8 sps:$4 sm:$0xff]   ;;  %v12333_v16 = vld [vmem:[%s13802_s1 + $0x1a4] ss:$8 sps:$4 sm:$0xff]  }
0x1815   : > { %9573 = vmatprep.mubr.bf16.mxu1 %v7962_v50  ;;  %9626 = vmatprep.mubr.bf16.mxu0 %v7964_v10  ;;  %v12328_v50 = vld [vmem:[%s13802_s1 + $0xa0] ss:$8 sps:$4 sm:$0xff]  }
0x1816   : > { %v12331_v10 = vld [vmem:[%s13802_s1 + $0x1a0] ss:$8 sps:$4 sm:$0xff]  }
0x1817   : > { %9548 = vmatpush1.bf16.msra.mxu1 %v12268_v38  ;;  %9601 = vmatpush1.bf16.msra.mxu0 %v12271_v17  ;;  %v12336_v38 = vld [vmem:[%s13802_s1 + $0x94] ss:$8 sps:$4 sm:$0xff]  }
0x1818   : > { %9549 = vmatprep.subr.bf16.mxu1 %v12276_v58  ;;  %9602 = vmatprep.subr.bf16.mxu0 %v12279_v21  ;;  %v12339_v17 = vld [vmem:[%s13802_s1 + $0x194] ss:$8 sps:$4 sm:$0xff]   ;;  %v6116_v58 = vrot.slane %v15299_v3, %v13976_v59  ;;  %v6124_v21 = vrot.slane %v15299_v3, %v13967_v56 }
0x181b   : > { %9550 = vmatpush1.bf16.msra.mxu1 %v12274_v45  ;;  %9603 = vmatpush1.bf16.msra.mxu0 %v12277_v53 }
0x181c   : > { %9551 = vmatprep.subr.bf16.mxu1 %v12282_v13  ;;  %9604 = vmatprep.subr.bf16.mxu0 %v12285_v15 }
0x181f   : > { %9552 = vmatpush1.bf16.msra.mxu1 %v12280_v49  ;;  %9605 = vmatpush1.bf16.msra.mxu0 %v12283_v6  ;;  %v12334_v49 = vld [vmem:[%s13802_s1 + $0x90] ss:$8 sps:$4 sm:$0xff]  }
0x1820   : > { %9553 = vmatprep.subr.bf16.mxu1 %v12288_v12  ;;  %9606 = vmatprep.subr.bf16.mxu0 %v12291_v19  ;;  %v12337_v6 = vld [vmem:[%s13802_s1 + $0x190] ss:$8 sps:$4 sm:$0xff]   ;;  %v7512_v12 = vadd.f32 %v15321_v62, %v6116_v58  ;;  %v7565_v19 = vadd.f32 %v15323_v51, %v6124_v21 }
0x1823   : > { %9554 = vmatpush1.bf16.msra.mxu1 %v12286_v20  ;;  %9607 = vmatpush1.bf16.msra.mxu0 %v12289_v8  ;;  %v12342_v20 = vld [vmem:[%s13802_s1 + $0x84] ss:$8 sps:$4 sm:$0xff]  }
0x1824   : > { %9555 = vmatprep.subr.bf16.mxu1 %v12294_v33  ;;  %9608 = vmatprep.subr.bf16.mxu0 %v12297_v39  ;;  %v12345_v8 = vld [vmem:[%s13802_s1 + $0x184] ss:$8 sps:$4 sm:$0xff]   ;;  %v7508_v33 = vadd.f32 %v15301_v26, %v6116_v58  ;;  %v7561_v39 = vadd.f32 %v15303_v27, %v6124_v21  ;;  %v7915_v26 = vmax.f32 %v7565_v19, 0.0 }
0x1827   : > { %9556 = vmatpush1.bf16.msra.mxu1 %v12292_v32  ;;  %9609 = vmatpush1.bf16.msra.mxu0 %v12295_v41 }
0x1828   : > { %9557 = vmatprep.subr.bf16.mxu1 %v12300_v44  ;;  %9610 = vmatprep.subr.bf16.mxu0 %v12303_v34 }
0x182b   : > { %9558 = vmatpush2.bf16.msra.mxu1 %v12298_v25  ;;  %9611 = vmatpush2.bf16.msra.mxu0 %v12301_v5  ;;  %v12340_v25 = vld [vmem:[%s13802_s1 + $0x80] ss:$8 sps:$4 sm:$0xff]  }
0x182c   : > { %9559 = vmatprep.subr.bf16.mxu1 %v12306_v40  ;;  %9612 = vmatprep.subr.bf16.mxu0 %v12309_v36  ;;  %v12343_v5 = vld [vmem:[%s13802_s1 + $0x180] ss:$8 sps:$4 sm:$0xff]   ;;  %v6143_v40 = vsub.s32 7, %v13964_v55  ;;  %v7913_v36 = vmax.f32 %v7512_v12, 0.0  ;;  %v12357_v12 = vld [vmem:[%s13802_s1 + $0x364] ss:$8 sps:$4 sm:$0xff]  }
0x182f   : > { %9560 = vmatpush2.bf16.msra.mxu1 %v12304_v35  ;;  %9613 = vmatpush2.bf16.msra.mxu0 %v12307_v22  ;;  %v12348_v22 = vld [vmem:[%s13802_s1 + $0x274] ss:$8 sps:$4 sm:$0xff]  }
0x1830   : > { %9561 = vmatprep.subr.bf16.mxu1 %v12312_v0  ;;  %9614 = vmatprep.subr.bf16.mxu0 %v12315_v7  ;;  %v7897_v0 = vmax.f32 %v7508_v33, 0.0  ;;  %v7899_v7 = vmax.f32 %v7561_v39, 0.0  ;;  %v12360_v39 = vld [vmem:[%s13802_s1 + $0x254] ss:$8 sps:$4 sm:$0xff]  }
0x1833   : > { %9562 = vmatpush2.bf16.msra.mxu1 %v12310_v52  ;;  %9615 = vmatpush2.bf16.msra.mxu0 %v12313_v37  ;;  %v12351_v52 = vld [vmem:[%s13802_s1 + $0x374] ss:$8 sps:$4 sm:$0xff]   ;;  %v15404_v37 = vrot.slane %v15299_v3, %v14061_v61 }
0x1834   : > { %9563 = vmatprep.subr.bf16.mxu1 %v12318_v24  ;;  %9616 = vmatprep.subr.bf16.mxu0 %v12321_v46 }
0x1837   : > { %9564 = vmatpush2.bf16.msra.mxu1 %v12316_v14  ;;  %9617 = vmatpush2.bf16.msra.mxu0 %v12319_v4 }
0x1838   : > { %9565 = vmatprep.subr.bf16.mxu1 %v12324_v1  ;;  %9618 = vmatprep.subr.bf16.mxu0 %v12327_v48 }
0x183b   : > { %9566 = vmatpush2.bf16.msra.mxu1 %v12322_v28  ;;  %9619 = vmatpush2.bf16.msra.mxu0 %v12325_v2  ;;  %v12346_v28 = vld [vmem:[%s13802_s1 + $0x270] ss:$8 sps:$4 sm:$0xff]  }
0x183c   : > { %9567 = vmatprep.subr.bf16.mxu1 %v12330_v11  ;;  %9620 = vmatprep.subr.bf16.mxu0 %v12333_v16  ;;  %v12349_v2 = vld [vmem:[%s13802_s1 + $0x370] ss:$8 sps:$4 sm:$0xff]   ;;  %v15415_v11 = vrot.slane %v15299_v3, %v6143_v40  ;;  %v7961_v16 = vpack.c.bf16 %v7913_v36, %v7897_v0 }
0x183d   : > { %v7517_v45 = vpop.f32.mrf.mxu1  ;;  %v7570_v53 = vpop.f32.mrf.mxu0 }
0x183f   : > { %9568 = vmatpush2.bf16.msra.mxu1 %v12328_v50  ;;  %9621 = vmatpush2.bf16.msra.mxu0 %v12331_v10  ;;  %v7519_v13 = vpop.f32.mrf.mxu1  ;;  %v7572_v15 = vpop.f32.mrf.mxu0  ;;  %v7963_v50 = vpack.c.bf16 %v7915_v26, %v7899_v7  ;;  %v12358_v26 = vld [vmem:[%s13802_s1 + $0x250] ss:$8 sps:$4 sm:$0xff]  }
0x1840   : > { %9569 = vmatprep.subr.bf16.mxu1 %v12336_v38  ;;  %9622 = vmatprep.subr.bf16.mxu0 %v12339_v17  ;;  %v7520_v44 = vadd.f32 %v7519_v13, %v15307_v30  ;;  %v7573_v34 = vadd.f32 %v7572_v15, %v15311_v47  ;;  %v7518_v17 = vadd.f32 %v7517_v45, %v6116_v58  ;;  %v12355_v45 = vld [vmem:[%s13802_s1 + $0x360] ss:$8 sps:$4 sm:$0xff]  }
0x1841   : > { %v7521_v32 = vpop.f32.mrf.mxu1  ;;  %v7574_v41 = vpop.f32.mrf.mxu0  ;;  %v7571_v13 = vadd.f32 %v7570_v53, %v6124_v21 }
0x1842   : > { %v7930_v24 = vmax.f32 %v7520_v44, 0.0  ;;  %v7932_v46 = vmax.f32 %v7573_v34, 0.0  ;;  %v7522_v1 = vadd.f32 %v7521_v32, %v6116_v58  ;;  %v12352_v58 = vld [vmem:[%s13802_s1 + $0x260] ss:$8 sps:$4 sm:$0xff]   ;;  %v12363_v32 = vld [vmem:[%s13802_s1 + $0x354] ss:$8 sps:$4 sm:$0xff]  }
0x1843   : > { %9570 = vmatpush2.bf16.msra.mxu1 %v12334_v49  ;;  %9623 = vmatpush2.bf16.msra.mxu0 %v12337_v6  ;;  %v7523_v62 = vpop.f32.mrf.mxu1  ;;  %v7576_v51 = vpop.f32.mrf.mxu0  ;;  %v12354_v6 = vld [vmem:[%s13802_s1 + $0x264] ss:$8 sps:$4 sm:$0xff]   ;;  %v7931_v44 = vmax.f32 %v7571_v13, 0.0  ;;  %v12384_v13 = vld [vmem:[%s13802_s1 + $0x214] ss:$8 sps:$4 sm:$0xff]  }
0x1844   : > { %v7524_v27 = vadd.f32 %v7523_v62, %v15307_v30  ;;  %v7577_v35 = vadd.f32 %v7576_v51, %v15311_v47  ;;  %9571 = vmatprep.subr.bf16.mxu1 %v12342_v20  ;;  %9624 = vmatprep.subr.bf16.mxu0 %v12345_v8  ;;  %v7575_v30 = vadd.f32 %v7574_v41, %v6124_v21  ;;  %v7945_v19 = vmax.f32 %v7522_v1, 0.0  ;;  %v12367_v1 = vld [vmem:[%s13802_s1 + $0x340] ss:$8 sps:$4 sm:$0xff]  }
0x1845   : > { %v7929_v41 = vmax.f32 %v7518_v17, 0.0  ;;  %v12379_v17 = vld [vmem:[%s13802_s1 + $0x320] ss:$8 sps:$4 sm:$0xff]  }
0x1846   : > { %v7946_v14 = vmax.f32 %v7524_v27, 0.0  ;;  %v7948_v4 = vmax.f32 %v7577_v35, 0.0  ;;  %v7947_v20 = vmax.f32 %v7575_v30, 0.0  ;;  %v12361_v27 = vld [vmem:[%s13802_s1 + $0x350] ss:$8 sps:$4 sm:$0xff]  }
0x1847   : > { %9572 = vmatpush2.bf16.msra.mxu1 %v12340_v25  ;;  %9625 = vmatpush2.bf16.msra.mxu0 %v12343_v5  ;;  %v15406_v47 = vpop.f32.mrf.mxu1  ;;  %v15408_v48 = vpop.f32.mrf.mxu0  ;;  %v7977_v5 = vpack.c.bf16 %v7945_v19, %v7929_v41  ;;  %v12366_v35 = vld [vmem:[%s13802_s1 + $0x244] ss:$8 sps:$4 sm:$0xff]   ;;  %v12372_v30 = vld [vmem:[%s13802_s1 + $0x234] ss:$8 sps:$4 sm:$0xff]  }
0x1848   : > { %v7978_v10 = vpack.c.bf16 %v7946_v14, %v7930_v24  ;;  %v7980_v38 = vpack.c.bf16 %v7948_v4, %v7932_v46  ;;  %9647 = vmatprep.subr.bf16.mxu1 %v12348_v22  ;;  %9700 = vmatprep.subr.bf16.mxu0 %v12351_v52  ;;  %v7979_v36 = vpack.c.bf16 %v7947_v20, %v7931_v44  ;;  %v12369_v24 = vld [vmem:[%s13802_s1 + $0x344] ss:$8 sps:$4 sm:$0xff]   ;;  %v12364_v4 = vld [vmem:[%s13802_s1 + $0x240] ss:$8 sps:$4 sm:$0xff]  }
0x1849   : > { %v7615_v15 = vpop.f32.mrf.mxu1  ;;  %v7668_v49 = vpop.f32.mrf.mxu0  ;;  %v12393_v19 = vld [vmem:[%s13802_s1 + $0x304] ss:$8 sps:$4 sm:$0xff]   ;;  %v12388_v20 = vld [vmem:[%s13802_s1 + $0x200] ss:$8 sps:$4 sm:$0xff]  }
0x184a   : > { %9574 = vmatmul.mubr.bf16.vlgmr.msra.gmra.mxu1 %v7961_v16  ;;  %9627 = vmatmul.mubr.bf16.vlgmr.msra.gmra.mxu0 %v7963_v50  ;;  %v7616_v21 = vadd.f32 %v7615_v15, %v15404_v37  ;;  %v7669_v53 = vadd.f32 %v7668_v49, %v15415_v11  ;;  %v12373_v16 = vld [vmem:[%s13802_s1 + $0x330] ss:$8 sps:$4 sm:$0xff]   ;;  %v12378_v50 = vld [vmem:[%s13802_s1 + $0x224] ss:$8 sps:$4 sm:$0xff]   ;;  %v12387_v15 = vld [vmem:[%s13802_s1 + $0x314] ss:$8 sps:$4 sm:$0xff]  }
0x184b   : > { %9648 = vmatpush1.bf16.msra.mxu1 %v12346_v28  ;;  %9701 = vmatpush1.bf16.msra.mxu0 %v12349_v2  ;;  %v15419_v8 = vpop.f32.mrf.mxu1  ;;  %v15421_v33 = vpop.f32.mrf.mxu0  ;;  %v12375_v28 = vld [vmem:[%s13802_s1 + $0x334] ss:$8 sps:$4 sm:$0xff]   ;;  %v12370_v2 = vld [vmem:[%s13802_s1 + $0x230] ss:$8 sps:$4 sm:$0xff]   ;;  %v12405_v41 = vld [vmem:[%s13802_s1 + $0x3e4] ss:$8 sps:$4 sm:$0xff]  }
0x184c   : > { %9583 = vmatprep.mubr.bf16.mxu1 %v7978_v10  ;;  %9636 = vmatprep.mubr.bf16.mxu0 %v7980_v38  ;;  %v7902_v22 = vmax.f32 %v7616_v21, 0.0  ;;  %v7904_v0 = vmax.f32 %v7669_v53, 0.0  ;;  %v12381_v10 = vld [vmem:[%s13802_s1 + $0x324] ss:$8 sps:$4 sm:$0xff]   ;;  %v12376_v38 = vld [vmem:[%s13802_s1 + $0x220] ss:$8 sps:$4 sm:$0xff]  }
0x184d   : > { %9649 = vmatprep.subr.bf16.mxu1 %v12354_v6  ;;  %9702 = vmatprep.subr.bf16.mxu0 %v12357_v12  ;;  %v7619_v34 = vpop.f32.mrf.mxu1  ;;  %v7672_v62 = vpop.f32.mrf.mxu0  ;;  %v12382_v49 = vld [vmem:[%s13802_s1 + $0x210] ss:$8 sps:$4 sm:$0xff]   ;;  %v12390_v12 = vld [vmem:[%s13802_s1 + $0x204] ss:$8 sps:$4 sm:$0xff]   ;;  %v12399_v21 = vld [vmem:[%s13802_s1 + $0x3f4] ss:$8 sps:$4 sm:$0xff]  }
0x184e   : > { %v7620_v51 = vadd.f32 %v7619_v34, %v15404_v37  ;;  %v7673_v25 = vadd.f32 %v7672_v62, %v15415_v11  ;;  %v12385_v6 = vld [vmem:[%s13802_s1 + $0x310] ss:$8 sps:$4 sm:$0xff]   ;;  %v12400_v44 = vld [vmem:[%s13802_s1 + $0x2e0] ss:$8 sps:$4 sm:$0xff]   ;;  %v12408_v62 = vld [vmem:[%s13802_s1 + $0x2d4] ss:$8 sps:$4 sm:$0xff]  }
0x184f   : > { %9650 = vmatpush1.bf16.msra.mxu1 %v12352_v58  ;;  %9703 = vmatpush1.bf16.msra.mxu0 %v12355_v45  ;;  %v12391_v58 = vld [vmem:[%s13802_s1 + $0x300] ss:$8 sps:$4 sm:$0xff]   ;;  %v12396_v45 = vld [vmem:[%s13802_s1 + $0x2f4] ss:$8 sps:$4 sm:$0xff]   ;;  %v12394_v53 = vld [vmem:[%s13802_s1 + $0x2f0] ss:$8 sps:$4 sm:$0xff]  }
0x1850   : > { %v7918_v7 = vmax.f32 %v7620_v51, 0.0  ;;  %v7920_v52 = vmax.f32 %v7673_v25, 0.0  ;;  %9651 = vmatprep.subr.bf16.mxu1 %v12360_v39  ;;  %9704 = vmatprep.subr.bf16.mxu0 %v12363_v32  ;;  %v12397_v39 = vld [vmem:[%s13802_s1 + $0x3f0] ss:$8 sps:$4 sm:$0xff]   ;;  %v12402_v32 = vld [vmem:[%s13802_s1 + $0x2e4] ss:$8 sps:$4 sm:$0xff]  }
0x1851   : > { %v12403_v34 = vld [vmem:[%s13802_s1 + $0x3e0] ss:$8 sps:$4 sm:$0xff]   ;;  %v12411_v51 = vld [vmem:[%s13802_s1 + $0x3d4] ss:$8 sps:$4 sm:$0xff]   ;;  %v12406_v25 = vld [vmem:[%s13802_s1 + $0x2d0] ss:$8 sps:$4 sm:$0xff]  }
0x1852   : > { %v7966_v46 = vpack.c.bf16 %v7918_v7, %v7902_v22  ;;  %v7968_v14 = vpack.c.bf16 %v7920_v52, %v7904_v0  ;;  %9584 = vmatmul.mubr.bf16.gmra.mxu1 %v7977_v5  ;;  %9637 = vmatmul.mubr.bf16.gmra.mxu0 %v7979_v36  ;;  %v12409_v5 = vld [vmem:[%s13802_s1 + $0x3d0] ss:$8 sps:$4 sm:$0xff]   ;;  %v12414_v36 = vld [vmem:[%s13802_s1 + $0x2c4] ss:$8 sps:$4 sm:$0xff]   ;;  %v12412_v22 = vld [vmem:[%s13802_s1 + $0x2c0] ss:$8 sps:$4 sm:$0xff]  }
0x1853   : > { %9652 = vmatpush1.bf16.msra.mxu1 %v12358_v26  ;;  %9705 = vmatpush1.bf16.msra.mxu0 %v12361_v27  ;;  %v12417_v26 = vld [vmem:[%s13802_s1 + $0x3c4] ss:$8 sps:$4 sm:$0xff]   ;;  %v15467_v27 = vpop.f32.mrf.mxu1  ;;  %v12415_v0 = vld [vmem:[%s13802_s1 + $0x3c0] ss:$8 sps:$4 sm:$0xff]   ;;  %v12420_v7 = vld [vmem:[%s13802_s1 + $0x2b4] ss:$8 sps:$4 sm:$0xff]  }
0x1854   : > { %9653 = vmatprep.subr.bf16.mxu1 %v12366_v35  ;;  %9706 = vmatprep.subr.bf16.mxu0 %v12369_v24  ;;  %v15469_v35 = vpop.f32.mrf.mxu0  ;;  %v12423_v52 = vld [vmem:[%s13802_s1 + $0x3b4] ss:$8 sps:$4 sm:$0xff]  }
0x1855   : > { %9679 = vmatprep.mubr.bf16.mxu1 %v7966_v46  ;;  %9732 = vmatprep.mubr.bf16.mxu0 %v7968_v14  ;;  %v7625_v24 = vpop.f32.mrf.mxu1  ;;  %v12418_v14 = vld [vmem:[%s13802_s1 + $0x2b0] ss:$8 sps:$4 sm:$0xff]  }
0x1856   : > { %v7678_v46 = vpop.f32.mrf.mxu0 }
0x1857   : > { %9654 = vmatpush1.bf16.msra.mxu1 %v12364_v4  ;;  %9707 = vmatpush1.bf16.msra.mxu0 %v12367_v1  ;;  %v12421_v4 = vld [vmem:[%s13802_s1 + $0x3b0] ss:$8 sps:$4 sm:$0xff]   ;;  %v12426_v1 = vld [vmem:[%s13802_s1 + $0x2a4] ss:$8 sps:$4 sm:$0xff]  }
0x1858   : > { %9655 = vmatprep.subr.bf16.mxu1 %v12372_v30  ;;  %9708 = vmatprep.subr.bf16.mxu0 %v12375_v28  ;;  %v12429_v30 = vld [vmem:[%s13802_s1 + $0x3a4] ss:$8 sps:$4 sm:$0xff]   ;;  %v6139_v28 = vsub.s32 6, %v13964_v55 }
0x185b   : > { %9656 = vmatpush1.bf16.msra.mxu1 %v12370_v2  ;;  %9709 = vmatpush1.bf16.msra.mxu0 %v12373_v16  ;;  %v7627_v2 = vpop.f32.mrf.mxu1  ;;  %v7680_v16 = vpop.f32.mrf.mxu0 }
0x185c   : > { %9657 = vmatprep.subr.bf16.mxu1 %v12378_v50  ;;  %9710 = vmatprep.subr.bf16.mxu0 %v12381_v10  ;;  %v12424_v50 = vld [vmem:[%s13802_s1 + $0x2a0] ss:$8 sps:$4 sm:$0xff]  }
0x185d   : > { %v12427_v10 = vld [vmem:[%s13802_s1 + $0x3a0] ss:$8 sps:$4 sm:$0xff]  }
0x185f   : > { %9658 = vmatpush1.bf16.msra.mxu1 %v12376_v38  ;;  %9711 = vmatpush1.bf16.msra.mxu0 %v12379_v17  ;;  %v12432_v38 = vld [vmem:[%s13802_s1 + $0x294] ss:$8 sps:$4 sm:$0xff]  }
0x1860   : > { %9659 = vmatprep.subr.bf16.mxu1 %v12384_v13  ;;  %9712 = vmatprep.subr.bf16.mxu0 %v12387_v15  ;;  %v12435_v17 = vld [vmem:[%s13802_s1 + $0x394] ss:$8 sps:$4 sm:$0xff]   ;;  %v6132_v13 = vrot.slane %v15299_v3, %v14058_v54  ;;  %v6140_v15 = vrot.slane %v15299_v3, %v6139_v28 }
0x1862   : > { %v7614_v3 = vadd.f32 %v15406_v47, %v6132_v13  ;;  %v12444_v47 = vld [vmem:[%s13802_s1 + $0x474] ss:$8 sps:$4 sm:$0xff]  }
0x1863   : > { %9660 = vmatpush1.bf16.msra.mxu1 %v12382_v49  ;;  %9713 = vmatpush1.bf16.msra.mxu0 %v12385_v6  ;;  %v7629_v49 = vpop.f32.mrf.mxu1  ;;  %v7682_v6 = vpop.f32.mrf.mxu0 }
0x1864   : > { %9661 = vmatprep.subr.bf16.mxu1 %v12390_v12  ;;  %9714 = vmatprep.subr.bf16.mxu0 %v12393_v19  ;;  %v7618_v12 = vadd.f32 %v15419_v8, %v6132_v13  ;;  %v12430_v19 = vld [vmem:[%s13802_s1 + $0x290] ss:$8 sps:$4 sm:$0xff]   ;;  %v7683_v8 = vadd.f32 %v7682_v6, %v15415_v11 }
0x1867   : > { %9662 = vmatpush1.bf16.msra.mxu1 %v12388_v20  ;;  %9715 = vmatpush1.bf16.msra.mxu0 %v12391_v58  ;;  %v12433_v20 = vld [vmem:[%s13802_s1 + $0x390] ss:$8 sps:$4 sm:$0xff]   ;;  %v7671_v58 = vadd.f32 %v15421_v33, %v6140_v15  ;;  %v12436_v33 = vld [vmem:[%s13802_s1 + $0x280] ss:$8 sps:$4 sm:$0xff]  }
0x1868   : > { %9663 = vmatprep.subr.bf16.mxu1 %v12396_v45  ;;  %9716 = vmatprep.subr.bf16.mxu0 %v12399_v21  ;;  %v12438_v45 = vld [vmem:[%s13802_s1 + $0x284] ss:$8 sps:$4 sm:$0xff]  }
0x1869   : > { %v12441_v21 = vld [vmem:[%s13802_s1 + $0x384] ss:$8 sps:$4 sm:$0xff]  }
0x186b   : > { %9664 = vmatpush2.bf16.msra.mxu1 %v12394_v53  ;;  %9717 = vmatpush2.bf16.msra.mxu0 %v12397_v39  ;;  %v7630_v53 = vadd.f32 %v7629_v49, %v15404_v37  ;;  %v7667_v39 = vadd.f32 %v15408_v48, %v6140_v15  ;;  %v7952_v48 = vmax.f32 %v7683_v8, 0.0 }
0x186c   : > { %9665 = vmatprep.subr.bf16.mxu1 %v12402_v32  ;;  %9718 = vmatprep.subr.bf16.mxu0 %v12405_v41  ;;  %v7917_v32 = vmax.f32 %v7618_v12, 0.0  ;;  %v7626_v41 = vadd.f32 %v7625_v24, %v15404_v37 }
0x186e   : > { %v7934_v37 = vmax.f32 %v7626_v41, 0.0 }
0x186f   : > { %9666 = vmatpush2.bf16.msra.mxu1 %v12400_v44  ;;  %9719 = vmatpush2.bf16.msra.mxu0 %v12403_v34  ;;  %v7679_v44 = vadd.f32 %v7678_v46, %v15415_v11  ;;  %v12439_v34 = vld [vmem:[%s13802_s1 + $0x380] ss:$8 sps:$4 sm:$0xff]  }
0x1870   : > { %9667 = vmatprep.subr.bf16.mxu1 %v12408_v62  ;;  %9720 = vmatprep.subr.bf16.mxu0 %v12411_v51  ;;  %v7919_v62 = vmax.f32 %v7671_v58, 0.0  ;;  %v12447_v51 = vld [vmem:[%s13802_s1 + $0x574] ss:$8 sps:$4 sm:$0xff]   ;;  %v12448_v58 = vld [vmem:[%s13802_s1 + $0x460] ss:$8 sps:$4 sm:$0xff]  }
0x1873   : > { %9668 = vmatpush2.bf16.msra.mxu1 %v12406_v25  ;;  %9721 = vmatpush2.bf16.msra.mxu0 %v12409_v5  ;;  %v7901_v25 = vmax.f32 %v7614_v3, 0.0  ;;  %v7950_v5 = vmax.f32 %v7630_v53, 0.0 }
0x1874   : > { %9669 = vmatprep.subr.bf16.mxu1 %v12414_v36  ;;  %9722 = vmatprep.subr.bf16.mxu0 %v12417_v26  ;;  %v7903_v36 = vmax.f32 %v7667_v39, 0.0 }
0x1875   : > { %v7965_v26 = vpack.c.bf16 %v7917_v32, %v7901_v25 }
0x1876   : > { %v7967_v11 = vpack.c.bf16 %v7919_v62, %v7903_v36  ;;  %v12462_v62 = vld [vmem:[%s13802_s1 + $0x444] ss:$8 sps:$4 sm:$0xff]  }
0x1877   : > { %9670 = vmatpush2.bf16.msra.mxu1 %v12412_v22  ;;  %9723 = vmatpush2.bf16.msra.mxu0 %v12415_v0  ;;  %v7936_v22 = vmax.f32 %v7679_v44, 0.0  ;;  %v7628_v0 = vadd.f32 %v7627_v2, %v6132_v13 }
0x1878   : > { %9671 = vmatprep.subr.bf16.mxu1 %v12420_v7  ;;  %9724 = vmatprep.subr.bf16.mxu0 %v12423_v52  ;;  %v7681_v7 = vadd.f32 %v7680_v16, %v6140_v15  ;;  %v15506_v52 = vld [vmem:[%s13796_s13 + $0x8] sm:$0xff]  ;;  %s15881_s13 = sld [smem:[#allocation52_spill]] (!%p11294_p10) }
0x1879   : > { %v15520_v2 = vrot.slane %v15506_v52, %v13970_v57  ;;  %v12450_v16 = vld [vmem:[%s13802_s1 + $0x464] ss:$8 sps:$4 sm:$0xff]   ;;  %v7949_v12 = vmax.f32 %v7628_v0, 0.0  ;;  %v12471_v0 = vld [vmem:[%s13802_s1 + $0x534] ss:$8 sps:$4 sm:$0xff]  }
0x187b   : > { %9672 = vmatpush2.bf16.msra.mxu1 %v12418_v14  ;;  %9725 = vmatpush2.bf16.msra.mxu0 %v12421_v4  ;;  %v12442_v14 = vld [vmem:[%s13802_s1 + $0x470] ss:$8 sps:$4 sm:$0xff]  }
0x187c   : > { %9673 = vmatprep.subr.bf16.mxu1 %v12426_v1  ;;  %9726 = vmatprep.subr.bf16.mxu0 %v12429_v30  ;;  %v12445_v4 = vld [vmem:[%s13802_s1 + $0x570] ss:$8 sps:$4 sm:$0xff]   ;;  %v7982_v1 = vpack.c.bf16 %v7950_v5, %v7934_v37  ;;  %v7984_v30 = vpack.c.bf16 %v7952_v48, %v7936_v22  ;;  %v12465_v48 = vld [vmem:[%s13802_s1 + $0x544] ss:$8 sps:$4 sm:$0xff]   ;;  %v12460_v37 = vld [vmem:[%s13802_s1 + $0x440] ss:$8 sps:$4 sm:$0xff]  }
0x187d   : > { %v12463_v22 = vld [vmem:[%s13802_s1 + $0x540] ss:$8 sps:$4 sm:$0xff]  }
0x187f   : > { %9674 = vmatpush2.bf16.msra.mxu1 %v12424_v50  ;;  %9727 = vmatpush2.bf16.msra.mxu0 %v12427_v10  ;;  %v15516_v50 = vrot.slane %v15506_v52, %v13979_v60  ;;  %v12453_v10 = vld [vmem:[%s13802_s1 + $0x564] ss:$8 sps:$4 sm:$0xff]  }
0x1880   : > { %9675 = vmatprep.subr.bf16.mxu1 %v12432_v38  ;;  %9728 = vmatprep.subr.bf16.mxu0 %v12435_v17  ;;  %v7624_v38 = vadd.f32 %v15467_v27, %v6132_v13  ;;  %v7677_v17 = vadd.f32 %v15469_v35, %v6140_v15  ;;  %v12451_v27 = vld [vmem:[%s13802_s1 + $0x560] ss:$8 sps:$4 sm:$0xff]   ;;  %v12456_v15 = vld [vmem:[%s13802_s1 + $0x454] ss:$8 sps:$4 sm:$0xff]  }
0x1882   : > { %v7935_v3 = vmax.f32 %v7677_v17, 0.0  ;;  %v12478_v17 = vld [vmem:[%s13802_s1 + $0x410] ss:$8 sps:$4 sm:$0xff]  }
0x1883   : > { %9676 = vmatpush2.bf16.msra.mxu1 %v12430_v19  ;;  %9729 = vmatpush2.bf16.msra.mxu0 %v12433_v20  ;;  %v7951_v19 = vmax.f32 %v7681_v7, 0.0  ;;  %v12466_v7 = vld [vmem:[%s13802_s1 + $0x430] ss:$8 sps:$4 sm:$0xff]  }
0x1884   : > { %9677 = vmatprep.subr.bf16.mxu1 %v12438_v45  ;;  %9730 = vmatprep.subr.bf16.mxu0 %v12441_v21  ;;  %v12459_v45 = vld [vmem:[%s13802_s1 + $0x554] ss:$8 sps:$4 sm:$0xff]   ;;  %v7933_v21 = vmax.f32 %v7624_v38, 0.0 }
0x1885   : > { %v7983_v44 = vpack.c.bf16 %v7951_v19, %v7935_v3  ;;  %v12483_v38 = vld [vmem:[%s13802_s1 + $0x514] ss:$8 sps:$4 sm:$0xff]   ;;  %v12484_v19 = vld [vmem:[%s13802_s1 + $0x400] ss:$8 sps:$4 sm:$0xff]  }
0x1886   : > { %v7981_v41 = vpack.c.bf16 %v7949_v12, %v7933_v21  ;;  %v12489_v12 = vld [vmem:[%s13802_s1 + $0x504] ss:$8 sps:$4 sm:$0xff]   ;;  %v12496_v3 = vld [vmem:[%s13802_s1 + $0x4e0] ss:$8 sps:$4 sm:$0xff]  }
0x1887   : > { %9678 = vmatpush2.bf16.msra.mxu1 %v12436_v33  ;;  %9731 = vmatpush2.bf16.msra.mxu0 %v12439_v34  ;;  %v12454_v33 = vld [vmem:[%s13802_s1 + $0x450] ss:$8 sps:$4 sm:$0xff]   ;;  %v12501_v21 = vld [vmem:[%s13802_s1 + $0x5e4] ss:$8 sps:$4 sm:$0xff]  }
0x1888   : > { %v15508_v24 = vpop.f32.mrf.mxu1  ;;  %v15510_v46 = vpop.f32.mrf.mxu0  ;;  %9753 = vmatprep.subr.bf16.mxu1 %v12444_v47  ;;  %9806 = vmatprep.subr.bf16.mxu0 %v12447_v51  ;;  %v12457_v34 = vld [vmem:[%s13802_s1 + $0x550] ss:$8 sps:$4 sm:$0xff]  }
0x188a   : > { %9680 = vmatmul.mubr.bf16.vlgmr.msra.gmra.mxu1 %v7965_v26  ;;  %9733 = vmatmul.mubr.bf16.vlgmr.msra.gmra.mxu0 %v7967_v11  ;;  %v7721_v49 = vpop.f32.mrf.mxu1  ;;  %v7774_v6 = vpop.f32.mrf.mxu0  ;;  %v12468_v11 = vld [vmem:[%s13802_s1 + $0x434] ss:$8 sps:$4 sm:$0xff]  }
0x188b   : > { %9689 = vmatprep.mubr.bf16.mxu1 %v7982_v1  ;;  %9742 = vmatprep.mubr.bf16.mxu0 %v7984_v30  ;;  %v7722_v35 = vadd.f32 %v7721_v49, %v15516_v50  ;;  %v7775_v13 = vadd.f32 %v7774_v6, %v15520_v2  ;;  %v12477_v1 = vld [vmem:[%s13802_s1 + $0x524] ss:$8 sps:$4 sm:$0xff]   ;;  %v12472_v30 = vld [vmem:[%s13802_s1 + $0x420] ss:$8 sps:$4 sm:$0xff]   ;;  %v12481_v49 = vld [vmem:[%s13802_s1 + $0x510] ss:$8 sps:$4 sm:$0xff]  }
0x188c   : > { %9754 = vmatpush1.bf16.msra.mxu1 %v12442_v14  ;;  %9807 = vmatpush1.bf16.msra.mxu0 %v12445_v4  ;;  %v15526_v57 = vpop.f32.mrf.mxu1  ;;  %v15528_v20 = vpop.f32.mrf.mxu0  ;;  %v12469_v14 = vld [vmem:[%s13802_s1 + $0x530] ss:$8 sps:$4 sm:$0xff]   ;;  %v12474_v4 = vld [vmem:[%s13802_s1 + $0x424] ss:$8 sps:$4 sm:$0xff]  }
0x188d   : > { %9755 = vmatprep.subr.bf16.mxu1 %v12450_v16  ;;  %9808 = vmatprep.subr.bf16.mxu0 %v12453_v10  ;;  %v7906_v47 = vmax.f32 %v7722_v35, 0.0  ;;  %v7908_v51 = vmax.f32 %v7775_v13, 0.0  ;;  %v12475_v16 = vld [vmem:[%s13802_s1 + $0x520] ss:$8 sps:$4 sm:$0xff]   ;;  %v12480_v10 = vld [vmem:[%s13802_s1 + $0x414] ss:$8 sps:$4 sm:$0xff]  }
0x188e   : > { %v7725_v53 = vpop.f32.mrf.mxu1  ;;  %v7778_v8 = vpop.f32.mrf.mxu0  ;;  %v12486_v6 = vld [vmem:[%s13802_s1 + $0x404] ss:$8 sps:$4 sm:$0xff]   ;;  %v12495_v35 = vld [vmem:[%s13802_s1 + $0x5f4] ss:$8 sps:$4 sm:$0xff]   ;;  %v12490_v13 = vld [vmem:[%s13802_s1 + $0x4f0] ss:$8 sps:$4 sm:$0xff]  }
0x188f   : > { %v7726_v39 = vadd.f32 %v7725_v53, %v15516_v50  ;;  %v7779_v32 = vadd.f32 %v7778_v8, %v15520_v2  ;;  %v12499_v53 = vld [vmem:[%s13802_s1 + $0x5e0] ss:$8 sps:$4 sm:$0xff]   ;;  %v12504_v8 = vld [vmem:[%s13802_s1 + $0x4d4] ss:$8 sps:$4 sm:$0xff]  }
0x1890   : > { %9756 = vmatpush1.bf16.msra.mxu1 %v12448_v58  ;;  %9809 = vmatpush1.bf16.msra.mxu0 %v12451_v27  ;;  %v12487_v58 = vld [vmem:[%s13802_s1 + $0x500] ss:$8 sps:$4 sm:$0xff]   ;;  %v12492_v27 = vld [vmem:[%s13802_s1 + $0x4f4] ss:$8 sps:$4 sm:$0xff]  }
0x1891   : > { %v7922_v25 = vmax.f32 %v7726_v39, 0.0  ;;  %v7924_v5 = vmax.f32 %v7779_v32, 0.0  ;;  %9757 = vmatprep.subr.bf16.mxu1 %v12456_v15  ;;  %9810 = vmatprep.subr.bf16.mxu0 %v12459_v45  ;;  %v12493_v15 = vld [vmem:[%s13802_s1 + $0x5f0] ss:$8 sps:$4 sm:$0xff]   ;;  %v12498_v45 = vld [vmem:[%s13802_s1 + $0x4e4] ss:$8 sps:$4 sm:$0xff]  }
0x1892   : > { %9690 = vmatmul.mubr.bf16.gmra.mxu1 %v7981_v41  ;;  %9743 = vmatmul.mubr.bf16.gmra.mxu0 %v7983_v44  ;;  %v12507_v39 = vld [vmem:[%s13802_s1 + $0x5d4] ss:$8 sps:$4 sm:$0xff]   ;;  %v12502_v32 = vld [vmem:[%s13802_s1 + $0x4d0] ss:$8 sps:$4 sm:$0xff]   ;;  %v12510_v44 = vld [vmem:[%s13802_s1 + $0x4c4] ss:$8 sps:$4 sm:$0xff]  }
0x1893   : > { %v7970_v36 = vpack.c.bf16 %v7922_v25, %v7906_v47  ;;  %v7972_v26 = vpack.c.bf16 %v7924_v5, %v7908_v51  ;;  %v12505_v41 = vld [vmem:[%s13802_s1 + $0x5d0] ss:$8 sps:$4 sm:$0xff]   ;;  %v12508_v47 = vld [vmem:[%s13802_s1 + $0x4c0] ss:$8 sps:$4 sm:$0xff]   ;;  %v12516_v25 = vld [vmem:[%s13802_s1 + $0x4b4] ss:$8 sps:$4 sm:$0xff]  }
0x1894   : > { %9758 = vmatpush1.bf16.msra.mxu1 %v12454_v33  ;;  %9811 = vmatpush1.bf16.msra.mxu0 %v12457_v34  ;;  %v12513_v33 = vld [vmem:[%s13802_s1 + $0x5c4] ss:$8 sps:$4 sm:$0xff]   ;;  %v15574_v34 = vpop.f32.mrf.mxu1  ;;  %v12511_v51 = vld [vmem:[%s13802_s1 + $0x5c0] ss:$8 sps:$4 sm:$0xff]   ;;  %v12519_v5 = vld [vmem:[%s13802_s1 + $0x5b4] ss:$8 sps:$4 sm:$0xff]  }
0x1895   : > { %9759 = vmatprep.subr.bf16.mxu1 %v12462_v62  ;;  %9812 = vmatprep.subr.bf16.mxu0 %v12465_v48  ;;  %v15576_v62 = vpop.f32.mrf.mxu0 }
0x1896   : > { %9785 = vmatprep.mubr.bf16.mxu1 %v7970_v36  ;;  %9838 = vmatprep.mubr.bf16.mxu0 %v7972_v26  ;;  %v7731_v48 = vpop.f32.mrf.mxu1  ;;  %v12514_v26 = vld [vmem:[%s13802_s1 + $0x4b0] ss:$8 sps:$4 sm:$0xff]  }
0x1897   : > { %v7784_v36 = vpop.f32.mrf.mxu0 }
0x1898   : > { %9760 = vmatpush1.bf16.msra.mxu1 %v12460_v37  ;;  %9813 = vmatpush1.bf16.msra.mxu0 %v12463_v22  ;;  %v12517_v37 = vld [vmem:[%s13802_s1 + $0x5b0] ss:$8 sps:$4 sm:$0xff]   ;;  %v12522_v22 = vld [vmem:[%s13802_s1 + $0x4a4] ss:$8 sps:$4 sm:$0xff]  }
0x1899   : > { %9761 = vmatprep.subr.bf16.mxu1 %v12468_v11  ;;  %9814 = vmatprep.subr.bf16.mxu0 %v12471_v0  ;;  %v12525_v11 = vld [vmem:[%s13802_s1 + $0x5a4] ss:$8 sps:$4 sm:$0xff]   ;;  %v7733_v0 = vpop.f32.mrf.mxu1 }
0x189c   : > { %9762 = vmatpush1.bf16.msra.mxu1 %v12466_v7  ;;  %9815 = vmatpush1.bf16.msra.mxu0 %v12469_v14  ;;  %v7786_v7 = vpop.f32.mrf.mxu0  ;;  %v12520_v14 = vld [vmem:[%s13802_s1 + $0x4a0] ss:$8 sps:$4 sm:$0xff]  }
0x189d   : > { %9763 = vmatprep.subr.bf16.mxu1 %v12474_v4  ;;  %9816 = vmatprep.subr.bf16.mxu0 %v12477_v1  ;;  %v12523_v4 = vld [vmem:[%s13802_s1 + $0x5a0] ss:$8 sps:$4 sm:$0xff]   ;;  %v12528_v1 = vld [vmem:[%s13802_s1 + $0x494] ss:$8 sps:$4 sm:$0xff]  }
0x18a0   : > { %9764 = vmatpush1.bf16.msra.mxu1 %v12472_v30  ;;  %9817 = vmatpush1.bf16.msra.mxu0 %v12475_v16  ;;  %v12531_v30 = vld [vmem:[%s13802_s1 + $0x594] ss:$8 sps:$4 sm:$0xff]   ;;  %v6148_v16 = vrot.slane %v15506_v52, %v13976_v59 }
0x18a1   : > { %9765 = vmatprep.subr.bf16.mxu1 %v12480_v10  ;;  %9818 = vmatprep.subr.bf16.mxu0 %v12483_v38  ;;  %v6156_v10 = vrot.slane %v15506_v52, %v13967_v56  ;;  %v7735_v38 = vpop.f32.mrf.mxu1 }
0x18a2   : > { %v7720_v56 = vadd.f32 %v15508_v24, %v6148_v16  ;;  %v12543_v24 = vld [vmem:[%s13802_s1 + $0x774] ss:$8 sps:$4 sm:$0xff]  }
0x18a4   : > { %9766 = vmatpush1.bf16.msra.mxu1 %v12478_v17  ;;  %9819 = vmatpush1.bf16.msra.mxu0 %v12481_v49  ;;  %v7788_v17 = vpop.f32.mrf.mxu0  ;;  %v7724_v49 = vadd.f32 %v15526_v57, %v6148_v16 }
0x18a5   : > { %9767 = vmatprep.subr.bf16.mxu1 %v12486_v6  ;;  %9820 = vmatprep.subr.bf16.mxu0 %v12489_v12  ;;  %v12526_v6 = vld [vmem:[%s13802_s1 + $0x490] ss:$8 sps:$4 sm:$0xff]   ;;  %v7789_v57 = vadd.f32 %v7788_v17, %v15520_v2 }
0x18a6   : > { %v12529_v12 = vld [vmem:[%s13802_s1 + $0x590] ss:$8 sps:$4 sm:$0xff]  }
0x18a8   : > { %9768 = vmatpush1.bf16.msra.mxu1 %v12484_v19  ;;  %9821 = vmatpush1.bf16.msra.mxu0 %v12487_v58  ;;  %v7777_v19 = vadd.f32 %v15528_v20, %v6156_v10  ;;  %v12534_v58 = vld [vmem:[%s13802_s1 + $0x484] ss:$8 sps:$4 sm:$0xff]   ;;  %v12532_v20 = vld [vmem:[%s13802_s1 + $0x480] ss:$8 sps:$4 sm:$0xff]  }
0x18a9   : > { %9769 = vmatprep.subr.bf16.mxu1 %v12492_v27  ;;  %9822 = vmatprep.subr.bf16.mxu0 %v12495_v35  ;;  %v12537_v27 = vld [vmem:[%s13802_s1 + $0x584] ss:$8 sps:$4 sm:$0xff]   ;;  %v7736_v35 = vadd.f32 %v7735_v38, %v15516_v50 }
0x18ac   : > { %9770 = vmatpush2.bf16.msra.mxu1 %v12490_v13  ;;  %9823 = vmatpush2.bf16.msra.mxu0 %v12493_v15  ;;  %v7773_v13 = vadd.f32 %v15510_v46, %v6156_v10  ;;  %v7921_v15 = vmax.f32 %v7724_v49, 0.0  ;;  %v12544_v49 = vld [vmem:[%s13802_s1 + $0x660] ss:$8 sps:$4 sm:$0xff]  }
0x18ad   : > { %9771 = vmatprep.subr.bf16.mxu1 %v12498_v45  ;;  %9824 = vmatprep.subr.bf16.mxu0 %v12501_v21  ;;  %v7732_v45 = vadd.f32 %v7731_v48, %v15516_v50  ;;  %v7785_v21 = vadd.f32 %v7784_v36, %v15520_v2  ;;  %v12538_v48 = vld [vmem:[%s13802_s1 + $0x670] ss:$8 sps:$4 sm:$0xff]  }
0x18ae   : > { %v7907_v46 = vmax.f32 %v7773_v13, 0.0  ;;  %v12541_v36 = vld [vmem:[%s13802_s1 + $0x770] ss:$8 sps:$4 sm:$0xff]  }
0x18af   : > { %v7940_v50 = vmax.f32 %v7785_v21, 0.0  ;;  %v12558_v21 = vld [vmem:[%s13802_s1 + $0x644] ss:$8 sps:$4 sm:$0xff]  }
0x18b0   : > { %9772 = vmatpush2.bf16.msra.mxu1 %v12496_v3  ;;  %9825 = vmatpush2.bf16.msra.mxu0 %v12499_v53  ;;  %v12535_v3 = vld [vmem:[%s13802_s1 + $0x580] ss:$8 sps:$4 sm:$0xff]   ;;  %v7923_v53 = vmax.f32 %v7777_v19, 0.0 }
0x18b1   : > { %9773 = vmatprep.subr.bf16.mxu1 %v12504_v8  ;;  %9826 = vmatprep.subr.bf16.mxu0 %v12507_v39  ;;  %v12540_v8 = vld [vmem:[%s13802_s1 + $0x674] ss:$8 sps:$4 sm:$0xff]   ;;  %v7905_v39 = vmax.f32 %v7720_v56, 0.0 }
0x18b2   : > { %v7971_v2 = vpack.c.bf16 %v7923_v53, %v7907_v46  ;;  %v12559_v46 = vld [vmem:[%s13802_s1 + $0x740] ss:$8 sps:$4 sm:$0xff]  }
0x18b4   : > { %9774 = vmatpush2.bf16.msra.mxu1 %v12502_v32  ;;  %9827 = vmatpush2.bf16.msra.mxu0 %v12505_v41  ;;  %v7954_v32 = vmax.f32 %v7736_v35, 0.0  ;;  %v7956_v41 = vmax.f32 %v7789_v57, 0.0 }
0x18b5   : > { %9775 = vmatprep.subr.bf16.mxu1 %v12510_v44  ;;  %9828 = vmatprep.subr.bf16.mxu0 %v12513_v33  ;;  %v7969_v44 = vpack.c.bf16 %v7921_v15, %v7905_v39  ;;  %v7938_v33 = vmax.f32 %v7732_v45, 0.0  ;;  %v12550_v15 = vld [vmem:[%s13802_s1 + $0x650] ss:$8 sps:$4 sm:$0xff]  }
0x18b6   : > { %v12553_v45 = vld [vmem:[%s13802_s1 + $0x750] ss:$8 sps:$4 sm:$0xff]  }
0x18b8   : > { %9776 = vmatpush2.bf16.msra.mxu1 %v12508_v47  ;;  %9829 = vmatpush2.bf16.msra.mxu0 %v12511_v51  ;;  %v7734_v47 = vadd.f32 %v7733_v0, %v6148_v16  ;;  %v7787_v51 = vadd.f32 %v7786_v7, %v6156_v10  ;;  %v12546_v0 = vld [vmem:[%s13802_s1 + $0x664] ss:$8 sps:$4 sm:$0xff]  }
0x18b9   : > { %9777 = vmatprep.subr.bf16.mxu1 %v12516_v25  ;;  %9830 = vmatprep.subr.bf16.mxu0 %v12519_v5  ;;  %v12549_v7 = vld [vmem:[%s13802_s1 + $0x764] ss:$8 sps:$4 sm:$0xff]  }
0x18ba   : > { %v7955_v38 = vmax.f32 %v7787_v51, 0.0  ;;  %v12573_v51 = vld [vmem:[%s13802_s1 + $0x724] ss:$8 sps:$4 sm:$0xff]  }
0x18bc   : > { %9778 = vmatpush2.bf16.msra.mxu1 %v12514_v26  ;;  %9831 = vmatpush2.bf16.msra.mxu0 %v12517_v37  ;;  %v7986_v26 = vpack.c.bf16 %v7954_v32, %v7938_v33  ;;  %v7988_v37 = vpack.c.bf16 %v7956_v41, %v7940_v50  ;;  %v12556_v41 = vld [vmem:[%s13802_s1 + $0x640] ss:$8 sps:$4 sm:$0xff]   ;;  %v12567_v33 = vld [vmem:[%s13802_s1 + $0x734] ss:$8 sps:$4 sm:$0xff]   ;;  %v12562_v50 = vld [vmem:[%s13802_s1 + $0x630] ss:$8 sps:$4 sm:$0xff]  }
0x18bd   : > { %9779 = vmatprep.subr.bf16.mxu1 %v12522_v22  ;;  %9832 = vmatprep.subr.bf16.mxu0 %v12525_v11  ;;  %v15618_v22 = vrot.slane %v15506_v52, %v14061_v61  ;;  %v15623_v11 = vrot.slane %v15506_v52, %v6143_v40  ;;  %v7953_v61 = vmax.f32 %v7734_v47, 0.0  ;;  %v12570_v47 = vld [vmem:[%s13802_s1 + $0x624] ss:$8 sps:$4 sm:$0xff]  }
0x18c0   : > { %9780 = vmatpush2.bf16.msra.mxu1 %v12520_v14  ;;  %9833 = vmatpush2.bf16.msra.mxu0 %v12523_v4  ;;  %v7730_v14 = vadd.f32 %v15574_v34, %v6148_v16  ;;  %v7783_v4 = vadd.f32 %v15576_v62, %v6156_v10  ;;  %v12547_v34 = vld [vmem:[%s13802_s1 + $0x760] ss:$8 sps:$4 sm:$0xff]   ;;  %v12552_v10 = vld [vmem:[%s13802_s1 + $0x654] ss:$8 sps:$4 sm:$0xff]  }
0x18c1   : > { %9781 = vmatprep.subr.bf16.mxu1 %v12528_v1  ;;  %9834 = vmatprep.subr.bf16.mxu0 %v12531_v30 }
0x18c2   : > { %v7939_v19 = vmax.f32 %v7783_v4, 0.0  ;;  %v12585_v4 = vld [vmem:[%s13802_s1 + $0x704] ss:$8 sps:$4 sm:$0xff]  }
0x18c4   : > { %9782 = vmatpush2.bf16.msra.mxu1 %v12526_v6  ;;  %9835 = vmatpush2.bf16.msra.mxu0 %v12529_v12  ;;  %v12555_v6 = vld [vmem:[%s13802_s1 + $0x754] ss:$8 sps:$4 sm:$0xff]   ;;  %v7937_v12 = vmax.f32 %v7730_v14, 0.0  ;;  %v7987_v13 = vpack.c.bf16 %v7955_v38, %v7939_v19  ;;  %v12582_v14 = vld [vmem:[%s13802_s1 + $0x604] ss:$8 sps:$4 sm:$0xff]  }
0x18c5   : > { %9783 = vmatprep.subr.bf16.mxu1 %v12534_v58  ;;  %9836 = vmatprep.subr.bf16.mxu0 %v12537_v27  ;;  %v12591_v38 = vld [vmem:[%s13802_s1 + $0x7f4] ss:$8 sps:$4 sm:$0xff]  }
0x18c6   : > { %v7985_v57 = vpack.c.bf16 %v7953_v61, %v7937_v12  ;;  %v12588_v61 = vld [vmem:[%s13802_s1 + $0x6f4] ss:$8 sps:$4 sm:$0xff]  }
0x18c7   : > { %v12600_v12 = vld [vmem:[%s13802_s1 + $0x6d4] ss:$8 sps:$4 sm:$0xff]  }
0x18c8   : > { %9784 = vmatpush2.bf16.msra.mxu1 %v12532_v20  ;;  %9837 = vmatpush2.bf16.msra.mxu0 %v12535_v3  ;;  %v12603_v19 = vld [vmem:[%s13802_s1 + $0x7d4] ss:$8 sps:$4 sm:$0xff]  }
0x18c9   : > { %v15610_v25 = vpop.f32.mrf.mxu1  ;;  %v15612_v5 = vpop.f32.mrf.mxu0  ;;  %9859 = vmatprep.subr.bf16.mxu1 %v12540_v8  ;;  %9912 = vmatprep.subr.bf16.mxu0 %v12543_v24  ;;  %v12561_v24 = vld [vmem:[%s13802_s1 + $0x744] ss:$8 sps:$4 sm:$0xff]  }
0x18cb   : > { %9786 = vmatmul.mubr.bf16.vlgmr.msra.gmra.mxu1 %v7969_v44  ;;  %9839 = vmatmul.mubr.bf16.vlgmr.msra.gmra.mxu0 %v7971_v2  ;;  %v7827_v1 = vpop.f32.mrf.mxu1  ;;  %v7880_v30 = vpop.f32.mrf.mxu0  ;;  %v12564_v44 = vld [vmem:[%s13802_s1 + $0x634] ss:$8 sps:$4 sm:$0xff]   ;;  %v12565_v2 = vld [vmem:[%s13802_s1 + $0x730] ss:$8 sps:$4 sm:$0xff]  }
0x18cc   : > { %9795 = vmatprep.mubr.bf16.mxu1 %v7986_v26  ;;  %9848 = vmatprep.mubr.bf16.mxu0 %v7988_v37  ;;  %v7828_v62 = vadd.f32 %v7827_v1, %v15618_v22  ;;  %v7881_v16 = vadd.f32 %v7880_v30, %v15623_v11  ;;  %v12576_v26 = vld [vmem:[%s13802_s1 + $0x614] ss:$8 sps:$4 sm:$0xff]   ;;  %v12580_v1 = vld [vmem:[%s13802_s1 + $0x600] ss:$8 sps:$4 sm:$0xff]  }
0x18cd   : > { %9860 = vmatpush1.bf16.msra.mxu1 %v12538_v48  ;;  %9913 = vmatpush1.bf16.msra.mxu0 %v12541_v36  ;;  %v15629_v40 = vpop.f32.mrf.mxu1  ;;  %v15631_v17 = vpop.f32.mrf.mxu0  ;;  %v12568_v48 = vld [vmem:[%s13802_s1 + $0x620] ss:$8 sps:$4 sm:$0xff]   ;;  %v12579_v37 = vld [vmem:[%s13802_s1 + $0x714] ss:$8 sps:$4 sm:$0xff]  }
0x18ce   : > { %9861 = vmatprep.subr.bf16.mxu1 %v12546_v0  ;;  %9914 = vmatprep.subr.bf16.mxu0 %v12549_v7  ;;  %v7910_v20 = vmax.f32 %v7828_v62, 0.0  ;;  %v7912_v3 = vmax.f32 %v7881_v16, 0.0  ;;  %v12571_v36 = vld [vmem:[%s13802_s1 + $0x720] ss:$8 sps:$4 sm:$0xff]   ;;  %v12574_v0 = vld [vmem:[%s13802_s1 + $0x610] ss:$8 sps:$4 sm:$0xff]  }
0x18cf   : > { %v7831_v58 = vpop.f32.mrf.mxu1  ;;  %v7884_v27 = vpop.f32.mrf.mxu0  ;;  %v12577_v7 = vld [vmem:[%s13802_s1 + $0x710] ss:$8 sps:$4 sm:$0xff]   ;;  %v12583_v30 = vld [vmem:[%s13802_s1 + $0x700] ss:$8 sps:$4 sm:$0xff]   ;;  %v12594_v62 = vld [vmem:[%s13802_s1 + $0x6e4] ss:$8 sps:$4 sm:$0xff]  }
0x18d0   : > { %v7832_v56 = vadd.f32 %v7831_v58, %v15618_v22  ;;  %v7885_v35 = vadd.f32 %v7884_v27, %v15623_v11  ;;  %v12597_v16 = vld [vmem:[%s13802_s1 + $0x7e4] ss:$8 sps:$4 sm:$0xff]   ;;  %v12598_v58 = vld [vmem:[%s13802_s1 + $0x6d0] ss:$8 sps:$4 sm:$0xff]  }
0x18d1   : > { %9862 = vmatpush1.bf16.msra.mxu1 %v12544_v49  ;;  %9915 = vmatpush1.bf16.msra.mxu0 %v12547_v34  ;;  %v12586_v49 = vld [vmem:[%s13802_s1 + $0x6f0] ss:$8 sps:$4 sm:$0xff]  }
0x18d2   : > { %v7926_v53 = vmax.f32 %v7832_v56, 0.0  ;;  %v7928_v8 = vmax.f32 %v7885_v35, 0.0  ;;  %9863 = vmatprep.subr.bf16.mxu1 %v12552_v10  ;;  %9916 = vmatprep.subr.bf16.mxu0 %v12555_v6  ;;  %v12589_v34 = vld [vmem:[%s13802_s1 + $0x7f0] ss:$8 sps:$4 sm:$0xff]   ;;  %v12592_v10 = vld [vmem:[%s13802_s1 + $0x6e0] ss:$8 sps:$4 sm:$0xff]  }
0x18d3   : > { %9796 = vmatmul.mubr.bf16.gmra.mxu1 %v7985_v57  ;;  %9849 = vmatmul.mubr.bf16.gmra.mxu0 %v7987_v13  ;;  %v12595_v6 = vld [vmem:[%s13802_s1 + $0x7e0] ss:$8 sps:$4 sm:$0xff]   ;;  %v12601_v27 = vld [vmem:[%s13802_s1 + $0x7d0] ss:$8 sps:$4 sm:$0xff]   ;;  %v12606_v56 = vld [vmem:[%s13802_s1 + $0x6c4] ss:$8 sps:$4 sm:$0xff]   ;;  %v15677_v57 = vpop.f32.mrf.mxu1  ;;  %v15679_v13 = vpop.f32.mrf.mxu0 }
0x18d4   : > { %v7974_v39 = vpack.c.bf16 %v7926_v53, %v7910_v20  ;;  %v7976_v32 = vpack.c.bf16 %v7928_v8, %v7912_v3  ;;  %v12609_v35 = vld [vmem:[%s13802_s1 + $0x7c4] ss:$8 sps:$4 sm:$0xff]   ;;  %v12615_v20 = vld [vmem:[%s13802_s1 + $0x7b4] ss:$8 sps:$4 sm:$0xff]   ;;  %v12610_v8 = vld [vmem:[%s13802_s1 + $0x6b0] ss:$8 sps:$4 sm:$0xff]  }
0x18d5   : > { %9864 = vmatpush1.bf16.msra.mxu1 %v12550_v15  ;;  %9917 = vmatpush1.bf16.msra.mxu0 %v12553_v45  ;;  %v12604_v15 = vld [vmem:[%s13802_s1 + $0x6c0] ss:$8 sps:$4 sm:$0xff]   ;;  %v7837_v3 = vpop.f32.mrf.mxu1  ;;  %v7890_v53 = vpop.f32.mrf.mxu0 }
0x18d6   : > { %9865 = vmatprep.subr.bf16.mxu1 %v12558_v21  ;;  %9918 = vmatprep.subr.bf16.mxu0 %v12561_v24  ;;  %v12607_v45 = vld [vmem:[%s13802_s1 + $0x7c0] ss:$8 sps:$4 sm:$0xff]   ;;  %v12612_v21 = vld [vmem:[%s13802_s1 + $0x6b4] ss:$8 sps:$4 sm:$0xff]   ;;  %v12613_v24 = vld [vmem:[%s13802_s1 + $0x7b0] ss:$8 sps:$4 sm:$0xff]  }
0x18d7   : > { %9891 = vmatprep.mubr.bf16.mxu1 %v7974_v39  ;;  %9944 = vmatprep.mubr.bf16.mxu0 %v7976_v32  ;;  %v12618_v39 = vld [vmem:[%s13802_s1 + $0x6a4] ss:$8 sps:$4 sm:$0xff]  }
0x18d8   : > { %v12621_v32 = vld [vmem:[%s13802_s1 + $0x7a4] ss:$8 sps:$4 sm:$0xff]  }
0x18d9   : > { %9866 = vmatpush1.bf16.msra.mxu1 %v12556_v41  ;;  %9919 = vmatpush1.bf16.msra.mxu0 %v12559_v46  ;;  %v7839_v41 = vpop.f32.mrf.mxu1  ;;  %v7892_v46 = vpop.f32.mrf.mxu0 }
0x18da   : > { %9867 = vmatprep.subr.bf16.mxu1 %v12564_v44  ;;  %9920 = vmatprep.subr.bf16.mxu0 %v12567_v33  ;;  %v12616_v44 = vld [vmem:[%s13802_s1 + $0x6a0] ss:$8 sps:$4 sm:$0xff]  }
0x18db   : > { %v12619_v33 = vld [vmem:[%s13802_s1 + $0x7a0] ss:$8 sps:$4 sm:$0xff]  }
0x18dd   : > { %9868 = vmatpush1.bf16.msra.mxu1 %v12562_v50  ;;  %9921 = vmatpush1.bf16.msra.mxu0 %v12565_v2  ;;  %v12624_v50 = vld [vmem:[%s13802_s1 + $0x694] ss:$8 sps:$4 sm:$0xff]  }
0x18de   : > { %9869 = vmatprep.subr.bf16.mxu1 %v12570_v47  ;;  %9922 = vmatprep.subr.bf16.mxu0 %v12573_v51  ;;  %v12627_v2 = vld [vmem:[%s13802_s1 + $0x794] ss:$8 sps:$4 sm:$0xff]   ;;  %v6164_v47 = vrot.slane %v15506_v52, %v14058_v54  ;;  %v6172_v51 = vrot.slane %v15506_v52, %v6139_v28  ;;  %v12633_v54 = vld [vmem:[%s13802_s1 + $0x784] ss:$8 sps:$4 sm:$0xff]  }
0x18e0   : > { %v7826_v52 = vadd.f32 %v15610_v25, %v6164_v47 }
0x18e1   : > { %9870 = vmatpush1.bf16.msra.mxu1 %v12568_v48  ;;  %9923 = vmatpush1.bf16.msra.mxu0 %v12571_v36  ;;  %v7841_v48 = vpop.f32.mrf.mxu1  ;;  %v7894_v36 = vpop.f32.mrf.mxu0 }
0x18e2   : > { %9871 = vmatprep.subr.bf16.mxu1 %v12576_v26  ;;  %9924 = vmatprep.subr.bf16.mxu0 %v12579_v37  ;;  %v12622_v26 = vld [vmem:[%s13802_s1 + $0x690] ss:$8 sps:$4 sm:$0xff]   ;;  %v7842_v55 = vadd.f32 %v7841_v48, %v15618_v22  ;;  %v7895_v28 = vadd.f32 %v7894_v36, %v15623_v11 }
0x18e3   : > { %v12625_v37 = vld [vmem:[%s13802_s1 + $0x790] ss:$8 sps:$4 sm:$0xff]  }
0x18e5   : > { %9872 = vmatpush1.bf16.msra.mxu1 %v12574_v0  ;;  %9925 = vmatpush1.bf16.msra.mxu0 %v12577_v7  ;;  %v7830_v0 = vadd.f32 %v15629_v40, %v6164_v47  ;;  %v7883_v7 = vadd.f32 %v15631_v17, %v6172_v51  ;;  %v12628_v40 = vld [vmem:[%s13802_s1 + $0x680] ss:$8 sps:$4 sm:$0xff]  }
0x18e6   : > { %9873 = vmatprep.subr.bf16.mxu1 %v12582_v14  ;;  %9926 = vmatprep.subr.bf16.mxu0 %v12585_v4  ;;  %v12630_v14 = vld [vmem:[%s13802_s1 + $0x684] ss:$8 sps:$4 sm:$0xff]   ;;  %v7879_v4 = vadd.f32 %v15612_v5, %v6172_v51  ;;  %v12631_v17 = vld [vmem:[%s13802_s1 + $0x780] ss:$8 sps:$4 sm:$0xff]  }
0x18e9   : > { %9874 = vmatpush1.bf16.msra.mxu1 %v12580_v1  ;;  %9927 = vmatpush1.bf16.msra.mxu0 %v12583_v30  ;;  %v7838_v1 = vadd.f32 %v7837_v3, %v15618_v22  ;;  %v7891_v30 = vadd.f32 %v7890_v53, %v15623_v11  ;;  %v7893_v11 = vadd.f32 %v7892_v46, %v6172_v51 }
0x18ea   : > { %9875 = vmatprep.subr.bf16.mxu1 %v12588_v61  ;;  %9928 = vmatprep.subr.bf16.mxu0 %v12591_v38  ;;  %v7925_v61 = vmax.f32 %v7830_v0, 0.0  ;;  %v7927_v38 = vmax.f32 %v7883_v7, 0.0 }
0x18eb   : > { %v7944_v25 = vmax.f32 %v7891_v30, 0.0 }
0x18ed   : > { %9876 = vmatpush2.bf16.msra.mxu1 %v12586_v49  ;;  %9929 = vmatpush2.bf16.msra.mxu0 %v12589_v34  ;;  %v7958_v49 = vmax.f32 %v7842_v55, 0.0  ;;  %v7960_v34 = vmax.f32 %v7895_v28, 0.0 }
0x18ee   : > { %9877 = vmatprep.subr.bf16.mxu1 %v12594_v62  ;;  %9930 = vmatprep.subr.bf16.mxu0 %v12597_v16  ;;  %v7909_v62 = vmax.f32 %v7826_v52, 0.0  ;;  %v7911_v16 = vmax.f32 %v7879_v4, 0.0 }
0x18f0   : > { %v7973_v5 = vpack.c.bf16 %v7925_v61, %v7909_v62  ;;  %v7975_v22 = vpack.c.bf16 %v7927_v38, %v7911_v16  ;;  %v8249_v62 = vld [vmem:[%s15867_s0] sm:$0x3] }
0x18f1   : > { %9878 = vmatpush2.bf16.msra.mxu1 %v12592_v10  ;;  %9931 = vmatpush2.bf16.msra.mxu0 %v12595_v6  ;;  %v7942_v10 = vmax.f32 %v7838_v1, 0.0  ;;  %v7840_v6 = vadd.f32 %v7839_v41, %v6164_v47 }
0x18f2   : > { %9879 = vmatprep.subr.bf16.mxu1 %v12600_v12  ;;  %9932 = vmatprep.subr.bf16.mxu0 %v12603_v19  ;;  %v7992_v19 = vpack.c.bf16 %v7960_v34, %v7944_v25  ;;  %v8254_v25 = vrot.slane %v8249_v62, %v13976_v59 }
0x18f3   : > { %v7990_v12 = vpack.c.bf16 %v7958_v49, %v7942_v10 }
0x18f5   : > { %9880 = vmatpush2.bf16.msra.mxu1 %v12598_v58  ;;  %9933 = vmatpush2.bf16.msra.mxu0 %v12601_v27  ;;  %v7836_v58 = vadd.f32 %v15677_v57, %v6164_v47  ;;  %v7889_v27 = vadd.f32 %v15679_v13, %v6172_v51 }
0x18f6   : > { %9881 = vmatprep.subr.bf16.mxu1 %v12606_v56  ;;  %9934 = vmatprep.subr.bf16.mxu0 %v12609_v35  ;;  %v7957_v56 = vmax.f32 %v7840_v6, 0.0  ;;  %v7959_v35 = vmax.f32 %v7893_v11, 0.0 }
0x18f9   : > { %9882 = vmatpush2.bf16.msra.mxu1 %v12604_v15  ;;  %9935 = vmatpush2.bf16.msra.mxu0 %v12607_v45  ;;  %v7941_v15 = vmax.f32 %v7836_v58, 0.0  ;;  %v7943_v45 = vmax.f32 %v7889_v27, 0.0 }
0x18fa   : > { %9883 = vmatprep.subr.bf16.mxu1 %v12612_v21  ;;  %9936 = vmatprep.subr.bf16.mxu0 %v12615_v20 }
0x18fb   : > { %v7989_v21 = vpack.c.bf16 %v7957_v56, %v7941_v15  ;;  %v7991_v20 = vpack.c.bf16 %v7959_v35, %v7943_v45 }
0x18fd   : > { %9884 = vmatpush2.bf16.msra.mxu1 %v12610_v8  ;;  %9937 = vmatpush2.bf16.msra.mxu0 %v12613_v24 }
0x18fe   : > { %9885 = vmatprep.subr.bf16.mxu1 %v12618_v39  ;;  %9938 = vmatprep.subr.bf16.mxu0 %v12621_v32 }
0x1901   : > { %9886 = vmatpush2.bf16.msra.mxu1 %v12616_v44  ;;  %9939 = vmatpush2.bf16.msra.mxu0 %v12619_v33 }
0x1902   : > { %9887 = vmatprep.subr.bf16.mxu1 %v12624_v50  ;;  %9940 = vmatprep.subr.bf16.mxu0 %v12627_v2 }
0x1905   : > { %9888 = vmatpush2.bf16.msra.mxu1 %v12622_v26  ;;  %9941 = vmatpush2.bf16.msra.mxu0 %v12625_v37 }
0x1906   : > { %9889 = vmatprep.subr.bf16.mxu1 %v12630_v14  ;;  %9942 = vmatprep.subr.bf16.mxu0 %v12633_v54 }
0x1909   : > { %9890 = vmatpush2.bf16.msra.mxu1 %v12628_v40  ;;  %9943 = vmatpush2.bf16.msra.mxu0 %v12631_v17 }
0x190a   : > { %v9575_v3 = vpop.f32.mrf.mxu1  ;;  %v9628_v53 = vpop.f32.mrf.mxu0 }
0x190b   : > { %v9576_v11 = vadd.f32 %v9575_v3, %v8254_v25 }
0x190c   : > { %9892 = vmatmul.mubr.bf16.vlgmr.msra.gmra.mxu1 %v7973_v5  ;;  %9945 = vmatmul.mubr.bf16.vlgmr.msra.gmra.mxu0 %v7975_v22  ;;  %v9577_v8 = vpop.f32.mrf.mxu1  ;;  %v9630_v24 = vpop.f32.mrf.mxu0  ;;  %v8258_v5 = vrot.slane %v8249_v62, %v13979_v60 }
0x190d   : > { %9901 = vmatprep.mubr.bf16.mxu1 %v7990_v12  ;;  %9954 = vmatprep.mubr.bf16.mxu0 %v7992_v19  ;;  %v9629_v27 = vadd.f32 %v9628_v53, %v9576_v11 }
0x190e   : > { %v9579_v39 = vpop.f32.mrf.mxu1  ;;  %v9632_v57 = vpop.f32.mrf.mxu0  ;;  %v9578_v12 = vadd.f32 %v9577_v8, %v8258_v5 }
0x190f   : > { %v9580_v56 = vadd.f32 %v9579_v39, %v8254_v25 }
0x1910   : > { %v9581_v32 = vpop.f32.mrf.mxu1  ;;  %v9634_v13 = vpop.f32.mrf.mxu0  ;;  %v9631_v35 = vadd.f32 %v9630_v24, %v9578_v12 }
0x1911   : > { %v9582_v15 = vadd.f32 %v9581_v32, %v8258_v5  ;;  %v9633_v23 = vadd.f32 %v9632_v57, %v9580_v56 }
0x1912   : > { %v9585_v41 = vpop.f32.mrf.mxu1  ;;  %v9638_v46 = vpop.f32.mrf.mxu0 }
0x1913   : > { %v9635_v59 = vadd.f32 %v9634_v13, %v9582_v15 }
0x1914   : > { %9902 = vmatmul.mubr.bf16.gmra.mxu1 %v7989_v21  ;;  %9955 = vmatmul.mubr.bf16.gmra.mxu0 %v7991_v20  ;;  %v9587_v44 = vpop.f32.mrf.mxu1  ;;  %v9640_v33 = vpop.f32.mrf.mxu0  ;;  %v9586_v21 = vadd.f32 %v9585_v41, %v8254_v25 }
0x1915   : > { %v9588_v43 = vadd.f32 %v9587_v44, %v8258_v5 }
0x1916   : > { %v9589_v50 = vpop.f32.mrf.mxu1  ;;  %v9642_v2 = vpop.f32.mrf.mxu0  ;;  %v9639_v60 = vadd.f32 %v9638_v46, %v9586_v21 }
0x1917   : > { %v9590_v9 = vadd.f32 %v9589_v50, %v8254_v25  ;;  %v9641_v39 = vadd.f32 %v9640_v33, %v9588_v43 }
0x1918   : > { %v9591_v47 = vpop.f32.mrf.mxu1  ;;  %v15714_v51 = vpop.f32.mrf.mxu0 }
0x1919   : > { %v9592_v24 = vadd.f32 %v9591_v47, %v8258_v5  ;;  %v9643_v11 = vadd.f32 %v9642_v2, %v9590_v9 }
0x194a   : > { %v9681_v48 = vpop.f32.mrf.mxu1  ;;  %v9734_v36 = vpop.f32.mrf.mxu0 }
0x194b   : > { %v9682_v45 = vadd.f32 %v9681_v48, %v9629_v27 }
0x194c   : > { %v9683_v26 = vpop.f32.mrf.mxu1  ;;  %v9736_v37 = vpop.f32.mrf.mxu0 }
0x194d   : > { %v9684_v18 = vadd.f32 %v9683_v26, %v9631_v35  ;;  %v9735_v31 = vadd.f32 %v9734_v36, %v9682_v45 }
0x194e   : > { %v9685_v0 = vpop.f32.mrf.mxu1  ;;  %v9738_v7 = vpop.f32.mrf.mxu0 }
0x194f   : > { %v9686_v62 = vadd.f32 %v9685_v0, %v9633_v23  ;;  %v9737_v29 = vadd.f32 %v9736_v37, %v9684_v18  ;;  %v9645_v23 = vadd.f32 %v15714_v51, %v9592_v24 }
0x1950   : > { %v9687_v14 = vpop.f32.mrf.mxu1  ;;  %v9740_v54 = vpop.f32.mrf.mxu0 }
0x1951   : > { %v9688_v63 = vadd.f32 %v9687_v14, %v9635_v59  ;;  %v9739_v48 = vadd.f32 %v9738_v7, %v9686_v62 }
0x1952   : > { %v9691_v55 = vpop.f32.mrf.mxu1  ;;  %v9744_v28 = vpop.f32.mrf.mxu0 }
0x1953   : > { %v9692_v32 = vadd.f32 %v9691_v55, %v9639_v60  ;;  %v9741_v44 = vadd.f32 %v9740_v54, %v9688_v63 }
0x1954   : > { %v9693_v52 = vpop.f32.mrf.mxu1  ;;  %v9746_v4 = vpop.f32.mrf.mxu0 }
0x1955   : > { %v9694_v12 = vadd.f32 %v9693_v52, %v9641_v39  ;;  %v9745_v46 = vadd.f32 %v9744_v28, %v9692_v32 }
0x1956   : > { %v9695_v1 = vpop.f32.mrf.mxu1  ;;  %v15716_v30 = vpop.f32.mrf.mxu0 }
0x1957   : > { %v9696_v50 = vadd.f32 %v9695_v1, %v9643_v11  ;;  %v9747_v33 = vadd.f32 %v9746_v4, %v9694_v12  ;;  %v15872_v12 = vld [vmem:[#allocation44_spill] sm:$0xff] }
0x1958   : > { %v9697_v40 = vpop.f32.mrf.mxu1  ;;  %v15718_v17 = vpop.f32.mrf.mxu0 }
0x1959   : > { %v9698_v60 = vadd.f32 %v9697_v40, %v9645_v23  ;;  %v9749_v63 = vadd.f32 %v15716_v30, %v9696_v50 }
0x195b   : > { %v9751_v1 = vadd.f32 %v15718_v17, %v9698_v60 }
0x198b   : > { %v9787_v61 = vpop.f32.mrf.mxu1  ;;  %v9840_v38 = vpop.f32.mrf.mxu0 }
0x198c   : > { %v9788_v53 = vadd.f32 %v9787_v61, %v9735_v31 }
0x198d   : > { %v9789_v49 = vpop.f32.mrf.mxu1  ;;  %v9842_v34 = vpop.f32.mrf.mxu0 }
0x198e   : > { %v9790_v41 = vadd.f32 %v9789_v49, %v9737_v29  ;;  %v9841_v13 = vadd.f32 %v9840_v38, %v9788_v53  ;;  %v15868_v49 = vld [vmem:[#allocation40_spill] sm:$0xff] }
0x198f   : > { %v9791_v16 = vpop.f32.mrf.mxu1  ;;  %v9844_v10 = vpop.f32.mrf.mxu0 }
0x1990   : > { %v9792_v36 = vadd.f32 %v9791_v16, %v9739_v48  ;;  %v9843_v59 = vadd.f32 %v9842_v34, %v9790_v41  ;;  %v15869_v16 = vld [vmem:[#allocation41_spill] sm:$0xff] }
0x1991   : > { %v9793_v22 = vpop.f32.mrf.mxu1  ;;  %v9846_v6 = vpop.f32.mrf.mxu0 }
0x1992   : > { %v9794_v31 = vadd.f32 %v9793_v22, %v9741_v44  ;;  %v9845_v2 = vadd.f32 %v9844_v10, %v9792_v36  ;;  %v15873_v44 = vld [vmem:[#allocation45_spill] sm:$0xff] }
0x1993   : > { %v9797_v19 = vpop.f32.mrf.mxu1  ;;  %v9850_v58 = vpop.f32.mrf.mxu0 }
0x1994   : > { %v9798_v47 = vadd.f32 %v9797_v19, %v9745_v46  ;;  %v9847_v55 = vadd.f32 %v9846_v6, %v9794_v31 }
0x1995   : > { %v9799_v20 = vpop.f32.mrf.mxu1  ;;  %v9852_v42 = vpop.f32.mrf.mxu0 }
0x1996   : > { %v9800_v14 = vadd.f32 %v9799_v20, %v9747_v33  ;;  %v9851_v61 = vadd.f32 %v9850_v58, %v9798_v47  ;;  %v15870_v58 = vld [vmem:[#allocation42_spill] sm:$0xff]  ;;  %v15871_v20 = vld [vmem:[#allocation43_spill] sm:$0xff] }
0x1997   : > { %v9801_v3 = vpop.f32.mrf.mxu1  ;;  %v9854_v8 = vpop.f32.mrf.mxu0 }
0x1998   : > { %v9802_v38 = vadd.f32 %v9801_v3, %v9749_v63  ;;  %v9853_v22 = vadd.f32 %v9852_v42, %v9800_v14 }
0x1999   : > { %v9803_v57 = vpop.f32.mrf.mxu1  ;;  %v9856_v26 = vpop.f32.mrf.mxu0 }
0x199a   : > { %v9804_v27 = vadd.f32 %v9803_v57, %v9751_v1  ;;  %v9855_v15 = vadd.f32 %v9854_v8, %v9802_v38 }
0x199c   : > { %v9857_v32 = vadd.f32 %v9856_v26, %v9804_v27 }
0x19cc   : > { %v9893_v0 = vpop.f32.mrf.mxu1  ;;  %v9946_v18 = vpop.f32.mrf.mxu0 }
0x19cd   : > { %v9894_v43 = vadd.f32 %v9893_v0, %v9841_v13  ;;  %v15874_v0 = vld [vmem:[#allocation46_spill] sm:$0xff] }
0x19ce   : > { %v9895_v29 = vpop.f32.mrf.mxu1  ;;  %v9948_v9 = vpop.f32.mrf.mxu0 }
0x19cf   : > { %v9947_v37 = vadd.f32 %v9946_v18, %v9894_v43  ;;  %v9896_v7 = vadd.f32 %v9895_v29, %v9843_v59  ;;  %v15875_v59 = vld [vmem:[#allocation47_spill] sm:$0xff] }
0x19d0   : > { %v9897_v54 = vpop.f32.mrf.mxu1  ;;  %v9950_v51 = vpop.f32.mrf.mxu0 }
0x19d1   : > { %v9949_v28 = vadd.f32 %v9948_v9, %v9896_v7  ;;  %v9898_v52 = vadd.f32 %v9897_v54, %v9845_v2  ;;  %v9965_v34 = vadd.f32 %v9947_v37, %v15868_v49 }
0x19d2   : > { %v9899_v4 = vpop.f32.mrf.mxu1  ;;  %v9952_v40 = vpop.f32.mrf.mxu0 }
0x19d3   : > { %v9966_v10 = vadd.f32 %v9949_v28, %v15869_v16  ;;  %v9951_v25 = vadd.f32 %v9950_v51, %v9898_v52  ;;  %v9900_v5 = vadd.f32 %v9899_v4, %v9847_v55 }
0x19d4   : > { %v9903_v30 = vpop.f32.mrf.mxu1  ;;  %v9956_v19 = vpop.f32.mrf.mxu0 }
0x19d5   : > { %v9953_v56 = vadd.f32 %v9952_v40, %v9900_v5  ;;  %v9904_v6 = vadd.f32 %v9903_v30, %v9851_v61  ;;  %v9975_v35 = vadd.f32 %v9966_v10, %v9965_v34  ;;  %v9967_v21 = vadd.f32 %v9951_v25, %v15870_v58 }
0x19d6   : > { %v9905_v45 = vpop.f32.mrf.mxu1  ;;  %v9958_v17 = vpop.f32.mrf.mxu0 }
0x19d7   : > { %v9968_v62 = vadd.f32 %v9953_v56, %v15871_v20  ;;  %v9957_v3 = vadd.f32 %v9956_v19, %v9904_v6  ;;  %v9906_v53 = vadd.f32 %v9905_v45, %v9853_v22  ;;  %9976 = vadd.xlane.f32.xlu0 %v9975_v35  ;;  %v9973_v20 = vld [vmem:[%s15876_s27] sm:$0x3] }
0x19d8   : > { %v9907_v39 = vpop.f32.mrf.mxu1  ;;  %v9960_v24 = vpop.f32.mrf.mxu0 }
0x19d9   : > { %v9959_v42 = vadd.f32 %v9958_v17, %v9906_v53  ;;  %v9908_v48 = vadd.f32 %v9907_v39, %v9855_v15  ;;  %v9978_v41 = vadd.f32 %v9968_v62, %v9967_v21  ;;  %v9969_v57 = vadd.f32 %v9957_v3, %v15872_v12  ;;  %v9974_v3 = vld [vmem:[%s15877_s25] sm:$0x3]  ;;  %v15878_v53 = vld [vmem:[#allocation38_spill] sm:$0xff] }
0x19da   : > { %v9909_v11 = vpop.f32.mrf.mxu1  ;;  %v9962_v23 = vpop.f32.mrf.mxu0  ;;  %v10043_v39 = vrot.slane %v9973_v20, %v15878_v53 }
0x19db   : > { %v9970_v8 = vadd.f32 %v9959_v42, %v15873_v44  ;;  %v9961_v13 = vadd.f32 %v9960_v24, %v9908_v48  ;;  %v9910_v36 = vadd.f32 %v9909_v11, %v9857_v32  ;;  %9979 = vadd.xlane.f32.xlu1 %v9978_v41  ;;  %v15879_v24 = vld [vmem:[#allocation39_spill] sm:$0xff]  ;;  %v10062_v48 = vrot.slane %v9974_v3, %v15878_v53 }
0x19dc   : > { %v10047_v32 = vrot.slane %v9973_v20, %v15879_v24  ;;  %v10066_v41 = vrot.slane %v9974_v3, %v15879_v24 }
0x19dd   : > { %v9963_v46 = vadd.f32 %v9962_v23, %v9910_v36  ;;  %v9981_v50 = vadd.f32 %v9970_v8, %v9969_v57  ;;  %v9971_v18 = vadd.f32 %v9961_v13, %v15874_v0 }
0x19df   : > { %v9972_v31 = vadd.f32 %v9963_v46, %v15875_v59  ;;  %9982 = vadd.xlane.f32.xlu0 %v9981_v50 }
0x19e1   : > { %v9984_v26 = vadd.f32 %v9972_v31, %v9971_v18 }
0x19e3   : > { %9985 = vadd.xlane.f32.xlu1 %v9984_v26 }
0x1a60   : > { %v9977_v43 = vpop.xlane.xlu0 %9976 }
0x1a61   : > { %v9987_v33 = vmul.f32 0.00390625, %v9977_v43 }
0x1a63   : > { %v9991_v60 = vsub.f32 %v9965_v34, %v9987_v33  ;;  %v9992_v47 = vsub.f32 %v9966_v10, %v9987_v33 }
0x1a64   : > { %v9980_v29 = vpop.xlane.xlu1 %9979 }
0x1a65   : > { %v9999_v9 = vmul.f32 %v9991_v60, %v9991_v60  ;;  %v10000_v2 = vmul.f32 %v9992_v47, %v9992_v47  ;;  %v9988_v37 = vmul.f32 0.00390625, %v9980_v29 }
0x1a67   : > { %v9993_v7 = vsub.f32 %v9967_v21, %v9988_v37  ;;  %v9994_v63 = vsub.f32 %v9968_v62, %v9988_v37  ;;  %v10007_v14 = vadd.f32 %v10000_v2, %v9999_v9 }
0x1a68   : > { %v9983_v54 = vpop.xlane.xlu0 %9982 }
0x1a69   : > { %v10001_v51 = vmul.f32 %v9993_v7, %v9993_v7  ;;  %v10002_v55 = vmul.f32 %v9994_v63, %v9994_v63  ;;  %v9989_v28 = vmul.f32 0.00390625, %v9983_v54  ;;  %10008 = vadd.xlane.f32.xlu0 %v10007_v14 }
0x1a6b   : > { %v9995_v52 = vsub.f32 %v9969_v57, %v9989_v28  ;;  %v9996_v1 = vsub.f32 %v9970_v8, %v9989_v28  ;;  %v10010_v61 = vadd.f32 %v10002_v55, %v10001_v51 }
0x1a6c   : > { %v9986_v38 = vpop.xlane.xlu1 %9985 }
0x1a6d   : > { %v10003_v4 = vmul.f32 %v9995_v52, %v9995_v52  ;;  %v10004_v40 = vmul.f32 %v9996_v1, %v9996_v1  ;;  %v9990_v49 = vmul.f32 0.00390625, %v9986_v38  ;;  %10011 = vadd.xlane.f32.xlu1 %v10010_v61 }
0x1a6f   : > { %v9997_v34 = vsub.f32 %v9971_v18, %v9990_v49  ;;  %v9998_v16 = vsub.f32 %v9972_v31, %v9990_v49  ;;  %v10013_v10 = vadd.f32 %v10004_v40, %v10003_v4 }
0x1a71   : > { %v10005_v25 = vmul.f32 %v9997_v34, %v9997_v34  ;;  %v10006_v5 = vmul.f32 %v9998_v16, %v9998_v16  ;;  %10014 = vadd.xlane.f32.xlu0 %v10013_v10 }
0x1a73   : > { %v10016_v22 = vadd.f32 %v10006_v5, %v10005_v25 }
0x1a75   : > { %10017 = vadd.xlane.f32.xlu1 %v10016_v22 }
0x1af2   : > { %v10009_v30 = vpop.xlane.xlu0 %10008 }
0x1af3   : > { %v10019_v19 = vmul.f32 0.00390625, %v10009_v30 }
0x1af5   : > { %v10023_v27 = vadd.f32 1e-05, %v10019_v19 }
0x1af6   : > { %v10012_v56 = vpop.xlane.xlu1 %10011 }
0x1af7   : > { %12770 = vrsqrt.f32 %v10023_v27  ;;  %v10020_v6 = vmul.f32 0.00390625, %v10012_v56 }
0x1af9   : > { %v10024_v35 = vadd.f32 1e-05, %v10020_v6 }
0x1afa   : > { %v10015_v15 = vpop.xlane.xlu0 %10014 }
0x1afb   : > { %12772 = vrsqrt.f32 %v10024_v35  ;;  %v10021_v45 = vmul.f32 0.00390625, %v10015_v15 }
0x1afd   : > { %v10025_v17 = vadd.f32 1e-05, %v10021_v45 }
0x1afe   : > { %v10018_v58 = vpop.xlane.xlu1 %10017 }
0x1aff   : > { %12774 = vrsqrt.f32 %v10025_v17  ;;  %v10022_v21 = vmul.f32 0.00390625, %v10018_v58 }
0x1b01   : > { %v10026_v62 = vadd.f32 1e-05, %v10022_v21 }
0x1b03   : > { %12776 = vrsqrt.f32 %v10026_v62 }
0x1b04   : > { %v12771_v42 = vpop.eup %12770 }
0x1b05   : > { %v10031_v11 = vmul.f32 %v12771_v42, %v9991_v60  ;;  %v10032_v12 = vmul.f32 %v12771_v42, %v9992_v47 }
0x1b07   : > { %v10050_v57 = vmul.f32 %v10043_v39, %v10031_v11  ;;  %v10051_v44 = vmul.f32 %v10047_v32, %v10032_v12 }
0x1b08   : > { %v12773_v8 = vpop.eup %12772 }
0x1b09   : > { %v10069_v13 = vadd.f32 %v10062_v48, %v10050_v57  ;;  %v10070_v36 = vadd.f32 %v10066_v41, %v10051_v44  ;;  %v10033_v23 = vmul.f32 %v12773_v8, %v9993_v7  ;;  %v10034_v46 = vmul.f32 %v12773_v8, %v9994_v63 }
0x1b0b   : > { %10077 = vst [vmem:[#allocation2 + $0x30] sm:$0xff] %v10069_v13  ;;  %10078 = vst [vmem:[#allocation2] sm:$0xff] %v10070_v36  ;;  %v10052_v50 = vmul.f32 %v10043_v39, %v10033_v23  ;;  %v10053_v0 = vmul.f32 %v10047_v32, %v10034_v46 }
0x1b0c   : > { %v12775_v18 = vpop.eup %12774 }
0x1b0d   : > { %v10071_v59 = vadd.f32 %v10062_v48, %v10052_v50  ;;  %v10072_v31 = vadd.f32 %v10066_v41, %v10053_v0  ;;  %v10035_v26 = vmul.f32 %v12775_v18, %v9995_v52  ;;  %v10036_v43 = vmul.f32 %v12775_v18, %v9996_v1 }
0x1b0f   : > { %10079 = vst [vmem:[#allocation2 + $0x18] sm:$0xff] %v10071_v59  ;;  %10080 = vst [vmem:[#allocation2 + $0x10] sm:$0xff] %v10072_v31  ;;  %v10054_v33 = vmul.f32 %v10043_v39, %v10035_v26  ;;  %v10055_v60 = vmul.f32 %v10047_v32, %v10036_v43 }
0x1b10   : > { %v12777_v47 = vpop.eup %12776 }
0x1b11   : > { %v10073_v29 = vadd.f32 %v10062_v48, %v10054_v33  ;;  %v10074_v9 = vadd.f32 %v10066_v41, %v10055_v60  ;;  %v10037_v2 = vmul.f32 %v12777_v47, %v9997_v34  ;;  %v10038_v37 = vmul.f32 %v12777_v47, %v9998_v16 }
0x1b13   : > { %10081 = vst [vmem:[#allocation2 + $0x8] sm:$0xff] %v10073_v29  ;;  %10082 = vst [vmem:[#allocation2 + $0x20] sm:$0xff] %v10074_v9  ;;  %v10056_v7 = vmul.f32 %v10043_v39, %v10037_v2  ;;  %v10057_v63 = vmul.f32 %v10047_v32, %v10038_v37  ;;  %10088 = sbr.rel (%p11294_p10) target bundleno = 7107 (0x1bc3), region = 144 }
0x1b15   : > { %v10075_v14 = vadd.f32 %v10062_v48, %v10056_v7  ;;  %v10076_v54 = vadd.f32 %v10066_v41, %v10057_v63 }
0x1b17   : > { %10083 = vst [vmem:[#allocation2 + $0x28] sm:$0xff] %v10075_v14  ;;  %10084 = vst [vmem:[#allocation2 + $0x38] sm:$0xff] %v10076_v54 }
0x1b18   : > { %v10089_v51 = vrot.slane %v10069_v13, 4  ;;  %v10095_v55 = vrot.slane %v10070_v36, 4  ;;  %v10101_v28 = vrot.slane %v10071_v59, 4  ;;  %v10107_v52 = vrot.slane %v10072_v31, 4  ;;  %v10146_v18 = vld [vmem:[%s15881_s13] sm:$0xff] }
0x1b19   : > { %v10113_v1 = vrot.slane %v10073_v29, 4  ;;  %v10119_v61 = vrot.slane %v10074_v9, 4  ;;  %v10125_v38 = vrot.slane %v10075_v14, 4  ;;  %v10131_v4 = vrot.slane %v10076_v54, 4  ;;  %v10171_v33 = vld [vmem:[#allocation23] sm:$0x3] }
0x1b1a   : > { %v10090_v40 = vadd.f32 %v10089_v51, %v10069_v13  ;;  %v10096_v49 = vadd.f32 %v10095_v55, %v10070_v36  ;;  %v10102_v34 = vadd.f32 %v10101_v28, %v10071_v59  ;;  %v10108_v16 = vadd.f32 %v10107_v52, %v10072_v31  ;;  %v15883_v55 = vld [vmem:[#allocation39_spill] sm:$0xff] }
0x1b1b   : > { %v10114_v10 = vadd.f32 %v10113_v1, %v10073_v29  ;;  %v10120_v25 = vadd.f32 %v10119_v61, %v10074_v9  ;;  %v10126_v5 = vadd.f32 %v10125_v38, %v10075_v14  ;;  %v10132_v22 = vadd.f32 %v10131_v4, %v10076_v54  ;;  %v15882_v54 = vld [vmem:[#allocation38_spill] sm:$0xff] }
0x1b1c   : > { %v10091_v30 = vrot.slane %v10090_v40, 2  ;;  %v10097_v19 = vrot.slane %v10096_v49, 2  ;;  %v10103_v27 = vrot.slane %v10102_v34, 2  ;;  %v10109_v56 = vrot.slane %v10108_v16, 2 }
0x1b1d   : > { %v10115_v6 = vrot.slane %v10114_v10, 2  ;;  %v10121_v35 = vrot.slane %v10120_v25, 2  ;;  %v10127_v15 = vrot.slane %v10126_v5, 2  ;;  %v10133_v45 = vrot.slane %v10132_v22, 2 }
0x1b1e   : > { %v10092_v17 = vadd.f32 %v10091_v30, %v10090_v40  ;;  %v10098_v58 = vadd.f32 %v10097_v19, %v10096_v49  ;;  %v10104_v21 = vadd.f32 %v10103_v27, %v10102_v34  ;;  %v10110_v20 = vadd.f32 %v10109_v56, %v10108_v16 }
0x1b1f   : > { %v10116_v62 = vadd.f32 %v10115_v6, %v10114_v10  ;;  %v10122_v3 = vadd.f32 %v10121_v35, %v10120_v25  ;;  %v10128_v53 = vadd.f32 %v10127_v15, %v10126_v5  ;;  %v10134_v39 = vadd.f32 %v10133_v45, %v10132_v22 }
0x1b20   : > { %v10093_v24 = vrot.slane %v10092_v17, 1  ;;  %v10099_v32 = vrot.slane %v10098_v58, 1  ;;  %v10105_v42 = vrot.slane %v10104_v21, 1  ;;  %v10111_v48 = vrot.slane %v10110_v20, 1 }
0x1b21   : > { %v10117_v41 = vrot.slane %v10116_v62, 1  ;;  %v10123_v11 = vrot.slane %v10122_v3, 1  ;;  %v10129_v12 = vrot.slane %v10128_v53, 1  ;;  %v10135_v57 = vrot.slane %v10134_v39, 1 }
0x1b22   : > { %v10094_v44 = vadd.f32 %v10093_v24, %v10092_v17  ;;  %v10100_v8 = vadd.f32 %v10099_v32, %v10098_v58  ;;  %v10106_v13 = vadd.f32 %v10105_v42, %v10104_v21  ;;  %v10112_v36 = vadd.f32 %v10111_v48, %v10110_v20 }
0x1b23   : > { %v10118_v23 = vadd.f32 %v10117_v41, %v10116_v62  ;;  %v10124_v46 = vadd.f32 %v10123_v11, %v10122_v3  ;;  %v10130_v50 = vadd.f32 %v10129_v12, %v10128_v53  ;;  %v10136_v0 = vadd.f32 %v10135_v57, %v10134_v39  ;;  %v11295_v41 = vld [vmem:[#allocation3] ss:$0 sm:$0xff] }
0x1b24   : > { %v10138_v59 = vmul.f32 0.125, %v10094_v44  ;;  %v10139_v31 = vmul.f32 0.125, %v10100_v8  ;;  %v10140_v26 = vmul.f32 0.125, %v10106_v13  ;;  %v10141_v43 = vmul.f32 0.125, %v10112_v36 }
0x1b25   : > { %v10142_v60 = vmul.f32 0.125, %v10118_v23  ;;  %v10143_v47 = vmul.f32 0.125, %v10124_v46  ;;  %v10144_v29 = vmul.f32 0.125, %v10130_v50  ;;  %v10145_v9 = vmul.f32 0.125, %v10136_v0 }
0x1b26   : > { %v10148_v2 = vcombine.high %v10146_v18, %v10146_v18  ;;  %v10149_v37 = vrot.slane %v10146_v18, 1  ;;  %v10151_v7 = vrot.slane %v10146_v18, 2  ;;  %v10153_v63 = vrot.slane %v10146_v18, 3 }
0x1b27   : > { %v10163_v14 = vadd.f32 %v10146_v18, %v10138_v59  ;;  %v10176_v51 = vrot.slane %v10171_v33, %v15882_v54  ;;  %v10180_v28 = vrot.slane %v10171_v33, %v15883_v55  ;;  %vm10200_vm6 = vcmask 1041409  }
0x1b28   : > { %v10150_v52 = vrot.slane %v10148_v2, 1  ;;  %v10152_v1 = vrot.slane %v10148_v2, 2  ;;  %v10154_v61 = vrot.slane %v10148_v2, 3  ;;  %v10164_v38 = vadd.f32 %v10148_v2, %v10139_v31 }
0x1b29   : > { %v10165_v4 = vadd.f32 %v10149_v37, %v10140_v26  ;;  %v10167_v40 = vadd.f32 %v10151_v7, %v10142_v60  ;;  %v10169_v49 = vadd.f32 %v10153_v63, %v10144_v29  ;;  %v10183_v25 = vmul.f32 %v10176_v51, %v10163_v14 }
0x1b2a   : > { %v10166_v34 = vadd.f32 %v10150_v52, %v10141_v43  ;;  %v10168_v16 = vadd.f32 %v10152_v1, %v10143_v47  ;;  %v10170_v10 = vadd.f32 %v10154_v61, %v10145_v9  ;;  %v10184_v19 = vmul.f32 %v10180_v28, %v10164_v38 }
0x1b2b   : > { %v10185_v5 = vmul.f32 %v10176_v51, %v10165_v4  ;;  %v10187_v22 = vmul.f32 %v10176_v51, %v10167_v40  ;;  %v10189_v30 = vmul.f32 %v10176_v51, %v10169_v49  ;;  %vm10203_vm7 = vcmask 1042434  }
0x1b2c   : > { %v10186_v27 = vmul.f32 %v10180_v28, %v10166_v34  ;;  %v10188_v56 = vmul.f32 %v10180_v28, %v10168_v16  ;;  %v10190_v6 = vmul.f32 %v10180_v28, %v10170_v10  ;;  %vm10206_vm8 = vcmask 1043459  }
0x1b2d   : > { %v10199_v35 = vrot.slane %v10185_v5, 7  ;;  %v10202_v15 = vrot.slane %v10187_v22, 6  ;;  %v10205_v45 = vrot.slane %v10189_v30, 5  ;;  %vm10229_vm9 = vcmask 3072  }
0x1b2e   : > { %v10208_v17 = vrot.slane %v10186_v27, 7  ;;  %v10210_v58 = vrot.slane %v10188_v56, 6  ;;  %v10212_v21 = vrot.slane %v10190_v6, 5 }
0x1b2f   : > { %v10201_v20 = vsel %vm10200_vm6, %v10199_v35, %v10183_v25 }
0x1b30   : > { %v10204_v62 = vsel %vm10203_vm7, %v10202_v15, %v10201_v20  ;;  %v10209_v3 = vsel %vm10200_vm6, %v10208_v17, %v10184_v19 }
0x1b31   : > { %v10207_v53 = vsel %vm10206_vm8, %v10205_v45, %v10204_v62  ;;  %v10211_v39 = vsel %vm10203_vm7, %v10210_v58, %v10209_v3 }
0x1b32   : > { %v10213_v24 = vsel %vm10206_vm8, %v10212_v21, %v10211_v39  ;;  %v10216_v32 = vsel %vm2055_vm3, %v10207_v53, 0.0 }
0x1b33   : > { %v10217_v42 = vsel %vm2055_vm3, %v10213_v24, 0.0 }
0x1b34   : > { %v10218_v48 = vadd.f32 %v10217_v42, %v10216_v32 }
0x1b36   : > { %10219 = vadd.xlane.f32.xlu0 %v10218_v48 }
0x1bbf   : > { %v10220_v11 = vpop.xlane.xlu0 %10219 }
0x1bc0   : > { %v10228_v12 = vadd.f32 %v11295_v41, %v10220_v11 }
0x1bc2   : > { %10230 = vst.msk [vmem:[%s15884_s30] sm:$0xf] %vm10229_vm9, %v10228_v12 }
0x1bc3 PF: > { %s15885_s25 = sld [smem:[#allocation35_spill]] }
0x1bc4   : > { %s15886_s23 = sld [smem:[#allocation32_spill]] }
0x1bc5   : > { %s15887_s24 = sld [smem:[#allocation33_spill]] }
0x1bc6   : > { %s15888_s15 = sld [smem:[#allocation36_spill]] }
0x1bc9   : > { %p46_p12 = scmp.ge.s32.totalorder %s15885_s25, 4  }
0x1bcb   :  { %48 = sbr.rel (!%p46_p12) target bundleno = 23 (0x17), region = 265 }
0x1bd0   :  { %10242 = vsyncpa [#allocation5], 1 }
0x1bd1   :  { %10244 = vsyncpa [#allocation5 + $0x1], 1 }
0x1bd2   :  { %10245 = vsyncpa [#allocation7], 1 }
0x1bd3   :  { %10247 = vsyncpa [#allocation7 + $0x1], 1 }
0x1bd4   :  { %10248 = vsyncpa [#allocation10], 1 }
0x1bd5   :  { %10250 = vsyncpa [#allocation10 + $0x1], 1 }
0x1bd6   :  { %10251 = vsyncpa [#allocation13], 1 }
0x1bd7   :  { %10253 = vsyncpa [#allocation13 + $0x1], 1 }
0x1bd8   :  { %10254 = vsyncpa [#allocation16], 1 }
0x1bd9   :  { %10256 = vsyncpa [#allocation16 + $0x1], 1 }
0x1bda   :  { %10257 = vsyncpa [#allocation19], 1 }
0x1bdb   :  { %10259 = vsyncpa [#allocation19 + $0x1], 1 }
0x1bdc   :  { %10260 = vsyncpa [#allocation22], 1 }
0x1bdd   :  { %10262 = vsyncpa [#allocation22 + $0x1], 1 }

</bundles_post_ra>
